<compile_context>
chip_gen: v5e
topology: v5e:2x2
jax: 0.10.0
libtpu: 0.0.40
codegen_flags: <defaults>
</compile_context>

<pallas_src>
import jax
import jax.numpy as jnp
from jax.experimental import pallas as pl
from jax.experimental.pallas import tpu as pltpu

# ---- module constants (match the PyTorch spec) ----
HIDDEN = 128      # hidden_size
INPUT = 270       # input_size
IN_PAD = 384      # input_size padded to a multiple of 128
HEADS = 16        # num_heads
LAYERS = 8        # num_layers (LSTM stack)
TIME = 4          # time_length == sequence_length (required by fc1)
BATCH = 8         # small batch; 8 fills the vreg sublanes
DIM_FF = 2048     # nn.TransformerEncoderLayer default dim_feedforward
FF_CHUNK = 512    # DIM_FF processed in chunks to bound live vregs
OUT = 5           # fc1 output features
OUT_PAD = 128     # lane-dense padded fc1 output width
EPS = 1e-5        # LayerNorm eps (PyTorch default)


def _layernorm(x, gamma, beta):
    mu = jnp.mean(x, axis=-1, keepdims=True)
    var = jnp.mean(jnp.square(x - mu), axis=-1, keepdims=True)
    return (x - mu) * jax.lax.rsqrt(var + EPS) * gamma + beta


def _full_spec(shape):
    zeros = (0,) * len(shape)
    return pl.BlockSpec(tuple(shape), lambda *_: zeros)


def _layer_spec(shape):
    tail = (0,) * (len(shape) - 1)
    return pl.BlockSpec((1,) + tuple(shape[1:]), lambda l: (l,) + tail)


# --------------------------- fused kernel (grid over LSTM layers) ---------------------------
def fused_kernel(x_ref, wih0_ref, wihr_ref, whh_ref, blstm_ref,
                 wqkv_ref, bqkv_ref, wo_ref, bo_ref,
                 g1_ref, be1_ref, w1_ref, b1_ref, w2_ref, b2_ref,
                 g2_ref, be2_ref, pool_ref, poolT_ref,
                 wfc_ref, bfc_ref, out_ref, act_ref, gx_ref):
    l = pl.program_id(0)
    last = pl.num_programs(0) - 1

    T = wfc_ref.shape[0]
    TB, H = act_ref.shape            # (T*B, H); t-major rows: row t*B+b = (t, b)
    B = TB // T

    # -------- LSTM layer l: input projection hoisted out of the time loop --------
    @pl.when(l == 0)
    def _():
        gx_ref[...] = jnp.dot(x_ref[...], wih0_ref[...],
                              preferred_element_type=jnp.float32) + blstm_ref[0]

    @pl.when(l > 0)
    def _():
        gx_ref[...] = jnp.dot(act_ref[...].astype(jnp.bfloat16), wihr_ref[0],
                              preferred_element_type=jnp.float32) + blstm_ref[0]

    # -------- serial recurrence: only h @ W_hh per step; h stored straight into act --------
    w_hh = whh_ref[0]                                        # (H, 4H) bf16
    h = jnp.zeros((B, H), jnp.float32)
    c = jnp.zeros((B, H), jnp.float32)
    for t in range(T):                                       # static unroll (T=4)
        gates = gx_ref[t * B:(t + 1) * B, :] + jnp.dot(
            h.astype(jnp.bfloat16), w_hh, preferred_element_type=jnp.float32)
        i = jax.nn.sigmoid(gates[:, 0 * H:1 * H])            # lane-tile aligned slices
        f = jax.nn.sigmoid(gates[:, 1 * H:2 * H])
        g = jnp.tanh(gates[:, 2 * H:3 * H])
        o = jax.nn.sigmoid(gates[:, 3 * H:4 * H])
        c = f * c + i * g
        h = o * jnp.tanh(c)
        act_ref[t * B:(t + 1) * B, :] = h                    # no per-layer concatenate

    # -------- transformer encoder layer + flatten + fc1: only on the last grid step --------
    @pl.when(l == last)
    def _():
        nH = pool_ref.shape[1]
        x_tb = act_ref[...]                                  # (TB, H) f32
        x_bf = x_tb.astype(jnp.bfloat16)

        # qkv in-projection (attention scale + bias already folded at prepare time)
        qkv = jnp.dot(x_bf, wqkv_ref[...],
                      preferred_element_type=jnp.float32) + bqkv_ref[...]   # (TB, 3H)
        q = qkv[:, 0 * H:1 * H]
        k = qkv[:, 1 * H:2 * H]
        v = qkv[:, 2 * H:3 * H]

        # packed scores: row (j, i, b) -> one (T*TB, H) @ (H, nH) matmul for all key steps
        q4 = jnp.broadcast_to(q.reshape(1, T, B, H), (T, T, B, H)).reshape(T * TB, H)
        k4 = jnp.broadcast_to(k.reshape(T, 1, B, H), (T, T, B, H)).reshape(T * TB, H)
        s_all = jnp.dot(q4 * k4, pool_ref[...],
                        preferred_element_type=jnp.float32)                 # (T*TB, nH)

        # numerically stable softmax over the key axis (block axis of s_all)
        m = s_all[0:TB]
        for j in range(1, T):
            m = jnp.maximum(m, s_all[j * TB:(j + 1) * TB])
        m4 = jnp.broadcast_to(m.reshape(1, TB, nH), (T, TB, nH)).reshape(T * TB, nH)
        e_all = jnp.exp(s_all - m4)
        denom = e_all[0:TB]
        for j in range(1, T):
            denom = denom + e_all[j * TB:(j + 1) * TB]
        inv = pl.reciprocal(denom, approx=True)
        inv4 = jnp.broadcast_to(inv.reshape(1, TB, nH), (T, TB, nH)).reshape(T * TB, nH)
        p_all = e_all * inv4                                                # (T*TB, nH)

        # context: one (T*TB, nH) @ (nH, H) matmul, elementwise with broadcast V, sum blocks
        v4 = jnp.broadcast_to(v.reshape(T, 1, B, H), (T, T, B, H)).reshape(T * TB, H)
        pv = jnp.dot(p_all, poolT_ref[...],
                     preferred_element_type=jnp.float32) * v4               # (T*TB, H)
        ctx = pv[0:TB]
        for j in range(1, T):
            ctx = ctx + pv[j * TB:(j + 1) * TB]
        attn = jnp.dot(ctx.astype(jnp.bfloat16), wo_ref[...],
                       preferred_element_type=jnp.float32) + bo_ref[...]

        # post-norm residual blocks (norm_first=False, activation=relu, dropout=identity)
        x1 = _layernorm(x_tb + attn, g1_ref[...], be1_ref[...])

        # feed-forward chunked over DIM_FF: never materialize the (TB, 2048) intermediate
        x1_bf = x1.astype(jnp.bfloat16)
        dff = w1_ref.shape[1]
        ff = jnp.zeros((TB, H), jnp.float32)
        for cidx in range(dff // FF_CHUNK):
            lo, hi = cidx * FF_CHUNK, (cidx + 1) * FF_CHUNK
            h1 = jnp.dot(x1_bf, w1_ref[:, lo:hi], preferred_element_type=jnp.float32)
            h1 = jnp.maximum(h1 + b1_ref[:, lo:hi], 0.0)
            ff = ff + jnp.dot(h1.astype(jnp.bfloat16), w2_ref[lo:hi, :],
                              preferred_element_type=jnp.float32)
        ff = ff + b2_ref[...]
        x2 = _layernorm(x1 + ff, g2_ref[...], be2_ref[...])

        # torch.flatten(x, 1) + fc1, as a sum of per-timestep matmuls; lane-dense store
        x2_bf = x2.astype(jnp.bfloat16)
        acc = jnp.zeros((B, out_ref.shape[1]), jnp.float32)
        for t in range(T):
            acc = acc + jnp.dot(x2_bf[t * B:(t + 1) * B, :], wfc_ref[t],
                                preferred_element_type=jnp.float32)
        out_ref[...] = acc + bfc_ref[...]


# --------------------------- one-time parameter preparation ---------------------------
def prepare_params(params):
    """Pre-transpose / stack / pad / bf16-cast weights into kernel layouts (done once)."""
    hd = HIDDEN // HEADS
    lstm = params['lstm']

    wih0 = jnp.transpose(lstm[0][0])                                   # (INPUT, 4H)
    wih0 = jnp.pad(wih0, ((0, IN_PAD - INPUT), (0, 0))).astype(jnp.bfloat16)

    # wihr[0] is a zero dummy block (layer 0 uses wih0); layers 1..L-1 at indices 1..L-1.
    wihr = jnp.stack([jnp.zeros((HIDDEN, 4 * HIDDEN), jnp.float32)]
                     + [jnp.transpose(w_ih) for (w_ih, _, _, _) in lstm[1:]])
    wihr = wihr.astype(jnp.bfloat16)                                   # (L, H, 4H)
    whh = jnp.stack([jnp.transpose(w_hh) for (_, w_hh, _, _) in lstm]).astype(jnp.bfloat16)
    blstm = jnp.stack([(b_ih + b_hh).reshape(1, -1)
                       for (_, _, b_ih, b_hh) in lstm])                # (L, 1, 4H) f32

    tp = params['tr']
    scale = 1.0 / jnp.sqrt(jnp.float32(hd))
    in_w = tp['in_proj_w'].at[:HIDDEN].multiply(scale)   # fold attention scale into Q rows
    in_b = tp['in_proj_b'].at[:HIDDEN].multiply(scale)

    pool = jnp.repeat(jnp.eye(HEADS, dtype=jnp.float32), hd, axis=0)   # (H, nH) 0/1

    wfc = jnp.transpose(tp['fc_w']).reshape(TIME, HIDDEN, OUT)
    wfc = jnp.pad(wfc, ((0, 0), (0, 0), (0, OUT_PAD - OUT))).astype(jnp.bfloat16)
    bfc = jnp.pad(tp['fc_b'], (0, OUT_PAD - OUT)).reshape(1, OUT_PAD)

    return dict(
        wih0=wih0, wihr=wihr, whh=whh, blstm=blstm,
        wqkv=jnp.transpose(in_w).astype(jnp.bfloat16), bqkv=in_b.reshape(1, -1),
        wo=jnp.transpose(tp['out_proj_w']).astype(jnp.bfloat16),
        bo=tp['out_proj_b'].reshape(1, -1),
        ln1_g=tp['ln1_g'].reshape(1, -1), ln1_b=tp['ln1_b'].reshape(1, -1),
        w1=jnp.transpose(tp['w1']).astype(jnp.bfloat16), b1=tp['b1'].reshape(1, -1),
        w2=jnp.transpose(tp['w2']).astype(jnp.bfloat16), b2=tp['b2'].reshape(1, -1),
        ln2_g=tp['ln2_g'].reshape(1, -1), ln2_b=tp['ln2_b'].reshape(1, -1),
        pool=pool, poolT=jnp.transpose(pool),
        wfc=wfc, bfc=bfc,
    )


# ------------------------------ full forward (single pallas_call) ------------------------------
def transformer_lstm_forward(x, kp):
    B, T, Din = x.shape
    # t-major row layout: row (t*B + b) = timestep t of batch b (contiguous per-step blocks)
    x2d = jnp.transpose(x.astype(jnp.float32), (1, 0, 2)).reshape(T * B, Din)
    x2d = jnp.pad(x2d, ((0, 0), (0, IN_PAD - Din))).astype(jnp.bfloat16)

    args = (x2d, kp['wih0'], kp['wihr'], kp['whh'], kp['blstm'],
            kp['wqkv'], kp['bqkv'], kp['wo'], kp['bo'],
            kp['ln1_g'], kp['ln1_b'], kp['w1'], kp['b1'], kp['w2'], kp['b2'],
            kp['ln2_g'], kp['ln2_b'], kp['pool'], kp['poolT'],
            kp['wfc'], kp['bfc'])
    in_specs = [
        _full_spec(x2d.shape), _full_spec(kp['wih0'].shape),
        _layer_spec(kp['wihr'].shape), _layer_spec(kp['whh'].shape),
        _layer_spec(kp['blstm'].shape),
        _full_spec(kp['wqkv'].shape), _full_spec(kp['bqkv'].shape),
        _full_spec(kp['wo'].shape), _full_spec(kp['bo'].shape),
        _full_spec(kp['ln1_g'].shape), _full_spec(kp['ln1_b'].shape),
        _full_spec(kp['w1'].shape), _full_spec(kp['b1'].shape),
        _full_spec(kp['w2'].shape), _full_spec(kp['b2'].shape),
        _full_spec(kp['ln2_g'].shape), _full_spec(kp['ln2_b'].shape),
        _full_spec(kp['pool'].shape), _full_spec(kp['poolT'].shape),
        _full_spec(kp['wfc'].shape), _full_spec(kp['bfc'].shape),
    ]

    out = pl.pallas_call(
        fused_kernel,
        out_shape=jax.ShapeDtypeStruct((B, OUT_PAD), jnp.float32),
        grid=(LAYERS,),
        in_specs=in_specs,
        out_specs=pl.BlockSpec((B, OUT_PAD), lambda l: (0, 0)),
        scratch_shapes=[pltpu.VMEM((T * B, HIDDEN), jnp.float32),      # layer activations
                        pltpu.VMEM((T * B, 4 * HIDDEN), jnp.float32)], # hoisted gate preacts
        compiler_params=pltpu.CompilerParams(
            dimension_semantics=("arbitrary",),
            vmem_limit_bytes=16 * 1024 * 1024),
    )(*args)
    return out[:, :OUT]


# ------------------------- pure-JAX reference (correctness check, f32) -------------------------
def ref_forward(x, params):
    h = x.astype(jnp.float32)
    for (w_ih, w_hh, b_ih, b_hh) in params['lstm']:
        B, T, _ = h.shape
        H = w_hh.shape[1]
        hs = jnp.zeros((B, H), jnp.float32)
        cs = jnp.zeros((B, H), jnp.float32)
        outs = []
        for t in range(T):
            g = h[:, t] @ w_ih.T + b_ih + hs @ w_hh.T + b_hh
            i, f, gg, o = jnp.split(g, 4, axis=-1)
            cs = jax.nn.sigmoid(f) * cs + jax.nn.sigmoid(i) * jnp.tanh(gg)
            hs = jax.nn.sigmoid(o) * jnp.tanh(cs)
            outs.append(hs)
        h = jnp.stack(outs, axis=1)

    tp = params['tr']
    B, T, D = h.shape
    hd = D // HEADS
    x2d = h.reshape(B * T, D)
    qkv = x2d @ tp['in_proj_w'].T + tp['in_proj_b']
    q, k, v = [a.reshape(B, T, HEADS, hd).transpose(0, 2, 1, 3)
               for a in jnp.split(qkv, 3, axis=-1)]
    s = jnp.einsum('bhqd,bhkd->bhqk', q, k) / jnp.sqrt(jnp.float32(hd))
    p = jax.nn.softmax(s, axis=-1)
    attn = jnp.einsum('bhqk,bhkd->bhqd', p, v).transpose(0, 2, 1, 3).reshape(B * T, D)
    attn = attn @ tp['out_proj_w'].T + tp['out_proj_b']

    def ln(z, g, b):
        mu = z.mean(-1, keepdims=True)
        var = ((z - mu) ** 2).mean(-1, keepdims=True)
        return (z - mu) / jnp.sqrt(var + EPS) * g + b

    x1 = ln(x2d + attn, tp['ln1_g'], tp['ln1_b'])
    ff = jnp.maximum(x1 @ tp['w1'].T + tp['b1'], 0.0) @ tp['w2'].T + tp['b2']
    x2 = ln(x1 + ff, tp['ln2_g'], tp['ln2_b'])
    return x2.reshape(B, T * D) @ tp['fc_w'].T + tp['fc_b']


# ------------------------------ parameter init ------------------------------
def init_params(key):
    keys = iter(jax.random.split(key, 64))

    def rnd(shape, scale=0.1):
        return scale * jax.random.normal(next(keys), shape, jnp.float32)

    lstm = []
    din = INPUT
    for _ in range(LAYERS):
        lstm.append((rnd((4 * HIDDEN, din)), rnd((4 * HIDDEN, HIDDEN)),
                     rnd((4 * HIDDEN,)), rnd((4 * HIDDEN,))))
        din = HIDDEN

    tr = dict(
        in_proj_w=rnd((3 * HIDDEN, HIDDEN)), in_proj_b=rnd((3 * HIDDEN,)),
        out_proj_w=rnd((HIDDEN, HIDDEN)), out_proj_b=rnd((HIDDEN,)),
        ln1_g=jnp.ones((HIDDEN,), jnp.float32), ln1_b=jnp.zeros((HIDDEN,), jnp.float32),
        w1=rnd((DIM_FF, HIDDEN)), b1=rnd((DIM_FF,)),
        w2=rnd((HIDDEN, DIM_FF)), b2=rnd((HIDDEN,)),
        ln2_g=jnp.ones((HIDDEN,), jnp.float32), ln2_b=jnp.zeros((HIDDEN,), jnp.float32),
        fc_w=rnd((OUT, HIDDEN * TIME)), fc_b=rnd((OUT,)),
    )
    return {'lstm': lstm, 'tr': tr}


if __name__ == "__main__":
    key = jax.random.PRNGKey(0)
    pkey, xkey = jax.random.split(key)
    params = init_params(pkey)
    kparams = prepare_params(params)          # one-time layout prep (transposes, bf16, padding)
    x = jax.random.normal(xkey, (BATCH, TIME, INPUT), jnp.float32)

    out = jax.block_until_ready(transformer_lstm_forward(x, kparams))
    ref = jax.block_until_ready(ref_forward(x, params))

    assert out.shape == (BATCH, OUT), out.shape
    assert bool(jnp.all(jnp.isfinite(out)))
    # bf16 weight storage + approx reciprocal: relaxed vs. the f32 reference.
    assert jnp.allclose(out, ref, atol=1e-1, rtol=1e-1), (out, ref)

    print("KERNEL_OK")
</pallas_src>

<mosaic_0001>
module attributes {stable_mosaic.version = 11 : i64} {
  func.func @fused_kernel(%arg0: i32, %arg1: memref<32x384xbf16, #tpu.memory_space<vmem>>, %arg2: memref<384x512xbf16, #tpu.memory_space<vmem>>, %arg3: memref<1x128x512xbf16, #tpu.memory_space<vmem>>, %arg4: memref<1x128x512xbf16, #tpu.memory_space<vmem>>, %arg5: memref<1x1x512xf32, #tpu.memory_space<vmem>>, %arg6: memref<128x384xbf16, #tpu.memory_space<vmem>>, %arg7: memref<1x384xf32, #tpu.memory_space<vmem>>, %arg8: memref<128x128xbf16, #tpu.memory_space<vmem>>, %arg9: memref<1x128xf32, #tpu.memory_space<vmem>>, %arg10: memref<1x128xf32, #tpu.memory_space<vmem>>, %arg11: memref<1x128xf32, #tpu.memory_space<vmem>>, %arg12: memref<128x2048xbf16, #tpu.memory_space<vmem>>, %arg13: memref<1x2048xf32, #tpu.memory_space<vmem>>, %arg14: memref<2048x128xbf16, #tpu.memory_space<vmem>>, %arg15: memref<1x128xf32, #tpu.memory_space<vmem>>, %arg16: memref<1x128xf32, #tpu.memory_space<vmem>>, %arg17: memref<1x128xf32, #tpu.memory_space<vmem>>, %arg18: memref<128x16xf32, #tpu.memory_space<vmem>>, %arg19: memref<16x128xf32, #tpu.memory_space<vmem>>, %arg20: memref<4x128x128xbf16, #tpu.memory_space<vmem>>, %arg21: memref<1x128xf32, #tpu.memory_space<vmem>>, %arg22: memref<8x128xf32, #tpu.memory_space<vmem>>, %arg23: memref<32x128xf32, #tpu.memory_space<vmem>>, %arg24: memref<32x512xf32, #tpu.memory_space<vmem>>) attributes {dimension_semantics = [#tpu.dimension_semantics<arbitrary>], iteration_bounds = array<i64: 8>, scalar_prefetch = 0 : i64, scratch_operands = 2 : i64, tpu.core_type = #tpu.core_type<tc>, window_params = [{pipeline_mode = #tpu.pipeline_mode<synchronous>, transform_indices = @transform_0, window_bounds = array<i64: 32, 384>}, {pipeline_mode = #tpu.pipeline_mode<synchronous>, transform_indices = @transform_1, window_bounds = array<i64: 384, 512>}, {transform_indices = @transform_2, window_bounds = array<i64: 1, 128, 512>}, {transform_indices = @transform_3, window_bounds = array<i64: 1, 128, 512>}, {transform_indices = @transform_4, window_bounds = array<i64: 1, 1, 512>}, {pipeline_mode = #tpu.pipeline_mode<synchronous>, transform_indices = @transform_5, window_bounds = array<i64: 128, 384>}, {pipeline_mode = #tpu.pipeline_mode<synchronous>, transform_indices = @transform_6, window_bounds = array<i64: 1, 384>}, {pipeline_mode = #tpu.pipeline_mode<synchronous>, transform_indices = @transform_7, window_bounds = array<i64: 128, 128>}, {pipeline_mode = #tpu.pipeline_mode<synchronous>, transform_indices = @transform_8, window_bounds = array<i64: 1, 128>}, {pipeline_mode = #tpu.pipeline_mode<synchronous>, transform_indices = @transform_9, window_bounds = array<i64: 1, 128>}, {pipeline_mode = #tpu.pipeline_mode<synchronous>, transform_indices = @transform_10, window_bounds = array<i64: 1, 128>}, {pipeline_mode = #tpu.pipeline_mode<synchronous>, transform_indices = @transform_11, window_bounds = array<i64: 128, 2048>}, {pipeline_mode = #tpu.pipeline_mode<synchronous>, transform_indices = @transform_12, window_bounds = array<i64: 1, 2048>}, {pipeline_mode = #tpu.pipeline_mode<synchronous>, transform_indices = @transform_13, window_bounds = array<i64: 2048, 128>}, {pipeline_mode = #tpu.pipeline_mode<synchronous>, transform_indices = @transform_14, window_bounds = array<i64: 1, 128>}, {pipeline_mode = #tpu.pipeline_mode<synchronous>, transform_indices = @transform_15, window_bounds = array<i64: 1, 128>}, {pipeline_mode = #tpu.pipeline_mode<synchronous>, transform_indices = @transform_16, window_bounds = array<i64: 1, 128>}, {pipeline_mode = #tpu.pipeline_mode<synchronous>, transform_indices = @transform_17, window_bounds = array<i64: 128, 16>}, {pipeline_mode = #tpu.pipeline_mode<synchronous>, transform_indices = @transform_18, window_bounds = array<i64: 16, 128>}, {pipeline_mode = #tpu.pipeline_mode<synchronous>, transform_indices = @transform_19, window_bounds = array<i64: 4, 128, 128>}, {pipeline_mode = #tpu.pipeline_mode<synchronous>, transform_indices = @transform_20, window_bounds = array<i64: 1, 128>}, {pipeline_mode = #tpu.pipeline_mode<synchronous>, transform_indices = @transform_21, window_bounds = array<i64: 8, 128>}]} {
    %c0_i32 = arith.constant 0 : i32
    %0 = arith.cmpi eq, %arg0, %c0_i32 : i32
    %1 = arith.extui %0 : i1 to i32
    %c0_i32_0 = arith.constant 0 : i32
    %2 = arith.cmpi ne, %1, %c0_i32_0 : i32
    scf.if %2 {
      %c0_36 = arith.constant 0 : index
      %c0_37 = arith.constant 0 : index
      %133 = vector.load %arg1[%c0_36, %c0_37] : memref<32x384xbf16, #tpu.memory_space<vmem>>, vector<32x384xbf16>
      %c0_38 = arith.constant 0 : index
      %c0_39 = arith.constant 0 : index
      %134 = vector.load %arg2[%c0_38, %c0_39] : memref<384x512xbf16, #tpu.memory_space<vmem>>, vector<384x512xbf16>
      %cst_40 = arith.constant dense<0.000000e+00> : vector<32x512xf32>
      %135 = tpu.matmul %133, %134, %cst_40 {dimension_numbers = #tpu.dot_dimension_numbers<[1], [0], [0], [1], [0, 0, 1, 1], [], []>} : vector<32x384xbf16>, vector<384x512xbf16>, vector<32x512xf32> -> vector<32x512xf32>
      %c0_41 = arith.constant 0 : index
      %c0_42 = arith.constant 0 : index
      %c0_43 = arith.constant 0 : index
      %136 = vector.load %arg5[%c0_41, %c0_42, %c0_43] : memref<1x1x512xf32, #tpu.memory_space<vmem>>, vector<1x1x512xf32>
      %137 = vector.shape_cast %136 : vector<1x1x512xf32> to vector<1x512xf32>
      %138 = vector.broadcast %137 : vector<1x512xf32> to vector<32x512xf32>
      %139 = arith.addf %135, %138 : vector<32x512xf32>
      %c0_44 = arith.constant 0 : index
      %c0_45 = arith.constant 0 : index
      %140 = vector.load %arg24[%c0_44, %c0_45] : memref<32x512xf32, #tpu.memory_space<vmem>>, vector<32x512xf32>
      tpu.vector_store %arg24[%c0_44, %c0_45], %139 {strides = array<i32>} : memref<32x512xf32, #tpu.memory_space<vmem>>, vector<32x512xf32>,
    } else {
    }
    %c0_i32_1 = arith.constant 0 : i32
    %3 = arith.cmpi sgt, %arg0, %c0_i32_1 : i32
    %4 = arith.extui %3 : i1 to i32
    %c0_i32_2 = arith.constant 0 : i32
    %5 = arith.cmpi ne, %4, %c0_i32_2 : i32
    scf.if %5 {
      %c0_36 = arith.constant 0 : index
      %c0_37 = arith.constant 0 : index
      %133 = vector.load %arg23[%c0_36, %c0_37] : memref<32x128xf32, #tpu.memory_space<vmem>>, vector<32x128xf32>
      %134 = arith.truncf %133 : vector<32x128xf32> to vector<32x128xbf16>
      %c0_38 = arith.constant 0 : index
      %c0_39 = arith.constant 0 : index
      %c0_40 = arith.constant 0 : index
      %135 = vector.load %arg3[%c0_38, %c0_39, %c0_40] : memref<1x128x512xbf16, #tpu.memory_space<vmem>>, vector<1x128x512xbf16>
      %136 = vector.shape_cast %135 : vector<1x128x512xbf16> to vector<128x512xbf16>
      %cst_41 = arith.constant dense<0.000000e+00> : vector<32x512xf32>
      %137 = tpu.matmul %134, %136, %cst_41 {dimension_numbers = #tpu.dot_dimension_numbers<[1], [0], [0], [1], [0, 0, 1, 1], [], []>} : vector<32x128xbf16>, vector<128x512xbf16>, vector<32x512xf32> -> vector<32x512xf32>
      %c0_42 = arith.constant 0 : index
      %c0_43 = arith.constant 0 : index
      %c0_44 = arith.constant 0 : index
      %138 = vector.load %arg5[%c0_42, %c0_43, %c0_44] : memref<1x1x512xf32, #tpu.memory_space<vmem>>, vector<1x1x512xf32>
      %139 = vector.shape_cast %138 : vector<1x1x512xf32> to vector<1x512xf32>
      %140 = vector.broadcast %139 : vector<1x512xf32> to vector<32x512xf32>
      %141 = arith.addf %137, %140 : vector<32x512xf32>
      %c0_45 = arith.constant 0 : index
      %c0_46 = arith.constant 0 : index
      %142 = vector.load %arg24[%c0_45, %c0_46] : memref<32x512xf32, #tpu.memory_space<vmem>>, vector<32x512xf32>
      tpu.vector_store %arg24[%c0_45, %c0_46], %141 {strides = array<i32>} : memref<32x512xf32, #tpu.memory_space<vmem>>, vector<32x512xf32>,
    } else {
    }
    %c0 = arith.constant 0 : index
    %c0_3 = arith.constant 0 : index
    %c0_4 = arith.constant 0 : index
    %6 = vector.load %arg4[%c0, %c0_3, %c0_4] : memref<1x128x512xbf16, #tpu.memory_space<vmem>>, vector<1x128x512xbf16>
    %7 = vector.shape_cast %6 : vector<1x128x512xbf16> to vector<128x512xbf16>
    %cst = arith.constant 0.000000e+00 : f32
    %8 = vector.broadcast %cst : f32 to vector<8x128xf32>
    %cst_5 = arith.constant 0.000000e+00 : f32
    %9 = vector.broadcast %cst_5 : f32 to vector<8x128xf32>
    %c0_6 = arith.constant 0 : index
    %c0_7 = arith.constant 0 : index
    %10 = vector.load %arg24[%c0_6, %c0_7] : memref<32x512xf32, #tpu.memory_space<vmem>>, vector<8x512xf32>
    %11 = arith.truncf %8 : vector<8x128xf32> to vector<8x128xbf16>
    %cst_8 = arith.constant dense<0.000000e+00> : vector<8x512xf32>
    %12 = tpu.matmul %11, %7, %cst_8 {dimension_numbers = #tpu.dot_dimension_numbers<[1], [0], [0], [1], [0, 0, 1, 1], [], []>} : vector<8x128xbf16>, vector<128x512xbf16>, vector<8x512xf32> -> vector<8x512xf32>
    %13 = arith.addf %10, %12 : vector<8x512xf32>
    %14 = vector.extract_strided_slice %13 {offsets = [0, 0], sizes = [8, 128], strides = [1, 1]} : vector<8x512xf32> to vector<8x128xf32>
    %15 = arith.negf %14 : vector<8x128xf32>
    %16 = math.exp %15 : vector<8x128xf32>
    %cst_9 = arith.constant 1.000000e+00 : f32
    %17 = vector.broadcast %cst_9 : f32 to vector<8x128xf32>
    %18 = arith.addf %17, %16 : vector<8x128xf32>
    %19 = arith.divf %17, %18 : vector<8x128xf32>
    %20 = vector.extract_strided_slice %13 {offsets = [0, 128], sizes = [8, 128], strides = [1, 1]} : vector<8x512xf32> to vector<8x128xf32>
    %21 = arith.negf %20 : vector<8x128xf32>
    %22 = math.exp %21 : vector<8x128xf32>
    %cst_10 = arith.constant 1.000000e+00 : f32
    %23 = vector.broadcast %cst_10 : f32 to vector<8x128xf32>
    %24 = arith.addf %23, %22 : vector<8x128xf32>
    %25 = arith.divf %23, %24 : vector<8x128xf32>
    %26 = vector.extract_strided_slice %13 {offsets = [0, 256], sizes = [8, 128], strides = [1, 1]} : vector<8x512xf32> to vector<8x128xf32>
    %27 = math.tanh %26 : vector<8x128xf32>
    %28 = vector.extract_strided_slice %13 {offsets = [0, 384], sizes = [8, 128], strides = [1, 1]} : vector<8x512xf32> to vector<8x128xf32>
    %29 = arith.negf %28 : vector<8x128xf32>
    %30 = math.exp %29 : vector<8x128xf32>
    %cst_11 = arith.constant 1.000000e+00 : f32
    %31 = vector.broadcast %cst_11 : f32 to vector<8x128xf32>
    %32 = arith.addf %31, %30 : vector<8x128xf32>
    %33 = arith.divf %31, %32 : vector<8x128xf32>
    %34 = arith.mulf %25, %9 : vector<8x128xf32>
    %35 = arith.mulf %19, %27 : vector<8x128xf32>
    %36 = arith.addf %34, %35 : vector<8x128xf32>
    %37 = math.tanh %36 : vector<8x128xf32>
    %38 = arith.mulf %33, %37 : vector<8x128xf32>
    %c0_12 = arith.constant 0 : index
    %c0_13 = arith.constant 0 : index
    %39 = vector.load %arg23[%c0_12, %c0_13] : memref<32x128xf32, #tpu.memory_space<vmem>>, vector<8x128xf32>
    tpu.vector_store %arg23[%c0_12, %c0_13], %38 {strides = array<i32>} : memref<32x128xf32, #tpu.memory_space<vmem>>, vector<8x128xf32>,
    %c8 = arith.constant 8 : index
    %c0_14 = arith.constant 0 : index
    %40 = vector.load %arg24[%c8, %c0_14] : memref<32x512xf32, #tpu.memory_space<vmem>>, vector<8x512xf32>
    %41 = arith.truncf %38 : vector<8x128xf32> to vector<8x128xbf16>
    %cst_15 = arith.constant dense<0.000000e+00> : vector<8x512xf32>
    %42 = tpu.matmul %41, %7, %cst_15 {dimension_numbers = #tpu.dot_dimension_numbers<[1], [0], [0], [1], [0, 0, 1, 1], [], []>} : vector<8x128xbf16>, vector<128x512xbf16>, vector<8x512xf32> -> vector<8x512xf32>
    %43 = arith.addf %40, %42 : vector<8x512xf32>
    %44 = vector.extract_strided_slice %43 {offsets = [0, 0], sizes = [8, 128], strides = [1, 1]} : vector<8x512xf32> to vector<8x128xf32>
    %45 = arith.negf %44 : vector<8x128xf32>
    %46 = math.exp %45 : vector<8x128xf32>
    %cst_16 = arith.constant 1.000000e+00 : f32
    %47 = vector.broadcast %cst_16 : f32 to vector<8x128xf32>
    %48 = arith.addf %47, %46 : vector<8x128xf32>
    %49 = arith.divf %47, %48 : vector<8x128xf32>
    %50 = vector.extract_strided_slice %43 {offsets = [0, 128], sizes = [8, 128], strides = [1, 1]} : vector<8x512xf32> to vector<8x128xf32>
    %51 = arith.negf %50 : vector<8x128xf32>
    %52 = math.exp %51 : vector<8x128xf32>
    %cst_17 = arith.constant 1.000000e+00 : f32
    %53 = vector.broadcast %cst_17 : f32 to vector<8x128xf32>
    %54 = arith.addf %53, %52 : vector<8x128xf32>
    %55 = arith.divf %53, %54 : vector<8x128xf32>
    %56 = vector.extract_strided_slice %43 {offsets = [0, 256], sizes = [8, 128], strides = [1, 1]} : vector<8x512xf32> to vector<8x128xf32>
    %57 = math.tanh %56 : vector<8x128xf32>
    %58 = vector.extract_strided_slice %43 {offsets = [0, 384], sizes = [8, 128], strides = [1, 1]} : vector<8x512xf32> to vector<8x128xf32>
    %59 = arith.negf %58 : vector<8x128xf32>
    %60 = math.exp %59 : vector<8x128xf32>
    %cst_18 = arith.constant 1.000000e+00 : f32
    %61 = vector.broadcast %cst_18 : f32 to vector<8x128xf32>
    %62 = arith.addf %61, %60 : vector<8x128xf32>
    %63 = arith.divf %61, %62 : vector<8x128xf32>
    %64 = arith.mulf %55, %36 : vector<8x128xf32>
    %65 = arith.mulf %49, %57 : vector<8x128xf32>
    %66 = arith.addf %64, %65 : vector<8x128xf32>
    %67 = math.tanh %66 : vector<8x128xf32>
    %68 = arith.mulf %63, %67 : vector<8x128xf32>
    %c8_19 = arith.constant 8 : index
    %c0_20 = arith.constant 0 : index
    %69 = vector.load %arg23[%c8_19, %c0_20] : memref<32x128xf32, #tpu.memory_space<vmem>>, vector<8x128xf32>
    tpu.vector_store %arg23[%c8_19, %c0_20], %68 {strides = array<i32>} : memref<32x128xf32, #tpu.memory_space<vmem>>, vector<8x128xf32>,
    %c16 = arith.constant 16 : index
    %c0_21 = arith.constant 0 : index
    %70 = vector.load %arg24[%c16, %c0_21] : memref<32x512xf32, #tpu.memory_space<vmem>>, vector<8x512xf32>
    %71 = arith.truncf %68 : vector<8x128xf32> to vector<8x128xbf16>
    %cst_22 = arith.constant dense<0.000000e+00> : vector<8x512xf32>
    %72 = tpu.matmul %71, %7, %cst_22 {dimension_numbers = #tpu.dot_dimension_numbers<[1], [0], [0], [1], [0, 0, 1, 1], [], []>} : vector<8x128xbf16>, vector<128x512xbf16>, vector<8x512xf32> -> vector<8x512xf32>
    %73 = arith.addf %70, %72 : vector<8x512xf32>
    %74 = vector.extract_strided_slice %73 {offsets = [0, 0], sizes = [8, 128], strides = [1, 1]} : vector<8x512xf32> to vector<8x128xf32>
    %75 = arith.negf %74 : vector<8x128xf32>
    %76 = math.exp %75 : vector<8x128xf32>
    %cst_23 = arith.constant 1.000000e+00 : f32
    %77 = vector.broadcast %cst_23 : f32 to vector<8x128xf32>
    %78 = arith.addf %77, %76 : vector<8x128xf32>
    %79 = arith.divf %77, %78 : vector<8x128xf32>
    %80 = vector.extract_strided_slice %73 {offsets = [0, 128], sizes = [8, 128], strides = [1, 1]} : vector<8x512xf32> to vector<8x128xf32>
    %81 = arith.negf %80 : vector<8x128xf32>
    %82 = math.exp %81 : vector<8x128xf32>
    %cst_24 = arith.constant 1.000000e+00 : f32
    %83 = vector.broadcast %cst_24 : f32 to vector<8x128xf32>
    %84 = arith.addf %83, %82 : vector<8x128xf32>
    %85 = arith.divf %83, %84 : vector<8x128xf32>
    %86 = vector.extract_strided_slice %73 {offsets = [0, 256], sizes = [8, 128], strides = [1, 1]} : vector<8x512xf32> to vector<8x128xf32>
    %87 = math.tanh %86 : vector<8x128xf32>
    %88 = vector.extract_strided_slice %73 {offsets = [0, 384], sizes = [8, 128], strides = [1, 1]} : vector<8x512xf32> to vector<8x128xf32>
    %89 = arith.negf %88 : vector<8x128xf32>
    %90 = math.exp %89 : vector<8x128xf32>
    %cst_25 = arith.constant 1.000000e+00 : f32
    %91 = vector.broadcast %cst_25 : f32 to vector<8x128xf32>
    %92 = arith.addf %91, %90 : vector<8x128xf32>
    %93 = arith.divf %91, %92 : vector<8x128xf32>
    %94 = arith.mulf %85, %66 : vector<8x128xf32>
    %95 = arith.mulf %79, %87 : vector<8x128xf32>
    %96 = arith.addf %94, %95 : vector<8x128xf32>
    %97 = math.tanh %96 : vector<8x128xf32>
    %98 = arith.mulf %93, %97 : vector<8x128xf32>
    %c16_26 = arith.constant 16 : index
    %c0_27 = arith.constant 0 : index
    %99 = vector.load %arg23[%c16_26, %c0_27] : memref<32x128xf32, #tpu.memory_space<vmem>>, vector<8x128xf32>
    tpu.vector_store %arg23[%c16_26, %c0_27], %98 {strides = array<i32>} : memref<32x128xf32, #tpu.memory_space<vmem>>, vector<8x128xf32>,
    %c24 = arith.constant 24 : index
    %c0_28 = arith.constant 0 : index
    %100 = vector.load %arg24[%c24, %c0_28] : memref<32x512xf32, #tpu.memory_space<vmem>>, vector<8x512xf32>
    %101 = arith.truncf %98 : vector<8x128xf32> to vector<8x128xbf16>
    %cst_29 = arith.constant dense<0.000000e+00> : vector<8x512xf32>
    %102 = tpu.matmul %101, %7, %cst_29 {dimension_numbers = #tpu.dot_dimension_numbers<[1], [0], [0], [1], [0, 0, 1, 1], [], []>} : vector<8x128xbf16>, vector<128x512xbf16>, vector<8x512xf32> -> vector<8x512xf32>
    %103 = arith.addf %100, %102 : vector<8x512xf32>
    %104 = vector.extract_strided_slice %103 {offsets = [0, 0], sizes = [8, 128], strides = [1, 1]} : vector<8x512xf32> to vector<8x128xf32>
    %105 = arith.negf %104 : vector<8x128xf32>
    %106 = math.exp %105 : vector<8x128xf32>
    %cst_30 = arith.constant 1.000000e+00 : f32
    %107 = vector.broadcast %cst_30 : f32 to vector<8x128xf32>
    %108 = arith.addf %107, %106 : vector<8x128xf32>
    %109 = arith.divf %107, %108 : vector<8x128xf32>
    %110 = vector.extract_strided_slice %103 {offsets = [0, 128], sizes = [8, 128], strides = [1, 1]} : vector<8x512xf32> to vector<8x128xf32>
    %111 = arith.negf %110 : vector<8x128xf32>
    %112 = math.exp %111 : vector<8x128xf32>
    %cst_31 = arith.constant 1.000000e+00 : f32
    %113 = vector.broadcast %cst_31 : f32 to vector<8x128xf32>
    %114 = arith.addf %113, %112 : vector<8x128xf32>
    %115 = arith.divf %113, %114 : vector<8x128xf32>
    %116 = vector.extract_strided_slice %103 {offsets = [0, 256], sizes = [8, 128], strides = [1, 1]} : vector<8x512xf32> to vector<8x128xf32>
    %117 = math.tanh %116 : vector<8x128xf32>
    %118 = vector.extract_strided_slice %103 {offsets = [0, 384], sizes = [8, 128], strides = [1, 1]} : vector<8x512xf32> to vector<8x128xf32>
    %119 = arith.negf %118 : vector<8x128xf32>
    %120 = math.exp %119 : vector<8x128xf32>
    %cst_32 = arith.constant 1.000000e+00 : f32
    %121 = vector.broadcast %cst_32 : f32 to vector<8x128xf32>
    %122 = arith.addf %121, %120 : vector<8x128xf32>
    %123 = arith.divf %121, %122 : vector<8x128xf32>
    %124 = arith.mulf %115, %96 : vector<8x128xf32>
    %125 = arith.mulf %109, %117 : vector<8x128xf32>
    %126 = arith.addf %124, %125 : vector<8x128xf32>
    %127 = math.tanh %126 : vector<8x128xf32>
    %128 = arith.mulf %123, %127 : vector<8x128xf32>
    %c24_33 = arith.constant 24 : index
    %c0_34 = arith.constant 0 : index
    %129 = vector.load %arg23[%c24_33, %c0_34] : memref<32x128xf32, #tpu.memory_space<vmem>>, vector<8x128xf32>
    tpu.vector_store %arg23[%c24_33, %c0_34], %128 {strides = array<i32>} : memref<32x128xf32, #tpu.memory_space<vmem>>, vector<8x128xf32>,
    %c7_i32 = arith.constant 7 : i32
    %130 = arith.cmpi eq, %arg0, %c7_i32 : i32
    %131 = arith.extui %130 : i1 to i32
    %c0_i32_35 = arith.constant 0 : i32
    %132 = arith.cmpi ne, %131, %c0_i32_35 : i32
    scf.if %132 {
      %c0_36 = arith.constant 0 : index
      %c0_37 = arith.constant 0 : index
      %133 = vector.load %arg23[%c0_36, %c0_37] : memref<32x128xf32, #tpu.memory_space<vmem>>, vector<32x128xf32>
      %134 = arith.truncf %133 : vector<32x128xf32> to vector<32x128xbf16>
      %c0_38 = arith.constant 0 : index
      %c0_39 = arith.constant 0 : index
      %135 = vector.load %arg6[%c0_38, %c0_39] : memref<128x384xbf16, #tpu.memory_space<vmem>>, vector<128x384xbf16>
      %cst_40 = arith.constant dense<0.000000e+00> : vector<32x384xf32>
      %136 = tpu.matmul %134, %135, %cst_40 {dimension_numbers = #tpu.dot_dimension_numbers<[1], [0], [0], [1], [0, 0, 1, 1], [], []>} : vector<32x128xbf16>, vector<128x384xbf16>, vector<32x384xf32> -> vector<32x384xf32>
      %c0_41 = arith.constant 0 : index
      %c0_42 = arith.constant 0 : index
      %137 = vector.load %arg7[%c0_41, %c0_42] : memref<1x384xf32, #tpu.memory_space<vmem>>, vector<1x384xf32>
      %138 = vector.broadcast %137 : vector<1x384xf32> to vector<32x384xf32>
      %139 = arith.addf %136, %138 : vector<32x384xf32>
      %140 = vector.extract_strided_slice %139 {offsets = [0, 0], sizes = [32, 128], strides = [1, 1]} : vector<32x384xf32> to vector<32x128xf32>
      %141 = vector.extract_strided_slice %139 {offsets = [0, 128], sizes = [32, 128], strides = [1, 1]} : vector<32x384xf32> to vector<32x128xf32>
      %142 = vector.extract_strided_slice %139 {offsets = [0, 256], sizes = [32, 128], strides = [1, 1]} : vector<32x384xf32> to vector<32x128xf32>
      %143 = vector.shape_cast %140 : vector<32x128xf32> to vector<1x4x8x128xf32>
      %144 = vector.shape_cast %143 : vector<1x4x8x128xf32> to vector<1x4x8x128xf32>
      %145 = vector.broadcast %144 : vector<1x4x8x128xf32> to vector<4x4x8x128xf32>
      %146 = vector.shape_cast %145 : vector<4x4x8x128xf32> to vector<128x128xf32>
      %147 = vector.shape_cast %141 : vector<32x128xf32> to vector<4x1x8x128xf32>
      %148 = vector.shape_cast %147 : vector<4x1x8x128xf32> to vector<4x1x8x128xf32>
      %149 = vector.broadcast %148 : vector<4x1x8x128xf32> to vector<4x4x8x128xf32>
      %150 = vector.shape_cast %149 : vector<4x4x8x128xf32> to vector<128x128xf32>
      %151 = arith.mulf %146, %150 : vector<128x128xf32>
      %c0_43 = arith.constant 0 : index
      %c0_44 = arith.constant 0 : index
      %152 = vector.load %arg18[%c0_43, %c0_44] : memref<128x16xf32, #tpu.memory_space<vmem>>, vector<128x16xf32>
      %cst_45 = arith.constant dense<0.000000e+00> : vector<128x16xf32>
      %153 = tpu.matmul %151, %152, %cst_45 {dimension_numbers = #tpu.dot_dimension_numbers<[1], [0], [0], [1], [0, 0, 1, 1], [], []>} : vector<128x128xf32>, vector<128x16xf32>, vector<128x16xf32> -> vector<128x16xf32>
      %154 = vector.extract_strided_slice %153 {offsets = [0, 0], sizes = [32, 16], strides = [1, 1]} : vector<128x16xf32> to vector<32x16xf32>
      %155 = vector.extract_strided_slice %153 {offsets = [32, 0], sizes = [32, 16], strides = [1, 1]} : vector<128x16xf32> to vector<32x16xf32>
      %156 = arith.maximumf %154, %155 : vector<32x16xf32>
      %157 = vector.extract_strided_slice %153 {offsets = [64, 0], sizes = [32, 16], strides = [1, 1]} : vector<128x16xf32> to vector<32x16xf32>
      %158 = arith.maximumf %156, %157 : vector<32x16xf32>
      %159 = vector.extract_strided_slice %153 {offsets = [96, 0], sizes = [32, 16], strides = [1, 1]} : vector<128x16xf32> to vector<32x16xf32>
      %160 = arith.maximumf %158, %159 : vector<32x16xf32>
      %161 = vector.shape_cast %160 : vector<32x16xf32> to vector<1x32x16xf32>
      %162 = vector.shape_cast %161 : vector<1x32x16xf32> to vector<1x32x16xf32>
      %163 = vector.broadcast %162 : vector<1x32x16xf32> to vector<4x32x16xf32>
      %164 = vector.shape_cast %163 : vector<4x32x16xf32> to vector<128x16xf32>
      %165 = arith.subf %153, %164 : vector<128x16xf32>
      %166 = math.exp %165 : vector<128x16xf32>
      %167 = vector.extract_strided_slice %166 {offsets = [0, 0], sizes = [32, 16], strides = [1, 1]} : vector<128x16xf32> to vector<32x16xf32>
      %168 = vector.extract_strided_slice %166 {offsets = [32, 0], sizes = [32, 16], strides = [1, 1]} : vector<128x16xf32> to vector<32x16xf32>
      %169 = arith.addf %167, %168 : vector<32x16xf32>
      %170 = vector.extract_strided_slice %166 {offsets = [64, 0], sizes = [32, 16], strides = [1, 1]} : vector<128x16xf32> to vector<32x16xf32>
      %171 = arith.addf %169, %170 : vector<32x16xf32>
      %172 = vector.extract_strided_slice %166 {offsets = [96, 0], sizes = [32, 16], strides = [1, 1]} : vector<128x16xf32> to vector<32x16xf32>
      %173 = arith.addf %171, %172 : vector<32x16xf32>
      %174 = tpu.reciprocal %173 {approx = true} : vector<32x16xf32> -> vector<32x16xf32>
      %175 = vector.shape_cast %174 : vector<32x16xf32> to vector<1x32x16xf32>
      %176 = vector.shape_cast %175 : vector<1x32x16xf32> to vector<1x32x16xf32>
      %177 = vector.broadcast %176 : vector<1x32x16xf32> to vector<4x32x16xf32>
      %178 = vector.shape_cast %177 : vector<4x32x16xf32> to vector<128x16xf32>
      %179 = arith.mulf %166, %178 : vector<128x16xf32>
      %180 = vector.shape_cast %142 : vector<32x128xf32> to vector<4x1x8x128xf32>
      %181 = vector.shape_cast %180 : vector<4x1x8x128xf32> to vector<4x1x8x128xf32>
      %182 = vector.broadcast %181 : vector<4x1x8x128xf32> to vector<4x4x8x128xf32>
      %183 = vector.shape_cast %182 : vector<4x4x8x128xf32> to vector<128x128xf32>
      %c0_46 = arith.constant 0 : index
      %c0_47 = arith.constant 0 : index
      %184 = vector.load %arg19[%c0_46, %c0_47] : memref<16x128xf32, #tpu.memory_space<vmem>>, vector<16x128xf32>
      %cst_48 = arith.constant dense<0.000000e+00> : vector<128x128xf32>
      %185 = tpu.matmul %179, %184, %cst_48 {dimension_numbers = #tpu.dot_dimension_numbers<[1], [0], [0], [1], [0, 0, 1, 1], [], []>} : vector<128x16xf32>, vector<16x128xf32>, vector<128x128xf32> -> vector<128x128xf32>
      %186 = arith.mulf %185, %183 : vector<128x128xf32>
      %187 = vector.extract_strided_slice %186 {offsets = [0, 0], sizes = [32, 128], strides = [1, 1]} : vector<128x128xf32> to vector<32x128xf32>
      %188 = vector.extract_strided_slice %186 {offsets = [32, 0], sizes = [32, 128], strides = [1, 1]} : vector<128x128xf32> to vector<32x128xf32>
      %189 = arith.addf %187, %188 : vector<32x128xf32>
      %190 = vector.extract_strided_slice %186 {offsets = [64, 0], sizes = [32, 128], strides = [1, 1]} : vector<128x128xf32> to vector<32x128xf32>
      %191 = arith.addf %189, %190 : vector<32x128xf32>
      %192 = vector.extract_strided_slice %186 {offsets = [96, 0], sizes = [32, 128], strides = [1, 1]} : vector<128x128xf32> to vector<32x128xf32>
      %193 = arith.addf %191, %192 : vector<32x128xf32>
      %194 = arith.truncf %193 : vector<32x128xf32> to vector<32x128xbf16>
      %c0_49 = arith.constant 0 : index
      %c0_50 = arith.constant 0 : index
      %195 = vector.load %arg8[%c0_49, %c0_50] : memref<128x128xbf16, #tpu.memory_space<vmem>>, vector<128x128xbf16>
      %cst_51 = arith.constant dense<0.000000e+00> : vector<32x128xf32>
      %196 = tpu.matmul %194, %195, %cst_51 {dimension_numbers = #tpu.dot_dimension_numbers<[1], [0], [0], [1], [0, 0, 1, 1], [], []>} : vector<32x128xbf16>, vector<128x128xbf16>, vector<32x128xf32> -> vector<32x128xf32>
      %c0_52 = arith.constant 0 : index
      %c0_53 = arith.constant 0 : index
      %197 = vector.load %arg9[%c0_52, %c0_53] : memref<1x128xf32, #tpu.memory_space<vmem>>, vector<1x128xf32>
      %198 = vector.broadcast %197 : vector<1x128xf32> to vector<32x128xf32>
      %199 = arith.addf %196, %198 : vector<32x128xf32>
      %200 = arith.addf %133, %199 : vector<32x128xf32>
      %c0_54 = arith.constant 0 : index
      %c0_55 = arith.constant 0 : index
      %201 = vector.load %arg10[%c0_54, %c0_55] : memref<1x128xf32, #tpu.memory_space<vmem>>, vector<1x128xf32>
      %c0_56 = arith.constant 0 : index
      %c0_57 = arith.constant 0 : index
      %202 = vector.load %arg11[%c0_56, %c0_57] : memref<1x128xf32, #tpu.memory_space<vmem>>, vector<1x128xf32>
      %cst_58 = arith.constant dense<0.000000e+00> : vector<32xf32>
      %203 = vector.multi_reduction <add>, %200, %cst_58 [1] : vector<32x128xf32> to vector<32xf32>
      %204 = vector.shape_cast %203 : vector<32xf32> to vector<32x1xf32>
      %cst_59 = arith.constant 1.280000e+02 : f32
      %205 = vector.broadcast %cst_59 : f32 to vector<32x1xf32>
      %206 = arith.divf %204, %205 : vector<32x1xf32>
      %207 = vector.broadcast %206 : vector<32x1xf32> to vector<32x128xf32>
      %208 = arith.subf %200, %207 : vector<32x128xf32>
      %209 = arith.mulf %208, %208 : vector<32x128xf32>
      %cst_60 = arith.constant dense<0.000000e+00> : vector<32xf32>
      %210 = vector.multi_reduction <add>, %209, %cst_60 [1] : vector<32x128xf32> to vector<32xf32>
      %211 = vector.shape_cast %210 : vector<32xf32> to vector<32x1xf32>
      %cst_61 = arith.constant 1.280000e+02 : f32
      %212 = vector.broadcast %cst_61 : f32 to vector<32x1xf32>
      %213 = arith.divf %211, %212 : vector<32x1xf32>
      %214 = vector.broadcast %206 : vector<32x1xf32> to vector<32x128xf32>
      %215 = arith.subf %200, %214 : vector<32x128xf32>
      %cst_62 = arith.constant 9.99999974E-6 : f32
      %216 = vector.broadcast %cst_62 : f32 to vector<32x1xf32>
      %217 = arith.addf %213, %216 : vector<32x1xf32>
      %218 = math.rsqrt %217 : vector<32x1xf32>
      %219 = vector.broadcast %218 : vector<32x1xf32> to vector<32x128xf32>
      %220 = arith.mulf %215, %219 : vector<32x128xf32>
      %221 = vector.broadcast %201 : vector<1x128xf32> to vector<32x128xf32>
      %222 = arith.mulf %220, %221 : vector<32x128xf32>
      %223 = vector.broadcast %202 : vector<1x128xf32> to vector<32x128xf32>
      %224 = arith.addf %222, %223 : vector<32x128xf32>
      %225 = arith.truncf %224 : vector<32x128xf32> to vector<32x128xbf16>
      %cst_63 = arith.constant 0.000000e+00 : f32
      %226 = vector.broadcast %cst_63 : f32 to vector<32x128xf32>
      %c0_64 = arith.constant 0 : index
      %c0_65 = arith.constant 0 : index
      %227 = vector.load %arg12[%c0_64, %c0_65] : memref<128x2048xbf16, #tpu.memory_space<vmem>>, vector<128x512xbf16>
      %cst_66 = arith.constant dense<0.000000e+00> : vector<32x512xf32>
      %228 = tpu.matmul %225, %227, %cst_66 {dimension_numbers = #tpu.dot_dimension_numbers<[1], [0], [0], [1], [0, 0, 1, 1], [], []>} : vector<32x128xbf16>, vector<128x512xbf16>, vector<32x512xf32> -> vector<32x512xf32>
      %c0_67 = arith.constant 0 : index
      %c0_68 = arith.constant 0 : index
      %229 = vector.load %arg13[%c0_67, %c0_68] : memref<1x2048xf32, #tpu.memory_space<vmem>>, vector<1x512xf32>
      %230 = vector.broadcast %229 : vector<1x512xf32> to vector<32x512xf32>
      %231 = arith.addf %228, %230 : vector<32x512xf32>
      %cst_69 = arith.constant 0.000000e+00 : f32
      %232 = vector.broadcast %cst_69 : f32 to vector<32x512xf32>
      %233 = arith.maximumf %231, %232 : vector<32x512xf32>
      %234 = arith.truncf %233 : vector<32x512xf32> to vector<32x512xbf16>
      %c0_70 = arith.constant 0 : index
      %c0_71 = arith.constant 0 : index
      %235 = vector.load %arg14[%c0_70, %c0_71] : memref<2048x128xbf16, #tpu.memory_space<vmem>>, vector<512x128xbf16>
      %cst_72 = arith.constant dense<0.000000e+00> : vector<32x128xf32>
      %236 = tpu.matmul %234, %235, %cst_72 {dimension_numbers = #tpu.dot_dimension_numbers<[1], [0], [0], [1], [0, 0, 1, 1], [], []>} : vector<32x512xbf16>, vector<512x128xbf16>, vector<32x128xf32> -> vector<32x128xf32>
      %237 = arith.addf %226, %236 : vector<32x128xf32>
      %c0_73 = arith.constant 0 : index
      %c512 = arith.constant 512 : index
      %238 = vector.load %arg12[%c0_73, %c512] : memref<128x2048xbf16, #tpu.memory_space<vmem>>, vector<128x512xbf16>
      %cst_74 = arith.constant dense<0.000000e+00> : vector<32x512xf32>
      %239 = tpu.matmul %225, %238, %cst_74 {dimension_numbers = #tpu.dot_dimension_numbers<[1], [0], [0], [1], [0, 0, 1, 1], [], []>} : vector<32x128xbf16>, vector<128x512xbf16>, vector<32x512xf32> -> vector<32x512xf32>
      %c0_75 = arith.constant 0 : index
      %c512_76 = arith.constant 512 : index
      %240 = vector.load %arg13[%c0_75, %c512_76] : memref<1x2048xf32, #tpu.memory_space<vmem>>, vector<1x512xf32>
      %241 = vector.broadcast %240 : vector<1x512xf32> to vector<32x512xf32>
      %242 = arith.addf %239, %241 : vector<32x512xf32>
      %cst_77 = arith.constant 0.000000e+00 : f32
      %243 = vector.broadcast %cst_77 : f32 to vector<32x512xf32>
      %244 = arith.maximumf %242, %243 : vector<32x512xf32>
      %245 = arith.truncf %244 : vector<32x512xf32> to vector<32x512xbf16>
      %c512_78 = arith.constant 512 : index
      %c0_79 = arith.constant 0 : index
      %246 = vector.load %arg14[%c512_78, %c0_79] : memref<2048x128xbf16, #tpu.memory_space<vmem>>, vector<512x128xbf16>
      %cst_80 = arith.constant dense<0.000000e+00> : vector<32x128xf32>
      %247 = tpu.matmul %245, %246, %cst_80 {dimension_numbers = #tpu.dot_dimension_numbers<[1], [0], [0], [1], [0, 0, 1, 1], [], []>} : vector<32x512xbf16>, vector<512x128xbf16>, vector<32x128xf32> -> vector<32x128xf32>
      %248 = arith.addf %237, %247 : vector<32x128xf32>
      %c0_81 = arith.constant 0 : index
      %c1024 = arith.constant 1024 : index
      %249 = vector.load %arg12[%c0_81, %c1024] : memref<128x2048xbf16, #tpu.memory_space<vmem>>, vector<128x512xbf16>
      %cst_82 = arith.constant dense<0.000000e+00> : vector<32x512xf32>
      %250 = tpu.matmul %225, %249, %cst_82 {dimension_numbers = #tpu.dot_dimension_numbers<[1], [0], [0], [1], [0, 0, 1, 1], [], []>} : vector<32x128xbf16>, vector<128x512xbf16>, vector<32x512xf32> -> vector<32x512xf32>
      %c0_83 = arith.constant 0 : index
      %c1024_84 = arith.constant 1024 : index
      %251 = vector.load %arg13[%c0_83, %c1024_84] : memref<1x2048xf32, #tpu.memory_space<vmem>>, vector<1x512xf32>
      %252 = vector.broadcast %251 : vector<1x512xf32> to vector<32x512xf32>
      %253 = arith.addf %250, %252 : vector<32x512xf32>
      %cst_85 = arith.constant 0.000000e+00 : f32
      %254 = vector.broadcast %cst_85 : f32 to vector<32x512xf32>
      %255 = arith.maximumf %253, %254 : vector<32x512xf32>
      %256 = arith.truncf %255 : vector<32x512xf32> to vector<32x512xbf16>
      %c1024_86 = arith.constant 1024 : index
      %c0_87 = arith.constant 0 : index
      %257 = vector.load %arg14[%c1024_86, %c0_87] : memref<2048x128xbf16, #tpu.memory_space<vmem>>, vector<512x128xbf16>
      %cst_88 = arith.constant dense<0.000000e+00> : vector<32x128xf32>
      %258 = tpu.matmul %256, %257, %cst_88 {dimension_numbers = #tpu.dot_dimension_numbers<[1], [0], [0], [1], [0, 0, 1, 1], [], []>} : vector<32x512xbf16>, vector<512x128xbf16>, vector<32x128xf32> -> vector<32x128xf32>
      %259 = arith.addf %248, %258 : vector<32x128xf32>
      %c0_89 = arith.constant 0 : index
      %c1536 = arith.constant 1536 : index
      %260 = vector.load %arg12[%c0_89, %c1536] : memref<128x2048xbf16, #tpu.memory_space<vmem>>, vector<128x512xbf16>
      %cst_90 = arith.constant dense<0.000000e+00> : vector<32x512xf32>
      %261 = tpu.matmul %225, %260, %cst_90 {dimension_numbers = #tpu.dot_dimension_numbers<[1], [0], [0], [1], [0, 0, 1, 1], [], []>} : vector<32x128xbf16>, vector<128x512xbf16>, vector<32x512xf32> -> vector<32x512xf32>
      %c0_91 = arith.constant 0 : index
      %c1536_92 = arith.constant 1536 : index
      %262 = vector.load %arg13[%c0_91, %c1536_92] : memref<1x2048xf32, #tpu.memory_space<vmem>>, vector<1x512xf32>
      %263 = vector.broadcast %262 : vector<1x512xf32> to vector<32x512xf32>
      %264 = arith.addf %261, %263 : vector<32x512xf32>
      %cst_93 = arith.constant 0.000000e+00 : f32
      %265 = vector.broadcast %cst_93 : f32 to vector<32x512xf32>
      %266 = arith.maximumf %264, %265 : vector<32x512xf32>
      %267 = arith.truncf %266 : vector<32x512xf32> to vector<32x512xbf16>
      %c1536_94 = arith.constant 1536 : index
      %c0_95 = arith.constant 0 : index
      %268 = vector.load %arg14[%c1536_94, %c0_95] : memref<2048x128xbf16, #tpu.memory_space<vmem>>, vector<512x128xbf16>
      %cst_96 = arith.constant dense<0.000000e+00> : vector<32x128xf32>
      %269 = tpu.matmul %267, %268, %cst_96 {dimension_numbers = #tpu.dot_dimension_numbers<[1], [0], [0], [1], [0, 0, 1, 1], [], []>} : vector<32x512xbf16>, vector<512x128xbf16>, vector<32x128xf32> -> vector<32x128xf32>
      %270 = arith.addf %259, %269 : vector<32x128xf32>
      %c0_97 = arith.constant 0 : index
      %c0_98 = arith.constant 0 : index
      %271 = vector.load %arg15[%c0_97, %c0_98] : memref<1x128xf32, #tpu.memory_space<vmem>>, vector<1x128xf32>
      %272 = vector.broadcast %271 : vector<1x128xf32> to vector<32x128xf32>
      %273 = arith.addf %270, %272 : vector<32x128xf32>
      %274 = arith.addf %224, %273 : vector<32x128xf32>
      %c0_99 = arith.constant 0 : index
      %c0_100 = arith.constant 0 : index
      %275 = vector.load %arg16[%c0_99, %c0_100] : memref<1x128xf32, #tpu.memory_space<vmem>>, vector<1x128xf32>
      %c0_101 = arith.constant 0 : index
      %c0_102 = arith.constant 0 : index
      %276 = vector.load %arg17[%c0_101, %c0_102] : memref<1x128xf32, #tpu.memory_space<vmem>>, vector<1x128xf32>
      %cst_103 = arith.constant dense<0.000000e+00> : vector<32xf32>
      %277 = vector.multi_reduction <add>, %274, %cst_103 [1] : vector<32x128xf32> to vector<32xf32>
      %278 = vector.shape_cast %277 : vector<32xf32> to vector<32x1xf32>
      %cst_104 = arith.constant 1.280000e+02 : f32
      %279 = vector.broadcast %cst_104 : f32 to vector<32x1xf32>
      %280 = arith.divf %278, %279 : vector<32x1xf32>
      %281 = vector.broadcast %280 : vector<32x1xf32> to vector<32x128xf32>
      %282 = arith.subf %274, %281 : vector<32x128xf32>
      %283 = arith.mulf %282, %282 : vector<32x128xf32>
      %cst_105 = arith.constant dense<0.000000e+00> : vector<32xf32>
      %284 = vector.multi_reduction <add>, %283, %cst_105 [1] : vector<32x128xf32> to vector<32xf32>
      %285 = vector.shape_cast %284 : vector<32xf32> to vector<32x1xf32>
      %cst_106 = arith.constant 1.280000e+02 : f32
      %286 = vector.broadcast %cst_106 : f32 to vector<32x1xf32>
      %287 = arith.divf %285, %286 : vector<32x1xf32>
      %288 = vector.broadcast %280 : vector<32x1xf32> to vector<32x128xf32>
      %289 = arith.subf %274, %288 : vector<32x128xf32>
      %cst_107 = arith.constant 9.99999974E-6 : f32
      %290 = vector.broadcast %cst_107 : f32 to vector<32x1xf32>
      %291 = arith.addf %287, %290 : vector<32x1xf32>
      %292 = math.rsqrt %291 : vector<32x1xf32>
      %293 = vector.broadcast %292 : vector<32x1xf32> to vector<32x128xf32>
      %294 = arith.mulf %289, %293 : vector<32x128xf32>
      %295 = vector.broadcast %275 : vector<1x128xf32> to vector<32x128xf32>
      %296 = arith.mulf %294, %295 : vector<32x128xf32>
      %297 = vector.broadcast %276 : vector<1x128xf32> to vector<32x128xf32>
      %298 = arith.addf %296, %297 : vector<32x128xf32>
      %299 = arith.truncf %298 : vector<32x128xf32> to vector<32x128xbf16>
      %cst_108 = arith.constant 0.000000e+00 : f32
      %300 = vector.broadcast %cst_108 : f32 to vector<8x128xf32>
      %301 = vector.extract_strided_slice %299 {offsets = [0, 0], sizes = [8, 128], strides = [1, 1]} : vector<32x128xbf16> to vector<8x128xbf16>
      %c0_109 = arith.constant 0 : index
      %c0_110 = arith.constant 0 : index
      %c0_111 = arith.constant 0 : index
      %302 = vector.load %arg20[%c0_109, %c0_110, %c0_111] : memref<4x128x128xbf16, #tpu.memory_space<vmem>>, vector<1x128x128xbf16>
      %303 = vector.shape_cast %302 : vector<1x128x128xbf16> to vector<128x128xbf16>
      %cst_112 = arith.constant dense<0.000000e+00> : vector<8x128xf32>
      %304 = tpu.matmul %301, %303, %cst_112 {dimension_numbers = #tpu.dot_dimension_numbers<[1], [0], [0], [1], [0, 0, 1, 1], [], []>} : vector<8x128xbf16>, vector<128x128xbf16>, vector<8x128xf32> -> vector<8x128xf32>
      %305 = arith.addf %300, %304 : vector<8x128xf32>
      %306 = vector.extract_strided_slice %299 {offsets = [8, 0], sizes = [8, 128], strides = [1, 1]} : vector<32x128xbf16> to vector<8x128xbf16>
      %c1 = arith.constant 1 : index
      %c0_113 = arith.constant 0 : index
      %c0_114 = arith.constant 0 : index
      %307 = vector.load %arg20[%c1, %c0_113, %c0_114] : memref<4x128x128xbf16, #tpu.memory_space<vmem>>, vector<1x128x128xbf16>
      %308 = vector.shape_cast %307 : vector<1x128x128xbf16> to vector<128x128xbf16>
      %cst_115 = arith.constant dense<0.000000e+00> : vector<8x128xf32>
      %309 = tpu.matmul %306, %308, %cst_115 {dimension_numbers = #tpu.dot_dimension_numbers<[1], [0], [0], [1], [0, 0, 1, 1], [], []>} : vector<8x128xbf16>, vector<128x128xbf16>, vector<8x128xf32> -> vector<8x128xf32>
      %310 = arith.addf %305, %309 : vector<8x128xf32>
      %311 = vector.extract_strided_slice %299 {offsets = [16, 0], sizes = [8, 128], strides = [1, 1]} : vector<32x128xbf16> to vector<8x128xbf16>
      %c2 = arith.constant 2 : index
      %c0_116 = arith.constant 0 : index
      %c0_117 = arith.constant 0 : index
      %312 = vector.load %arg20[%c2, %c0_116, %c0_117] : memref<4x128x128xbf16, #tpu.memory_space<vmem>>, vector<1x128x128xbf16>
      %313 = vector.shape_cast %312 : vector<1x128x128xbf16> to vector<128x128xbf16>
      %cst_118 = arith.constant dense<0.000000e+00> : vector<8x128xf32>
      %314 = tpu.matmul %311, %313, %cst_118 {dimension_numbers = #tpu.dot_dimension_numbers<[1], [0], [0], [1], [0, 0, 1, 1], [], []>} : vector<8x128xbf16>, vector<128x128xbf16>, vector<8x128xf32> -> vector<8x128xf32>
      %315 = arith.addf %310, %314 : vector<8x128xf32>
      %316 = vector.extract_strided_slice %299 {offsets = [24, 0], sizes = [8, 128], strides = [1, 1]} : vector<32x128xbf16> to vector<8x128xbf16>
      %c3 = arith.constant 3 : index
      %c0_119 = arith.constant 0 : index
      %c0_120 = arith.constant 0 : index
      %317 = vector.load %arg20[%c3, %c0_119, %c0_120] : memref<4x128x128xbf16, #tpu.memory_space<vmem>>, vector<1x128x128xbf16>
      %318 = vector.shape_cast %317 : vector<1x128x128xbf16> to vector<128x128xbf16>
      %cst_121 = arith.constant dense<0.000000e+00> : vector<8x128xf32>
      %319 = tpu.matmul %316, %318, %cst_121 {dimension_numbers = #tpu.dot_dimension_numbers<[1], [0], [0], [1], [0, 0, 1, 1], [], []>} : vector<8x128xbf16>, vector<128x128xbf16>, vector<8x128xf32> -> vector<8x128xf32>
      %320 = arith.addf %315, %319 : vector<8x128xf32>
      %c0_122 = arith.constant 0 : index
      %c0_123 = arith.constant 0 : index
      %321 = vector.load %arg21[%c0_122, %c0_123] : memref<1x128xf32, #tpu.memory_space<vmem>>, vector<1x128xf32>
      %322 = vector.broadcast %321 : vector<1x128xf32> to vector<8x128xf32>
      %323 = arith.addf %320, %322 : vector<8x128xf32>
      %c0_124 = arith.constant 0 : index
      %c0_125 = arith.constant 0 : index
      %324 = vector.load %arg22[%c0_124, %c0_125] : memref<8x128xf32, #tpu.memory_space<vmem>>, vector<8x128xf32>
      tpu.vector_store %arg22[%c0_124, %c0_125], %323 {strides = array<i32>} : memref<8x128xf32, #tpu.memory_space<vmem>>, vector<8x128xf32>,
    } else {
    }
    return
  }
  func.func @transform_0(%arg0: i32) -> (i32, i32) {
    %c0_i32 = arith.constant 0 : i32
    %c0_i32_0 = arith.constant 0 : i32
    %c0_i32_1 = arith.constant 0 : i32
    return %c0_i32, %c0_i32_0 : i32, i32
  }
  func.func @transform_1(%arg0: i32) -> (i32, i32) {
    %c0_i32 = arith.constant 0 : i32
    %c0_i32_0 = arith.constant 0 : i32
    %c0_i32_1 = arith.constant 0 : i32
    return %c0_i32, %c0_i32_0 : i32, i32
  }
  func.func @transform_2(%arg0: i32) -> (i32, i32, i32) {
    %c0_i32 = arith.constant 0 : i32
    %c0_i32_0 = arith.constant 0 : i32
    %c0_i32_1 = arith.constant 0 : i32
    return %arg0, %c0_i32, %c0_i32_0 : i32, i32, i32
  }
  func.func @transform_3(%arg0: i32) -> (i32, i32, i32) {
    %c0_i32 = arith.constant 0 : i32
    %c0_i32_0 = arith.constant 0 : i32
    %c0_i32_1 = arith.constant 0 : i32
    return %arg0, %c0_i32, %c0_i32_0 : i32, i32, i32
  }
  func.func @transform_4(%arg0: i32) -> (i32, i32, i32) {
    %c0_i32 = arith.constant 0 : i32
    %c0_i32_0 = arith.constant 0 : i32
    %c0_i32_1 = arith.constant 0 : i32
    return %arg0, %c0_i32, %c0_i32_0 : i32, i32, i32
  }
  func.func @transform_5(%arg0: i32) -> (i32, i32) {
    %c0_i32 = arith.constant 0 : i32
    %c0_i32_0 = arith.constant 0 : i32
    %c0_i32_1 = arith.constant 0 : i32
    return %c0_i32, %c0_i32_0 : i32, i32
  }
  func.func @transform_6(%arg0: i32) -> (i32, i32) {
    %c0_i32 = arith.constant 0 : i32
    %c0_i32_0 = arith.constant 0 : i32
    %c0_i32_1 = arith.constant 0 : i32
    return %c0_i32, %c0_i32_0 : i32, i32
  }
  func.func @transform_7(%arg0: i32) -> (i32, i32) {
    %c0_i32 = arith.constant 0 : i32
    %c0_i32_0 = arith.constant 0 : i32
    %c0_i32_1 = arith.constant 0 : i32
    return %c0_i32, %c0_i32_0 : i32, i32
  }
  func.func @transform_8(%arg0: i32) -> (i32, i32) {
    %c0_i32 = arith.constant 0 : i32
    %c0_i32_0 = arith.constant 0 : i32
    %c0_i32_1 = arith.constant 0 : i32
    return %c0_i32, %c0_i32_0 : i32, i32
  }
  func.func @transform_9(%arg0: i32) -> (i32, i32) {
    %c0_i32 = arith.constant 0 : i32
    %c0_i32_0 = arith.constant 0 : i32
    %c0_i32_1 = arith.constant 0 : i32
    return %c0_i32, %c0_i32_0 : i32, i32
  }
  func.func @transform_10(%arg0: i32) -> (i32, i32) {
    %c0_i32 = arith.constant 0 : i32
    %c0_i32_0 = arith.constant 0 : i32
    %c0_i32_1 = arith.constant 0 : i32
    return %c0_i32, %c0_i32_0 : i32, i32
  }
  func.func @transform_11(%arg0: i32) -> (i32, i32) {
    %c0_i32 = arith.constant 0 : i32
    %c0_i32_0 = arith.constant 0 : i32
    %c0_i32_1 = arith.constant 0 : i32
    return %c0_i32, %c0_i32_0 : i32, i32
  }
  func.func @transform_12(%arg0: i32) -> (i32, i32) {
    %c0_i32 = arith.constant 0 : i32
    %c0_i32_0 = arith.constant 0 : i32
    %c0_i32_1 = arith.constant 0 : i32
    return %c0_i32, %c0_i32_0 : i32, i32
  }
  func.func @transform_13(%arg0: i32) -> (i32, i32) {
    %c0_i32 = arith.constant 0 : i32
    %c0_i32_0 = arith.constant 0 : i32
    %c0_i32_1 = arith.constant 0 : i32
    return %c0_i32, %c0_i32_0 : i32, i32
  }
  func.func @transform_14(%arg0: i32) -> (i32, i32) {
    %c0_i32 = arith.constant 0 : i32
    %c0_i32_0 = arith.constant 0 : i32
    %c0_i32_1 = arith.constant 0 : i32
    return %c0_i32, %c0_i32_0 : i32, i32
  }
  func.func @transform_15(%arg0: i32) -> (i32, i32) {
    %c0_i32 = arith.constant 0 : i32
    %c0_i32_0 = arith.constant 0 : i32
    %c0_i32_1 = arith.constant 0 : i32
    return %c0_i32, %c0_i32_0 : i32, i32
  }
  func.func @transform_16(%arg0: i32) -> (i32, i32) {
    %c0_i32 = arith.constant 0 : i32
    %c0_i32_0 = arith.constant 0 : i32
    %c0_i32_1 = arith.constant 0 : i32
    return %c0_i32, %c0_i32_0 : i32, i32
  }
  func.func @transform_17(%arg0: i32) -> (i32, i32) {
    %c0_i32 = arith.constant 0 : i32
    %c0_i32_0 = arith.constant 0 : i32
    %c0_i32_1 = arith.constant 0 : i32
    return %c0_i32, %c0_i32_0 : i32, i32
  }
  func.func @transform_18(%arg0: i32) -> (i32, i32) {
    %c0_i32 = arith.constant 0 : i32
    %c0_i32_0 = arith.constant 0 : i32
    %c0_i32_1 = arith.constant 0 : i32
    return %c0_i32, %c0_i32_0 : i32, i32
  }
  func.func @transform_19(%arg0: i32) -> (i32, i32, i32) {
    %c0_i32 = arith.constant 0 : i32
    %c0_i32_0 = arith.constant 0 : i32
    %c0_i32_1 = arith.constant 0 : i32
    %c0_i32_2 = arith.constant 0 : i32
    return %c0_i32, %c0_i32_0, %c0_i32_1 : i32, i32, i32
  }
  func.func @transform_20(%arg0: i32) -> (i32, i32) {
    %c0_i32 = arith.constant 0 : i32
    %c0_i32_0 = arith.constant 0 : i32
    %c0_i32_1 = arith.constant 0 : i32
    return %c0_i32, %c0_i32_0 : i32, i32
  }
  func.func @transform_21(%arg0: i32) -> (i32, i32) {
    %c0_i32 = arith.constant 0 : i32
    %c0_i32_0 = arith.constant 0 : i32
    %c0_i32_1 = arith.constant 0 : i32
    return %c0_i32, %c0_i32_0 : i32, i32
  }
}

</mosaic_0001>

<bundles_post_ra>
// kernel: tpu_custom_call.1
= control target key start
LH: loop header
LB: loop body
LE: loop exit
PB: predicated region body
PF: predicated region fallthrough
CT: control target
= control target key end

     0   :  { %s11516_s0 = inlined_call_operand.vmem [shape: bf16[32,384], index: 0, kind: input, shape index: {}]   ;;  %s11517_s1 = inlined_call_operand.hbm [shape: bf16[384,512], index: 1, kind: input, shape index: {}]   ;;  %s11518_s2 = inlined_call_operand.hbm [shape: bf16[8,128,512], index: 2, kind: input, shape index: {}]   ;;  %s11519_s3 = inlined_call_operand.hbm [shape: bf16[8,128,512], index: 3, kind: input, shape index: {}]   ;;  %s11520_s4 = inlined_call_operand.vmem [shape: f32[8,1,512], index: 4, kind: input, shape index: {}]   ;;  %s11521_s5 = inlined_call_operand.hbm [shape: bf16[128,384], index: 5, kind: input, shape index: {}]   ;;  %s11522_s6 = inlined_call_operand.hbm [shape: f32[1,384], index: 6, kind: input, shape index: {}]   ;;  %s11523_s7 = inlined_call_operand.vmem [shape: bf16[128,128], index: 7, kind: input, shape index: {}]   ;;  %s11524_s8 = inlined_call_operand.hbm [shape: f32[1,128], index: 8, kind: input, shape index: {}]   ;;  %s11525_s9 = inlined_call_operand.hbm [shape: f32[1,128], index: 9, kind: input, shape index: {}]   ;;  %s11526_s10 = inlined_call_operand.hbm [shape: f32[1,128], index: 10, kind: input, shape index: {}]   ;;  %s11527_s11 = inlined_call_operand.hbm [shape: bf16[128,2048], index: 11, kind: input, shape index: {}]   ;;  %s11528_s12 = inlined_call_operand.hbm [shape: f32[1,2048], index: 12, kind: input, shape index: {}]   ;;  %s11529_s13 = inlined_call_operand.hbm [shape: bf16[2048,128], index: 13, kind: input, shape index: {}]   ;;  %s11530_s14 = inlined_call_operand.hbm [shape: f32[1,128], index: 14, kind: input, shape index: {}]   ;;  %s11531_s15 = inlined_call_operand.hbm [shape: f32[1,128], index: 15, kind: input, shape index: {}]   ;;  %s11532_s16 = inlined_call_operand.hbm [shape: f32[1,128], index: 16, kind: input, shape index: {}]   ;;  %s11533_s17 = inlined_call_operand.vmem [shape: f32[128,16], index: 17, kind: input, shape index: {}]   ;;  %s11534_s18 = inlined_call_operand.hbm [shape: f32[16,128], index: 18, kind: input, shape index: {}]   ;;  %s11535_s19 = inlined_call_operand.hbm [shape: bf16[4,128,128], index: 19, kind: input, shape index: {}]   ;;  %s11536_s20 = inlined_call_operand.vmem [shape: f32[1,128], index: 20, kind: input, shape index: {}]   ;;  %s11537_s21 = inlined_call_operand.hbm [shape: f32[8,128], index: 21, kind: output, shape index: {}]  }
   0x1   :  { %11548 = sst [smem:[#allocation44_spill]] %s11516_s0 }
   0x2   :  { %11549 = sst [smem:[#allocation45_spill]] %s11517_s1 }
   0x3   :  { %11550 = sst [smem:[#allocation46_spill]] %s11518_s2 }
   0x4   :  { %11551 = sst [smem:[#allocation47_spill]] %s11519_s3 }
   0x5   :  { %11552 = sst [smem:[#allocation48_spill]] %s11520_s4 }
   0x6   :  { %11553 = sst [smem:[#allocation49_spill]] %s11521_s5 }
   0x7   :  { %11554 = sst [smem:[#allocation50_spill]] %s11523_s7 }
   0x8   :  { %11555 = sst [smem:[#allocation51_spill]] %s11524_s8 }
   0x9   :  { %11556 = sst [smem:[#allocation52_spill]] %s11526_s10 }
   0xa   :  { %11557 = sst [smem:[#allocation53_spill]] %s11528_s12 }
   0xb   :  { %11558 = sst [smem:[#allocation54_spill]] %s11530_s14 }
   0xc   :  { %11559 = sst [smem:[#allocation55_spill]] %s11532_s16 }
   0xd   :  { %11560 = sst [smem:[#allocation56_spill]] %s11533_s17 }
   0xe   :  { %11561 = sst [smem:[#allocation57_spill]] %s11535_s19 }
   0xf   :  { %11562 = sst [smem:[#allocation58_spill]] %s11536_s20 }
  0x10   :  { %11563 = sst [smem:[#allocation59_spill]] %s11537_s21 }
  0x11   :  { %26 = vsyncpa [#allocation5], 0 }
  0x12   :  { %27 = vsyncpa [#allocation8], 0 }
  0x13   :  { %29 = vsyncpa [#allocation8 + $0x1], 0 }
  0x14   :  { %30 = vsyncpa [#allocation11], 0 }
  0x15   :  { %31 = vsyncpa [#allocation14], 0 }
  0x16   :  { %32 = vsyncpa [#allocation17], 0 }
  0x17   :  { %33 = vsyncpa [#allocation20], 0 }
  0x18   :  { %34 = vsyncpa [#allocation23], 0 }
  0x19   :  { %35 = vsyncpa [#allocation26], 0 }
  0x1a   :  { %36 = vsyncpa [#allocation29], 0 }
  0x1b   :  { %37 = vsyncpa [#allocation6], 0  ;;  %s10331_s2 = smov 0   ;;  %s10333_s25 = smov 0  }
  0x1c   :  { %s10335_s26 = smov 0   ;;  %s10337_s27 = smov 0  }
  0x1d LB: > { %11564 = sst [smem:[#allocation41_spill]] %s10189_s26  ;;  %s10355_s4 = sadd.s32 4294967295, %s10193_s27   ;;  %s10193_s27 = sphi %s10337_s27, %s11599_s27   ;;  %s10189_s26 = sphi %s10335_s26, %s11596_s26   ;;  %s10185_s25 = sphi %s10333_s25, %s11598_s25   ;;  %s10181_s2 = sphi %s10331_s2, %s11597_s2  }
  0x1e   : > { %s11565_s29 = sld [smem:[#allocation49_spill]]  ;;  %p6776_p0 = scmp.ge.s32.totalorder %s10193_s27, 1 }
  0x1f   : > { %p106_p1 = scmp.eq.s32.totalorder %s10355_s4, 0  ;;  %p525_p2 = scmp.lt.s32.totalorder %s10193_s27, 9 }
  0x20   : > { %p6777_p3 = scmp.ne.s32.totalorder %s10355_s4, 0  ;;  %s10195_s5 = smov [#allocation10]  }
  0x21   : > { %p10361_p4 = pnand %p6776_p0, %p525_p2  ;;  %s555_s22 = sshll.u32 %s10195_s5, 4  ;;  %s556_s22 = int_to_ptr.vmem [resolvable:$true] %s555_s22 }
  0x22   : > { %s11568_s8 = sld [smem:[#allocation51_spill]]  ;;  %s10196_s21 = smov [#allocation13]  }
  0x23   : > { %s11566_s30 = scalar_select %p10361_p4, 1, 0 }
  0x24   : > { %s553_s0 = sshll.u32 %s11565_s29, 4  ;;  %p9347_p5 = pneg %p10361_p4  ;;  %s554_s0 = int_to_ptr.hbm [resolvable:$true] %s553_s0 }
  0x25   : > { %11567 = sst [smem:[#allocation42_spill]] %s11566_s30  ;;  %s585_s20 = sshll.u32 %s10196_s21, 4  ;;  %s586_s20 = int_to_ptr.vmem [resolvable:$true] %s585_s20 }
  0x26   : > { %p10372_p6 = pnand %p9347_p5, %p106_p1  ;;  %s11570_s10 = sld [smem:[#allocation52_spill]] }
  0x27   : > { %s10197_s7 = smov 192   ;;  %s10198_s17 = smov 12  }
  0x28   : > { %s583_s24 = sshll.u32 %s11568_s8, 4  ;;  %s11571_s12 = sld [smem:[#allocation53_spill]]  ;;  %s584_s24 = int_to_ptr.hbm [resolvable:$true] %s583_s24 }
  0x29   : > { %9353 = dma.hbm_to_vmem [thread:$0]  (!%p10372_p6), %s554_s0, 3072, %s556_s22, [#allocation11], %s10197_s7, %s10197_s7, %s10198_s17  }
  0x2a   : > { %9359 = dma.hbm_to_vmem [thread:$0]  (!%p10372_p6), %s584_s24, 16, %s586_s20, [#allocation14]  }
  0x2b   : > { %s10199_s30 = smov [#allocation16]   ;;  %s10200_s21 = smov [#allocation19]  }
  0x2c   : > { %s607_s5 = sshll.u32 %s11570_s10, 4  ;;  %s609_s19 = sshll.u32 %s10199_s30, 4  ;;  %s608_s5 = int_to_ptr.hbm [resolvable:$true] %s607_s5  ;;  %s610_s19 = int_to_ptr.vmem [resolvable:$true] %s609_s19 }
  0x2d   : > { %9365 = dma.hbm_to_vmem [thread:$0]  (!%p10372_p6), %s608_s5, 16, %s610_s19, [#allocation17]  }
  0x2e   : > { %s633_s8 = sshll.u32 %s11571_s12, 4  ;;  %s635_s28 = sshll.u32 %s10200_s21, 4  ;;  %s634_s8 = int_to_ptr.hbm [resolvable:$true] %s633_s8  ;;  %s636_s28 = int_to_ptr.vmem [resolvable:$true] %s635_s28 }
  0x2f   : > { %s11572_s14 = sld [smem:[#allocation54_spill]]  ;;  %s10201_s22 = smov [#allocation22]  }
  0x30   : > { %9371 = dma.hbm_to_vmem [thread:$0]  (!%p10372_p6), %s634_s8, 256, %s636_s28, [#allocation20]  }
  0x31   : > { %s11573_s16 = sld [smem:[#allocation55_spill]]  ;;  %s661_s24 = sshll.u32 %s10201_s22, 4  ;;  %s662_s24 = int_to_ptr.vmem [resolvable:$true] %s661_s24 }
  0x32   : > { %s10202_s29 = smov [#allocation25]   ;;  %s10401_s5 = sadd.s32 1, %s10193_s27  }
  0x33   : > { %s685_s8 = sshll.u32 %s10202_s29, 4  ;;  %s92_s23 = sadd.s32 1, %s10189_s26  ;;  %s686_s8 = int_to_ptr.vmem [resolvable:$true] %s685_s8 }
  0x34   : > { %s89_s1 = ssub.s32 %s10193_s27, %s10401_s5  ;;  %p99_p7 = scmp.ne.s32.totalorder %s10189_s26, %s10185_s25 }
  0x35   : > { %s659_s20 = sshll.u32 %s11572_s14, 4  ;;  %p90_p8 = scmp.eq.s32.totalorder %s89_s1, 0  ;;  %s660_s20 = int_to_ptr.hbm [resolvable:$true] %s659_s20 }
  0x36   : > { %9377 = dma.hbm_to_vmem [thread:$0]  (!%p10372_p6), %s660_s20, 16, %s662_s24, [#allocation23]  }
  0x37   : > { %s683_s19 = sshll.u32 %s11573_s16, 4  ;;  %p100_p9 = scmp.eq.s32.totalorder %s10193_s27, 0  ;;  %s684_s19 = int_to_ptr.hbm [resolvable:$true] %s683_s19 }
  0x38   : > { %9383 = dma.hbm_to_vmem [thread:$0]  (!%p10372_p6), %s684_s19, 16, %s686_s8, [#allocation26]  }
  0x39   : > { %p105_p10 = scmp.ne.s32.totalorder %s10185_s25, %s10181_s2  ;;  %p10414_p11 = por %p100_p9, %p99_p7 }
  0x3a   : > { %s10412_s21 = scalar_select %p90_p8, %s10189_s26, %s92_s23  }
  0x3b   : > { %p10420_p12 = por %p106_p1, %p105_p10  ;;  %p9411_p13 = scmp.lt.s32.totalorder %s10193_s27, 8 }
  0x3c   : > { %11574 = sst [smem:[#allocation43_spill]] %s10412_s21  ;;  %s730_s17 = sand.u32 1, %s10193_s27  }
  0x3d   : > { %s732_s20 = sand.u32 1, %s10189_s26   ;;  %s8795_s30 = sshll.u32 %s10193_s27, 8 }
  0x3e   : > { %s10427_s0 = sshll.u32 %s732_s20, 8  ;;  %s11577_s22 = sld [smem:[#allocation46_spill]] }
  0x3f   : > { %s734_s29 = scalar_lea.vmem [#allocation7], %s10427_s0  ;;  %p10436_p0 = pnand %p9411_p13, %p10414_p11 }
  0x40   : > { %s742_s8 = sshll.u32 %s734_s29, 4  ;;  %s11579_s20 = sld [smem:[#allocation47_spill]]  ;;  %s743_s8 = int_to_ptr.vmem [resolvable:$true] %s742_s8 }
  0x41   : > { %s10443_s16 = scalar_lea.sflag [#allocation8], %s730_s17  ;;  %p9799_p5 = pneg %p10436_p0 }
  0x44   : > { %s739_s24 = scalar_lea.hbm %s11577_s22, %s8795_s30  ;;  %s9802_s10 = scalar_lea.hbm %s11577_s22, 2048 }
  0x45   : > { %s740_s23 = sshll.u32 %s739_s24, 4  ;;  %s741_s23 = int_to_ptr.hbm [resolvable:$true] %s740_s23 }
  0x46   : > { %s761_s27 = scalar_lea.hbm %s11579_s20, %s8795_s30  ;;  %s9795_s2 = sshra.s32 %s741_s23, 4  ;;  %s9796_s2 = int_to_ptr.hbm [resolvable:$true] %s9795_s2 }
  0x47   : > { %s762_s14 = sshll.u32 %s761_s27, 4  ;;  %s9797_s19 = scalar_lea.hbm %s9796_s2, 256  ;;  %s10462_s14 = int_to_ptr.hbm [resolvable:$true] %s762_s14 }
  0x48   : > { %p9798_p2 = scmp.ne.s32.totalorder %s9796_s2, %s9797_s19  ;;  %p9803_p9 = scmp.lt.s32.totalorder %s9796_s2, %s11577_s22 }
  0x49   : > { %p9804_p10 = scmp.lt.s32.totalorder %s9802_s10, %s9797_s19 }
  0x4a   : > { %p9800_p7 = pnand %p9799_p5, %p9798_p2 }
  0x4b   : > { %p9805_p11 = por %p9804_p10, %p9803_p9 }
  0x4c   : > { %p9801_p8 = pneg %p9800_p7 }
  0x4e   : > { %p9806_p13 = pnand %p9805_p11, %p9801_p8 }
  0x50   : > { %9809 = shalt.err (!%p9806_p13)
}
  0x51   : > { %s11546_s17 = smov 256   ;;  %s11547_s30 = smov 16  }
  0x52   : > { %9393 = dma.hbm_to_vmem [thread:$0]  (!%p10436_p0), %s741_s23, 4096, %s743_s8, %s10443_s16, %s11546_s17, %s11546_s17, %s11547_s30  }
  0x53   : > { %s756_s27 = scalar_lea.vmem [#allocation9], %s10427_s0  ;;  %s11580_s24 = sld [smem:[#allocation45_spill]] }
  0x54   : > { %s10465_s2 = sshll.u32 %s756_s27, 4  ;;  %s10205_s12 = smov [#allocation4]   ;;  %s765_s2 = int_to_ptr.vmem [resolvable:$true] %s10465_s2 }
  0x55   : > { %s541_s29 = sshll.u32 %s10205_s12, 4  ;;  %s568_s26 = sshll.u32 %s11522_s6, 4  ;;  %s542_s29 = int_to_ptr.vmem [resolvable:$true] %s541_s29  ;;  %s569_s26 = int_to_ptr.hbm [resolvable:$true] %s568_s26 }
  0x56   : > { %s595_s23 = sshll.u32 %s11525_s9, 4  ;;  %s10206_s27 = smov [#allocation12]   ;;  %s596_s23 = int_to_ptr.hbm [resolvable:$true] %s595_s23 }
  0x57   : > { %s570_s19 = sshll.u32 %s10206_s27, 4  ;;  %s10207_s21 = smov [#allocation15]   ;;  %s571_s19 = int_to_ptr.vmem [resolvable:$true] %s570_s19 }
  0x58   : > { %9356 = dma.hbm_to_vmem [thread:$0]  (!%p10372_p6), %s569_s26, 48, %s571_s19, [#allocation11]  }
  0x59   : > { %s539_s10 = sshll.u32 %s11580_s24, 4  ;;  %s597_s22 = sshll.u32 %s10207_s21, 4  ;;  %s540_s10 = int_to_ptr.hbm [resolvable:$true] %s539_s10  ;;  %s598_s22 = int_to_ptr.vmem [resolvable:$true] %s597_s22 }
  0x5a   : > { %9350 = dma.hbm_to_vmem [thread:$0]  (!%p10372_p6), %s540_s10, 12288, %s542_s29, [#allocation5], %s11546_s17, %s11546_s17, %s11547_s30  }
  0x5b   : > { %s618_s12 = sshll.u32 %s11527_s11, 4  ;;  %s10208_s10 = smov [#allocation18]   ;;  %s619_s12 = int_to_ptr.hbm [resolvable:$true] %s618_s12 }
  0x5c   : > { %9362 = dma.hbm_to_vmem [thread:$0]  (!%p10372_p6), %s596_s23, 16, %s598_s22, [#allocation14]  }
  0x5d   : > { %s620_s29 = sshll.u32 %s10208_s10, 4  ;;  %s644_s27 = sshll.u32 %s11529_s13, 4  ;;  %s621_s29 = int_to_ptr.vmem [resolvable:$true] %s620_s29  ;;  %s645_s27 = int_to_ptr.hbm [resolvable:$true] %s644_s27 }
  0x5e   : > { %s10209_s17 = smov 1024   ;;  %s10210_s26 = smov 64  }
  0x5f   : > { %9368 = dma.hbm_to_vmem [thread:$0]  (!%p10372_p6), %s619_s12, 16384, %s621_s29, [#allocation17], %s10209_s17, %s10209_s17, %s10210_s26  }
  0x60   : > { %s10211_s19 = smov [#allocation21]   ;;  %s671_s23 = sshll.u32 %s11531_s15, 4  ;;  %s672_s23 = int_to_ptr.hbm [resolvable:$true] %s671_s23 }
  0x61   : > { %s646_s21 = sshll.u32 %s10211_s19, 4  ;;  %s10212_s22 = smov 4   ;;  %s647_s21 = int_to_ptr.vmem [resolvable:$true] %s646_s21 }
  0x62   : > { %9374 = dma.hbm_to_vmem [thread:$0]  (!%p10372_p6), %s645_s27, 16384, %s647_s21, [#allocation20], %s10210_s26, %s10210_s26, %s10212_s22  }
  0x63   : > { %s10213_s10 = smov [#allocation24]   ;;  %s697_s12 = sshll.u32 %s11534_s18, 4  ;;  %s698_s12 = int_to_ptr.hbm [resolvable:$true] %s697_s12 }
  0x64   : > { %s673_s0 = sshll.u32 %s10213_s10, 4  ;;  %s10214_s29 = smov [#allocation27]   ;;  %s674_s0 = int_to_ptr.vmem [resolvable:$true] %s673_s0 }
  0x65   : > { %9380 = dma.hbm_to_vmem [thread:$0]  (!%p10372_p6), %s672_s23, 16, %s674_s0, [#allocation23]  }
  0x66   : > { %s699_s19 = sshll.u32 %s10214_s29, 4  ;;  %s11581_s21 = sld [smem:[#allocation57_spill]]  ;;  %s700_s19 = int_to_ptr.vmem [resolvable:$true] %s699_s19 }
  0x67   : > { %s10215_s30 = smov 128   ;;  %s10216_s10 = smov 8  }
  0x68   : > { %9386 = dma.hbm_to_vmem [thread:$0]  (!%p10372_p6), %s698_s12, 256, %s700_s19, [#allocation26], %s10215_s30, %s10215_s30, %s10216_s10  }
  0x69   : > { %s10217_s8 = smov [#allocation28]   ;;  %s10065_s23 = sshra.s32 %s10462_s14, 4  ;;  %s10066_s23 = int_to_ptr.hbm [resolvable:$true] %s10065_s23 }
  0x6a   : > { %s713_s17 = sshll.u32 %s10217_s8, 4  ;;  %s10067_s0 = scalar_lea.hbm %s10066_s23, 256  ;;  %s714_s17 = int_to_ptr.vmem [resolvable:$true] %s713_s17 }
  0x6b   : > { %p10068_p2 = scmp.ne.s32.totalorder %s10066_s23, %s10067_s0  ;;  %s10072_s30 = scalar_lea.hbm %s11579_s20, 2048 }
  0x6c   : > { %s711_s24 = sshll.u32 %s11581_s21, 4  ;;  %p10073_p9 = scmp.lt.s32.totalorder %s10066_s23, %s11579_s20  ;;  %s712_s24 = int_to_ptr.hbm [resolvable:$true] %s711_s24 }
  0x6d   : > { %9389 = dma.hbm_to_vmem [thread:$0]  (!%p10372_p6), %s712_s24, 4096, %s714_s17, [#allocation29], %s10210_s26, %s10210_s26, %s10212_s22  }
  0x6e   : > { %p10070_p7 = pnand %p10068_p2, %p9799_p5  ;;  %p10074_p10 = scmp.lt.s32.totalorder %s10072_s30, %s10067_s0 }
  0x70   : > { %p10071_p8 = pneg %p10070_p7  ;;  %p10075_p11 = por %p10074_p10, %p10073_p9 }
  0x72   : > { %p10076_p13 = pnand %p10075_p11, %p10071_p8 }
  0x74   : > { %10079 = shalt.err (!%p10076_p13)
}
  0x75   : > { %s11582_s3 = smov 16   ;;  %s11583_s26 = smov 256  }
  0x76   : > { %9396 = dma.hbm_to_vmem [thread:$0]  (!%p10436_p0), %s10462_s14, 4096, %s765_s2, %s10443_s16, %s11583_s26, %s11583_s26, %s11582_s3  }
  0x77   : > { %783 = sbr.rel (%p10361_p4) target bundleno = 3620 (0xe24), region = 104 }
  0x7c   : > { %10140 = dma.done.wait (%p106_p1), [#allocation5], 12288  }
  0x7d   : > { %10142 = vsyncadd (%p106_p1), [#allocation5], 4294955008  ;;  %s790_s27 = sand.u32 1, %s10355_s4   ;;  %s792_s1 = sand.u32 1, %s10185_s25  }
  0x7e   : > { %s6800_s21 = sshll.u32 %s792_s1, 8  ;;  %s791_s24 = scalar_lea.sflag [#allocation8], %s790_s27 }
  0x7f   : > { %s10541_s10 = scalar_lea.vmem [#allocation7], %s6800_s21 }
  0x80   : > { %10144 = dma.done.wait (%p10420_p12), %s791_s24, 8192  }
  0x81   : > { %10146 = vsyncadd (%p10420_p12), %s791_s24, 4294959104  ;;  %s10547_s14 = scalar_lea.vmem [#allocation9], %s6800_s21 }
  0x82   : > { %10148 = dma.done.wait (%p106_p1), [#allocation11], 3120  }
  0x83   : > { %10150 = vsyncadd (%p106_p1), [#allocation11], 4294964176 }
  0x84   : > { %10152 = dma.done.wait (%p106_p1), [#allocation14], 32  }
  0x85   : > { %10154 = vsyncadd (%p106_p1), [#allocation14], 4294967264 }
  0x86   : > { %10156 = dma.done.wait (%p106_p1), [#allocation17], 16400  }
  0x87   : > { %10158 = vsyncadd (%p106_p1), [#allocation17], 4294950896 }
  0x88   : > { %10160 = dma.done.wait (%p106_p1), [#allocation20], 16640  }
  0x89   : > { %10162 = vsyncadd (%p106_p1), [#allocation20], 4294950656 }
  0x8a   : > { %10164 = dma.done.wait (%p106_p1), [#allocation23], 32  }
  0x8b   : > { %10166 = vsyncadd (%p106_p1), [#allocation23], 4294967264 }
  0x8c   : > { %10168 = dma.done.wait (%p106_p1), [#allocation26], 272  }
  0x8d   : > { %10170 = vsyncadd (%p106_p1), [#allocation26], 4294967024 }
  0x8e   : > { %10172 = dma.done.wait (%p106_p1), [#allocation29], 4096  }
  0x8f   : > { %10174 = vsyncadd (%p106_p1), [#allocation29], 4294963200  ;;  %p933_p4 = scmp.lt.s32.totalorder %s10355_s4, 7  ;;  %s11585_s17 = sld [smem:[#allocation48_spill]] }
  0x90   : > { %s11586_s28 = sld [smem:[#allocation44_spill]] (!%p6777_p3) }
  0x91   : > { %s934_s16 = scalar_select %p933_p4, %s10355_s4, 7 }
  0x92   : > { %941 = sbr.rel (%p6777_p3) target bundleno = 414 (0x19e), region = 172 }
  0x93   : > { %s6815_s7 = sshll.u32 %s934_s16, 2 }
  0x95   : > { %s10582_s23 = scalar_lea.vmem %s11585_s17, %s6815_s7 }
  0x97   : > { %v6955_v0 = vld [vmem:[#allocation4 + $0xe0] sm:$0xf]  ;;  %v8833_v1 = vld [vmem:[#allocation4 + $0xec] sm:$0xf0]  ;;  %v8831_v9 = vld [vmem:[#allocation4 + $0xe4] sm:$0xf] }
  0x98   : > { %v7083_v2 = vld [vmem:[#allocation4 + $0x1e0] sm:$0xf]  ;;  %v6956_v3 = vor.u32 %v8833_v1, %v6955_v0  ;;  %v8865_v4 = vld [vmem:[#allocation4 + $0x1ec] sm:$0xf0]  ;;  %v6957_v10 = vld [vmem:[#allocation4 + $0xf0] sm:$0xf0] }
  0x99   : > { %v7211_v5 = vld [vmem:[#allocation4 + $0x2e0] sm:$0xf]  ;;  %v8897_v6 = vld [vmem:[#allocation4 + $0x2ec] sm:$0xf0]  ;;  %v7084_v7 = vor.u32 %v8865_v4, %v7083_v2  ;;  %v6960_v12 = vor.u32 %v8831_v9, %v6957_v10  ;;  %v8827_v20 = vld [vmem:[#allocation4 + $0xc4] sm:$0xf] }
  0x9a   : > { %v7212_v8 = vor.u32 %v8897_v6, %v7211_v5  ;;  %v6939_v11 = vld [vmem:[#allocation4 + $0xc0] sm:$0xf]  ;;  %1568 = vmatpush.bf16.msra.mxu0 %v6956_v3  ;;  %v8829_v13 = vld [vmem:[#allocation4 + $0xcc] sm:$0xf0]  ;;  %v6941_v22 = vld [vmem:[#allocation4 + $0xd0] sm:$0xf0] }
  0x9b   : > { %v7067_v14 = vld [vmem:[#allocation4 + $0x1c0] sm:$0xf]  ;;  %v8861_v15 = vld [vmem:[#allocation4 + $0x1cc] sm:$0xf0]  ;;  %1587 = vmatpush.bf16.msra.mxu1 %v7084_v7  ;;  %v6940_v16 = vor.u32 %v8829_v13, %v6939_v11  ;;  %1625 = vmatpush.bf16.msra.mxu3 %v6960_v12  ;;  %v6944_v25 = vor.u32 %v8827_v20, %v6941_v22  ;;  %v8823_v31 = vld [vmem:[#allocation4 + $0xa4] sm:$0xf] }
  0x9c   : > { %1606 = vmatpush.bf16.msra.mxu2 %v7212_v8  ;;  %v7068_v17 = vor.u32 %v8861_v15, %v7067_v14  ;;  %v7195_v18 = vld [vmem:[#allocation4 + $0x2c0] sm:$0xf]  ;;  %v8893_v19 = vld [vmem:[#allocation4 + $0x2cc] sm:$0xf0]  ;;  %v6925_v32 = vld [vmem:[#allocation4 + $0xb0] sm:$0xf0] }
  0x9d   : > { %v7196_v21 = vor.u32 %v8893_v19, %v7195_v18  ;;  %v6923_v23 = vld [vmem:[#allocation4 + $0xa0] sm:$0xf]  ;;  %v8825_v24 = vld [vmem:[#allocation4 + $0xac] sm:$0xf0]  ;;  %v6928_v38 = vor.u32 %v8823_v31, %v6925_v32  ;;  %v8819_v42 = vld [vmem:[#allocation4 + $0x84] sm:$0xf] }
  0x9e   : > { %v7051_v26 = vld [vmem:[#allocation4 + $0x1a0] sm:$0xf]  ;;  %v8857_v27 = vld [vmem:[#allocation4 + $0x1ac] sm:$0xf0]  ;;  %1569 = vmatpush.bf16.msra.mxu0 %v6940_v16  ;;  %v6924_v29 = vor.u32 %v8825_v24, %v6923_v23  ;;  %v6909_v43 = vld [vmem:[#allocation4 + $0x90] sm:$0xf0] }
  0x9f   : > { %v7179_v28 = vld [vmem:[#allocation4 + $0x2a0] sm:$0xf]  ;;  %v8889_v30 = vld [vmem:[#allocation4 + $0x2ac] sm:$0xf0]  ;;  %1588 = vmatpush.bf16.msra.mxu1 %v7068_v17  ;;  %v7052_v33 = vor.u32 %v8857_v27, %v7051_v26  ;;  %1626 = vmatpush.bf16.msra.mxu3 %v6944_v25  ;;  %v6912_v50 = vor.u32 %v8819_v42, %v6909_v43  ;;  %v8815_v54 = vld [vmem:[#allocation4 + $0x64] sm:$0xf] }
  0xa0   : > { %1607 = vmatpush.bf16.msra.mxu2 %v7196_v21  ;;  %v7180_v34 = vor.u32 %v8889_v30, %v7179_v28  ;;  %v6907_v35 = vld [vmem:[#allocation4 + $0x80] sm:$0xf]  ;;  %v8821_v36 = vld [vmem:[#allocation4 + $0x8c] sm:$0xf0]  ;;  %v6893_v55 = vld [vmem:[#allocation4 + $0x70] sm:$0xf0] }
  0xa1   : > { %v7035_v37 = vld [vmem:[#allocation4 + $0x180] sm:$0xf]  ;;  %v8853_v39 = vld [vmem:[#allocation4 + $0x18c] sm:$0xf0]  ;;  %v6908_v44 = vor.u32 %v8821_v36, %v6907_v35  ;;  %v6896_v62 = vor.u32 %v8815_v54, %v6893_v55  ;;  %v8811_v2 = vld [vmem:[#allocation4 + $0x44] sm:$0xf] }
  0xa2   : > { %v7163_v40 = vld [vmem:[#allocation4 + $0x280] sm:$0xf]  ;;  %v8885_v41 = vld [vmem:[#allocation4 + $0x28c] sm:$0xf0]  ;;  %1570 = vmatpush.bf16.msra.mxu0 %v6924_v29  ;;  %v7036_v45 = vor.u32 %v8853_v39, %v7035_v37  ;;  %v6877_v3 = vld [vmem:[#allocation4 + $0x50] sm:$0xf0] }
  0xa3   : > { %1589 = vmatpush.bf16.msra.mxu1 %v7052_v33  ;;  %v7164_v46 = vor.u32 %v8885_v41, %v7163_v40  ;;  %v6891_v47 = vld [vmem:[#allocation4 + $0x60] sm:$0xf]  ;;  %v8817_v48 = vld [vmem:[#allocation4 + $0x6c] sm:$0xf0]  ;;  %1627 = vmatpush.bf16.msra.mxu3 %v6928_v38  ;;  %v6880_v10 = vor.u32 %v8811_v2, %v6877_v3  ;;  %v8807_v14 = vld [vmem:[#allocation4 + $0x24] sm:$0xf] }
  0xa4   : > { %1608 = vmatpush.bf16.msra.mxu2 %v7180_v34  ;;  %v7019_v49 = vld [vmem:[#allocation4 + $0x160] sm:$0xf]  ;;  %v8849_v51 = vld [vmem:[#allocation4 + $0x16c] sm:$0xf0]  ;;  %v6892_v56 = vor.u32 %v8817_v48, %v6891_v47  ;;  %v6861_v15 = vld [vmem:[#allocation4 + $0x30] sm:$0xf0] }
  0xa5   : > { %v7147_v52 = vld [vmem:[#allocation4 + $0x260] sm:$0xf]  ;;  %v8881_v53 = vld [vmem:[#allocation4 + $0x26c] sm:$0xf0]  ;;  %v7020_v57 = vor.u32 %v8849_v51, %v7019_v49  ;;  %v6864_v25 = vor.u32 %v8807_v14, %v6861_v15  ;;  %v8803_v26 = vld [vmem:[#allocation4 + $0x4] sm:$0xf] }
  0xa6   : > { %1571 = vmatpush.bf16.msra.mxu0 %v6908_v44  ;;  %v7148_v58 = vor.u32 %v8881_v53, %v7147_v52  ;;  %v6875_v59 = vld [vmem:[#allocation4 + $0x40] sm:$0xf]  ;;  %v8813_v60 = vld [vmem:[#allocation4 + $0x4c] sm:$0xf0]  ;;  %v6845_v27 = vld [vmem:[#allocation4 + $0x10] sm:$0xf0] }
  0xa7   : > { %1590 = vmatpush.bf16.msra.mxu1 %v7036_v45  ;;  %v7003_v61 = vld [vmem:[#allocation4 + $0x140] sm:$0xf]  ;;  %1628 = vmatpush.bf16.msra.mxu3 %v6912_v50  ;;  %v8845_v63 = vld [vmem:[#allocation4 + $0x14c] sm:$0xf0]  ;;  %v6876_v4 = vor.u32 %v8813_v60, %v6875_v59  ;;  %v8798_v29 = vld [vmem:[%s11586_s28 + $0x8] sm:$0xf0]  ;;  %v6848_v41 = vor.u32 %v8803_v26, %v6845_v27 }
  0xa8   : > { %1609 = vmatpush.bf16.msra.mxu2 %v7164_v46  ;;  %v7131_v0 = vld [vmem:[#allocation4 + $0x240] sm:$0xf]  ;;  %v8877_v1 = vld [vmem:[#allocation4 + $0x24c] sm:$0xf0]  ;;  %v7004_v5 = vor.u32 %v8845_v63, %v7003_v61  ;;  %v6963_v30 = vld [vmem:[#allocation4 + $0xe8] sm:$0xf] }
  0xa9   : > { %v7132_v6 = vor.u32 %v8877_v1, %v7131_v0  ;;  %v6859_v7 = vld [vmem:[#allocation4 + $0x20] sm:$0xf]  ;;  %v8809_v8 = vld [vmem:[#allocation4 + $0x2c] sm:$0xf0]  ;;  %v8834_v31 = vld [vmem:[#allocation4 + $0xf4] sm:$0xf0] }
  0xaa   : > { %1572 = vmatpush.bf16.msra.mxu0 %v6892_v56  ;;  %v6987_v9 = vld [vmem:[#allocation4 + $0x120] sm:$0xf]  ;;  %v8841_v11 = vld [vmem:[#allocation4 + $0x12c] sm:$0xf0]  ;;  %v6860_v16 = vor.u32 %v8809_v8, %v6859_v7  ;;  %v8797_v33 = vld [vmem:[%s11586_s28 + $0x4] sm:$0xf]  ;;  %v6964_v42 = vor.u32 %v8834_v31, %v6963_v30 }
  0xab   : > { %1591 = vmatpush.bf16.msra.mxu1 %v7020_v57  ;;  %1629 = vmatpush.bf16.msra.mxu3 %v6896_v62  ;;  %v7115_v12 = vld [vmem:[#allocation4 + $0x220] sm:$0xf]  ;;  %v8873_v13 = vld [vmem:[#allocation4 + $0x22c] sm:$0xf0]  ;;  %v6988_v20 = vor.u32 %v8841_v11, %v6987_v9  ;;  %v8895_v34 = vld [vmem:[#allocation4 + $0x2e4] sm:$0xf] }
  0xac   : > { %1610 = vmatpush.bf16.msra.mxu2 %v7148_v58  ;;  %v6843_v17 = vld [vmem:[#allocation4] sm:$0xf]  ;;  %v8805_v18 = vld [vmem:[#allocation4 + $0xc] sm:$0xf0]  ;;  %v7116_v21 = vor.u32 %v8873_v13, %v7115_v12  ;;  %v7213_v35 = vld [vmem:[#allocation4 + $0x2f0] sm:$0xf0] }
  0xad   : > { %v6971_v19 = vld [vmem:[#allocation4 + $0x100] sm:$0xf]  ;;  %v8837_v22 = vld [vmem:[#allocation4 + $0x10c] sm:$0xf0]  ;;  %v6844_v32 = vor.u32 %v8805_v18, %v6843_v17  ;;  %v6827_v39 = vld [vmem:[%s11586_s28 + $0x8] sm:$0xf]  ;;  %v7216_v47 = vor.u32 %v8895_v34, %v7213_v35 }
  0xae   : > { %1573 = vmatpush.bf16.msra.mxu0 %v6876_v4  ;;  %v7099_v23 = vld [vmem:[#allocation4 + $0x200] sm:$0xf]  ;;  %v8869_v24 = vld [vmem:[#allocation4 + $0x20c] sm:$0xf0]  ;;  %v6972_v36 = vor.u32 %v8837_v22, %v6971_v19  ;;  %v8799_v40 = vld [vmem:[%s11586_s28 + $0x10] sm:$0xf0] }
  0xaf   : > { %1592 = vmatpush.bf16.msra.mxu1 %v7004_v5  ;;  %1630 = vmatpush.bf16.msra.mxu3 %v6880_v10  ;;  %v6819_v28 = vld [vmem:[%s11586_s28] sm:$0xf]  ;;  %v7100_v37 = vor.u32 %v8869_v24, %v7099_v23  ;;  %v6821_v38 = vld [vmem:[%s11586_s28 + $0xc] sm:$0xf0]  ;;  %v8863_v43 = vld [vmem:[#allocation4 + $0x1e4] sm:$0xf]  ;;  %v10608_v52 = vor.u32 %v8799_v40, %v6827_v39 }
  0xb0   : > { %1611 = vmatpush.bf16.msra.mxu2 %v7132_v6  ;;  %v7085_v44 = vld [vmem:[#allocation4 + $0x1f0] sm:$0xf0]  ;;  %v7091_v45 = vld [vmem:[#allocation4 + $0x1e8] sm:$0xf]  ;;  %v10604_v46 = vor.u32 %v8798_v29, %v6819_v28  ;;  %v8866_v48 = vld [vmem:[#allocation4 + $0x1f4] sm:$0xf0]  ;;  %v10606_v51 = vor.u32 %v8797_v33, %v6821_v38 }
  0xb1   : > { %v6947_v49 = vld [vmem:[#allocation4 + $0xc8] sm:$0xf]  ;;  %v8830_v50 = vld [vmem:[#allocation4 + $0xd4] sm:$0xf0]  ;;  %v8891_v53 = vld [vmem:[#allocation4 + $0x2c4] sm:$0xf]  ;;  %v7088_v55 = vor.u32 %v8863_v43, %v7085_v44  ;;  %v7092_v56 = vor.u32 %v8866_v48, %v7091_v45 }
  0xb2   : > { %1574 = vmatpush.bf16.msra.mxu0 %v6860_v16  ;;  %v7197_v54 = vld [vmem:[#allocation4 + $0x2d0] sm:$0xf0]  ;;  %v6948_v57 = vor.u32 %v8830_v50, %v6947_v49  ;;  %v8859_v58 = vld [vmem:[#allocation4 + $0x1c4] sm:$0xf]  ;;  %v7075_v60 = vld [vmem:[#allocation4 + $0x1c8] sm:$0xf] }
  0xb3   : > { %1593 = vmatpush.bf16.msra.mxu1 %v6988_v20  ;;  %1631 = vmatpush.bf16.msra.mxu3 %v6864_v25  ;;  %v7069_v59 = vld [vmem:[#allocation4 + $0x1d0] sm:$0xf0]  ;;  %v7200_v61 = vor.u32 %v8891_v53, %v7197_v54  ;;  %v8862_v62 = vld [vmem:[#allocation4 + $0x1d4] sm:$0xf0]  ;;  %v6931_v63 = vld [vmem:[#allocation4 + $0xa8] sm:$0xf] }
  0xb4   : > { %1612 = vmatpush.bf16.msra.mxu2 %v7116_v21  ;;  %v8826_v0 = vld [vmem:[#allocation4 + $0xb4] sm:$0xf0]  ;;  %v8887_v1 = vld [vmem:[#allocation4 + $0x2a4] sm:$0xf]  ;;  %v7181_v2 = vld [vmem:[#allocation4 + $0x2b0] sm:$0xf0]  ;;  %v7072_v3 = vor.u32 %v8859_v58, %v7069_v59  ;;  %v7076_v4 = vor.u32 %v8862_v62, %v7075_v60 }
  0xb5   : > { %v6932_v5 = vor.u32 %v8826_v0, %v6931_v63  ;;  %v8855_v6 = vld [vmem:[#allocation4 + $0x1a4] sm:$0xf]  ;;  %v7053_v7 = vld [vmem:[#allocation4 + $0x1b0] sm:$0xf0]  ;;  %v7059_v8 = vld [vmem:[#allocation4 + $0x1a8] sm:$0xf]  ;;  %v7184_v9 = vor.u32 %v8887_v1, %v7181_v2 }
  0xb6   : > { %1575 = vmatpush.bf16.msra.mxu0 %v6844_v32  ;;  %v8858_v10 = vld [vmem:[#allocation4 + $0x1b4] sm:$0xf0]  ;;  %v6915_v11 = vld [vmem:[#allocation4 + $0x88] sm:$0xf]  ;;  %v8883_v13 = vld [vmem:[#allocation4 + $0x284] sm:$0xf]  ;;  %v7056_v15 = vor.u32 %v8855_v6, %v7053_v7 }
  0xb7   : > { %1594 = vmatpush.bf16.msra.mxu1 %v6972_v36  ;;  %1632 = vmatpush.bf16.msra.mxu3 %v6848_v41  ;;  %v8822_v12 = vld [vmem:[#allocation4 + $0x94] sm:$0xf0]  ;;  %v7165_v14 = vld [vmem:[#allocation4 + $0x290] sm:$0xf0]  ;;  %v8851_v16 = vld [vmem:[#allocation4 + $0x184] sm:$0xf]  ;;  %v7060_v18 = vor.u32 %v8858_v10, %v7059_v8 }
  0xb8   : > { %1613 = vmatpush.bf16.msra.mxu2 %v7100_v37  ;;  %v7037_v17 = vld [vmem:[#allocation4 + $0x190] sm:$0xf0]  ;;  %v6916_v19 = vor.u32 %v8822_v12, %v6915_v11  ;;  %v7043_v20 = vld [vmem:[#allocation4 + $0x188] sm:$0xf]  ;;  %v8854_v21 = vld [vmem:[#allocation4 + $0x194] sm:$0xf0]  ;;  %v7168_v23 = vor.u32 %v8883_v13, %v7165_v14 }
  0xb9   : > { %1576 = vmatmul.bf16.vlgmr.msra.gmra.mxu0 %v10604_v46  ;;  %v6831_v22 = vld [vmem:[%s11586_s28 + $0x18] sm:$0xf]  ;;  %v8801_v24 = vld [vmem:[%s11586_s28 + $0x20] sm:$0xf0]  ;;  %v6899_v25 = vld [vmem:[#allocation4 + $0x68] sm:$0xf]  ;;  %v7040_v30 = vor.u32 %v8851_v16, %v7037_v17  ;;  %v7044_v34 = vor.u32 %v8854_v21, %v7043_v20 }
  0xba   : > { %1595 = vmatmul.bf16.vlgmr.msra.gmra.mxu1 %v10606_v51  ;;  %1633 = vmatmul.bf16.vlgmr.msra.gmra.mxu3 %v10604_v46  ;;  %v8818_v26 = vld [vmem:[#allocation4 + $0x74] sm:$0xf0]  ;;  %v8800_v27 = vld [vmem:[%s11586_s28 + $0x1c] sm:$0xf]  ;;  %v8879_v28 = vld [vmem:[#allocation4 + $0x264] sm:$0xf]  ;;  %v10632_v39 = vor.u32 %v8801_v24, %v6831_v22 }
  0xbb   : > { %1663 = vmatpush.bf16.msrb.mxu1 %v7216_v47  ;;  %1614 = vmatmul.bf16.vlgmr.msra.gmra.mxu2 %v10608_v52  ;;  %v7149_v29 = vld [vmem:[#allocation4 + $0x270] sm:$0xf0]  ;;  %v6833_v31 = vld [vmem:[%s11586_s28 + $0x24] sm:$0xf0]  ;;  %v6839_v32 = vld [vmem:[%s11586_s28 + $0x20] sm:$0xf]  ;;  %v6900_v35 = vor.u32 %v8818_v26, %v6899_v25 }
  0xbc   : > { %1682 = vmatpush.bf16.msrb.mxu2 %v6964_v42  ;;  %1644 = vmatpush.bf16.msrb.mxu0 %v7088_v55  ;;  %v8802_v33 = vld [vmem:[%s11586_s28 + $0x28] sm:$0xf0]  ;;  %v8847_v36 = vld [vmem:[#allocation4 + $0x164] sm:$0xf]  ;;  %v7021_v37 = vld [vmem:[#allocation4 + $0x170] sm:$0xf0]  ;;  %v7152_v40 = vor.u32 %v8879_v28, %v7149_v29  ;;  %v10634_v44 = vor.u32 %v8800_v27, %v6833_v31 }
  0xbd   : > { %1701 = vmatpush.bf16.msrb.mxu3 %v7092_v56  ;;  %v7027_v38 = vld [vmem:[#allocation4 + $0x168] sm:$0xf]  ;;  %v8850_v41 = vld [vmem:[#allocation4 + $0x174] sm:$0xf0]  ;;  %v10636_v45 = vor.u32 %v8802_v33, %v6839_v32  ;;  %v8875_v47 = vld [vmem:[#allocation4 + $0x244] sm:$0xf]  ;;  %v7024_v49 = vor.u32 %v8847_v36, %v7021_v37 }
  0xbe   : > { %v6883_v42 = vld [vmem:[#allocation4 + $0x48] sm:$0xf]  ;;  %v8814_v43 = vld [vmem:[#allocation4 + $0x54] sm:$0xf0]  ;;  %v7133_v48 = vld [vmem:[#allocation4 + $0x250] sm:$0xf0]  ;;  %v7028_v50 = vor.u32 %v8850_v41, %v7027_v38 }
  0xbf   : > { %1664 = vmatpush.bf16.msrb.mxu1 %v7200_v61  ;;  %v6884_v53 = vor.u32 %v8814_v43, %v6883_v42  ;;  %v8843_v54 = vld [vmem:[#allocation4 + $0x144] sm:$0xf]  ;;  %v7005_v55 = vld [vmem:[#allocation4 + $0x150] sm:$0xf0]  ;;  %v7011_v56 = vld [vmem:[#allocation4 + $0x148] sm:$0xf] }
  0xc0   : > { %1683 = vmatpush.bf16.msrb.mxu2 %v6948_v57  ;;  %1645 = vmatpush.bf16.msrb.mxu0 %v7072_v3  ;;  %v7136_v57 = vor.u32 %v8875_v47, %v7133_v48  ;;  %v8846_v58 = vld [vmem:[#allocation4 + $0x154] sm:$0xf0]  ;;  %v6867_v59 = vld [vmem:[#allocation4 + $0x28] sm:$0xf]  ;;  %v8871_v61 = vld [vmem:[#allocation4 + $0x224] sm:$0xf]  ;;  %v7008_v63 = vor.u32 %v8843_v54, %v7005_v55 }
  0xc1   : > { %1702 = vmatpush.bf16.msrb.mxu3 %v7076_v4  ;;  %v8810_v60 = vld [vmem:[#allocation4 + $0x34] sm:$0xf0]  ;;  %v7117_v62 = vld [vmem:[#allocation4 + $0x230] sm:$0xf0]  ;;  %v8839_v0 = vld [vmem:[#allocation4 + $0x124] sm:$0xf]  ;;  %v7012_v1 = vor.u32 %v8846_v58, %v7011_v56 }
  0xc2   : > { %v6868_v2 = vor.u32 %v8810_v60, %v6867_v59  ;;  %v6989_v3 = vld [vmem:[#allocation4 + $0x130] sm:$0xf0]  ;;  %v6995_v4 = vld [vmem:[#allocation4 + $0x128] sm:$0xf]  ;;  %v7120_v6 = vor.u32 %v8871_v61, %v7117_v62  ;;  %v8806_v8 = vld [vmem:[#allocation4 + $0x14] sm:$0xf0] }
  0xc3   : > { %1665 = vmatpush.bf16.msrb.mxu1 %v7184_v9  ;;  %v6851_v7 = vld [vmem:[#allocation4 + $0x8] sm:$0xf]  ;;  %v8867_v9 = vld [vmem:[#allocation4 + $0x204] sm:$0xf]  ;;  %v7101_v10 = vld [vmem:[#allocation4 + $0x210] sm:$0xf0]  ;;  %v6992_v13 = vor.u32 %v8839_v0, %v6989_v3 }
  0xc4   : > { %1684 = vmatpush.bf16.msrb.mxu2 %v6932_v5  ;;  %1646 = vmatpush.bf16.msrb.mxu0 %v7056_v15  ;;  %v8842_v5 = vld [vmem:[#allocation4 + $0x134] sm:$0xf0]  ;;  %v8864_v11 = vld [vmem:[#allocation4 + $0x1ec] sm:$0xf]  ;;  %v7093_v12 = vld [vmem:[#allocation4 + $0x1f8] sm:$0xf0]  ;;  %v7104_v22 = vor.u32 %v8867_v9, %v7101_v10 }
  0xc5   : > { %1703 = vmatpush.bf16.msrb.mxu3 %v7060_v18  ;;  %v8835_v14 = vld [vmem:[#allocation4 + $0x104] sm:$0xf]  ;;  %v8832_v15 = vld [vmem:[#allocation4 + $0xec] sm:$0xf]  ;;  %v6965_v16 = vld [vmem:[#allocation4 + $0xf8] sm:$0xf0]  ;;  %v6996_v17 = vor.u32 %v8842_v5, %v6995_v4  ;;  %v6852_v18 = vor.u32 %v8806_v8, %v6851_v7 }
  0xc6   : > { %v6979_v20 = vld [vmem:[#allocation4 + $0x108] sm:$0xf]  ;;  %v8838_v21 = vld [vmem:[#allocation4 + $0x114] sm:$0xf0]  ;;  %v8896_v26 = vld [vmem:[#allocation4 + $0x2ec] sm:$0xf]  ;;  %v6968_v27 = vor.u32 %v8832_v15, %v6965_v16 }
  0xc7   : > { %1666 = vmatpush.bf16.msrb.mxu1 %v7168_v23  ;;  %v7096_v23 = vor.u32 %v8864_v11, %v7093_v12  ;;  %v7219_v24 = vld [vmem:[#allocation4 + $0x2e8] sm:$0xf]  ;;  %v8898_v25 = vld [vmem:[#allocation4 + $0x2f4] sm:$0xf0]  ;;  %v7221_v28 = vld [vmem:[#allocation4 + $0x2f8] sm:$0xf0]  ;;  %v6980_v32 = vor.u32 %v8838_v21, %v6979_v20 }
  0xc8   : > { %1685 = vmatpush.bf16.msrb.mxu2 %v6916_v19  ;;  %1647 = vmatpush.bf16.msrb.mxu0 %v7040_v30  ;;  %v6973_v19 = vld [vmem:[#allocation4 + $0x110] sm:$0xf0]  ;;  %v8860_v29 = vld [vmem:[#allocation4 + $0x1cc] sm:$0xf]  ;;  %v7077_v30 = vld [vmem:[#allocation4 + $0x1d8] sm:$0xf0]  ;;  %v7220_v33 = vor.u32 %v8898_v25, %v7219_v24  ;;  %v7224_v36 = vor.u32 %v8896_v26, %v7221_v28 }
  0xc9   : > { %1704 = vmatpush.bf16.msrb.mxu3 %v7044_v34  ;;  %1581 = vmatmul.bf16.gmra.mxu0 %v10632_v39  ;;  %v6976_v31 = vor.u32 %v8835_v14, %v6973_v19  ;;  %v7203_v34 = vld [vmem:[#allocation4 + $0x2c8] sm:$0xf]  ;;  %v7080_v37 = vor.u32 %v8860_v29, %v7077_v30  ;;  %v8828_v38 = vld [vmem:[#allocation4 + $0xcc] sm:$0xf]  ;;  %v7205_v42 = vld [vmem:[#allocation4 + $0x2d8] sm:$0xf0] }
  0xca   : > { %1600 = vmatmul.bf16.gmra.mxu1 %v10634_v44  ;;  %1638 = vmatmul.bf16.gmra.mxu3 %v10632_v39  ;;  %v8892_v41 = vld [vmem:[#allocation4 + $0x2cc] sm:$0xf]  ;;  %v7061_v47 = vld [vmem:[#allocation4 + $0x1b8] sm:$0xf0]  ;;  %v7171_v0 = vld [vmem:[#allocation4 + $0x288] sm:$0xf] }
  0xcb   : > { %1667 = vmatpush.bf16.msrb.mxu1 %v7152_v40  ;;  %1619 = vmatmul.bf16.gmra.mxu2 %v10636_v45  ;;  %v6949_v40 = vld [vmem:[#allocation4 + $0xd8] sm:$0xf0]  ;;  %v8856_v43 = vld [vmem:[#allocation4 + $0x1ac] sm:$0xf]  ;;  %v7208_v54 = vor.u32 %v8892_v41, %v7205_v42  ;;  %v7155_v12 = vld [vmem:[#allocation4 + $0x268] sm:$0xf] }
  0xcc   : > { %1686 = vmatpush.bf16.msrb.mxu2 %v6900_v35  ;;  %1648 = vmatpush.bf16.msrb.mxu0 %v7024_v49  ;;  %v8894_v35 = vld [vmem:[#allocation4 + $0x2d4] sm:$0xf0]  ;;  %v6952_v49 = vor.u32 %v8828_v38, %v6949_v40  ;;  %v7064_v55 = vor.u32 %v8856_v43, %v7061_v47  ;;  %v8824_v56 = vld [vmem:[#allocation4 + $0xac] sm:$0xf]  ;;  %v7189_v59 = vld [vmem:[#allocation4 + $0x2b8] sm:$0xf0] }
  0xcd   : > { %1705 = vmatpush.bf16.msrb.mxu3 %v7028_v50  ;;  %v7204_v48 = vor.u32 %v8894_v35, %v7203_v34  ;;  %v7187_v50 = vld [vmem:[#allocation4 + $0x2a8] sm:$0xf]  ;;  %v8888_v58 = vld [vmem:[#allocation4 + $0x2ac] sm:$0xf]  ;;  %v7045_v61 = vld [vmem:[#allocation4 + $0x198] sm:$0xf0] }
  0xce   : > { %v8852_v60 = vld [vmem:[#allocation4 + $0x18c] sm:$0xf]  ;;  %v6917_v5 = vld [vmem:[#allocation4 + $0x98] sm:$0xf0]  ;;  %v7139_v24 = vld [vmem:[#allocation4 + $0x248] sm:$0xf] }
  0xcf   : > { %1668 = vmatpush.bf16.msrb.mxu1 %v7136_v57  ;;  %v6933_v57 = vld [vmem:[#allocation4 + $0xb8] sm:$0xf0]  ;;  %v7048_v3 = vor.u32 %v8852_v60, %v7045_v61  ;;  %v8820_v4 = vld [vmem:[#allocation4 + $0x8c] sm:$0xf]  ;;  %v8878_v25 = vld [vmem:[#allocation4 + $0x254] sm:$0xf0] }
  0xd0   : > { %1687 = vmatpush.bf16.msrb.mxu2 %v6884_v53  ;;  %1649 = vmatpush.bf16.msrb.mxu0 %v7008_v63  ;;  %v8890_v53 = vld [vmem:[#allocation4 + $0x2b4] sm:$0xf0]  ;;  %v6936_v63 = vor.u32 %v8824_v56, %v6933_v57  ;;  %v7173_v7 = vld [vmem:[#allocation4 + $0x298] sm:$0xf0]  ;;  %v8848_v8 = vld [vmem:[#allocation4 + $0x16c] sm:$0xf]  ;;  %v6920_v11 = vor.u32 %v8820_v4, %v6917_v5  ;;  %v7140_v34 = vor.u32 %v8878_v25, %v7139_v24 }
  0xd1   : > { %1706 = vmatpush.bf16.msrb.mxu3 %v7012_v1  ;;  %v7188_v62 = vor.u32 %v8890_v53, %v7187_v50  ;;  %v8886_v1 = vld [vmem:[#allocation4 + $0x294] sm:$0xf0]  ;;  %v7029_v9 = vld [vmem:[#allocation4 + $0x178] sm:$0xf0]  ;;  %v8816_v16 = vld [vmem:[#allocation4 + $0x6c] sm:$0xf] }
  0xd2   : > { %v7172_v10 = vor.u32 %v8886_v1, %v7171_v0  ;;  %v7032_v15 = vor.u32 %v8848_v8, %v7029_v9  ;;  %v7157_v19 = vld [vmem:[#allocation4 + $0x278] sm:$0xf0]  ;;  %v8844_v20 = vld [vmem:[#allocation4 + $0x14c] sm:$0xf]  ;;  %v8870_v57 = vld [vmem:[#allocation4 + $0x214] sm:$0xf0] }
  0xd3   : > { %1669 = vmatpush.bf16.msrb.mxu1 %v7120_v6  ;;  %v8884_v6 = vld [vmem:[#allocation4 + $0x28c] sm:$0xf]  ;;  %v7013_v21 = vld [vmem:[#allocation4 + $0x158] sm:$0xf0]  ;;  %v10659_v1 = vld [vmem:[%s10582_s23] sm:$0xf] }
  0xd4   : > { %1688 = vmatpush.bf16.msrb.mxu2 %v6868_v2  ;;  %1650 = vmatpush.bf16.msrb.mxu0 %v6992_v13  ;;  %v7192_v2 = vor.u32 %v8888_v58, %v7189_v59  ;;  %v8882_v13 = vld [vmem:[#allocation4 + $0x274] sm:$0xf0]  ;;  %v7176_v14 = vor.u32 %v8884_v6, %v7173_v7  ;;  %v8812_v28 = vld [vmem:[#allocation4 + $0x4c] sm:$0xf]  ;;  %v6885_v29 = vld [vmem:[#allocation4 + $0x58] sm:$0xf0] }
  0xd5   : > { %1707 = vmatpush.bf16.msrb.mxu3 %v6996_v17  ;;  %v6901_v17 = vld [vmem:[#allocation4 + $0x78] sm:$0xf0]  ;;  %v8876_v30 = vld [vmem:[#allocation4 + $0x24c] sm:$0xf]  ;;  %v6888_v35 = vor.u32 %v8812_v28, %v6885_v29 }
  0xd6   : > { %v8808_v41 = vld [vmem:[#allocation4 + $0x2c] sm:$0xf]  ;;  %v6869_v42 = vld [vmem:[#allocation4 + $0x38] sm:$0xf0] }
  0xd7   : > { %1670 = vmatpush.bf16.msrb.mxu1 %v7104_v22  ;;  %v7156_v22 = vor.u32 %v8882_v13, %v7155_v12  ;;  %v8872_v43 = vld [vmem:[#allocation4 + $0x22c] sm:$0xf]  ;;  %v7125_v47 = vld [vmem:[#allocation4 + $0x238] sm:$0xf0]  ;;  %v6872_v53 = vor.u32 %v8808_v41, %v6869_v42 }
  0xd8   : > { %1689 = vmatpush.bf16.msrb.mxu2 %v6852_v18  ;;  %1651 = vmatpush.bf16.msrb.mxu0 %v6976_v31  ;;  %v8880_v18 = vld [vmem:[#allocation4 + $0x26c] sm:$0xf]  ;;  %v7141_v31 = vld [vmem:[#allocation4 + $0x258] sm:$0xf0] }
  0xd9   : > { %1708 = vmatpush.bf16.msrb.mxu3 %v6980_v32  ;;  %v7160_v26 = vor.u32 %v8880_v18, %v7157_v19  ;;  %v8840_v32 = vld [vmem:[#allocation4 + $0x12c] sm:$0xf]  ;;  %v7144_v38 = vor.u32 %v8876_v30, %v7141_v31  ;;  %v6853_v59 = vld [vmem:[#allocation4 + $0x18] sm:$0xf0] }
  0xda   : > { %1671 = vmatmul.bf16.vlgmr.msrb.gmra.mxu1 %v10608_v52  ;;  %v8804_v58 = vld [vmem:[#allocation4 + $0xc] sm:$0xf]  ;;  %v7109_v61 = vld [vmem:[#allocation4 + $0x218] sm:$0xf0] }
  0xdb   : > { %1739 = vmatpush.bf16.msra.mxu1 %v6968_v27  ;;  %1652 = vmatmul.bf16.vlgmr.msrb.gmra.mxu0 %v10606_v51  ;;  %v7016_v27 = vor.u32 %v8844_v20, %v7013_v21  ;;  %v8868_v60 = vld [vmem:[#allocation4 + $0x20c] sm:$0xf]  ;;  %v1049_v21 = vperm.slane %v10659_v1, 1 }
  0xdc   : > { %1758 = vmatpush.bf16.msra.mxu2 %v7096_v23  ;;  %1720 = vmatpush.bf16.msra.mxu0 %v7220_v33  ;;  %v6904_v23 = vor.u32 %v8816_v16, %v6901_v17  ;;  %v6997_v33 = vld [vmem:[#allocation4 + $0x138] sm:$0xf0]  ;;  %v7112_v0 = vor.u32 %v8868_v60, %v7109_v61 }
  0xdd   : > { %1777 = vmatpush.bf16.msra.mxu3 %v7224_v36  ;;  %1690 = vmatmul.bf16.vlgmr.msrb.gmra.mxu2 %v10604_v46  ;;  %v7123_v36 = vld [vmem:[#allocation4 + $0x228] sm:$0xf]  ;;  %v7000_v40 = vor.u32 %v8840_v32, %v6997_v33 }
  0xde   : > { %1709 = vmatmul.bf16.vlgmr.msrb.gmra.mxu3 %v10606_v51 }
  0xdf   : > { %1740 = vmatpush.bf16.msra.mxu1 %v6952_v49  ;;  %v6981_v49 = vld [vmem:[#allocation4 + $0x118] sm:$0xf0] }
  0xe0   : > { %1759 = vmatpush.bf16.msra.mxu2 %v7080_v37  ;;  %1721 = vmatpush.bf16.msra.mxu0 %v7204_v48  ;;  %v8874_v37 = vld [vmem:[#allocation4 + $0x234] sm:$0xf0]  ;;  %v8836_v48 = vld [vmem:[#allocation4 + $0x10c] sm:$0xf] }
  0xe1   : > { %1778 = vmatpush.bf16.msra.mxu3 %v7208_v54  ;;  %v7124_v50 = vor.u32 %v8874_v37, %v7123_v36  ;;  %v7107_v54 = vld [vmem:[#allocation4 + $0x208] sm:$0xf]  ;;  %v6984_v56 = vor.u32 %v8836_v48, %v6981_v49 }
  0xe3   : > { %1741 = vmatpush.bf16.msra.mxu1 %v6936_v63  ;;  %v6856_v63 = vor.u32 %v8804_v58, %v6853_v59 }
  0xe4   : > { %1760 = vmatpush.bf16.msra.mxu2 %v7064_v55  ;;  %1722 = vmatpush.bf16.msra.mxu0 %v7188_v62  ;;  %v7128_v55 = vor.u32 %v8872_v43, %v7125_v47  ;;  %v7108_v62 = vor.u32 %v8870_v57, %v7107_v54 }
  0xe5   : > { %1779 = vmatpush.bf16.msra.mxu3 %v7192_v2  ;;  %v1048_v2 = vperm.slane %v10659_v1, 0 }
  0xe7   : > { %1742 = vmatpush.bf16.msra.mxu1 %v6920_v11 }
  0xe8   : > { %1761 = vmatpush.bf16.msra.mxu2 %v7048_v3  ;;  %1723 = vmatpush.bf16.msra.mxu0 %v7172_v10 }
  0xe9   : > { %1780 = vmatpush.bf16.msra.mxu3 %v7176_v14 }
  0xea   : > { %1676 = vmatmul.bf16.gmra.mxu1 %v10636_v45 }
  0xeb   : > { %1743 = vmatpush.bf16.msra.mxu1 %v6904_v23  ;;  %1657 = vmatmul.bf16.gmra.mxu0 %v10634_v44 }
  0xec   : > { %1762 = vmatpush.bf16.msra.mxu2 %v7032_v15  ;;  %1724 = vmatpush.bf16.msra.mxu0 %v7156_v22 }
  0xed   : > { %1781 = vmatpush.bf16.msra.mxu3 %v7160_v26  ;;  %1695 = vmatmul.bf16.gmra.mxu2 %v10632_v39 }
  0xee   : > { %1714 = vmatmul.bf16.gmra.mxu3 %v10634_v44 }
  0xef   : > { %1744 = vmatpush.bf16.msra.mxu1 %v6888_v35 }
  0xf0   : > { %1763 = vmatpush.bf16.msra.mxu2 %v7016_v27  ;;  %1725 = vmatpush.bf16.msra.mxu0 %v7140_v34 }
  0xf1   : > { %1782 = vmatpush.bf16.msra.mxu3 %v7144_v38 }
  0xf3   : > { %1745 = vmatpush.bf16.msra.mxu1 %v6872_v53 }
  0xf4   : > { %1764 = vmatpush.bf16.msra.mxu2 %v7000_v40  ;;  %1726 = vmatpush.bf16.msra.mxu0 %v7124_v50  ;;  %v1050_v50 = vperm.slane %v10659_v1, 2 }
  0xf5   : > { %1783 = vmatpush.bf16.msra.mxu3 %v7128_v55 }
  0xf7   : > { %1746 = vmatpush.bf16.msra.mxu1 %v6856_v63 }
  0xf8   : > { %1765 = vmatpush.bf16.msra.mxu2 %v6984_v56  ;;  %1727 = vmatpush.bf16.msra.mxu0 %v7108_v62 }
  0xf9   : > { %1784 = vmatpush.bf16.msra.mxu3 %v7112_v0  ;;  %v1051_v0 = vperm.slane %v10659_v1, 3 }
  0xfa   : > { %1747 = vmatmul.bf16.vlgmr.msra.gmra.mxu1 %v10604_v46 }
  0xfb   : > { %1728 = vmatmul.bf16.vlgmr.msra.gmra.mxu0 %v10608_v52 }
  0xfd   : > { %1766 = vmatmul.bf16.vlgmr.msra.gmra.mxu2 %v10606_v51 }
  0xfe   : > { %1785 = vmatmul.bf16.vlgmr.msra.gmra.mxu3 %v10608_v52 }
 0x10a   : > { %1752 = vmatmul.bf16.gmra.mxu1 %v10632_v39 }
 0x10b   : > { %1733 = vmatmul.bf16.gmra.mxu0 %v10636_v45 }
 0x10d   : > { %1771 = vmatmul.bf16.gmra.mxu2 %v10634_v44 }
 0x10e   : > { %1790 = vmatmul.bf16.gmra.mxu3 %v10636_v45 }
 0x136   : > { %v1577_v3 = vpop.f32.mrf.mxu0 }
 0x137   : > { %v1578_v4 = vadd.f32 %v1577_v3, %v1048_v2  ;;  %v1596_v5 = vpop.f32.mrf.mxu1 }
 0x139   : > { %v1597_v46 = vadd.f32 %v1596_v5, %v1578_v4 }
 0x13d   : > { %v1634_v7 = vpop.f32.mrf.mxu3 }
 0x13e   : > { %v1615_v6 = vpop.f32.mrf.mxu2  ;;  %v1579_v52 = vpop.f32.mrf.mxu0  ;;  %v1635_v24 = vadd.f32 %v1634_v7, %v1049_v21 }
 0x13f   : > { %v1616_v51 = vadd.f32 %v1615_v6, %v1597_v46  ;;  %v1598_v8 = vpop.f32.mrf.mxu1  ;;  %v1580_v9 = vadd.f32 %v1579_v52, %v1048_v2 }
 0x141   : > { %1796 = vst [vmem:[#allocation3] sm:$0xff] %v1616_v51  ;;  %v1599_v39 = vadd.f32 %v1598_v8, %v1580_v9 }
 0x145   : > { %v1636_v11 = vpop.f32.mrf.mxu3 }
 0x146   : > { %v1617_v10 = vpop.f32.mrf.mxu2  ;;  %v1582_v45 = vpop.f32.mrf.mxu0  ;;  %v1637_v31 = vadd.f32 %v1636_v11, %v1049_v21 }
 0x147   : > { %v1618_v44 = vadd.f32 %v1617_v10, %v1599_v39  ;;  %v1583_v12 = vadd.f32 %v1582_v45, %v1048_v2  ;;  %v1601_v13 = vpop.f32.mrf.mxu1 }
 0x149   : > { %1800 = vst [vmem:[#allocation3 + $0x20] sm:$0xff] %v1618_v44  ;;  %v1602_v14 = vadd.f32 %v1601_v13, %v1583_v12 }
 0x14d   : > { %v1639_v17 = vpop.f32.mrf.mxu3 }
 0x14e   : > { %v1620_v15 = vpop.f32.mrf.mxu2  ;;  %v1584_v18 = vpop.f32.mrf.mxu0  ;;  %v1640_v38 = vadd.f32 %v1639_v17, %v1049_v21 }
 0x14f   : > { %v1621_v16 = vadd.f32 %v1620_v15, %v1602_v14  ;;  %v1603_v19 = vpop.f32.mrf.mxu1  ;;  %v1585_v20 = vadd.f32 %v1584_v18, %v1048_v2 }
 0x151   : > { %1804 = vst [vmem:[#allocation3 + $0x40] sm:$0xff] %v1621_v16  ;;  %v1604_v22 = vadd.f32 %v1603_v19, %v1585_v20 }
 0x155   : > { %v1641_v26 = vpop.f32.mrf.mxu3 }
 0x156   : > { %v1622_v23 = vpop.f32.mrf.mxu2  ;;  %v1642_v49 = vadd.f32 %v1641_v26, %v1049_v21 }
 0x157   : > { %v1623_v25 = vadd.f32 %v1622_v23, %v1604_v22  ;;  %v1672_v28 = vpop.f32.mrf.mxu1 }
 0x158   : > { %v1653_v27 = vpop.f32.mrf.mxu0 }
 0x159   : > { %1808 = vst [vmem:[#allocation3 + $0x60] sm:$0xff] %v1623_v25  ;;  %v1654_v29 = vadd.f32 %v1653_v27, %v1635_v24 }
 0x15b   : > { %v1673_v30 = vadd.f32 %v1672_v28, %v1654_v29 }
 0x15d   : > { %1797 = vst [vmem:[#allocation3 + $0x38] sm:$0xff] %v1673_v30 }
 0x15f   : > { %v1674_v35 = vpop.f32.mrf.mxu1 }
 0x160   : > { %v1691_v32 = vpop.f32.mrf.mxu2  ;;  %v1655_v34 = vpop.f32.mrf.mxu0 }
 0x161   : > { %v1710_v33 = vpop.f32.mrf.mxu3  ;;  %v1656_v36 = vadd.f32 %v1655_v34, %v1637_v31  ;;  %v1692_v58 = vadd.f32 %v1691_v32, %v1050_v50 }
 0x163   : > { %v1675_v37 = vadd.f32 %v1674_v35, %v1656_v36  ;;  %v1711_v60 = vadd.f32 %v1710_v33, %v1692_v58 }
 0x165   : > { %1801 = vst [vmem:[#allocation3 + $0x8] sm:$0xff] %v1675_v37 }
 0x167   : > { %v1677_v43 = vpop.f32.mrf.mxu1 }
 0x168   : > { %v1693_v40 = vpop.f32.mrf.mxu2  ;;  %v1658_v42 = vpop.f32.mrf.mxu0 }
 0x169   : > { %v1712_v41 = vpop.f32.mrf.mxu3  ;;  %v1659_v47 = vadd.f32 %v1658_v42, %v1640_v38  ;;  %v1694_v4 = vadd.f32 %v1693_v40, %v1050_v50 }
 0x16b   : > { %v1678_v48 = vadd.f32 %v1677_v43, %v1659_v47  ;;  %v1713_v46 = vadd.f32 %v1712_v41, %v1694_v4 }
 0x16d   : > { %1805 = vst [vmem:[#allocation3 + $0x30] sm:$0xff] %v1678_v48 }
 0x16f   : > { %v1679_v56 = vpop.f32.mrf.mxu1 }
 0x170   : > { %v1696_v53 = vpop.f32.mrf.mxu2  ;;  %v1660_v55 = vpop.f32.mrf.mxu0 }
 0x171   : > { %v1715_v54 = vpop.f32.mrf.mxu3  ;;  %v1661_v57 = vadd.f32 %v1660_v55, %v1642_v49  ;;  %v1697_v10 = vadd.f32 %v1696_v53, %v1050_v50 }
 0x173   : > { %v1680_v59 = vadd.f32 %v1679_v56, %v1661_v57  ;;  %v1716_v11 = vadd.f32 %v1715_v54, %v1697_v10 }
 0x175   : > { %1809 = vst [vmem:[#allocation3 + $0x48] sm:$0xff] %v1680_v59 }
 0x177   : > { %v1748_v2 = vpop.f32.mrf.mxu1 }
 0x178   : > { %v1698_v61 = vpop.f32.mrf.mxu2  ;;  %v1729_v63 = vpop.f32.mrf.mxu0  ;;  %v1749_v5 = vadd.f32 %v1748_v2, %v1051_v0 }
 0x179   : > { %v1717_v62 = vpop.f32.mrf.mxu3  ;;  %v1730_v3 = vadd.f32 %v1729_v63, %v1711_v60  ;;  %v1699_v17 = vadd.f32 %v1698_v61, %v1050_v50 }
 0x17b   : > { %1798 = vst [vmem:[#allocation3 + $0x78] sm:$0xff] %v1730_v3  ;;  %v1718_v19 = vadd.f32 %v1717_v62, %v1699_v17 }
 0x17f   : > { %v1750_v8 = vpop.f32.mrf.mxu1 }
 0x180   : > { %v1767_v6 = vpop.f32.mrf.mxu2  ;;  %v1731_v52 = vpop.f32.mrf.mxu0  ;;  %v1751_v44 = vadd.f32 %v1750_v8, %v1051_v0 }
 0x181   : > { %v1786_v51 = vpop.f32.mrf.mxu3  ;;  %v1768_v7 = vadd.f32 %v1767_v6, %v1749_v5  ;;  %v1732_v9 = vadd.f32 %v1731_v52, %v1713_v46 }
 0x183   : > { %v1787_v39 = vadd.f32 %v1786_v51, %v1768_v7  ;;  %1802 = vst [vmem:[#allocation3 + $0x70] sm:$0xff] %v1732_v9 }
 0x185   : > { %1799 = vst [vmem:[#allocation3 + $0x58] sm:$0xff] %v1787_v39 }
 0x187   : > { %v1753_v15 = vpop.f32.mrf.mxu1 }
 0x188   : > { %v1769_v45 = vpop.f32.mrf.mxu2  ;;  %v1734_v13 = vpop.f32.mrf.mxu0  ;;  %v1754_v18 = vadd.f32 %v1753_v15, %v1051_v0 }
 0x189   : > { %v1788_v1 = vpop.f32.mrf.mxu3  ;;  %v1770_v12 = vadd.f32 %v1769_v45, %v1751_v44  ;;  %v1735_v14 = vadd.f32 %v1734_v13, %v1716_v11 }
 0x18b   : > { %v1789_v16 = vadd.f32 %v1788_v1, %v1770_v12  ;;  %1806 = vst [vmem:[#allocation3 + $0x68] sm:$0xff] %v1735_v14 }
 0x18d   : > { %1803 = vst [vmem:[#allocation3 + $0x10] sm:$0xff] %v1789_v16 }
 0x18f   : > { %v1755_v26 = vpop.f32.mrf.mxu1 }
 0x190   : > { %v1772_v20 = vpop.f32.mrf.mxu2  ;;  %v1736_v23 = vpop.f32.mrf.mxu0  ;;  %v1756_v27 = vadd.f32 %v1755_v26, %v1051_v0 }
 0x191   : > { %v1791_v21 = vpop.f32.mrf.mxu3  ;;  %v1773_v22 = vadd.f32 %v1772_v20, %v1754_v18  ;;  %v1737_v24 = vadd.f32 %v1736_v23, %v1718_v19 }
 0x193   : > { %v1792_v25 = vadd.f32 %v1791_v21, %v1773_v22  ;;  %1810 = vst [vmem:[#allocation3 + $0x18] sm:$0xff] %v1737_v24 }
 0x195   : > { %1807 = vst [vmem:[#allocation3 + $0x28] sm:$0xff] %v1792_v25 }
 0x198   : > { %v1774_v28 = vpop.f32.mrf.mxu2 }
 0x199   : > { %v1775_v29 = vadd.f32 %v1774_v28, %v1756_v27  ;;  %v1793_v30 = vpop.f32.mrf.mxu3 }
 0x19b   : > { %v1794_v31 = vadd.f32 %v1793_v30, %v1775_v29 }
 0x19d   : > { %1811 = vst [vmem:[#allocation3 + $0x50] sm:$0xff] %v1794_v31 }
 0x19e PF: > { %p7225_p1 = scmp.le.s32.totalorder %s10355_s4, 0 }
 0x1a0   : > { %1815 = sbr.rel (%p7225_p1) target bundleno = 616 (0x268), region = 176 }
 0x1a5   : > { %v7340_v32 = vld [vmem:[%s10541_s10 + $0xe0] sm:$0xf]  ;;  %v8929_v33 = vld [vmem:[%s10541_s10 + $0xec] sm:$0xf0]  ;;  %v8927_v34 = vld [vmem:[%s10541_s10 + $0xe4] sm:$0xf] }
 0x1a6   : > { %v7341_v35 = vor.u32 %v8929_v33, %v7340_v32  ;;  %v7342_v36 = vld [vmem:[%s10541_s10 + $0xf0] sm:$0xf0]  ;;  %v7348_v37 = vld [vmem:[%s10541_s10 + $0xe8] sm:$0xf]  ;;  %v8930_v38 = vld [vmem:[%s10541_s10 + $0xf4] sm:$0xf0] }
 0x1a7   : > { %v7345_v40 = vor.u32 %v8927_v34, %v7342_v36  ;;  %v7349_v41 = vor.u32 %v8930_v38, %v7348_v37  ;;  %v8928_v42 = vld [vmem:[%s10541_s10 + $0xec] sm:$0xf]  ;;  %v7350_v43 = vld [vmem:[%s10541_s10 + $0xf8] sm:$0xf0]  ;;  %v7324_v47 = vld [vmem:[%s10541_s10 + $0xc0] sm:$0xf] }
 0x1a8   : > { %2024 = vmatpush.bf16.msra.mxu0 %v7341_v35  ;;  %v7353_v48 = vor.u32 %v8928_v42, %v7350_v43  ;;  %v8925_v49 = vld [vmem:[%s10541_s10 + $0xcc] sm:$0xf0]  ;;  %v8923_v50 = vld [vmem:[%s10541_s10 + $0xc4] sm:$0xf]  ;;  %v7326_v53 = vld [vmem:[%s10541_s10 + $0xd0] sm:$0xf0] }
 0x1a9   : > { %2043 = vmatpush.bf16.msra.mxu1 %v7345_v40  ;;  %2062 = vmatpush.bf16.msra.mxu2 %v7349_v41  ;;  %v7325_v54 = vor.u32 %v8925_v49, %v7324_v47  ;;  %v7329_v55 = vor.u32 %v8923_v50, %v7326_v53  ;;  %v7332_v56 = vld [vmem:[%s10541_s10 + $0xc8] sm:$0xf]  ;;  %v8926_v57 = vld [vmem:[%s10541_s10 + $0xd4] sm:$0xf0]  ;;  %v8924_v58 = vld [vmem:[%s10541_s10 + $0xcc] sm:$0xf] }
 0x1aa   : > { %2081 = vmatpush.bf16.msra.mxu3 %v7353_v48  ;;  %v7333_v59 = vor.u32 %v8926_v57, %v7332_v56  ;;  %v7334_v60 = vld [vmem:[%s10541_s10 + $0xd8] sm:$0xf0]  ;;  %v7308_v61 = vld [vmem:[%s10541_s10 + $0xa0] sm:$0xf]  ;;  %v8921_v62 = vld [vmem:[%s10541_s10 + $0xac] sm:$0xf0] }
 0x1ab   : > { %v7337_v63 = vor.u32 %v8924_v58, %v7334_v60  ;;  %v8919_v0 = vld [vmem:[%s10541_s10 + $0xa4] sm:$0xf]  ;;  %v7310_v2 = vld [vmem:[%s10541_s10 + $0xb0] sm:$0xf0]  ;;  %v7316_v3 = vld [vmem:[%s10541_s10 + $0xa8] sm:$0xf]  ;;  %v7309_v4 = vor.u32 %v8921_v62, %v7308_v61 }
 0x1ac   : > { %2025 = vmatpush.bf16.msra.mxu0 %v7325_v54  ;;  %v8922_v5 = vld [vmem:[%s10541_s10 + $0xb4] sm:$0xf0]  ;;  %v8920_v46 = vld [vmem:[%s10541_s10 + $0xac] sm:$0xf]  ;;  %v7318_v6 = vld [vmem:[%s10541_s10 + $0xb8] sm:$0xf0]  ;;  %v7313_v51 = vor.u32 %v8919_v0, %v7310_v2 }
 0x1ad   : > { %2044 = vmatpush.bf16.msra.mxu1 %v7329_v55  ;;  %2063 = vmatpush.bf16.msra.mxu2 %v7333_v59  ;;  %v7317_v7 = vor.u32 %v8922_v5, %v7316_v3  ;;  %v7292_v52 = vld [vmem:[%s10541_s10 + $0x80] sm:$0xf]  ;;  %v8917_v8 = vld [vmem:[%s10541_s10 + $0x8c] sm:$0xf0]  ;;  %v8915_v9 = vld [vmem:[%s10541_s10 + $0x84] sm:$0xf]  ;;  %v7321_v39 = vor.u32 %v8920_v46, %v7318_v6 }
 0x1ae   : > { %2082 = vmatpush.bf16.msra.mxu3 %v7337_v63  ;;  %v7294_v10 = vld [vmem:[%s10541_s10 + $0x90] sm:$0xf0]  ;;  %v7300_v44 = vld [vmem:[%s10541_s10 + $0x88] sm:$0xf]  ;;  %v8918_v11 = vld [vmem:[%s10541_s10 + $0x94] sm:$0xf0]  ;;  %v7293_v12 = vor.u32 %v8917_v8, %v7292_v52 }
 0x1af   : > { %v8916_v45 = vld [vmem:[%s10541_s10 + $0x8c] sm:$0xf]  ;;  %v7302_v1 = vld [vmem:[%s10541_s10 + $0x98] sm:$0xf0]  ;;  %v7297_v13 = vor.u32 %v8915_v9, %v7294_v10  ;;  %v7301_v14 = vor.u32 %v8918_v11, %v7300_v44  ;;  %v7276_v15 = vld [vmem:[%s10541_s10 + $0x60] sm:$0xf] }
 0x1b0   : > { %2026 = vmatpush.bf16.msra.mxu0 %v7309_v4  ;;  %v8913_v16 = vld [vmem:[%s10541_s10 + $0x6c] sm:$0xf0]  ;;  %v8911_v17 = vld [vmem:[%s10541_s10 + $0x64] sm:$0xf]  ;;  %v7305_v18 = vor.u32 %v8916_v45, %v7302_v1  ;;  %v7278_v19 = vld [vmem:[%s10541_s10 + $0x70] sm:$0xf0] }
 0x1b1   : > { %2045 = vmatpush.bf16.msra.mxu1 %v7313_v51  ;;  %2064 = vmatpush.bf16.msra.mxu2 %v7317_v7  ;;  %v7284_v20 = vld [vmem:[%s10541_s10 + $0x68] sm:$0xf]  ;;  %v8914_v21 = vld [vmem:[%s10541_s10 + $0x74] sm:$0xf0]  ;;  %v8912_v22 = vld [vmem:[%s10541_s10 + $0x6c] sm:$0xf]  ;;  %v7277_v24 = vor.u32 %v8913_v16, %v7276_v15  ;;  %v7281_v25 = vor.u32 %v8911_v17, %v7278_v19 }
 0x1b2   : > { %2083 = vmatpush.bf16.msra.mxu3 %v7321_v39  ;;  %v7286_v23 = vld [vmem:[%s10541_s10 + $0x78] sm:$0xf0]  ;;  %v7285_v26 = vor.u32 %v8914_v21, %v7284_v20  ;;  %v7260_v27 = vld [vmem:[%s10541_s10 + $0x40] sm:$0xf]  ;;  %v8909_v28 = vld [vmem:[%s10541_s10 + $0x4c] sm:$0xf0] }
 0x1b3   : > { %v8907_v29 = vld [vmem:[%s10541_s10 + $0x44] sm:$0xf]  ;;  %v7289_v30 = vor.u32 %v8912_v22, %v7286_v23  ;;  %v7262_v31 = vld [vmem:[%s10541_s10 + $0x50] sm:$0xf0]  ;;  %v7268_v32 = vld [vmem:[%s10541_s10 + $0x48] sm:$0xf]  ;;  %v7261_v36 = vor.u32 %v8909_v28, %v7260_v27 }
 0x1b4   : > { %2027 = vmatpush.bf16.msra.mxu0 %v7293_v12  ;;  %v8910_v33 = vld [vmem:[%s10541_s10 + $0x54] sm:$0xf0]  ;;  %v8908_v34 = vld [vmem:[%s10541_s10 + $0x4c] sm:$0xf]  ;;  %v7270_v35 = vld [vmem:[%s10541_s10 + $0x58] sm:$0xf0]  ;;  %v7265_v37 = vor.u32 %v8907_v29, %v7262_v31 }
 0x1b5   : > { %2046 = vmatpush.bf16.msra.mxu1 %v7297_v13  ;;  %2065 = vmatpush.bf16.msra.mxu2 %v7301_v14  ;;  %v7269_v38 = vor.u32 %v8910_v33, %v7268_v32  ;;  %v7244_v40 = vld [vmem:[%s10541_s10 + $0x20] sm:$0xf]  ;;  %v8905_v41 = vld [vmem:[%s10541_s10 + $0x2c] sm:$0xf0]  ;;  %v8903_v42 = vld [vmem:[%s10541_s10 + $0x24] sm:$0xf]  ;;  %v7273_v43 = vor.u32 %v8908_v34, %v7270_v35 }
 0x1b6   : > { %2084 = vmatpush.bf16.msra.mxu3 %v7305_v18  ;;  %v7246_v47 = vld [vmem:[%s10541_s10 + $0x30] sm:$0xf0]  ;;  %v7252_v48 = vld [vmem:[%s10541_s10 + $0x28] sm:$0xf]  ;;  %v8906_v49 = vld [vmem:[%s10541_s10 + $0x34] sm:$0xf0]  ;;  %v7245_v54 = vor.u32 %v8905_v41, %v7244_v40 }
 0x1b7   : > { %v8904_v50 = vld [vmem:[%s10541_s10 + $0x2c] sm:$0xf]  ;;  %v7254_v53 = vld [vmem:[%s10541_s10 + $0x38] sm:$0xf0]  ;;  %v7249_v55 = vor.u32 %v8903_v42, %v7246_v47  ;;  %v7253_v56 = vor.u32 %v8906_v49, %v7252_v48  ;;  %v7228_v57 = vld [vmem:[%s10541_s10] sm:$0xf] }
 0x1b8   : > { %2028 = vmatpush.bf16.msra.mxu0 %v7277_v24  ;;  %v8901_v58 = vld [vmem:[%s10541_s10 + $0xc] sm:$0xf0]  ;;  %v8899_v59 = vld [vmem:[%s10541_s10 + $0x4] sm:$0xf]  ;;  %v7257_v60 = vor.u32 %v8904_v50, %v7254_v53  ;;  %v7230_v61 = vld [vmem:[%s10541_s10 + $0x10] sm:$0xf0] }
 0x1b9   : > { %2047 = vmatpush.bf16.msra.mxu1 %v7281_v25  ;;  %2066 = vmatpush.bf16.msra.mxu2 %v7285_v26  ;;  %v7236_v62 = vld [vmem:[%s10541_s10 + $0x8] sm:$0xf]  ;;  %v8902_v63 = vld [vmem:[%s10541_s10 + $0x14] sm:$0xf0]  ;;  %v8900_v0 = vld [vmem:[%s10541_s10 + $0xc] sm:$0xf]  ;;  %v7229_v3 = vor.u32 %v8901_v58, %v7228_v57  ;;  %v7233_v46 = vor.u32 %v8899_v59, %v7230_v61 }
 0x1ba   : > { %2085 = vmatpush.bf16.msra.mxu3 %v7289_v30  ;;  %v7238_v2 = vld [vmem:[%s10541_s10 + $0x18] sm:$0xf0]  ;;  %v1816_v4 = vld [vmem:[#allocation2 + $0x10] sm:$0xff]  ;;  %v1817_v5 = vld [vmem:[#allocation2] sm:$0xff]  ;;  %v7237_v6 = vor.u32 %v8902_v63, %v7236_v62 }
 0x1bb   : > { %v7241_v51 = vor.u32 %v8900_v0, %v7238_v2  ;;  %v1820_v7 = vpack.c.bf16 %v1817_v5, %v1816_v4  ;;  %v1818_v52 = vld [vmem:[#allocation2 + $0x18] sm:$0xff]  ;;  %v1819_v8 = vld [vmem:[#allocation2 + $0x8] sm:$0xff]  ;;  %v1854_v39 = vld [vmem:[%s10582_s23] sm:$0xf] }
 0x1bc   : > { %2029 = vmatpush.bf16.msra.mxu0 %v7261_v36  ;;  %v1821_v9 = vpack.c.bf16 %v1819_v8, %v1818_v52  ;;  %v1856_v10 = vperm.slane %v1854_v39, 0  ;;  %v1857_v44 = vperm.slane %v1854_v39, 1  ;;  %v1858_v13 = vperm.slane %v1854_v39, 2 }
 0x1bd   : > { %2048 = vmatpush.bf16.msra.mxu1 %v7265_v37  ;;  %2067 = vmatpush.bf16.msra.mxu2 %v7269_v38  ;;  %v1859_v14 = vperm.slane %v1854_v39, 3 }
 0x1be   : > { %2086 = vmatpush.bf16.msra.mxu3 %v7273_v43 }
 0x1c0   : > { %2030 = vmatpush.bf16.msra.mxu0 %v7245_v54 }
 0x1c1   : > { %2049 = vmatpush.bf16.msra.mxu1 %v7249_v55  ;;  %2068 = vmatpush.bf16.msra.mxu2 %v7253_v56 }
 0x1c2   : > { %2087 = vmatpush.bf16.msra.mxu3 %v7257_v60 }
 0x1c4   : > { %2031 = vmatpush.bf16.msra.mxu0 %v7229_v3 }
 0x1c5   : > { %2050 = vmatpush.bf16.msra.mxu1 %v7233_v46  ;;  %2069 = vmatpush.bf16.msra.mxu2 %v7237_v6 }
 0x1c6   : > { %2088 = vmatpush.bf16.msra.mxu3 %v7241_v51 }
 0x1c7   : > { %2032 = vmatmul.bf16.vlgmr.msra.gmra.mxu0 %v1820_v7 }
 0x1c8   : > { %2051 = vmatmul.bf16.vlgmr.msra.gmra.mxu1 %v1820_v7  ;;  %2070 = vmatmul.bf16.vlgmr.msra.gmra.mxu2 %v1820_v7 }
 0x1c9   : > { %2089 = vmatmul.bf16.vlgmr.msra.gmra.mxu3 %v1820_v7 }
 0x1d7   : > { %2037 = vmatmul.bf16.gmra.mxu0 %v1821_v9 }
 0x1d8   : > { %2056 = vmatmul.bf16.gmra.mxu1 %v1821_v9  ;;  %2075 = vmatmul.bf16.gmra.mxu2 %v1821_v9 }
 0x1d9   : > { %2094 = vmatmul.bf16.gmra.mxu3 %v1821_v9 }
 0x244   : > { %v2033_v11 = vpop.f32.mrf.mxu0 }
 0x245   : > { %v2034_v45 = vadd.f32 %v2033_v11, %v1856_v10  ;;  %v2052_v1 = vpop.f32.mrf.mxu1 }
 0x246   : > { %v2053_v12 = vadd.f32 %v2052_v1, %v1857_v44 }
 0x247   : > { %2100 = vst [vmem:[#allocation3] sm:$0xff] %v2034_v45 }
 0x248   : > { %2101 = vst [vmem:[#allocation3 + $0x38] sm:$0xff] %v2053_v12 }
 0x24b   : > { %v2071_v15 = vpop.f32.mrf.mxu2 }
 0x24c   : > { %v2072_v16 = vadd.f32 %v2071_v15, %v1858_v13  ;;  %v2090_v17 = vpop.f32.mrf.mxu3  ;;  %v2035_v18 = vpop.f32.mrf.mxu0 }
 0x24d   : > { %v2091_v19 = vadd.f32 %v2090_v17, %v1859_v14  ;;  %v2036_v20 = vadd.f32 %v2035_v18, %v1856_v10  ;;  %v2054_v21 = vpop.f32.mrf.mxu1 }
 0x24e   : > { %2102 = vst [vmem:[#allocation3 + $0x78] sm:$0xff] %v2072_v16  ;;  %v2055_v22 = vadd.f32 %v2054_v21, %v1857_v44 }
 0x24f   : > { %2103 = vst [vmem:[#allocation3 + $0x58] sm:$0xff] %v2091_v19 }
 0x250   : > { %2104 = vst [vmem:[#allocation3 + $0x20] sm:$0xff] %v2036_v20 }
 0x251   : > { %2105 = vst [vmem:[#allocation3 + $0x8] sm:$0xff] %v2055_v22 }
 0x253   : > { %v2073_v23 = vpop.f32.mrf.mxu2 }
 0x254   : > { %v2074_v24 = vadd.f32 %v2073_v23, %v1858_v13  ;;  %v2092_v25 = vpop.f32.mrf.mxu3  ;;  %v2038_v26 = vpop.f32.mrf.mxu0 }
 0x255   : > { %v2093_v27 = vadd.f32 %v2092_v25, %v1859_v14  ;;  %v2039_v28 = vadd.f32 %v2038_v26, %v1856_v10  ;;  %v2057_v29 = vpop.f32.mrf.mxu1 }
 0x256   : > { %2106 = vst [vmem:[#allocation3 + $0x70] sm:$0xff] %v2074_v24  ;;  %v2058_v30 = vadd.f32 %v2057_v29, %v1857_v44 }
 0x257   : > { %2107 = vst [vmem:[#allocation3 + $0x10] sm:$0xff] %v2093_v27 }
 0x258   : > { %2108 = vst [vmem:[#allocation3 + $0x40] sm:$0xff] %v2039_v28 }
 0x259   : > { %2109 = vst [vmem:[#allocation3 + $0x30] sm:$0xff] %v2058_v30 }
 0x25b   : > { %v2076_v31 = vpop.f32.mrf.mxu2 }
 0x25c   : > { %v2077_v32 = vadd.f32 %v2076_v31, %v1858_v13  ;;  %v2095_v33 = vpop.f32.mrf.mxu3  ;;  %v2040_v34 = vpop.f32.mrf.mxu0 }
 0x25d   : > { %v2096_v35 = vadd.f32 %v2095_v33, %v1859_v14  ;;  %v2041_v36 = vadd.f32 %v2040_v34, %v1856_v10  ;;  %v2059_v37 = vpop.f32.mrf.mxu1 }
 0x25e   : > { %2110 = vst [vmem:[#allocation3 + $0x68] sm:$0xff] %v2077_v32  ;;  %v2060_v38 = vadd.f32 %v2059_v37, %v1857_v44 }
 0x25f   : > { %2111 = vst [vmem:[#allocation3 + $0x28] sm:$0xff] %v2096_v35 }
 0x260   : > { %2112 = vst [vmem:[#allocation3 + $0x60] sm:$0xff] %v2041_v36 }
 0x261   : > { %2113 = vst [vmem:[#allocation3 + $0x48] sm:$0xff] %v2060_v38 }
 0x263   : > { %v2078_v40 = vpop.f32.mrf.mxu2 }
 0x264   : > { %v2079_v41 = vadd.f32 %v2078_v40, %v1858_v13  ;;  %v2097_v42 = vpop.f32.mrf.mxu3 }
 0x265   : > { %v2098_v43 = vadd.f32 %v2097_v42, %v1859_v14 }
 0x266   : > { %2114 = vst [vmem:[#allocation3 + $0x18] sm:$0xff] %v2079_v41 }
 0x267   : > { %2115 = vst [vmem:[#allocation3 + $0x50] sm:$0xff] %v2098_v43 }
 0x268 PF: > { %v7468_v47 = vld [vmem:[%s10547_s14 + $0xe0] sm:$0xf]  ;;  %v8961_v48 = vld [vmem:[%s10547_s14 + $0xec] sm:$0xf0]  ;;  %v8959_v49 = vld [vmem:[%s10547_s14 + $0xe4] sm:$0xf] }
 0x269   : > { %v10734_v50 = vor.u32 %v8961_v48, %v7468_v47  ;;  %v7470_v53 = vld [vmem:[%s10547_s14 + $0xf0] sm:$0xf0]  ;;  %v8960_v54 = vld [vmem:[%s10547_s14 + $0xec] sm:$0xf]  ;;  %v7478_v55 = vld [vmem:[%s10547_s14 + $0xf8] sm:$0xf0] }
 0x26a   : > { %v10739_v56 = vor.u32 %v8959_v49, %v7470_v53  ;;  %v10741_v57 = vor.u32 %v8960_v54, %v7478_v55  ;;  %v7452_v58 = vld [vmem:[%s10547_s14 + $0xc0] sm:$0xf]  ;;  %v8957_v59 = vld [vmem:[%s10547_s14 + $0xcc] sm:$0xf0]  ;;  %v8955_v60 = vld [vmem:[%s10547_s14 + $0xc4] sm:$0xf] }
 0x26b   : > { %2312 = vmatpush.bf16.msra.mxu0 %v10734_v50  ;;  %v10747_v61 = vor.u32 %v8957_v59, %v7452_v58  ;;  %v7454_v62 = vld [vmem:[%s10547_s14 + $0xd0] sm:$0xf0]  ;;  %v8956_v63 = vld [vmem:[%s10547_s14 + $0xcc] sm:$0xf]  ;;  %v7462_v0 = vld [vmem:[%s10547_s14 + $0xd8] sm:$0xf0] }
 0x26c   : > { %2325 = vmatpush.bf16.msra.mxu1 %v10739_v56  ;;  %2351 = vmatpush.bf16.msra.mxu3 %v10741_v57  ;;  %v10754_v2 = vor.u32 %v8955_v60, %v7454_v62  ;;  %v10756_v3 = vor.u32 %v8956_v63, %v7462_v0  ;;  %v7476_v4 = vld [vmem:[%s10547_s14 + $0xe8] sm:$0xf]  ;;  %v8962_v5 = vld [vmem:[%s10547_s14 + $0xf4] sm:$0xf0]  ;;  %v7436_v46 = vld [vmem:[%s10547_s14 + $0xa0] sm:$0xf] }
 0x26d   : > { %v10761_v6 = vor.u32 %v8962_v5, %v7476_v4  ;;  %v8953_v51 = vld [vmem:[%s10547_s14 + $0xac] sm:$0xf0]  ;;  %v8951_v7 = vld [vmem:[%s10547_s14 + $0xa4] sm:$0xf]  ;;  %v7438_v52 = vld [vmem:[%s10547_s14 + $0xb0] sm:$0xf0] }
 0x26e   : > { %v8952_v8 = vld [vmem:[%s10547_s14 + $0xac] sm:$0xf]  ;;  %v7446_v9 = vld [vmem:[%s10547_s14 + $0xb8] sm:$0xf0]  ;;  %v7460_v39 = vld [vmem:[%s10547_s14 + $0xc8] sm:$0xf]  ;;  %v10771_v10 = vor.u32 %v8953_v51, %v7436_v46  ;;  %v10778_v1 = vor.u32 %v8951_v7, %v7438_v52 }
 0x26f   : > { %2313 = vmatpush.bf16.msra.mxu0 %v10747_v61  ;;  %2338 = vmatpush.bf16.msra.mxu2 %v10761_v6  ;;  %v8958_v44 = vld [vmem:[%s10547_s14 + $0xd4] sm:$0xf0]  ;;  %v7420_v11 = vld [vmem:[%s10547_s14 + $0x80] sm:$0xf]  ;;  %v8949_v45 = vld [vmem:[%s10547_s14 + $0x8c] sm:$0xf0]  ;;  %v10780_v12 = vor.u32 %v8952_v8, %v7446_v9 }
 0x270   : > { %2326 = vmatpush.bf16.msra.mxu1 %v10754_v2  ;;  %2352 = vmatpush.bf16.msra.mxu3 %v10756_v3  ;;  %v10782_v13 = vor.u32 %v8958_v44, %v7460_v39  ;;  %v8947_v14 = vld [vmem:[%s10547_s14 + $0x84] sm:$0xf]  ;;  %v7422_v15 = vld [vmem:[%s10547_s14 + $0x90] sm:$0xf0]  ;;  %v8948_v16 = vld [vmem:[%s10547_s14 + $0x8c] sm:$0xf]  ;;  %v10792_v20 = vor.u32 %v8949_v45, %v7420_v11 }
 0x271   : > { %v7430_v17 = vld [vmem:[%s10547_s14 + $0x98] sm:$0xf0]  ;;  %v7444_v18 = vld [vmem:[%s10547_s14 + $0xa8] sm:$0xf]  ;;  %v8954_v19 = vld [vmem:[%s10547_s14 + $0xb4] sm:$0xf0]  ;;  %v10800_v24 = vor.u32 %v8947_v14, %v7422_v15 }
 0x272   : > { %v10794_v21 = vor.u32 %v8954_v19, %v7444_v18  ;;  %v7404_v22 = vld [vmem:[%s10547_s14 + $0x60] sm:$0xf]  ;;  %v8945_v23 = vld [vmem:[%s10547_s14 + $0x6c] sm:$0xf0]  ;;  %v10802_v25 = vor.u32 %v8948_v16, %v7430_v17  ;;  %v8943_v26 = vld [vmem:[%s10547_s14 + $0x64] sm:$0xf] }
 0x273   : > { %2314 = vmatpush.bf16.msra.mxu0 %v10771_v10  ;;  %2339 = vmatpush.bf16.msra.mxu2 %v10782_v13  ;;  %v7428_v27 = vld [vmem:[%s10547_s14 + $0x88] sm:$0xf]  ;;  %v8950_v28 = vld [vmem:[%s10547_s14 + $0x94] sm:$0xf0]  ;;  %v7406_v29 = vld [vmem:[%s10547_s14 + $0x70] sm:$0xf0]  ;;  %v10812_v32 = vor.u32 %v8945_v23, %v7404_v22 }
 0x274   : > { %2327 = vmatpush.bf16.msra.mxu1 %v10778_v1  ;;  %2353 = vmatpush.bf16.msra.mxu3 %v10780_v12  ;;  %v8944_v30 = vld [vmem:[%s10547_s14 + $0x6c] sm:$0xf]  ;;  %v7414_v31 = vld [vmem:[%s10547_s14 + $0x78] sm:$0xf0]  ;;  %v10814_v33 = vor.u32 %v8950_v28, %v7428_v27  ;;  %v7388_v34 = vld [vmem:[%s10547_s14 + $0x40] sm:$0xf]  ;;  %v10820_v36 = vor.u32 %v8943_v26, %v7406_v29 }
 0x275   : > { %v8941_v35 = vld [vmem:[%s10547_s14 + $0x4c] sm:$0xf0]  ;;  %v10822_v37 = vor.u32 %v8944_v30, %v7414_v31  ;;  %v8939_v38 = vld [vmem:[%s10547_s14 + $0x44] sm:$0xf]  ;;  %v7412_v40 = vld [vmem:[%s10547_s14 + $0x68] sm:$0xf] }
 0x276   : > { %v8946_v41 = vld [vmem:[%s10547_s14 + $0x74] sm:$0xf0]  ;;  %v7390_v42 = vld [vmem:[%s10547_s14 + $0x50] sm:$0xf0]  ;;  %v8940_v43 = vld [vmem:[%s10547_s14 + $0x4c] sm:$0xf]  ;;  %v10832_v48 = vor.u32 %v8941_v35, %v7388_v34 }
 0x277   : > { %2315 = vmatpush.bf16.msra.mxu0 %v10792_v20  ;;  %2340 = vmatpush.bf16.msra.mxu2 %v10794_v21  ;;  %v7398_v47 = vld [vmem:[%s10547_s14 + $0x58] sm:$0xf0]  ;;  %v10834_v49 = vor.u32 %v8946_v41, %v7412_v40  ;;  %v7372_v53 = vld [vmem:[%s10547_s14 + $0x20] sm:$0xf]  ;;  %v8937_v54 = vld [vmem:[%s10547_s14 + $0x2c] sm:$0xf0]  ;;  %v10840_v55 = vor.u32 %v8939_v38, %v7390_v42 }
 0x278   : > { %2328 = vmatpush.bf16.msra.mxu1 %v10800_v24  ;;  %2354 = vmatpush.bf16.msra.mxu3 %v10802_v25  ;;  %v10842_v58 = vor.u32 %v8940_v43, %v7398_v47  ;;  %v8935_v59 = vld [vmem:[%s10547_s14 + $0x24] sm:$0xf]  ;;  %v7396_v60 = vld [vmem:[%s10547_s14 + $0x48] sm:$0xf]  ;;  %v8942_v62 = vld [vmem:[%s10547_s14 + $0x54] sm:$0xf0]  ;;  %v10852_v5 = vor.u32 %v8937_v54, %v7372_v53 }
 0x279   : > { %v7374_v63 = vld [vmem:[%s10547_s14 + $0x30] sm:$0xf0]  ;;  %v8936_v0 = vld [vmem:[%s10547_s14 + $0x2c] sm:$0xf]  ;;  %v7382_v4 = vld [vmem:[%s10547_s14 + $0x38] sm:$0xf0]  ;;  %v10854_v46 = vor.u32 %v8942_v62, %v7396_v60 }
 0x27a   : > { %v7356_v51 = vld [vmem:[%s10547_s14] sm:$0xf]  ;;  %v8933_v7 = vld [vmem:[%s10547_s14 + $0xc] sm:$0xf0]  ;;  %v10860_v52 = vor.u32 %v8935_v59, %v7374_v63  ;;  %v10862_v8 = vor.u32 %v8936_v0, %v7382_v4  ;;  %v8931_v9 = vld [vmem:[%s10547_s14 + $0x4] sm:$0xf] }
 0x27b   : > { %2316 = vmatpush.bf16.msra.mxu0 %v10812_v32  ;;  %2341 = vmatpush.bf16.msra.mxu2 %v10814_v33  ;;  %v7380_v39 = vld [vmem:[%s10547_s14 + $0x28] sm:$0xf]  ;;  %v8938_v44 = vld [vmem:[%s10547_s14 + $0x34] sm:$0xf0]  ;;  %v7358_v11 = vld [vmem:[%s10547_s14 + $0x10] sm:$0xf0]  ;;  %v10872_v15 = vor.u32 %v8933_v7, %v7356_v51 }
 0x27c   : > { %2329 = vmatpush.bf16.msra.mxu1 %v10820_v36  ;;  %2355 = vmatpush.bf16.msra.mxu3 %v10822_v37  ;;  %v8932_v45 = vld [vmem:[%s10547_s14 + $0xc] sm:$0xf]  ;;  %v7366_v14 = vld [vmem:[%s10547_s14 + $0x18] sm:$0xf0]  ;;  %v10874_v16 = vor.u32 %v8938_v44, %v7380_v39  ;;  %v10878_v17 = vor.u32 %v8931_v9, %v7358_v11  ;;  %v7364_v19 = vld [vmem:[%s10547_s14 + $0x8] sm:$0xf] }
 0x27d   : > { %v10880_v18 = vor.u32 %v8932_v45, %v7366_v14  ;;  %v8934_v22 = vld [vmem:[%s10547_s14 + $0x14] sm:$0xf0]  ;;  %v10218_v26 = vmov 0   ;;  %v2148_v27 = vld [vmem:[#allocation3] sm:$0xff]  ;;  %p7494_p3 = scmp.ne.s32.totalorder %s10355_s4, 7 }
 0x27e   : > { %v10888_v23 = vor.u32 %v8934_v22, %v7364_v19  ;;  %v2149_v28 = vld [vmem:[#allocation3 + $0x38] sm:$0xff]  ;;  %s11587_s23 = sld [smem:[#allocation56_spill]] (!%p7494_p3) }
 0x27f   : > { %2317 = vmatpush.bf16.msra.mxu0 %v10832_v48  ;;  %2342 = vmatpush.bf16.msra.mxu2 %v10834_v49  ;;  %v2151_v40 = vld [vmem:[#allocation3 + $0x58] sm:$0xff]  ;;  %s11588_s12 = sld [smem:[#allocation50_spill]] (!%p7494_p3) }
 0x280   : > { %2330 = vmatpush.bf16.msra.mxu1 %v10840_v55  ;;  %2356 = vmatpush.bf16.msra.mxu3 %v10842_v58  ;;  %v2150_v0 = vld [vmem:[#allocation3 + $0x78] sm:$0xff]  ;;  %s11593_s29 = sld [smem:[#allocation58_spill]] (!%p7494_p3) }
 0x283   : > { %2318 = vmatpush.bf16.msra.mxu0 %v10852_v5  ;;  %2343 = vmatpush.bf16.msra.mxu2 %v10854_v46 }
 0x284   : > { %2331 = vmatpush.bf16.msra.mxu1 %v10860_v52  ;;  %2357 = vmatpush.bf16.msra.mxu3 %v10862_v8 }
 0x287   : > { %2319 = vmatpush.bf16.msra.mxu0 %v10872_v15  ;;  %2344 = vmatpush.bf16.msra.mxu2 %v10874_v16 }
 0x288   : > { %2332 = vmatpush.bf16.msra.mxu1 %v10878_v17  ;;  %2358 = vmatpush.bf16.msra.mxu3 %v10880_v18 }
 0x28a   : > { %2320 = vmatmul.bf16.vlgmr.msra.gmra.mxu0 %v10218_v26 }
 0x28b   : > { %2437 = vmatpush.bf16.msrb.mxu0 %v10734_v50  ;;  %2333 = vmatmul.bf16.vlgmr.msra.gmra.mxu1 %v10218_v26 }
 0x28c   : > { %2450 = vmatpush.bf16.msrb.mxu1 %v10739_v56  ;;  %2476 = vmatpush.bf16.msrb.mxu3 %v10741_v57 }
 0x28d   : > { %2359 = vmatmul.bf16.vlgmr.msra.gmra.mxu3 %v10218_v26  ;;  %2345 = vmatpush.bf16.msra.mxu2 %v10888_v23 }
 0x28f   : > { %2438 = vmatpush.bf16.msrb.mxu0 %v10747_v61 }
 0x290   : > { %2451 = vmatpush.bf16.msrb.mxu1 %v10754_v2  ;;  %2477 = vmatpush.bf16.msrb.mxu3 %v10756_v3 }
 0x291   : > { %2463 = vmatpush.bf16.msrb.mxu2 %v10761_v6 }
 0x292   : > { %2346 = vmatmul.bf16.vlgmr.msra.gmra.mxu2 %v10218_v26 }
 0x293   : > { %2439 = vmatpush.bf16.msrb.mxu0 %v10771_v10 }
 0x294   : > { %2452 = vmatpush.bf16.msrb.mxu1 %v10778_v1  ;;  %2478 = vmatpush.bf16.msrb.mxu3 %v10780_v12 }
 0x295   : > { %2464 = vmatpush.bf16.msrb.mxu2 %v10782_v13 }
 0x297   : > { %2440 = vmatpush.bf16.msrb.mxu0 %v10792_v20 }
 0x298   : > { %2453 = vmatpush.bf16.msrb.mxu1 %v10800_v24  ;;  %2479 = vmatpush.bf16.msrb.mxu3 %v10802_v25 }
 0x299   : > { %2465 = vmatpush.bf16.msrb.mxu2 %v10794_v21 }
 0x29b   : > { %2441 = vmatpush.bf16.msrb.mxu0 %v10812_v32 }
 0x29c   : > { %2454 = vmatpush.bf16.msrb.mxu1 %v10820_v36  ;;  %2480 = vmatpush.bf16.msrb.mxu3 %v10822_v37 }
 0x29d   : > { %2466 = vmatpush.bf16.msrb.mxu2 %v10814_v33 }
 0x29f   : > { %2442 = vmatpush.bf16.msrb.mxu0 %v10832_v48 }
 0x2a0   : > { %2455 = vmatpush.bf16.msrb.mxu1 %v10840_v55  ;;  %2481 = vmatpush.bf16.msrb.mxu3 %v10842_v58 }
 0x2a1   : > { %2467 = vmatpush.bf16.msrb.mxu2 %v10834_v49 }
 0x2a3   : > { %2443 = vmatpush.bf16.msrb.mxu0 %v10852_v5 }
 0x2a4   : > { %2456 = vmatpush.bf16.msrb.mxu1 %v10860_v52  ;;  %2482 = vmatpush.bf16.msrb.mxu3 %v10862_v8 }
 0x2a5   : > { %2468 = vmatpush.bf16.msrb.mxu2 %v10854_v46 }
 0x2a7   : > { %2444 = vmatpush.bf16.msrb.mxu0 %v10872_v15 }
 0x2a8   : > { %2457 = vmatpush.bf16.msrb.mxu1 %v10878_v17  ;;  %2483 = vmatpush.bf16.msrb.mxu3 %v10880_v18 }
 0x2a9   : > { %2469 = vmatpush.bf16.msrb.mxu2 %v10874_v16 }
 0x2ab   : > { %2562 = vmatpush.bf16.msra.mxu0 %v10734_v50 }
 0x2ac   : > { %2575 = vmatpush.bf16.msra.mxu1 %v10739_v56  ;;  %2601 = vmatpush.bf16.msra.mxu3 %v10741_v57 }
 0x2ad   : > { %2470 = vmatpush.bf16.msrb.mxu2 %v10888_v23 }
 0x2af   : > { %2563 = vmatpush.bf16.msra.mxu0 %v10747_v61 }
 0x2b0   : > { %2576 = vmatpush.bf16.msra.mxu1 %v10754_v2  ;;  %2602 = vmatpush.bf16.msra.mxu3 %v10756_v3 }
 0x2b1   : > { %2588 = vmatpush.bf16.msra.mxu2 %v10761_v6 }
 0x2b3   : > { %2564 = vmatpush.bf16.msra.mxu0 %v10771_v10 }
 0x2b4   : > { %2577 = vmatpush.bf16.msra.mxu1 %v10778_v1  ;;  %2603 = vmatpush.bf16.msra.mxu3 %v10780_v12 }
 0x2b5   : > { %2589 = vmatpush.bf16.msra.mxu2 %v10782_v13 }
 0x2b7   : > { %2565 = vmatpush.bf16.msra.mxu0 %v10792_v20 }
 0x2b8   : > { %2578 = vmatpush.bf16.msra.mxu1 %v10800_v24  ;;  %2604 = vmatpush.bf16.msra.mxu3 %v10802_v25 }
 0x2b9   : > { %2590 = vmatpush.bf16.msra.mxu2 %v10794_v21 }
 0x2bb   : > { %2566 = vmatpush.bf16.msra.mxu0 %v10812_v32 }
 0x2bc   : > { %2579 = vmatpush.bf16.msra.mxu1 %v10820_v36  ;;  %2605 = vmatpush.bf16.msra.mxu3 %v10822_v37 }
 0x2bd   : > { %2591 = vmatpush.bf16.msra.mxu2 %v10814_v33 }
 0x2bf   : > { %2567 = vmatpush.bf16.msra.mxu0 %v10832_v48 }
 0x2c0   : > { %2580 = vmatpush.bf16.msra.mxu1 %v10840_v55  ;;  %2606 = vmatpush.bf16.msra.mxu3 %v10842_v58 }
 0x2c1   : > { %2592 = vmatpush.bf16.msra.mxu2 %v10834_v49 }
 0x2c3   : > { %2568 = vmatpush.bf16.msra.mxu0 %v10852_v5 }
 0x2c4   : > { %2581 = vmatpush.bf16.msra.mxu1 %v10860_v52  ;;  %2607 = vmatpush.bf16.msra.mxu3 %v10862_v8 }
 0x2c5   : > { %2593 = vmatpush.bf16.msra.mxu2 %v10854_v46 }
 0x2c7   : > { %2569 = vmatpush.bf16.msra.mxu0 %v10872_v15 }
 0x2c8   : > { %2582 = vmatpush.bf16.msra.mxu1 %v10878_v17  ;;  %2608 = vmatpush.bf16.msra.mxu3 %v10880_v18 }
 0x2c9   : > { %2594 = vmatpush.bf16.msra.mxu2 %v10874_v16 }
 0x2cd   : > { %2595 = vmatpush.bf16.msra.mxu2 %v10888_v23 }
 0x307   : > { %v2321_v29 = vpop.f32.mrf.mxu0 }
 0x308   : > { %v2364_v30 = vadd.f32 %v2321_v29, %v2148_v27  ;;  %v2334_v31 = vpop.f32.mrf.mxu1 }
 0x309   : > { %v2365_v34 = vadd.f32 %v2334_v31, %v2149_v28 }
 0x30a   : > { %v7482_v35 = vmul.f32 -1.442695, %v2364_v30 }
 0x30b   : > { %v7483_v38 = vmul.f32 -1.442695, %v2365_v34 }
 0x30c   : > { %9486 = vpow2.f32 %v7482_v35 }
 0x30d   : > { %9488 = vpow2.f32 %v7483_v38 }
 0x30f   : > { %v2323_v43 = vpop.f32.mrf.mxu0 }
 0x310   : > { %v2360_v41 = vpop.f32.mrf.mxu3  ;;  %v2336_v47 = vpop.f32.mrf.mxu1 }
 0x311   : > { %v2367_v42 = vadd.f32 %v2360_v41, %v2151_v40 }
 0x312   : > { %v9487_v54 = vpop.eup %9486 }
 0x313   : > { %v7484_v53 = vmul.f32 -1.442695, %v2367_v42  ;;  %v9489_v60 = vpop.eup %9488  ;;  %v2371_v62 = vadd.f32 1.0, %v9487_v54 }
 0x314   : > { %v2390_v63 = vadd.f32 1.0, %v9489_v60 }
 0x315   : > { %v2347_v59 = vpop.f32.mrf.mxu2  ;;  %9490 = vpow2.f32 %v7484_v53  ;;  %v2383_v26 = vand.u32 2147483648, %v2371_v62  ;;  %v2381_v29 = vand.u32 2147483647, %v2371_v62  ;;  %vm2377_vm2 = vweird.f32 %v2371_v62 }
 0x316   : > { %9492 = vrcp.f32 %v2371_v62  ;;  %v2366_v7 = vadd.f32 %v2347_v59, %v2150_v0  ;;  %v2402_v27 = vand.u32 2147483648, %v2390_v63  ;;  %v2400_v31 = vand.u32 2147483647, %v2390_v63 }
 0x317   : > { %9494 = vrcp.f32 %v2390_v63  ;;  %vm2396_vm3 = vweird.f32 %v2390_v63  ;;  %v2384_v41 = vor.u32 1.1754944e-38, %v2383_v26  ;;  %vm2382_vm5 = vcmp.eq.f32.partialorder %v2381_v29, 8.507059e+37 }
 0x318   : > { %v2362_v4 = vpop.f32.mrf.mxu3  ;;  %v2403_v43 = vor.u32 1.1754944e-38, %v2402_v27  ;;  %vm2401_vm7 = vcmp.eq.f32.partialorder %v2400_v31, 8.507059e+37 }
 0x31b   : > { %v9491_v51 = vpop.eup %9490 }
 0x31c   : > { %v2410_v9 = vadd.f32 1.0, %v9491_v51  ;;  %v9493_v44 = vpop.eup %9492 }
 0x31d   : > { %v2349_v39 = vpop.f32.mrf.mxu2  ;;  %v9495_v11 = vpop.eup %9494  ;;  %v2373_v45 = vmul.f32 %v9493_v44, %v2371_v62  ;;  %vm2378_vm0 = vweird.f32 %v9493_v44 }
 0x31e   : > { %9496 = vrcp.f32 %v2410_v9  ;;  %v2392_v14 = vmul.f32 %v9495_v11, %v2390_v63  ;;  %vm2397_vm1 = vweird.f32 %v9495_v11  ;;  %vm2379_vm4 = vmor %vm2377_vm2, %vm2378_vm0  ;;  %v2422_v63 = vand.u32 2147483648, %v2410_v9 }
 0x31f   : > { %9498 = vtanh.f32 %v2366_v7  ;;  %v2374_v19 = vsub.f32 1.0, %v2373_v45  ;;  %vm2398_vm6 = vmor %vm2396_vm3, %vm2397_vm1  ;;  %vm2416_vm9 = vweird.f32 %v2410_v9  ;;  %v2420_v39 = vand.u32 2147483647, %v2410_v9 }
 0x320   : > { %v2393_v22 = vsub.f32 1.0, %v2392_v14  ;;  %v2423_v45 = vor.u32 1.1754944e-38, %v2422_v63 }
 0x321   : > { %v2375_v28 = vmul.f32 %v9493_v44, %v2374_v19  ;;  %vm2421_vm11 = vcmp.eq.f32.partialorder %v2420_v39, 8.507059e+37 }
 0x322   : > { %v2394_v30 = vmul.f32 %v9495_v11, %v2393_v22 }
 0x323   : > { %v2376_v35 = vadd.f32 %v9493_v44, %v2375_v28 }
 0x324   : > { %v9497_v34 = vpop.eup %9496  ;;  %v2395_v42 = vadd.f32 %v9495_v11, %v2394_v30 }
 0x325   : > { %v9499_v38 = vpop.eup %9498  ;;  %v2412_v40 = vmul.f32 %v9497_v34, %v2410_v9  ;;  %v2380_v47 = vsel %vm2379_vm4, %v9493_v44, %v2376_v35  ;;  %vm2417_vm8 = vweird.f32 %v9497_v34 }
 0x326   : > { %v2385_v54 = vsel %vm2382_vm5, %v2384_v41, %v2380_v47  ;;  %v2399_v59 = vsel %vm2398_vm6, %v9495_v11, %v2395_v42  ;;  %vm2418_vm10 = vmor %vm2416_vm9, %vm2417_vm8 }
 0x327   : > { %v2413_v53 = vsub.f32 1.0, %v2412_v40  ;;  %v2404_v60 = vsel %vm2401_vm7, %v2403_v43, %v2399_v59  ;;  %v2427_v0 = vmul.f32 %v9499_v38, %v2385_v54 }
 0x328   : > { %v2426_v51 = vmul.f32 0.0, %v2404_v60 }
 0x329   : > { %v2414_v4 = vmul.f32 %v9497_v34, %v2413_v53 }
 0x32a   : > { %v10955_v7 = vadd.f32 %v2427_v0, %v2426_v51 }
 0x32b   : > { %v2415_v62 = vadd.f32 %v9497_v34, %v2414_v4 }
 0x32c   : > { %9500 = vtanh.f32 %v10955_v7 }
 0x32d   : > { %v2419_v44 = vsel %vm2418_vm10, %v9497_v34, %v2415_v62 }
 0x32e   : > { %v2424_v11 = vsel %vm2421_vm11, %v2423_v45, %v2419_v44 }
 0x332   : > { %v9501_v14 = vpop.eup %9500 }
 0x333   : > { %v2430_v19 = vmul.f32 %v9501_v14, %v2424_v11 }
 0x335   : > { %2431 = vst [vmem:[#allocation2 + $0x10] sm:$0xff] %v2430_v19  ;;  %v2436_v22 = vpack.c.bf16 %v2430_v19, %v2430_v19 }
 0x337   : > { %2445 = vmatmul.bf16.vlgmr.msrb.gmra.mxu0 %v2436_v22  ;;  %2458 = vmatmul.bf16.vlgmr.msrb.gmra.mxu1 %v2436_v22 }
 0x338   : > { %2471 = vmatmul.bf16.vlgmr.msrb.gmra.mxu2 %v2436_v22  ;;  %2484 = vmatmul.bf16.vlgmr.msrb.gmra.mxu3 %v2436_v22  ;;  %v2558_v22 = vld [vmem:[#allocation3 + $0x30] sm:$0xff] }
 0x339   : > { %2687 = vmatpush.bf16.msrb.mxu0 %v10734_v50  ;;  %2700 = vmatpush.bf16.msrb.mxu1 %v10739_v56  ;;  %v2432_v50 = vld [vmem:[#allocation3 + $0x20] sm:$0xff]  ;;  %v2433_v56 = vld [vmem:[#allocation3 + $0x8] sm:$0xff] }
 0x33a   : > { %2713 = vmatpush.bf16.msrb.mxu2 %v10761_v6  ;;  %2726 = vmatpush.bf16.msrb.mxu3 %v10741_v57 }
 0x33d   : > { %2688 = vmatpush.bf16.msrb.mxu0 %v10747_v61  ;;  %2701 = vmatpush.bf16.msrb.mxu1 %v10754_v2 }
 0x33e   : > { %2714 = vmatpush.bf16.msrb.mxu2 %v10782_v13  ;;  %2727 = vmatpush.bf16.msrb.mxu3 %v10756_v3 }
 0x341   : > { %2689 = vmatpush.bf16.msrb.mxu0 %v10771_v10  ;;  %2702 = vmatpush.bf16.msrb.mxu1 %v10778_v1  ;;  %v2435_v1 = vld [vmem:[#allocation3 + $0x10] sm:$0xff] }
 0x342   : > { %2715 = vmatpush.bf16.msrb.mxu2 %v10794_v21  ;;  %2728 = vmatpush.bf16.msrb.mxu3 %v10780_v12 }
 0x345   : > { %2690 = vmatpush.bf16.msrb.mxu0 %v10792_v20  ;;  %2703 = vmatpush.bf16.msrb.mxu1 %v10800_v24 }
 0x346   : > { %2716 = vmatpush.bf16.msrb.mxu2 %v10814_v33  ;;  %2729 = vmatpush.bf16.msrb.mxu3 %v10802_v25 }
 0x349   : > { %2691 = vmatpush.bf16.msrb.mxu0 %v10812_v32  ;;  %2704 = vmatpush.bf16.msrb.mxu1 %v10820_v36 }
 0x34a   : > { %2717 = vmatpush.bf16.msrb.mxu2 %v10834_v49  ;;  %2730 = vmatpush.bf16.msrb.mxu3 %v10822_v37 }
 0x34d   : > { %2692 = vmatpush.bf16.msrb.mxu0 %v10832_v48  ;;  %2705 = vmatpush.bf16.msrb.mxu1 %v10840_v55  ;;  %v2434_v55 = vld [vmem:[#allocation3 + $0x70] sm:$0xff] }
 0x34e   : > { %2718 = vmatpush.bf16.msrb.mxu2 %v10854_v46  ;;  %2731 = vmatpush.bf16.msrb.mxu3 %v10842_v58 }
 0x351   : > { %2693 = vmatpush.bf16.msrb.mxu0 %v10852_v5  ;;  %2706 = vmatpush.bf16.msrb.mxu1 %v10860_v52 }
 0x352   : > { %2719 = vmatpush.bf16.msrb.mxu2 %v10874_v16  ;;  %2732 = vmatpush.bf16.msrb.mxu3 %v10862_v8 }
 0x355   : > { %2694 = vmatpush.bf16.msrb.mxu0 %v10872_v15  ;;  %2707 = vmatpush.bf16.msrb.mxu1 %v10878_v17 }
 0x356   : > { %2720 = vmatpush.bf16.msrb.mxu2 %v10888_v23  ;;  %2733 = vmatpush.bf16.msrb.mxu3 %v10880_v18 }
 0x3b4   : > { %v2446_v57 = vpop.f32.mrf.mxu0  ;;  %v2459_v61 = vpop.f32.mrf.mxu1 }
 0x3b5   : > { %v2489_v2 = vadd.f32 %v2446_v57, %v2432_v50  ;;  %v2490_v3 = vadd.f32 %v2459_v61, %v2433_v56 }
 0x3b7   : > { %v7485_v6 = vmul.f32 -1.442695, %v2489_v2  ;;  %v7486_v10 = vmul.f32 -1.442695, %v2490_v3 }
 0x3b9   : > { %9502 = vpow2.f32 %v7485_v6  ;;  %v2560_v6 = vld [vmem:[#allocation3 + $0x28] sm:$0xff] }
 0x3ba   : > { %9504 = vpow2.f32 %v7486_v10 }
 0x3bb   : > { %v2472_v12 = vpop.f32.mrf.mxu2  ;;  %v2485_v13 = vpop.f32.mrf.mxu3 }
 0x3bc   : > { %v2492_v20 = vadd.f32 %v2485_v13, %v2435_v1  ;;  %v2448_v21 = vpop.f32.mrf.mxu0  ;;  %v2461_v24 = vpop.f32.mrf.mxu1  ;;  %v2491_v52 = vadd.f32 %v2472_v12, %v2434_v55 }
 0x3be   : > { %v7487_v25 = vmul.f32 -1.442695, %v2492_v20 }
 0x3bf   : > { %v9503_v32 = vpop.eup %9502 }
 0x3c0   : > { %v9505_v33 = vpop.eup %9504  ;;  %v2496_v36 = vadd.f32 1.0, %v9503_v32  ;;  %9506 = vpow2.f32 %v7487_v25 }
 0x3c1   : > { %v2515_v37 = vadd.f32 1.0, %v9505_v33 }
 0x3c2   : > { %9508 = vrcp.f32 %v2496_v36  ;;  %v2508_v23 = vand.u32 2147483648, %v2496_v36  ;;  %v2506_v27 = vand.u32 2147483647, %v2496_v36  ;;  %vm2502_vm14 = vweird.f32 %v2496_v36 }
 0x3c3   : > { %9510 = vrcp.f32 %v2515_v37  ;;  %v2474_v48 = vpop.f32.mrf.mxu2  ;;  %v2487_v49 = vpop.f32.mrf.mxu3  ;;  %v2527_v9 = vand.u32 2147483648, %v2515_v37  ;;  %v2525_v29 = vand.u32 2147483647, %v2515_v37  ;;  %vm2521_vm15 = vweird.f32 %v2515_v37 }
 0x3c4   : > { %v2509_v34 = vor.u32 1.1754944e-38, %v2508_v23  ;;  %vm2507_vm2 = vcmp.eq.f32.partialorder %v2506_v27, 8.507059e+37  ;;  %v2559_v48 = vld [vmem:[#allocation3 + $0x68] sm:$0xff] }
 0x3c5   : > { %v2528_v40 = vor.u32 1.1754944e-38, %v2527_v9  ;;  %vm2526_vm3 = vcmp.eq.f32.partialorder %v2525_v29, 8.507059e+37 }
 0x3c6   : > { %v9507_v58 = vpop.eup %9506 }
 0x3c7   : > { %v2535_v5 = vadd.f32 1.0, %v9507_v58 }
 0x3c8   : > { %v9509_v46 = vpop.eup %9508 }
 0x3c9   : > { %v9511_v8 = vpop.eup %9510  ;;  %v2498_v15 = vmul.f32 %v9509_v46, %v2496_v36  ;;  %9512 = vrcp.f32 %v2535_v5  ;;  %vm2503_vm12 = vweird.f32 %v9509_v46  ;;  %v2547_v62 = vand.u32 2147483648, %v2535_v5 }
 0x3ca   : > { %v2517_v16 = vmul.f32 %v9511_v8, %v2515_v37  ;;  %9514 = vtanh.f32 %v2491_v52  ;;  %vm2522_vm13 = vweird.f32 %v9511_v8  ;;  %vm2504_vm0 = vmor %vm2502_vm14, %vm2503_vm12  ;;  %vm2541_vm5 = vweird.f32 %v2535_v5 }
 0x3cb   : > { %v2499_v17 = vsub.f32 1.0, %v2498_v15  ;;  %vm2523_vm1 = vmor %vm2521_vm15, %vm2522_vm13  ;;  %v2545_v63 = vand.u32 2147483647, %v2535_v5  ;;  %v2548_v44 = vor.u32 1.1754944e-38, %v2547_v62 }
 0x3cc   : > { %v2518_v18 = vsub.f32 1.0, %v2517_v16 }
 0x3cd   : > { %v2500_v26 = vmul.f32 %v9509_v46, %v2499_v17  ;;  %vm2546_vm7 = vcmp.eq.f32.partialorder %v2545_v63, 8.507059e+37 }
 0x3ce   : > { %v2519_v28 = vmul.f32 %v9511_v8, %v2518_v18 }
 0x3cf   : > { %v9513_v30 = vpop.eup %9512  ;;  %v2501_v31 = vadd.f32 %v9509_v46, %v2500_v26 }
 0x3d0   : > { %v2520_v35 = vadd.f32 %v9511_v8, %v2519_v28  ;;  %v2537_v38 = vmul.f32 %v9513_v30, %v2535_v5  ;;  %v9515_v42 = vpop.eup %9514  ;;  %vm2542_vm4 = vweird.f32 %v9513_v30 }
 0x3d1   : > { %v2505_v41 = vsel %vm2504_vm0, %v9509_v46, %v2501_v31  ;;  %vm2543_vm6 = vmor %vm2541_vm5, %vm2542_vm4 }
 0x3d2   : > { %v2510_v43 = vsel %vm2507_vm2, %v2509_v34, %v2505_v41  ;;  %v2524_v47 = vsel %vm2523_vm1, %v9511_v8, %v2520_v35  ;;  %v2538_v53 = vsub.f32 1.0, %v2537_v38 }
 0x3d3   : > { %v2529_v54 = vsel %vm2526_vm3, %v2528_v40, %v2524_v47  ;;  %v2552_v59 = vmul.f32 %v9515_v42, %v2510_v43 }
 0x3d4   : > { %v2551_v60 = vmul.f32 %v2529_v54, %v10955_v7  ;;  %v2539_v0 = vmul.f32 %v9513_v30, %v2538_v53  ;;  %v2557_v7 = vld [vmem:[#allocation3 + $0x40] sm:$0xff] }
 0x3d6   : > { %v10991_v4 = vadd.f32 %v2552_v59, %v2551_v60  ;;  %v2540_v51 = vadd.f32 %v9513_v30, %v2539_v0 }
 0x3d8   : > { %9516 = vtanh.f32 %v10991_v4  ;;  %v2544_v39 = vsel %vm2543_vm6, %v9513_v30, %v2540_v51 }
 0x3d9   : > { %v2549_v14 = vsel %vm2546_vm7, %v2548_v44, %v2544_v39 }
 0x3de   : > { %v9517_v45 = vpop.eup %9516 }
 0x3df   : > { %v2555_v11 = vmul.f32 %v9517_v45, %v2549_v14 }
 0x3e1   : > { %2556 = vst [vmem:[#allocation2] sm:$0xff] %v2555_v11  ;;  %v2561_v19 = vpack.c.bf16 %v2555_v11, %v2555_v11 }
 0x3e3   : > { %2570 = vmatmul.bf16.vlgmr.msra.gmra.mxu0 %v2561_v19  ;;  %2583 = vmatmul.bf16.vlgmr.msra.gmra.mxu1 %v2561_v19 }
 0x3e4   : > { %2596 = vmatmul.bf16.vlgmr.msra.gmra.mxu2 %v2561_v19  ;;  %2609 = vmatmul.bf16.vlgmr.msra.gmra.mxu3 %v2561_v19  ;;  %v2683_v19 = vld [vmem:[#allocation3 + $0x48] sm:$0xff] }
 0x460   : > { %v2571_v50 = vpop.f32.mrf.mxu0  ;;  %v2584_v56 = vpop.f32.mrf.mxu1 }
 0x461   : > { %v2614_v57 = vadd.f32 %v2571_v50, %v2557_v7  ;;  %v2615_v61 = vadd.f32 %v2584_v56, %v2558_v22 }
 0x463   : > { %v7488_v2 = vmul.f32 -1.442695, %v2614_v57  ;;  %v7489_v3 = vmul.f32 -1.442695, %v2615_v61 }
 0x465   : > { %9518 = vpow2.f32 %v7488_v2  ;;  %v2685_v2 = vld [vmem:[#allocation3 + $0x50] sm:$0xff] }
 0x466   : > { %9520 = vpow2.f32 %v7489_v3 }
 0x467   : > { %v2597_v10 = vpop.f32.mrf.mxu2  ;;  %v2610_v1 = vpop.f32.mrf.mxu3 }
 0x468   : > { %v2617_v12 = vadd.f32 %v2610_v1, %v2560_v6  ;;  %v2573_v13 = vpop.f32.mrf.mxu0  ;;  %v2586_v20 = vpop.f32.mrf.mxu1  ;;  %v2616_v5 = vadd.f32 %v2597_v10, %v2559_v48 }
 0x46a   : > { %v7490_v21 = vmul.f32 -1.442695, %v2617_v12 }
 0x46b   : > { %v9519_v24 = vpop.eup %9518 }
 0x46c   : > { %v9521_v25 = vpop.eup %9520  ;;  %v2621_v32 = vadd.f32 1.0, %v9519_v24  ;;  %9522 = vpow2.f32 %v7490_v21 }
 0x46d   : > { %v2640_v33 = vadd.f32 1.0, %v9521_v25 }
 0x46e   : > { %9524 = vrcp.f32 %v2621_v32  ;;  %v2633_v17 = vand.u32 2147483648, %v2621_v32  ;;  %v2631_v9 = vand.u32 2147483647, %v2621_v32  ;;  %vm2627_vm10 = vweird.f32 %v2621_v32 }
 0x46f   : > { %9526 = vrcp.f32 %v2640_v33  ;;  %v2599_v36 = vpop.f32.mrf.mxu2  ;;  %v2612_v37 = vpop.f32.mrf.mxu3  ;;  %v2652_v18 = vand.u32 2147483648, %v2640_v33  ;;  %v2650_v27 = vand.u32 2147483647, %v2640_v33  ;;  %vm2646_vm11 = vweird.f32 %v2640_v33 }
 0x470   : > { %v2634_v30 = vor.u32 1.1754944e-38, %v2633_v17  ;;  %vm2632_vm14 = vcmp.eq.f32.partialorder %v2631_v9, 8.507059e+37  ;;  %v2684_v36 = vld [vmem:[#allocation3 + $0x18] sm:$0xff] }
 0x471   : > { %v2653_v35 = vor.u32 1.1754944e-38, %v2652_v18  ;;  %vm2651_vm15 = vcmp.eq.f32.partialorder %v2650_v27, 8.507059e+37 }
 0x472   : > { %v9523_v49 = vpop.eup %9522 }
 0x473   : > { %v2660_v55 = vadd.f32 1.0, %v9523_v49 }
 0x474   : > { %v9525_v58 = vpop.eup %9524 }
 0x475   : > { %v9527_v46 = vpop.eup %9526  ;;  %v2623_v52 = vmul.f32 %v9525_v58, %v2621_v32  ;;  %9528 = vrcp.f32 %v2660_v55  ;;  %vm2628_vm8 = vweird.f32 %v9525_v58  ;;  %v2672_v51 = vand.u32 2147483648, %v2660_v55 }
 0x476   : > { %v2642_v8 = vmul.f32 %v9527_v46, %v2640_v33  ;;  %9530 = vtanh.f32 %v2616_v5  ;;  %vm2647_vm9 = vweird.f32 %v9527_v46  ;;  %vm2629_vm12 = vmor %vm2627_vm10, %vm2628_vm8  ;;  %vm2666_vm1 = vweird.f32 %v2660_v55 }
 0x477   : > { %v2624_v15 = vsub.f32 1.0, %v2623_v52  ;;  %vm2648_vm13 = vmor %vm2646_vm11, %vm2647_vm9  ;;  %v2670_v62 = vand.u32 2147483647, %v2660_v55  ;;  %v2673_v39 = vor.u32 1.1754944e-38, %v2672_v51 }
 0x478   : > { %v2643_v16 = vsub.f32 1.0, %v2642_v8 }
 0x479   : > { %v2625_v23 = vmul.f32 %v9525_v58, %v2624_v15  ;;  %vm2671_vm3 = vcmp.eq.f32.partialorder %v2670_v62, 8.507059e+37 }
 0x47a   : > { %v2644_v26 = vmul.f32 %v9527_v46, %v2643_v16 }
 0x47b   : > { %v9529_v28 = vpop.eup %9528  ;;  %v2626_v29 = vadd.f32 %v9525_v58, %v2625_v23 }
 0x47c   : > { %v2645_v31 = vadd.f32 %v9527_v46, %v2644_v26  ;;  %v2662_v34 = vmul.f32 %v9529_v28, %v2660_v55  ;;  %v9531_v40 = vpop.eup %9530  ;;  %vm2667_vm0 = vweird.f32 %v9529_v28 }
 0x47d   : > { %v2630_v38 = vsel %vm2629_vm12, %v9525_v58, %v2626_v29  ;;  %vm2668_vm2 = vmor %vm2666_vm1, %vm2667_vm0 }
 0x47e   : > { %v2635_v41 = vsel %vm2632_vm14, %v2634_v30, %v2630_v38  ;;  %v2649_v42 = vsel %vm2648_vm13, %v9527_v46, %v2645_v31  ;;  %v2663_v43 = vsub.f32 1.0, %v2662_v34 }
 0x47f   : > { %v2654_v47 = vsel %vm2651_vm15, %v2653_v35, %v2649_v42  ;;  %v2677_v53 = vmul.f32 %v9531_v40, %v2635_v41 }
 0x480   : > { %v2676_v54 = vmul.f32 %v2654_v47, %v10991_v4  ;;  %v2664_v59 = vmul.f32 %v9529_v28, %v2663_v43  ;;  %v2682_v4 = vld [vmem:[#allocation3 + $0x60] sm:$0xff] }
 0x482   : > { %v10995_v60 = vadd.f32 %v2677_v53, %v2676_v54  ;;  %v2665_v0 = vadd.f32 %v9529_v28, %v2664_v59 }
 0x484   : > { %9532 = vtanh.f32 %v10995_v60  ;;  %v2669_v63 = vsel %vm2668_vm2, %v9529_v28, %v2665_v0 }
 0x485   : > { %v2674_v45 = vsel %vm2671_vm3, %v2673_v39, %v2669_v63 }
 0x48a   : > { %v9533_v44 = vpop.eup %9532 }
 0x48b   : > { %v2680_v14 = vmul.f32 %v9533_v44, %v2674_v45 }
 0x48d   : > { %2681 = vst [vmem:[#allocation2 + $0x18] sm:$0xff] %v2680_v14  ;;  %v2686_v11 = vpack.c.bf16 %v2680_v14, %v2680_v14 }
 0x48f   : > { %2695 = vmatmul.bf16.vlgmr.msrb.gmra.mxu0 %v2686_v11  ;;  %2708 = vmatmul.bf16.vlgmr.msrb.gmra.mxu1 %v2686_v11 }
 0x490   : > { %2721 = vmatmul.bf16.vlgmr.msrb.gmra.mxu2 %v2686_v11  ;;  %2734 = vmatmul.bf16.vlgmr.msrb.gmra.mxu3 %v2686_v11 }
 0x50c   : > { %v2696_v7 = vpop.f32.mrf.mxu0  ;;  %v2709_v22 = vpop.f32.mrf.mxu1 }
 0x50d   : > { %v2739_v50 = vadd.f32 %v2696_v7, %v2682_v4  ;;  %v2740_v56 = vadd.f32 %v2709_v22, %v2683_v19 }
 0x50f   : > { %v7491_v57 = vmul.f32 -1.442695, %v2739_v50  ;;  %v7492_v61 = vmul.f32 -1.442695, %v2740_v56 }
 0x511   : > { %9534 = vpow2.f32 %v7491_v57 }
 0x512   : > { %9536 = vpow2.f32 %v7492_v61 }
 0x513   : > { %v2722_v3 = vpop.f32.mrf.mxu2  ;;  %v2735_v6 = vpop.f32.mrf.mxu3 }
 0x514   : > { %v2742_v10 = vadd.f32 %v2735_v6, %v2685_v2  ;;  %v2698_v1 = vpop.f32.mrf.mxu0  ;;  %v2711_v12 = vpop.f32.mrf.mxu1  ;;  %v2741_v55 = vadd.f32 %v2722_v3, %v2684_v36 }
 0x516   : > { %v7493_v13 = vmul.f32 -1.442695, %v2742_v10 }
 0x517   : > { %v9535_v20 = vpop.eup %9534 }
 0x518   : > { %v9537_v21 = vpop.eup %9536  ;;  %v2746_v24 = vadd.f32 1.0, %v9535_v20  ;;  %9538 = vpow2.f32 %v7493_v13 }
 0x519   : > { %v2765_v25 = vadd.f32 1.0, %v9537_v21 }
 0x51a   : > { %9540 = vrcp.f32 %v2746_v24  ;;  %v2758_v15 = vand.u32 2147483648, %v2746_v24  ;;  %v2756_v18 = vand.u32 2147483647, %v2746_v24  ;;  %vm2752_vm6 = vweird.f32 %v2746_v24 }
 0x51b   : > { %9542 = vrcp.f32 %v2765_v25  ;;  %v2724_v32 = vpop.f32.mrf.mxu2  ;;  %v2737_v33 = vpop.f32.mrf.mxu3  ;;  %v2777_v16 = vand.u32 2147483648, %v2765_v25  ;;  %v2775_v9 = vand.u32 2147483647, %v2765_v25  ;;  %vm2771_vm7 = vweird.f32 %v2765_v25 }
 0x51c   : > { %v2759_v28 = vor.u32 1.1754944e-38, %v2758_v15  ;;  %vm2757_vm10 = vcmp.eq.f32.partialorder %v2756_v18, 8.507059e+37 }
 0x51d   : > { %v2778_v31 = vor.u32 1.1754944e-38, %v2777_v16  ;;  %vm2776_vm11 = vcmp.eq.f32.partialorder %v2775_v9, 8.507059e+37 }
 0x51e   : > { %v9539_v37 = vpop.eup %9538 }
 0x51f   : > { %v2785_v48 = vadd.f32 1.0, %v9539_v37 }
 0x520   : > { %v9541_v49 = vpop.eup %9540 }
 0x521   : > { %v9543_v58 = vpop.eup %9542  ;;  %v2748_v5 = vmul.f32 %v9541_v49, %v2746_v24  ;;  %9544 = vrcp.f32 %v2785_v48  ;;  %vm2753_vm4 = vweird.f32 %v9541_v49  ;;  %v2797_v0 = vand.u32 2147483648, %v2785_v48 }
 0x522   : > { %v2767_v46 = vmul.f32 %v9543_v58, %v2765_v25  ;;  %9546 = vtanh.f32 %v2741_v55  ;;  %vm2772_vm5 = vweird.f32 %v9543_v58  ;;  %vm2754_vm8 = vmor %vm2752_vm6, %vm2753_vm4  ;;  %vm2791_vm13 = vweird.f32 %v2785_v48 }
 0x523   : > { %v2749_v52 = vsub.f32 1.0, %v2748_v5  ;;  %vm2773_vm9 = vmor %vm2771_vm7, %vm2772_vm5  ;;  %v2795_v51 = vand.u32 2147483647, %v2785_v48  ;;  %v2798_v63 = vor.u32 1.1754944e-38, %v2797_v0 }
 0x524   : > { %v2768_v8 = vsub.f32 1.0, %v2767_v46 }
 0x525   : > { %v2750_v17 = vmul.f32 %v9541_v49, %v2749_v52  ;;  %vm2796_vm15 = vcmp.eq.f32.partialorder %v2795_v51, 8.507059e+37 }
 0x526   : > { %v2769_v23 = vmul.f32 %v9543_v58, %v2768_v8 }
 0x527   : > { %v9545_v26 = vpop.eup %9544  ;;  %v2751_v27 = vadd.f32 %v9541_v49, %v2750_v17 }
 0x528   : > { %v2770_v29 = vadd.f32 %v9543_v58, %v2769_v23  ;;  %v2787_v30 = vmul.f32 %v9545_v26, %v2785_v48  ;;  %v9547_v35 = vpop.eup %9546  ;;  %vm2792_vm12 = vweird.f32 %v9545_v26 }
 0x529   : > { %v2755_v34 = vsel %vm2754_vm8, %v9541_v49, %v2751_v27  ;;  %vm2793_vm14 = vmor %vm2791_vm13, %vm2792_vm12 }
 0x52a   : > { %v2760_v38 = vsel %vm2757_vm10, %v2759_v28, %v2755_v34  ;;  %v2774_v40 = vsel %vm2773_vm9, %v9543_v58, %v2770_v29  ;;  %v2788_v41 = vsub.f32 1.0, %v2787_v30 }
 0x52b   : > { %v2779_v42 = vsel %vm2776_vm11, %v2778_v31, %v2774_v40  ;;  %v2802_v43 = vmul.f32 %v9547_v35, %v2760_v38 }
 0x52c   : > { %v2801_v47 = vmul.f32 %v2779_v42, %v10995_v60  ;;  %v2789_v53 = vmul.f32 %v9545_v26, %v2788_v41 }
 0x52e   : > { %v2803_v54 = vadd.f32 %v2802_v43, %v2801_v47  ;;  %v2790_v59 = vadd.f32 %v9545_v26, %v2789_v53 }
 0x530   : > { %9548 = vtanh.f32 %v2803_v54  ;;  %v2794_v62 = vsel %vm2793_vm14, %v9545_v26, %v2790_v59 }
 0x531   : > { %v2799_v44 = vsel %vm2796_vm15, %v2798_v63, %v2794_v62 }
 0x535   : > { %2810 = sbr.rel (%p7494_p3) target bundleno = 3609 (0xe19), region = 180 }
 0x536   : > { %v9549_v39 = vpop.eup %9548 }
 0x537   : > { %v2805_v45 = vmul.f32 %v9549_v39, %v2799_v44 }
 0x539   : > { %2806 = vst [vmem:[#allocation2 + $0x8] sm:$0xff] %v2805_v45 }
 0x53a   : > { %v7581_v60 = vld [vmem:[#allocation10 + $0xa8] sm:$0xf]  ;;  %v8985_v14 = vld [vmem:[#allocation10 + $0xb0] sm:$0xf0]  ;;  %v8984_v11 = vld [vmem:[#allocation10 + $0xac] sm:$0xf] }
 0x53b   : > { %v7582_v4 = vor.u32 %v8985_v14, %v7581_v60  ;;  %v7583_v19 = vld [vmem:[#allocation10 + $0xb4] sm:$0xf0]  ;;  %v7569_v7 = vld [vmem:[#allocation10 + $0x90] sm:$0xf]  ;;  %v8982_v22 = vld [vmem:[#allocation10 + $0x98] sm:$0xf0] }
 0x53c   : > { %v7586_v50 = vor.u32 %v8984_v11, %v7583_v19  ;;  %v8981_v56 = vld [vmem:[#allocation10 + $0x94] sm:$0xf]  ;;  %v7571_v57 = vld [vmem:[#allocation10 + $0x9c] sm:$0xf0]  ;;  %v7570_v61 = vor.u32 %v8982_v22, %v7569_v7  ;;  %v7557_v3 = vld [vmem:[#allocation10 + $0x78] sm:$0xf] }
 0x53d   : > { %2985 = vmatpush.bf16.msra.mxu0 %v7582_v4  ;;  %v7574_v2 = vor.u32 %v8981_v56, %v7571_v57  ;;  %v8979_v6 = vld [vmem:[#allocation10 + $0x80] sm:$0xf0]  ;;  %v8978_v10 = vld [vmem:[#allocation10 + $0x7c] sm:$0xf]  ;;  %v7559_v1 = vld [vmem:[#allocation10 + $0x84] sm:$0xf0] }
 0x53e   : > { %3004 = vmatpush.bf16.msra.mxu1 %v7586_v50  ;;  %v7558_v12 = vor.u32 %v8979_v6, %v7557_v3  ;;  %v7562_v13 = vor.u32 %v8978_v10, %v7559_v1  ;;  %v7545_v20 = vld [vmem:[#allocation10 + $0x60] sm:$0xf]  ;;  %v8976_v21 = vld [vmem:[#allocation10 + $0x68] sm:$0xf0]  ;;  %v8975_v24 = vld [vmem:[#allocation10 + $0x64] sm:$0xf] }
 0x53f   : > { %v7547_v25 = vld [vmem:[#allocation10 + $0x6c] sm:$0xf0]  ;;  %v7533_v32 = vld [vmem:[#allocation10 + $0x48] sm:$0xf]  ;;  %v7546_v33 = vor.u32 %v8976_v21, %v7545_v20  ;;  %v8973_v36 = vld [vmem:[#allocation10 + $0x50] sm:$0xf0] }
 0x540   : > { %v8972_v37 = vld [vmem:[#allocation10 + $0x4c] sm:$0xf]  ;;  %v7535_v48 = vld [vmem:[#allocation10 + $0x54] sm:$0xf0]  ;;  %v7550_v49 = vor.u32 %v8975_v24, %v7547_v25  ;;  %v7534_v55 = vor.u32 %v8973_v36, %v7533_v32  ;;  %v7521_v5 = vld [vmem:[#allocation10 + $0x30] sm:$0xf] }
 0x541   : > { %2986 = vmatpush.bf16.msra.mxu0 %v7570_v61  ;;  %v7538_v58 = vor.u32 %v8972_v37, %v7535_v48  ;;  %v8970_v46 = vld [vmem:[#allocation10 + $0x38] sm:$0xf0]  ;;  %v8969_v52 = vld [vmem:[#allocation10 + $0x34] sm:$0xf]  ;;  %v7523_v8 = vld [vmem:[#allocation10 + $0x3c] sm:$0xf0] }
 0x542   : > { %3005 = vmatpush.bf16.msra.mxu1 %v7574_v2  ;;  %v7522_v15 = vor.u32 %v8970_v46, %v7521_v5  ;;  %v3073_v16 = vld [vmem:[%s11587_s23 + $0x78] sm:$0xff]  ;;  %v3072_v17 = vld [vmem:[%s11587_s23 + $0x70] sm:$0xff]  ;;  %v7526_v18 = vor.u32 %v8969_v52, %v7523_v8  ;;  %v8967_v9 = vld [vmem:[#allocation10 + $0x20] sm:$0xf0]  ;;  %vm3233_vm0 = vcmask 130048  }
 0x543   : > { %v7509_v23 = vld [vmem:[#allocation10 + $0x18] sm:$0xf]  ;;  %3074 = vmatpush.msra.mxu3 %v3073_v16  ;;  %v8966_v26 = vld [vmem:[#allocation10 + $0x1c] sm:$0xf]  ;;  %v7511_v27 = vld [vmem:[#allocation10 + $0x24] sm:$0xf0] }
 0x544   : > { %v3071_v28 = vld [vmem:[%s11587_s23 + $0x68] sm:$0xff]  ;;  %v7510_v29 = vor.u32 %v8967_v9, %v7509_v23  ;;  %v3070_v30 = vld [vmem:[%s11587_s23 + $0x60] sm:$0xff]  ;;  %v7514_v31 = vor.u32 %v8966_v26, %v7511_v27  ;;  %v7499_v40 = vld [vmem:[#allocation10 + $0xc] sm:$0xf0] }
 0x545   : > { %2987 = vmatpush.bf16.msra.mxu0 %v7558_v12  ;;  %3075 = vmatpush.msra.mxu3 %v3072_v17  ;;  %v7497_v34 = vld [vmem:[#allocation10] sm:$0xf]  ;;  %v8964_v35 = vld [vmem:[#allocation10 + $0x8] sm:$0xf0]  ;;  %v8963_v38 = vld [vmem:[#allocation10 + $0x4] sm:$0xf] }
 0x546   : > { %3006 = vmatpush.bf16.msra.mxu1 %v7562_v13  ;;  %v3069_v41 = vld [vmem:[%s11587_s23 + $0x58] sm:$0xff]  ;;  %v7498_v42 = vor.u32 %v8964_v35, %v7497_v34  ;;  %v11015_v43 = vld [vmem:[#allocation2 + $0x10] sm:$0xff]  ;;  %v11017_v47 = vld [vmem:[#allocation2] sm:$0xff]  ;;  %v7502_v54 = vor.u32 %v8963_v38, %v7499_v40 }
 0x547   : > { %3076 = vmatpush.msra.mxu3 %v3071_v28  ;;  %v3068_v53 = vld [vmem:[%s11587_s23 + $0x50] sm:$0xff]  ;;  %v3067_v59 = vld [vmem:[%s11587_s23 + $0x48] sm:$0xff]  ;;  %v11027_v0 = vpack.c.bf16 %v11017_v47, %v11015_v43  ;;  %v3066_v51 = vld [vmem:[%s11587_s23 + $0x40] sm:$0xff] }
 0x548   : > { %v3065_v62 = vld [vmem:[%s11587_s23 + $0x38] sm:$0xff]  ;;  %v3064_v63 = vld [vmem:[%s11587_s23 + $0x30] sm:$0xff]  ;;  %v3063_v39 = vld [vmem:[%s11587_s23 + $0x28] sm:$0xff] }
 0x549   : > { %2988 = vmatpush.bf16.msra.mxu0 %v7546_v33  ;;  %3077 = vmatpush.msra.mxu3 %v3070_v30  ;;  %v3062_v44 = vld [vmem:[%s11587_s23 + $0x20] sm:$0xff]  ;;  %v3061_v45 = vld [vmem:[%s11587_s23 + $0x18] sm:$0xff]  ;;  %v11051_v14 = vld [vmem:[#allocation2 + $0x8] sm:$0xff] }
 0x54a   : > { %3007 = vmatpush.bf16.msra.mxu1 %v7550_v49  ;;  %v11049_v60 = vld [vmem:[#allocation2 + $0x18] sm:$0xff]  ;;  %v3060_v4 = vld [vmem:[%s11587_s23 + $0x10] sm:$0xff]  ;;  %v3059_v19 = vld [vmem:[%s11587_s23 + $0x8] sm:$0xff] }
 0x54b   : > { %3078 = vmatpush.msra.mxu3 %v3069_v41  ;;  %v11055_v11 = vpack.c.bf16 %v11051_v14, %v11049_v60  ;;  %v3058_v7 = vld [vmem:[%s11587_s23] sm:$0xff]  ;;  %v7589_v38 = vld [vmem:[#allocation10 + $0xb0] sm:$0xf]  ;;  %v8986_v40 = vld [vmem:[#allocation10 + $0xb8] sm:$0xf0] }
 0x54c   : > { %v11068_v22 = vld [vmem:[#allocation12] sm:$0x7]  ;;  %v7590_v41 = vor.u32 %v8986_v40, %v7589_v38 }
 0x54d   : > { %2989 = vmatpush.bf16.msra.mxu0 %v7534_v55  ;;  %3079 = vmatpush.msra.mxu3 %v3068_v53  ;;  %v2851_v50 = vperm.slane %v11068_v22, 0  ;;  %v2852_v56 = vperm.slane %v11068_v22, 1  ;;  %v8983_v53 = vld [vmem:[#allocation10 + $0xa0] sm:$0xf0] }
 0x54e   : > { %3008 = vmatpush.bf16.msra.mxu1 %v7538_v58  ;;  %3023 = vmatpush.bf16.msra.mxu2 %v7590_v41 }
 0x54f   : > { %3080 = vmatpush.msra.mxu3 %v3067_v59 }
 0x551   : > { %2990 = vmatpush.bf16.msra.mxu0 %v7522_v15  ;;  %3081 = vmatpush.msra.mxu3 %v3066_v51  ;;  %v3232_v51 = vld [vmem:[#allocation27 + $0x8] sm:$0xff] }
 0x552   : > { %3009 = vmatpush.bf16.msra.mxu1 %v7526_v18 }
 0x553   : > { %3082 = vmatpush.msra.mxu3 %v3065_v62  ;;  %v7565_v62 = vld [vmem:[#allocation10 + $0x80] sm:$0xf] }
 0x555   : > { %2991 = vmatpush.bf16.msra.mxu0 %v7510_v29  ;;  %3083 = vmatpush.msra.mxu3 %v3064_v63  ;;  %v8980_v63 = vld [vmem:[#allocation10 + $0x88] sm:$0xf0] }
 0x556   : > { %3010 = vmatpush.bf16.msra.mxu1 %v7514_v31 }
 0x557   : > { %3084 = vmatpush.msra.mxu3 %v3063_v39  ;;  %v7566_v39 = vor.u32 %v8980_v63, %v7565_v62 }
 0x559   : > { %2992 = vmatpush.bf16.msra.mxu0 %v7498_v42  ;;  %3085 = vmatpush.msra.mxu3 %v3062_v44  ;;  %v7577_v42 = vld [vmem:[#allocation10 + $0x98] sm:$0xf] }
 0x55a   : > { %3011 = vmatpush.bf16.msra.mxu1 %v7502_v54  ;;  %v7578_v59 = vor.u32 %v8983_v53, %v7577_v42 }
 0x55b   : > { %3086 = vmatpush.msra.mxu3 %v3061_v45  ;;  %v7553_v45 = vld [vmem:[#allocation10 + $0x68] sm:$0xf] }
 0x55c   : > { %2993 = vmatmul.bf16.vlgmr.msra.gmra.mxu0 %v11027_v0  ;;  %3024 = vmatpush.bf16.msra.mxu2 %v7578_v59 }
 0x55d   : > { %3012 = vmatmul.bf16.vlgmr.msra.gmra.mxu1 %v11027_v0  ;;  %3087 = vmatpush.msra.mxu3 %v3060_v4  ;;  %v8977_v4 = vld [vmem:[#allocation10 + $0x70] sm:$0xf0] }
 0x55e   : > { %3296 = vmatpush.msrb.mxu0 %v3232_v51 }
 0x55f   : > { %3088 = vmatpush.msra.mxu3 %v3059_v19  ;;  %v7554_v19 = vor.u32 %v8977_v4, %v7553_v45 }
 0x560   : > { %3025 = vmatpush.bf16.msra.mxu2 %v7566_v39 }
 0x561   : > { %3089 = vmatpush.msra.mxu3 %v3058_v7  ;;  %v7541_v7 = vld [vmem:[#allocation10 + $0x50] sm:$0xf] }
 0x564   : > { %3026 = vmatpush.bf16.msra.mxu2 %v7554_v19 }
 0x56c   : > { %2998 = vmatmul.bf16.gmra.mxu0 %v11055_v11 }
 0x56d   : > { %3017 = vmatmul.bf16.gmra.mxu1 %v11055_v11 }
 0x5d9   : > { %v2994_v57 = vpop.f32.mrf.mxu0 }
 0x5da   : > { %v2995_v61 = vadd.f32 %v2994_v57, %v2851_v50  ;;  %v3013_v2 = vpop.f32.mrf.mxu1 }
 0x5db   : > { %v3014_v3 = vadd.f32 %v3013_v2, %v2852_v56  ;;  %v8971_v2 = vld [vmem:[#allocation10 + $0x40] sm:$0xf0] }
 0x5dd   : > { %v3042_v6 = vmul.f32 %v3014_v3, %v2995_v61 }
 0x5df   : > { %3090 = vmatmul.f32.vlgmr.msra.gmra.mxu3 %v3042_v6  ;;  %v7517_v6 = vld [vmem:[#allocation10 + $0x20] sm:$0xf] }
 0x5e1   : > { %v2996_v10 = vpop.f32.mrf.mxu0 }
 0x5e2   : > { %v2997_v1 = vadd.f32 %v2996_v10, %v2851_v50  ;;  %v3015_v12 = vpop.f32.mrf.mxu1  ;;  %v8968_v10 = vld [vmem:[#allocation10 + $0x28] sm:$0xf0] }
 0x5e3   : > { %v3016_v17 = vadd.f32 %v3015_v12, %v2852_v56 }
 0x5e4   : > { %v3043_v13 = vmul.f32 %v3014_v3, %v2997_v1 }
 0x5e5   : > { %v3046_v18 = vmul.f32 %v3016_v17, %v2995_v61  ;;  %v3047_v23 = vmul.f32 %v3016_v17, %v2997_v1 }
 0x5e7   : > { %3093 = vmatmul.f32.gmra.mxu3 %v3043_v13  ;;  %v7505_v13 = vld [vmem:[#allocation10 + $0x8] sm:$0xf] }
 0x5e9   : > { %v2999_v20 = vpop.f32.mrf.mxu0 }
 0x5ea   : > { %v3000_v21 = vadd.f32 %v2999_v20, %v2851_v50  ;;  %v3018_v24 = vpop.f32.mrf.mxu1  ;;  %v8965_v20 = vld [vmem:[#allocation10 + $0x10] sm:$0xf0] }
 0x5eb   : > { %v3019_v25 = vadd.f32 %v3018_v24, %v2852_v56  ;;  %v3231_v24 = vld [vmem:[#allocation27] sm:$0xff] }
 0x5ec   : > { %v3044_v32 = vmul.f32 %v3014_v3, %v3000_v21  ;;  %v3048_v9 = vmul.f32 %v3016_v17, %v3000_v21  ;;  %3297 = vmatpush.msrb.mxu0 %v3231_v24 }
 0x5ed   : > { %v3050_v33 = vmul.f32 %v3019_v25, %v2995_v61  ;;  %v3051_v36 = vmul.f32 %v3019_v25, %v2997_v1  ;;  %v3052_v37 = vmul.f32 %v3019_v25, %v3000_v21 }
 0x5ef   : > { %3096 = vmatmul.f32.gmra.mxu3 %v3044_v32 }
 0x5f1   : > { %v3001_v48 = vpop.f32.mrf.mxu0 }
 0x5f2   : > { %v3002_v49 = vadd.f32 %v3001_v48, %v2851_v50  ;;  %v3020_v55 = vpop.f32.mrf.mxu1  ;;  %v8974_v50 = vld [vmem:[#allocation10 + $0x58] sm:$0xf0] }
 0x5f3   : > { %v3021_v58 = vadd.f32 %v3020_v55, %v2852_v56  ;;  %v7542_v56 = vor.u32 %v8974_v50, %v7541_v7 }
 0x5f4   : > { %v3045_v5 = vmul.f32 %v3014_v3, %v3002_v49  ;;  %v3053_v46 = vmul.f32 %v3019_v25, %v3002_v49  ;;  %v3049_v26 = vmul.f32 %v3016_v17, %v3002_v49 }
 0x5f5   : > { %v3054_v52 = vmul.f32 %v3021_v58, %v2995_v61  ;;  %v3055_v8 = vmul.f32 %v3021_v58, %v2997_v1  ;;  %v3056_v15 = vmul.f32 %v3021_v58, %v3000_v21  ;;  %v3057_v16 = vmul.f32 %v3021_v58, %v3002_v49  ;;  %3027 = vmatpush.bf16.msra.mxu2 %v7542_v56  ;;  %v7529_v61 = vld [vmem:[#allocation10 + $0x38] sm:$0xf] }
 0x5f6   : > { %v7530_v3 = vor.u32 %v8971_v2, %v7529_v61  ;;  %v7518_v1 = vor.u32 %v8968_v10, %v7517_v6  ;;  %v7506_v21 = vor.u32 %v8965_v20, %v7505_v13 }
 0x5f7   : > { %3099 = vmatmul.f32.gmra.mxu3 %v3045_v5 }
 0x5f9   : > { %3028 = vmatpush.bf16.msra.mxu2 %v7530_v3 }
 0x5fd   : > { %3029 = vmatpush.bf16.msra.mxu2 %v7518_v1 }
 0x5ff   : > { %3102 = vmatmul.f32.gmra.mxu3 %v3046_v18 }
 0x601   : > { %3030 = vmatpush.bf16.msra.mxu2 %v7506_v21 }
 0x604   : > { %3031 = vmatmul.bf16.vlgmr.msra.gmra.mxu2 %v11027_v0 }
 0x607   : > { %3105 = vmatmul.f32.gmra.mxu3 %v3047_v23 }
 0x60f   : > { %3108 = vmatmul.f32.gmra.mxu3 %v3048_v9 }
 0x614   : > { %3036 = vmatmul.bf16.gmra.mxu2 %v11055_v11 }
 0x617   : > { %3111 = vmatmul.f32.gmra.mxu3 %v3049_v26 }
 0x61f   : > { %3114 = vmatmul.f32.gmra.mxu3 %v3050_v33 }
 0x627   : > { %3117 = vmatmul.f32.gmra.mxu3 %v3051_v36 }
 0x62f   : > { %3120 = vmatmul.f32.gmra.mxu3 %v3052_v37 }
 0x637   : > { %3123 = vmatmul.f32.gmra.mxu3 %v3053_v46 }
 0x63f   : > { %3126 = vmatmul.f32.gmra.mxu3 %v3054_v52 }
 0x647   : > { %3129 = vmatmul.f32.gmra.mxu3 %v3055_v8 }
 0x64f   : > { %3132 = vmatmul.f32.gmra.mxu3 %v3056_v15 }
 0x657   : > { %3135 = vmatmul.f32.gmra.mxu3 %v3057_v16 }
 0x662   : > { %v3091_v27 = vpop.f32.mrf.mxu3 }
 0x66a   : > { %v11072_v28 = vpop.f32.mrf.mxu3 }
 0x672   : > { %v11074_v29 = vpop.f32.mrf.mxu3 }
 0x67a   : > { %v11076_v30 = vpop.f32.mrf.mxu3 }
 0x682   : > { %v3103_v31 = vpop.f32.mrf.mxu3 }
 0x683   : > { %v3139_v32 = vmax.f32 %v3091_v27, %v3103_v31 }
 0x68a   : > { %v11078_v34 = vpop.f32.mrf.mxu3 }
 0x68b   : > { %v3140_v5 = vmax.f32 %v11072_v28, %v11078_v34 }
 0x692   : > { %v11080_v35 = vpop.f32.mrf.mxu3 }
 0x69a   : > { %v11082_v54 = vpop.f32.mrf.mxu3 }
 0x69b   : > { %v3142_v7 = vmax.f32 %v11076_v30, %v11082_v54 }
 0x6a2   : > { %v3115_v44 = vpop.f32.mrf.mxu3 }
 0x6a3   : > { %v3143_v33 = vmax.f32 %v3139_v32, %v3115_v44 }
 0x6aa   : > { %v3118_v57 = vpop.f32.mrf.mxu3 }
 0x6ab   : > { %v3144_v15 = vmax.f32 %v3140_v5, %v3118_v57 }
 0x6b2   : > { %v11084_v12 = vpop.f32.mrf.mxu3 }
 0x6ba   : > { %v11086_v25 = vpop.f32.mrf.mxu3 }
 0x6bb   : > { %v3146_v2 = vmax.f32 %v3142_v7, %v11086_v25 }
 0x6c2   : > { %v3127_v36 = vpop.f32.mrf.mxu3 }
 0x6c3   : > { %v3147_v37 = vmax.f32 %v3143_v33, %v3127_v36 }
 0x6c5   : > { %v3151_v48 = vsub.f32 %v3091_v27, %v3147_v37  ;;  %v3155_v49 = vsub.f32 %v3103_v31, %v3147_v37  ;;  %v3159_v55 = vsub.f32 %v3115_v44, %v3147_v37  ;;  %v3163_v58 = vsub.f32 %v3127_v36, %v3147_v37 }
 0x6c6   : > { %v3141_v27 = vmax.f32 %v11074_v29, %v11080_v35 }
 0x6c7   : > { %v3167_v46 = vmul.f32 1.442695, %v3151_v48  ;;  %v3175_v52 = vmul.f32 1.442695, %v3155_v49  ;;  %v3183_v8 = vmul.f32 1.442695, %v3159_v55 }
 0x6c8   : > { %v3191_v16 = vmul.f32 1.442695, %v3163_v58  ;;  %v3145_v42 = vmax.f32 %v3141_v27, %v11084_v12 }
 0x6c9   : > { %9557 = vpow2.f32 %v3167_v46 }
 0x6ca   : > { %9559 = vpow2.f32 %v3175_v52  ;;  %v3130_v17 = vpop.f32.mrf.mxu3 }
 0x6cb   : > { %v3148_v0 = vmax.f32 %v3144_v15, %v3130_v17  ;;  %9561 = vpow2.f32 %v3183_v8 }
 0x6cc   : > { %9563 = vpow2.f32 %v3191_v16 }
 0x6cd   : > { %v3152_v18 = vsub.f32 %v11072_v28, %v3148_v0  ;;  %v3156_v23 = vsub.f32 %v11078_v34, %v3148_v0  ;;  %v3160_v9 = vsub.f32 %v3118_v57, %v3148_v0  ;;  %v3164_v40 = vsub.f32 %v3130_v17, %v3148_v0 }
 0x6cf   : > { %v9558_v26 = vpop.eup %9557  ;;  %v3177_v31 = vmul.f32 1.442695, %v3156_v23  ;;  %v3169_v41 = vmul.f32 1.442695, %v3152_v18  ;;  %v3185_v28 = vmul.f32 1.442695, %v3160_v9 }
 0x6d0   : > { %v11096_v38 = vpop.eup %9559  ;;  %v3193_v63 = vmul.f32 1.442695, %v3164_v40 }
 0x6d1   : > { %v3199_v11 = vadd.f32 %v11096_v38, %v9558_v26  ;;  %v9562_v53 = vpop.eup %9561  ;;  %9565 = vpow2.f32 %v3177_v31 }
 0x6d2   : > { %v3133_v59 = vpop.f32.mrf.mxu3  ;;  %v9564_v62 = vpop.eup %9563  ;;  %9567 = vpow2.f32 %v3169_v41 }
 0x6d3   : > { %v3203_v34 = vadd.f32 %v9562_v53, %v3199_v11  ;;  %v3149_v51 = vmax.f32 %v3145_v42, %v3133_v59  ;;  %9569 = vpow2.f32 %v3185_v28 }
 0x6d5   : > { %v3207_v39 = vadd.f32 %v9564_v62, %v3203_v34  ;;  %v3153_v44 = vsub.f32 %v11074_v29, %v3149_v51  ;;  %v3157_v45 = vsub.f32 %v11080_v35, %v3149_v51  ;;  %v3161_v4 = vsub.f32 %v11084_v12, %v3149_v51 }
 0x6d6   : > { %v3165_v19 = vsub.f32 %v3133_v59, %v3149_v51 }
 0x6d7   : > { %9571 = vrcp.f32 %v3207_v39  ;;  %v3171_v50 = vmul.f32 1.442695, %v3153_v44  ;;  %v3179_v56 = vmul.f32 1.442695, %v3157_v45  ;;  %v11105_v57 = vpop.eup %9565  ;;  %v3187_v61 = vmul.f32 1.442695, %v3161_v4 }
 0x6d8   : > { %9573 = vpow2.f32 %v3193_v63  ;;  %v3195_v29 = vmul.f32 1.442695, %v3165_v19  ;;  %v9568_v3 = vpop.eup %9567 }
 0x6d9   : > { %9575 = vpow2.f32 %v3171_v50  ;;  %v3200_v10 = vadd.f32 %v9568_v3, %v11105_v57  ;;  %v9570_v1 = vpop.eup %9569  ;;  %v3032_v50 = vpop.f32.mrf.mxu2 }
 0x6da   : > { %9577 = vpow2.f32 %v3179_v56  ;;  %v3136_v35 = vpop.f32.mrf.mxu3 }
 0x6db   : > { %v3150_v6 = vmax.f32 %v3146_v2, %v3136_v35  ;;  %9579 = vpow2.f32 %v3187_v61  ;;  %v3204_v33 = vadd.f32 %v9570_v1, %v3200_v10 }
 0x6dc   : > { %9581 = vpow2.f32 %v3195_v29 }
 0x6dd   : > { %v9572_v12 = vpop.eup %9571  ;;  %v3154_v13 = vsub.f32 %v11076_v30, %v3150_v6  ;;  %v3158_v20 = vsub.f32 %v11082_v54, %v3150_v6  ;;  %v3162_v24 = vsub.f32 %v11086_v25, %v3150_v6  ;;  %v3166_v46 = vsub.f32 %v3136_v35, %v3150_v6 }
 0x6de   : > { %v9574_v21 = vpop.eup %9573  ;;  %v3215_v32 = vmul.f32 %v9572_v12, %v9558_v26  ;;  %v3223_v36 = vmul.f32 %v9572_v12, %v9562_v53  ;;  %v3227_v49 = vmul.f32 %v9572_v12, %v9564_v62  ;;  %v3219_v39 = vmul.f32 %v9572_v12, %v11096_v38  ;;  %v8994_v12 = vld [vmem:[%s11588_s12 + $0x38] sm:$0xff] }
 0x6df   : > { %v9576_v37 = vpop.eup %9575  ;;  %v3181_v48 = vmul.f32 1.442695, %v3158_v20  ;;  %v3208_v58 = vadd.f32 %v9574_v21, %v3204_v33  ;;  %v3173_v52 = vmul.f32 1.442695, %v3154_v13  ;;  %v3189_v8 = vmul.f32 1.442695, %v3162_v24  ;;  %3445 = vmatpush.bf16.msrb.mxu1 %v8994_v12 }
 0x6e0   : > { %v9578_v55 = vpop.eup %9577  ;;  %7591 = vmatmul.msk.f32.vlgmr.msrb.gmra.mxu0 %vm3233_vm0, %v3215_v32  ;;  %v3197_v16 = vmul.f32 1.442695, %v3166_v46  ;;  %v8992_v32 = vld [vmem:[%s11588_s12 + $0x28] sm:$0xff] }
 0x6e1   : > { %v3201_v5 = vadd.f32 %v9578_v55, %v9576_v37  ;;  %v9580_v30 = vpop.eup %9579  ;;  %9583 = vpow2.f32 %v3181_v48  ;;  %v3034_v61 = vpop.f32.mrf.mxu2 }
 0x6e2   : > { %v9582_v54 = vpop.eup %9581  ;;  %9585 = vrcp.f32 %v3208_v58 }
 0x6e3   : > { %v3205_v15 = vadd.f32 %v9580_v30, %v3201_v5  ;;  %9587 = vpow2.f32 %v3173_v52  ;;  %v8987_v5 = vld [vmem:[%s11588_s12] sm:$0xff] }
 0x6e4   : > { %9589 = vpow2.f32 %v3189_v8 }
 0x6e5   : > { %v3209_v25 = vadd.f32 %v9582_v54, %v3205_v15 }
 0x6e7   : > { %9591 = vrcp.f32 %v3209_v25  ;;  %v9584_v17 = vpop.eup %9583 }
 0x6e8   : > { %9593 = vpow2.f32 %v3197_v16  ;;  %v9586_v0 = vpop.eup %9585 }
 0x6e9   : > { %v9588_v18 = vpop.eup %9587  ;;  %v3216_v23 = vmul.f32 %v9586_v0, %v9568_v3  ;;  %v3224_v9 = vmul.f32 %v9586_v0, %v9570_v1  ;;  %v3228_v26 = vmul.f32 %v9586_v0, %v9574_v21  ;;  %v3220_v44 = vmul.f32 %v9586_v0, %v11105_v57  ;;  %v3037_v52 = vpop.f32.mrf.mxu2 }
 0x6ea   : > { %v9590_v27 = vpop.eup %9589  ;;  %v3202_v31 = vadd.f32 %v9588_v18, %v9584_v17  ;;  %v2853_v57 = vperm.slane %v11068_v22, 2  ;;  %v8993_v22 = vld [vmem:[%s11588_s12 + $0x30] sm:$0xff] }
 0x6eb   : > { %7592 = vmatmul.msk.f32.gmra.mxu0 %vm3233_vm0, %v3216_v23  ;;  %3446 = vmatpush.bf16.msrb.mxu1 %v8993_v22 }
 0x6ec   : > { %v3206_v41 = vadd.f32 %v9590_v27, %v3202_v31  ;;  %v3033_v2 = vadd.f32 %v3032_v50, %v2853_v57  ;;  %v3035_v29 = vadd.f32 %v3034_v61, %v2853_v57  ;;  %v3038_v15 = vadd.f32 %v3037_v52, %v2853_v57  ;;  %v9550_v50 = vld [vmem:[#allocation13] ss:$0 sm:$0xff] }
 0x6ed   : > { %v9592_v40 = vpop.eup %9591 }
 0x6ee   : > { %v3225_v42 = vmul.f32 %v9592_v40, %v9580_v30  ;;  %v9594_v11 = vpop.eup %9593  ;;  %v3229_v53 = vmul.f32 %v9592_v40, %v9582_v54  ;;  %v3217_v59 = vmul.f32 %v9592_v40, %v9576_v37  ;;  %v3221_v45 = vmul.f32 %v9592_v40, %v9578_v55  ;;  %v8990_v37 = vld [vmem:[%s11588_s12 + $0x18] sm:$0xff]  ;;  %v8988_v55 = vld [vmem:[%s11588_s12 + $0x8] sm:$0xff] }
 0x6ef   : > { %v3210_v28 = vadd.f32 %v9594_v11, %v3206_v41  ;;  %3447 = vmatpush.bf16.msrb.mxu1 %v8992_v32 }
 0x6f1   : > { %9595 = vrcp.f32 %v3210_v28  ;;  %v3039_v8 = vpop.f32.mrf.mxu2 }
 0x6f2   : > { %v3040_v16 = vadd.f32 %v3039_v8, %v2853_v57 }
 0x6f3   : > { %7593 = vmatmul.msk.f32.gmra.mxu0 %vm3233_vm0, %v3217_v59 }
 0x6f7   : > { %v9596_v34 = vpop.eup %9595 }
 0x6f8   : > { %v3218_v51 = vmul.f32 %v9596_v34, %v9588_v18  ;;  %v3226_v62 = vmul.f32 %v9596_v34, %v9590_v27  ;;  %v3230_v63 = vmul.f32 %v9596_v34, %v9594_v11  ;;  %v3222_v4 = vmul.f32 %v9596_v34, %v9584_v17 }
 0x6fb   : > { %7594 = vmatmul.msk.f32.gmra.mxu0 %vm3233_vm0, %v3218_v51 }
 0x703   : > { %7595 = vmatmul.msk.f32.gmra.mxu0 %vm3233_vm0, %v3219_v39 }
 0x70b   : > { %7596 = vmatmul.msk.f32.gmra.mxu0 %vm3233_vm0, %v3220_v44 }
 0x713   : > { %7597 = vmatmul.msk.f32.gmra.mxu0 %vm3233_vm0, %v3221_v45 }
 0x71b   : > { %7598 = vmatmul.msk.f32.gmra.mxu0 %vm3233_vm0, %v3222_v4 }
 0x723   : > { %7599 = vmatmul.msk.f32.gmra.mxu0 %vm3233_vm0, %v3223_v36  ;;  %v8991_v36 = vld [vmem:[%s11588_s12 + $0x20] sm:$0xff] }
 0x724   : > { %3448 = vmatpush.bf16.msrb.mxu1 %v8991_v36 }
 0x728   : > { %3449 = vmatpush.bf16.msrb.mxu1 %v8990_v37 }
 0x72b   : > { %7600 = vmatmul.msk.f32.gmra.mxu0 %vm3233_vm0, %v3224_v9 }
 0x733   : > { %7601 = vmatmul.msk.f32.gmra.mxu0 %vm3233_vm0, %v3225_v42 }
 0x73b   : > { %7602 = vmatmul.msk.f32.gmra.mxu0 %vm3233_vm0, %v3226_v62 }
 0x743   : > { %7603 = vmatmul.msk.f32.gmra.mxu0 %vm3233_vm0, %v3227_v49  ;;  %v8989_v49 = vld [vmem:[%s11588_s12 + $0x10] sm:$0xff] }
 0x744   : > { %3450 = vmatpush.bf16.msrb.mxu1 %v8989_v49 }
 0x748   : > { %3451 = vmatpush.bf16.msrb.mxu1 %v8988_v55 }
 0x74b   : > { %7604 = vmatmul.msk.f32.gmra.mxu0 %vm3233_vm0, %v3228_v26 }
 0x74c   : > { %3452 = vmatpush.bf16.msrb.mxu1 %v8987_v5 }
 0x753   : > { %7605 = vmatmul.msk.f32.gmra.mxu0 %vm3233_vm0, %v3229_v53 }
 0x75b   : > { %7606 = vmatmul.msk.f32.gmra.mxu0 %vm3233_vm0, %v3230_v63 }
 0x75d   : > { %v3299_v38 = vpop.f32.mrf.mxu0 }
 0x75e   : > { %v3347_v35 = vmul.f32 %v3299_v38, %v3033_v2 }
 0x768   : > { %v3302_v19 = vpop.f32.mrf.mxu0 }
 0x769   : > { %v3348_v17 = vmul.f32 %v3302_v19, %v3033_v2 }
 0x770   : > { %v3305_v7 = vpop.f32.mrf.mxu0 }
 0x771   : > { %v3349_v20 = vmul.f32 %v3305_v7, %v3033_v2 }
 0x778   : > { %v3308_v56 = vpop.f32.mrf.mxu0 }
 0x779   : > { %v3350_v59 = vmul.f32 %v3308_v56, %v3033_v2 }
 0x780   : > { %v3311_v3 = vpop.f32.mrf.mxu0 }
 0x781   : > { %v3351_v6 = vmul.f32 %v3311_v3, %v3035_v29 }
 0x783   : > { %v3363_v10 = vadd.f32 %v3351_v6, %v3347_v35 }
 0x788   : > { %v3314_v1 = vpop.f32.mrf.mxu0 }
 0x789   : > { %v3352_v25 = vmul.f32 %v3314_v1, %v3035_v29 }
 0x78b   : > { %v3364_v23 = vadd.f32 %v3352_v25, %v3348_v17  ;;  %v7753_v25 = vld [vmem:[#allocation18 + $0x380] sm:$0xf]  ;;  %v9023_v17 = vld [vmem:[#allocation18 + $0x384] sm:$0xf] }
 0x790   : > { %v3317_v13 = vpop.f32.mrf.mxu0 }
 0x791   : > { %v3353_v21 = vmul.f32 %v3317_v13, %v3035_v29 }
 0x793   : > { %v3365_v24 = vadd.f32 %v3353_v21, %v3349_v20  ;;  %v10219_v20 = vmov 128.0  }
 0x794   : > { %9597 = vrcp.f32 %v10219_v20  ;;  %v9072_v20 = vld [vmem:[#allocation18 + $0x19c] sm:$0xf] }
 0x798   : > { %v3320_v33 = vpop.f32.mrf.mxu0 }
 0x799   : > { %v3354_v28 = vmul.f32 %v3320_v33, %v3035_v29 }
 0x79a   : > { %v9598_v21 = vpop.eup %9597 }
 0x79b   : > { %v3366_v62 = vadd.f32 %v3354_v28, %v3350_v59  ;;  %vm3483_vm1 = vweird.f32 %v9598_v21  ;;  %v7875_v28 = vld [vmem:[#allocation18 + $0x358] sm:$0xf0] }
 0x7a0   : > { %v3323_v48 = vpop.f32.mrf.mxu0 }
 0x7a1   : > { %v3355_v0 = vmul.f32 %v3323_v48, %v3038_v15 }
 0x7a3   : > { %v3367_v27 = vadd.f32 %v3363_v10, %v3355_v0 }
 0x7a8   : > { %v3326_v58 = vpop.f32.mrf.mxu0 }
 0x7a9   : > { %v3356_v18 = vmul.f32 %v3326_v58, %v3038_v15 }
 0x7ab   : > { %v3368_v31 = vadd.f32 %v3364_v23, %v3356_v18  ;;  %v7755_v18 = vld [vmem:[#allocation18 + $0x3c0] sm:$0xf0]  ;;  %v9088_v23 = vld [vmem:[#allocation18 + $0x39c] sm:$0xf] }
 0x7b0   : > { %v3329_v46 = vpop.f32.mrf.mxu0 }
 0x7b1   : > { %v3357_v34 = vmul.f32 %v3329_v46, %v3038_v15 }
 0x7b3   : > { %v3369_v44 = vadd.f32 %v3365_v24, %v3357_v34 }
 0x7b8   : > { %v3332_v30 = vpop.f32.mrf.mxu0 }
 0x7b9   : > { %v3358_v51 = vmul.f32 %v3332_v30, %v3038_v15 }
 0x7bb   : > { %v3370_v45 = vadd.f32 %v3366_v62, %v3358_v51  ;;  %v7721_v51 = vld [vmem:[#allocation18 + $0x280] sm:$0xf] }
 0x7bc   : > { %v9017_v62 = vld [vmem:[#allocation18 + $0x2bc] sm:$0xf0] }
 0x7c0   : > { %v3335_v54 = vpop.f32.mrf.mxu0 }
 0x7c1   : > { %v3359_v9 = vmul.f32 %v3335_v54, %v3040_v16 }
 0x7c3   : > { %v3371_v41 = vadd.f32 %v3367_v27, %v3359_v9  ;;  %v7891_v9 = vld [vmem:[#allocation18 + $0x3d8] sm:$0xf0] }
 0x7c4   : > { %v7894_v27 = vor.u32 %v9088_v23, %v7891_v9  ;;  %v7641_v9 = vld [vmem:[#allocation18] sm:$0xf] }
 0x7c6   : > { %4198 = vmatpush.bf16.msrb.mxu3 %v7894_v27  ;;  %v8995_v27 = vld [vmem:[#allocation18 + $0x4] sm:$0xf] }
 0x7c8   : > { %v3338_v26 = vpop.f32.mrf.mxu0 }
 0x7c9   : > { %v3360_v40 = vmul.f32 %v3338_v26, %v3040_v16  ;;  %v7758_v26 = vor.u32 %v9023_v17, %v7755_v18 }
 0x7cb   : > { %v3372_v42 = vadd.f32 %v3368_v31, %v3360_v40  ;;  %3794 = vmatpush.bf16.msra.mxu1 %v7758_v26  ;;  %v7737_v31 = vld [vmem:[#allocation18 + $0x300] sm:$0xf] }
 0x7cc   : > { %v9021_v40 = vld [vmem:[#allocation18 + $0x33c] sm:$0xf0] }
 0x7cd   : > { %v3375_v11 = vpack.c.bf16 %v3372_v42, %v3371_v41  ;;  %v9019_v41 = vld [vmem:[#allocation18 + $0x304] sm:$0xf]  ;;  %v7738_v42 = vor.u32 %v9021_v40, %v7737_v31  ;;  %v8997_v26 = vld [vmem:[#allocation18 + $0x3c] sm:$0xf0] }
 0x7ce   : > { %v7642_v31 = vor.u32 %v8997_v26, %v7641_v9  ;;  %v7643_v40 = vld [vmem:[#allocation18 + $0x40] sm:$0xf0]  ;;  %v7681_v9 = vld [vmem:[#allocation18 + $0x108] sm:$0xf] }
 0x7cf   : > { %3453 = vmatmul.bf16.vlgmr.msrb.gmra.mxu1 %v3375_v11  ;;  %v7739_v11 = vld [vmem:[#allocation18 + $0x340] sm:$0xf0]  ;;  %v9006_v26 = vld [vmem:[#allocation18 + $0x144] sm:$0xf0] }
 0x7d0   : > { %v3341_v53 = vpop.f32.mrf.mxu0  ;;  %v7742_v59 = vor.u32 %v9019_v41, %v7739_v11  ;;  %v9060_v41 = vld [vmem:[#allocation18 + $0x1c] sm:$0xf] }
 0x7d1   : > { %v3361_v63 = vmul.f32 %v3341_v53, %v3040_v16  ;;  %v9084_v53 = vld [vmem:[#allocation18 + $0x31c] sm:$0xf] }
 0x7d2   : > { %v7878_v34 = vor.u32 %v9084_v53, %v7875_v28  ;;  %3795 = vmatpush.bf16.msra.mxu1 %v7742_v59  ;;  %v7646_v53 = vor.u32 %v8995_v27, %v7643_v40  ;;  %v7761_v59 = vld [vmem:[#allocation18 + $0x388] sm:$0xf]  ;;  %v11204_v27 = vld [vmem:[#allocation15] ss:$0 sm:$0xff]  ;;  %v7682_v40 = vor.u32 %v9006_v26, %v7681_v9  ;;  %v7851_v9 = vld [vmem:[#allocation18 + $0x2d0] sm:$0xf0] }
 0x7d3   : > { %v3373_v38 = vadd.f32 %v3369_v44, %v3361_v63  ;;  %v9015_v63 = vld [vmem:[#allocation18 + $0x284] sm:$0xf] }
 0x7d4   : > { %4199 = vmatpush.bf16.msrb.mxu3 %v7878_v34  ;;  %v7723_v44 = vld [vmem:[#allocation18 + $0x2c0] sm:$0xf0]  ;;  %v9026_v34 = vld [vmem:[#allocation18 + $0x3c4] sm:$0xf0] }
 0x7d8   : > { %v3344_v39 = vpop.f32.mrf.mxu0 }
 0x7d9   : > { %v3362_v4 = vmul.f32 %v3344_v39, %v3040_v16  ;;  %v9025_v16 = vld [vmem:[#allocation18 + $0x3bc] sm:$0xf0]  ;;  %v7722_v39 = vor.u32 %v9017_v62, %v7721_v51  ;;  %v7762_v51 = vor.u32 %v9026_v34, %v7761_v59  ;;  %v9024_v62 = vld [vmem:[#allocation18 + $0x38c] sm:$0xf]  ;;  %v9002_v59 = vld [vmem:[#allocation18 + $0xc4] sm:$0xf0] }
 0x7da   : > { %v7754_v0 = vor.u32 %v9025_v16, %v7753_v25  ;;  %v9064_v25 = vld [vmem:[#allocation18 + $0x9c] sm:$0xf] }
 0x7db   : > { %v3374_v19 = vadd.f32 %v3370_v45, %v3362_v4  ;;  %v9080_v45 = vld [vmem:[#allocation18 + $0x29c] sm:$0xf] }
 0x7dc   : > { %3775 = vmatpush.bf16.msrb.mxu2 %v7754_v0  ;;  %v7859_v4 = vld [vmem:[#allocation18 + $0x2d8] sm:$0xf0] }
 0x7dd   : > { %v3376_v7 = vpack.c.bf16 %v3374_v19, %v3373_v38  ;;  %v7726_v38 = vor.u32 %v9015_v63, %v7723_v44  ;;  %v7862_v19 = vor.u32 %v9080_v45, %v7859_v4  ;;  %v7795_v16 = vld [vmem:[#allocation18 + $0xd8] sm:$0xf0]  ;;  %v7763_v63 = vld [vmem:[#allocation18 + $0x3c8] sm:$0xf0]  ;;  %v7745_v4 = vld [vmem:[#allocation18 + $0x308] sm:$0xf] }
 0x7de   : > { %v7798_v0 = vor.u32 %v9064_v25, %v7795_v16  ;;  %v7699_v16 = vld [vmem:[#allocation18 + $0x1c8] sm:$0xf0] }
 0x7df   : > { %3458 = vmatmul.bf16.gmra.mxu1 %v3376_v7  ;;  %4200 = vmatpush.bf16.msrb.mxu3 %v7862_v19  ;;  %v7705_v7 = vld [vmem:[#allocation18 + $0x200] sm:$0xf]  ;;  %v9020_v19 = vld [vmem:[#allocation18 + $0x30c] sm:$0xf] }
 0x7e0   : > { %3776 = vmatpush.bf16.msrb.mxu2 %v7738_v42  ;;  %3796 = vmatpush.bf16.msra.mxu1 %v7726_v38  ;;  %v7779_v42 = vld [vmem:[#allocation18 + $0x58] sm:$0xf0]  ;;  %v9022_v38 = vld [vmem:[#allocation18 + $0x344] sm:$0xf0] }
 0x7e1   : > { %v7782_v28 = vor.u32 %v9060_v41, %v7779_v42  ;;  %v9004_v41 = vld [vmem:[#allocation18 + $0x10c] sm:$0xf] }
 0x7e2   : > { %v7683_v42 = vld [vmem:[#allocation18 + $0x148] sm:$0xf0] }
 0x7e4   : > { %3777 = vmatpush.bf16.msrb.mxu2 %v7722_v39  ;;  %v7766_v39 = vor.u32 %v9024_v62, %v7763_v63  ;;  %v9000_v63 = vld [vmem:[#allocation18 + $0x8c] sm:$0xf] }
 0x84c   : > { %v3454_v57 = vpop.f32.mrf.mxu1 }
 0x84d   : > { %v3455_v61 = vadd.f32 %v9550_v50, %v3454_v57  ;;  %v9011_v57 = vld [vmem:[#allocation18 + $0x204] sm:$0xf] }
 0x84f   : > { %v3464_v3 = vadd.f32 %v3455_v61, %v11015_v43  ;;  %v3479_v43 = vmul.f32 128.0, %v9598_v21 }
 0x851   : > { %3470 = vadd.xlane.f32.xlu0 %v3464_v3  ;;  %v3480_v22 = vsub.f32 1.0, %v3479_v43 }
 0x853   : > { %v3481_v24 = vmul.f32 %v9598_v21, %v3480_v22 }
 0x854   : > { %v3456_v29 = vpop.f32.mrf.mxu1 }
 0x855   : > { %v3457_v56 = vadd.f32 %v9550_v50, %v3456_v29  ;;  %v3482_v32 = vadd.f32 %v9598_v21, %v3481_v24  ;;  %v9076_v29 = vld [vmem:[#allocation18 + $0x21c] sm:$0xf]  ;;  %v7673_v24 = vld [vmem:[#allocation18 + $0x100] sm:$0xf] }
 0x857   : > { %v3465_v2 = vadd.f32 %v3457_v56, %v11017_v47  ;;  %v11159_v47 = vsel %vm3483_vm1, %v9598_v21, %v3482_v32  ;;  %v7843_v56 = vld [vmem:[#allocation18 + $0x258] sm:$0xf0]  ;;  %v9005_v32 = vld [vmem:[#allocation18 + $0x13c] sm:$0xf0] }
 0x858   : > { %v7827_v21 = vld [vmem:[#allocation18 + $0x1d8] sm:$0xf0] }
 0x859   : > { %3472 = vadd.xlane.f32.xlu0 %v3465_v2  ;;  %v7830_v22 = vor.u32 %v9072_v20, %v7827_v21 }
 0x85c   : > { %v3459_v35 = vpop.f32.mrf.mxu1 }
 0x85d   : > { %v3460_v6 = vadd.f32 %v9550_v50, %v3459_v35  ;;  %v7846_v35 = vor.u32 %v9076_v29, %v7843_v56 }
 0x85f   : > { %v3466_v10 = vadd.f32 %v3460_v6, %v11049_v60  ;;  %4201 = vmatpush.bf16.msrb.mxu3 %v7846_v35  ;;  %v7689_v6 = vld [vmem:[#allocation18 + $0x180] sm:$0xf]  ;;  %v9018_v35 = vld [vmem:[#allocation18 + $0x2c4] sm:$0xf0] }
 0x861   : > { %3474 = vadd.xlane.f32.xlu1 %v3466_v10 }
 0x863   : > { %4202 = vmatpush.bf16.msrb.mxu3 %v7830_v22  ;;  %v7713_v22 = vld [vmem:[#allocation18 + $0x208] sm:$0xf] }
 0x864   : > { %v3461_v1 = vpop.f32.mrf.mxu1 }
 0x865   : > { %v3462_v12 = vadd.f32 %v9550_v50, %v3461_v1  ;;  %v9013_v50 = vld [vmem:[#allocation18 + $0x23c] sm:$0xf0]  ;;  %v9007_v1 = vld [vmem:[#allocation18 + $0x184] sm:$0xf] }
 0x866   : > { %v7706_v61 = vor.u32 %v9013_v50, %v7705_v7 }
 0x867   : > { %v3467_v13 = vadd.f32 %v3462_v12, %v11051_v14 }
 0x868   : > { %3778 = vmatpush.bf16.msrb.mxu2 %v7706_v61  ;;  %v7747_v61 = vld [vmem:[#allocation18 + $0x348] sm:$0xf0] }
 0x869   : > { %3476 = vadd.xlane.f32.xlu1 %v3467_v13  ;;  %v7750_v29 = vor.u32 %v9020_v19, %v7747_v61  ;;  %v11217_v61 = vld [vmem:[#allocation16] ss:$0 sm:$0xff] }
 0x8c4   : > { %v3471_v33 = vpop.xlane.xlu0 %3470 }
 0x8c5   : > { %v3485_v36 = vmul.f32 %v11159_v47, %v3471_v33  ;;  %v9003_v33 = vld [vmem:[#allocation18 + $0x104] sm:$0xf] }
 0x8c7   : > { %v11162_v60 = vsub.f32 %v3464_v3, %v3485_v36  ;;  %v7707_v3 = vld [vmem:[#allocation18 + $0x240] sm:$0xf0]  ;;  %v7674_v36 = vor.u32 %v9005_v32, %v7673_v24  ;;  %v9014_v24 = vld [vmem:[#allocation18 + $0x244] sm:$0xf0] }
 0x8c9   : > { %v3493_v37 = vmul.f32 %v11162_v60, %v11162_v60 }
 0x8cb   : > { %3497 = vadd.xlane.f32.xlu2 %v3493_v37  ;;  %v7675_v37 = vld [vmem:[#allocation18 + $0x140] sm:$0xf0] }
 0x8cc   : > { %v3473_v14 = vpop.xlane.xlu0 %3472 }
 0x8cd   : > { %v3486_v48 = vmul.f32 %v11159_v47, %v3473_v14  ;;  %v9068_v14 = vld [vmem:[#allocation18 + $0x11c] sm:$0xf] }
 0x8cf   : > { %v11167_v49 = vsub.f32 %v3465_v2, %v3486_v48  ;;  %v7710_v2 = vor.u32 %v9011_v57, %v7707_v3  ;;  %v7811_v48 = vld [vmem:[#allocation18 + $0x158] sm:$0xf0]  ;;  %v7746_v57 = vor.u32 %v9022_v38, %v7745_v4 }
 0x8d1   : > { %v3494_v55 = vmul.f32 %v11167_v49, %v11167_v49  ;;  %3797 = vmatpush.bf16.msra.mxu1 %v7710_v2  ;;  %v7729_v2 = vld [vmem:[#allocation18 + $0x288] sm:$0xf] }
 0x8d3   : > { %3499 = vadd.xlane.f32.xlu2 %v3494_v55  ;;  %v7678_v55 = vor.u32 %v9003_v33, %v7675_v37  ;;  %v9012_v37 = vld [vmem:[#allocation18 + $0x20c] sm:$0xf] }
 0x8d4   : > { %v3475_v58 = vpop.xlane.xlu1 %3474 }
 0x8d5   : > { %v3487_v5 = vmul.f32 %v11159_v47, %v3475_v58  ;;  %v7814_v58 = vor.u32 %v9068_v14, %v7811_v48  ;;  %v7715_v14 = vld [vmem:[#allocation18 + $0x248] sm:$0xf0] }
 0x8d7   : > { %v11172_v46 = vsub.f32 %v3466_v10, %v3487_v5  ;;  %v9009_v10 = vld [vmem:[#allocation18 + $0x1bc] sm:$0xf0]  ;;  %4203 = vmatpush.bf16.msrb.mxu3 %v7814_v58  ;;  %v7718_v58 = vor.u32 %v9012_v37, %v7715_v14  ;;  %v9087_v37 = vld [vmem:[#allocation18 + $0x394] sm:$0xf] }
 0x8d8   : > { %v7690_v12 = vor.u32 %v9009_v10, %v7689_v6  ;;  %v7657_v5 = vld [vmem:[#allocation18 + $0x80] sm:$0xf]  ;;  %v9016_v6 = vld [vmem:[#allocation18 + $0x28c] sm:$0xf]  ;;  %v7730_v10 = vor.u32 %v9018_v35, %v7729_v2  ;;  %v7883_v14 = vld [vmem:[#allocation18 + $0x3d0] sm:$0xf0] }
 0x8d9   : > { %v3495_v52 = vmul.f32 %v11172_v46, %v11172_v46 }
 0x8da   : > { %3779 = vmatpush.bf16.msrb.mxu2 %v7690_v12 }
 0x8db   : > { %3501 = vadd.xlane.f32.xlu0 %v3495_v52  ;;  %v9001_v52 = vld [vmem:[#allocation18 + $0xbc] sm:$0xf0]  ;;  %4204 = vmatpush.bf16.msrb.mxu3 %v7798_v0 }
 0x8dc   : > { %v3477_v30 = vpop.xlane.xlu1 %3476 }
 0x8dd   : > { %v3488_v8 = vmul.f32 %v11159_v47, %v3477_v30  ;;  %v8999_v30 = vld [vmem:[#allocation18 + $0x84] sm:$0xf] }
 0x8de   : > { %3780 = vmatpush.bf16.msrb.mxu2 %v7674_v36  ;;  %v7714_v36 = vor.u32 %v9014_v24, %v7713_v22 }
 0x8df   : > { %v11177_v54 = vsub.f32 %v3467_v13, %v3488_v8  ;;  %v7691_v13 = vld [vmem:[#allocation18 + $0x1c0] sm:$0xf0]  ;;  %v7658_v8 = vor.u32 %v9001_v52, %v7657_v5  ;;  %4205 = vmatpush.bf16.msrb.mxu3 %v7782_v28  ;;  %v7697_v52 = vld [vmem:[#allocation18 + $0x188] sm:$0xf] }
 0x8e0   : > { %v7694_v43 = vor.u32 %v9007_v1, %v7691_v13  ;;  %v7731_v1 = vld [vmem:[#allocation18 + $0x2c8] sm:$0xf0]  ;;  %v7665_v28 = vld [vmem:[#allocation18 + $0x88] sm:$0xf] }
 0x8e1   : > { %v3496_v15 = vmul.f32 %v11177_v54, %v11177_v54  ;;  %v7734_v20 = vor.u32 %v9016_v6, %v7731_v1  ;;  %v7666_v4 = vor.u32 %v9002_v59, %v7665_v28  ;;  %v9075_v59 = vld [vmem:[#allocation18 + $0x214] sm:$0xf] }
 0x8e2   : > { %3798 = vmatpush.bf16.msra.mxu1 %v7694_v43  ;;  %3781 = vmatpush.bf16.msrb.mxu2 %v7658_v8  ;;  %v9008_v8 = vld [vmem:[#allocation18 + $0x18c] sm:$0xf] }
 0x8e3   : > { %3503 = vadd.xlane.f32.xlu1 %v3496_v15  ;;  %v7659_v15 = vld [vmem:[#allocation18 + $0xc0] sm:$0xf0] }
 0x8e4   : > { %v7662_v17 = vor.u32 %v8999_v30, %v7659_v15  ;;  %v9010_v30 = vld [vmem:[#allocation18 + $0x1c4] sm:$0xf0] }
 0x8e5   : > { %v7698_v25 = vor.u32 %v9010_v30, %v7697_v52  ;;  %v7886_v52 = vor.u32 %v9087_v37, %v7883_v14  ;;  %v9083_v30 = vld [vmem:[#allocation18 + $0x314] sm:$0xf]  ;;  %v9086_v14 = vld [vmem:[#allocation18 + $0x354] sm:$0xf0] }
 0x8e6   : > { %3799 = vmatpush.bf16.msra.mxu1 %v7678_v55  ;;  %3782 = vmatpush.bf16.msrb.mxu2 %v7642_v31 }
 0x8ea   : > { %3800 = vmatpush.bf16.msra.mxu1 %v7662_v17  ;;  %3813 = vmatpush.bf16.msra.mxu2 %v7762_v51 }
 0x8ee   : > { %3801 = vmatpush.bf16.msra.mxu1 %v7646_v53  ;;  %3814 = vmatpush.bf16.msra.mxu2 %v7746_v57  ;;  %v7686_v53 = vor.u32 %v9004_v41, %v7683_v42  ;;  %v8998_v57 = vld [vmem:[#allocation18 + $0x44] sm:$0xf0]  ;;  %v7833_v42 = vld [vmem:[#allocation18 + $0x210] sm:$0xf] }
 0x8f2   : > { %3832 = vmatpush.bf16.msrb.mxu1 %v7766_v39  ;;  %3815 = vmatpush.bf16.msra.mxu2 %v7730_v10  ;;  %v7667_v39 = vld [vmem:[#allocation18 + $0xc8] sm:$0xf0] }
 0x8f6   : > { %3833 = vmatpush.bf16.msrb.mxu1 %v7750_v29  ;;  %3816 = vmatpush.bf16.msra.mxu2 %v7714_v36  ;;  %v8996_v29 = vld [vmem:[#allocation18 + $0xc] sm:$0xf]  ;;  %v9089_v36 = vld [vmem:[#allocation18 + $0x3cc] sm:$0xf0] }
 0x8fa   : > { %3834 = vmatpush.bf16.msrb.mxu1 %v7734_v20  ;;  %3817 = vmatpush.bf16.msra.mxu2 %v7698_v25 }
 0x8fe   : > { %3835 = vmatpush.bf16.msrb.mxu1 %v7718_v58  ;;  %3818 = vmatpush.bf16.msra.mxu2 %v7682_v40 }
 0x902   : > { %3819 = vmatpush.bf16.msra.mxu2 %v7666_v4  ;;  %v9071_v4 = vld [vmem:[#allocation18 + $0x194] sm:$0xf] }
 0x93e   : > { %v3498_v18 = vpop.xlane.xlu2 %3497 }
 0x93f   : > { %v3505_v23 = vmul.f32 %v3498_v18, %v11159_v47 }
 0x941   : > { %v3509_v11 = vadd.f32 1e-05, %v3505_v23  ;;  %v7702_v23 = vor.u32 %v9008_v8, %v7699_v16  ;;  %v7867_v8 = vld [vmem:[#allocation18 + $0x350] sm:$0xf0] }
 0x942   : > { %v7870_v16 = vor.u32 %v9083_v30, %v7867_v8  ;;  %v9078_v30 = vld [vmem:[#allocation18 + $0x254] sm:$0xf0] }
 0x943   : > { %9599 = vrsqrt.f32 %v3509_v11  ;;  %vm3519_vm3 = vweird.f32 %v3509_v11  ;;  %3836 = vmatpush.bf16.msrb.mxu1 %v7702_v23  ;;  %v9079_v23 = vld [vmem:[#allocation18 + $0x294] sm:$0xf] }
 0x944   : > { %v7854_v41 = vor.u32 %v9079_v23, %v7851_v9  ;;  %v7793_v23 = vld [vmem:[#allocation18 + $0x98] sm:$0xf] }
 0x945   : > { %v9066_v9 = vld [vmem:[#allocation18 + $0xd4] sm:$0xf0] }
 0x946   : > { %v3500_v44 = vpop.xlane.xlu2 %3499 }
 0x947   : > { %v3506_v45 = vmul.f32 %v3500_v44, %v11159_v47  ;;  %3837 = vmatpush.bf16.msrb.mxu1 %v7686_v53 }
 0x949   : > { %v11183_v7 = vpop.eup %9599  ;;  %v11185_v50 = vadd.f32 1e-05, %v3506_v45 }
 0x94a   : > { %v3514_v3 = vmul.f32 %v11183_v7, %v3509_v11  ;;  %vm3520_vm2 = vweird.f32 %v11183_v7 }
 0x94b   : > { %9601 = vrsqrt.f32 %v11185_v50  ;;  %vm11197_vm4 = vmor %vm3519_vm3, %vm3520_vm2  ;;  %vm3529_vm6 = vweird.f32 %v11185_v50 }
 0x94c   : > { %v3515_v56 = vmul.f32 %v11183_v7, %v3514_v3 }
 0x94e   : > { %v3516_v12 = vmul.f32 0.5, %v3515_v56  ;;  %v3502_v13 = vpop.xlane.xlu0 %3501  ;;  %v7651_v56 = vld [vmem:[#allocation18 + $0x48] sm:$0xf0] }
 0x94f   : > { %v3507_v21 = vmul.f32 %v3502_v13, %v11159_v47  ;;  %v7654_v1 = vor.u32 %v8996_v29, %v7651_v56  ;;  %v7785_v29 = vld [vmem:[#allocation18 + $0x90] sm:$0xf] }
 0x950   : > { %v3517_v43 = vsub.f32 1.5, %v3516_v12  ;;  %v9065_v56 = vld [vmem:[#allocation18 + $0xcc] sm:$0xf0] }
 0x951   : > { %v9602_v32 = vpop.eup %9601  ;;  %v11191_v33 = vadd.f32 1e-05, %v3507_v21 }
 0x952   : > { %v3518_v48 = vmul.f32 %v11183_v7, %v3517_v43  ;;  %v3524_v55 = vmul.f32 %v9602_v32, %v11185_v50  ;;  %vm3530_vm5 = vweird.f32 %v9602_v32 }
 0x953   : > { %9603 = vrsqrt.f32 %v11191_v33  ;;  %vm3531_vm7 = vmor %vm3529_vm6, %vm3530_vm5  ;;  %vm3539_vm9 = vweird.f32 %v11191_v33 }
 0x954   : > { %v3525_v5 = vmul.f32 %v9602_v32, %v3524_v55  ;;  %v3522_v17 = vsel %vm11197_vm4, %v11183_v7, %v3518_v48  ;;  %v7649_v7 = vld [vmem:[#allocation18 + $0x8] sm:$0xf]  ;;  %v7865_v48 = vld [vmem:[#allocation18 + $0x310] sm:$0xf] }
 0x955   : > { %v3553_v51 = vmul.f32 %v3522_v17, %v11162_v60  ;;  %v7670_v60 = vor.u32 %v9000_v63, %v7667_v39  ;;  %v7650_v6 = vor.u32 %v8998_v57, %v7649_v7  ;;  %v9085_v55 = vld [vmem:[#allocation18 + $0x34c] sm:$0xf0]  ;;  %v9067_v57 = vld [vmem:[#allocation18 + $0x114] sm:$0xf] }
 0x956   : > { %v3526_v0 = vmul.f32 0.5, %v3525_v5  ;;  %v3504_v18 = vpop.xlane.xlu1 %3503  ;;  %v7866_v15 = vor.u32 %v9085_v55, %v7865_v48  ;;  %v7849_v17 = vld [vmem:[#allocation18 + $0x290] sm:$0xf]  ;;  %v7857_v55 = vld [vmem:[#allocation18 + $0x298] sm:$0xf] }
 0x957   : > { %v3508_v31 = vmul.f32 %v3504_v18, %v11159_v47  ;;  %v3560_v3 = vmul.f32 %v11204_v27, %v3553_v51  ;;  %3838 = vmatpush.bf16.msrb.mxu1 %v7670_v60  ;;  %3820 = vmatpush.bf16.msra.mxu2 %v7650_v6  ;;  %v9069_v60 = vld [vmem:[#allocation18 + $0x14c] sm:$0xf0]  ;;  %v7786_v6 = vor.u32 %v9065_v56, %v7785_v29  ;;  %v9053_v29 = vld [vmem:[#allocation21 + $0xd0] sm:$0xff] }
 0x958   : > { %v3527_v11 = vsub.f32 1.5, %v3526_v0  ;;  %v9081_v0 = vld [vmem:[#allocation18 + $0x2cc] sm:$0xf0] }
 0x959   : > { %v11207_v34 = vpop.eup %9603  ;;  %v11210_v62 = vadd.f32 1e-05, %v3508_v31  ;;  %v11224_v13 = vadd.f32 %v11217_v61, %v3560_v3  ;;  %v7850_v31 = vor.u32 %v9081_v0, %v7849_v17  ;;  %v7809_v17 = vld [vmem:[#allocation18 + $0x118] sm:$0xf] }
 0x95a   : > { %v3528_v44 = vmul.f32 %v9602_v32, %v3527_v11  ;;  %v3534_v45 = vmul.f32 %v11207_v34, %v11191_v33  ;;  %vm3540_vm8 = vweird.f32 %v11207_v34  ;;  %v9077_v11 = vld [vmem:[#allocation18 + $0x24c] sm:$0xf0]  ;;  %v9070_v0 = vld [vmem:[#allocation18 + $0x154] sm:$0xf0] }
 0x95b   : > { %9605 = vrsqrt.f32 %v11210_v62  ;;  %vm11236_vm10 = vmor %vm3539_vm9, %vm3540_vm8  ;;  %3839 = vmatpush.bf16.msrb.mxu1 %v7654_v1  ;;  %vm3549_vm12 = vweird.f32 %v11210_v62  ;;  %v7834_v51 = vor.u32 %v9077_v11, %v7833_v42  ;;  %v7769_v1 = vld [vmem:[#allocation18 + $0x10] sm:$0xf]  ;;  %v9122_v42 = vld [vmem:[#allocation21 + $0x1f8] sm:$0xff] }
 0x95c   : > { %v3532_v38 = vsel %vm3531_vm7, %v9602_v32, %v3528_v44  ;;  %v3535_v19 = vmul.f32 %v11207_v34, %v3534_v45  ;;  %v7881_v32 = vld [vmem:[#allocation18 + $0x390] sm:$0xf]  ;;  %4554 = vmatpush.bf16.msra.mxu3 %v9122_v42  ;;  %v9121_v11 = vld [vmem:[#allocation21 + $0x1f0] sm:$0xff]  ;;  %v8227_v42 = vld [vmem:[#allocation18 + $0x268] sm:$0xf0] }
 0x95d   : > { %v3554_v50 = vmul.f32 %v3532_v38, %v11167_v49  ;;  %v7882_v33 = vor.u32 %v9089_v36, %v7881_v32  ;;  %v9073_v45 = vld [vmem:[#allocation18 + $0x1cc] sm:$0xf0]  ;;  %v7819_v38 = vld [vmem:[#allocation18 + $0x1d0] sm:$0xf0]  ;;  %v7889_v32 = vld [vmem:[#allocation18 + $0x398] sm:$0xf] }
 0x95e   : > { %v3536_v2 = vmul.f32 0.5, %v3535_v19  ;;  %v7801_v19 = vld [vmem:[#allocation18 + $0x110] sm:$0xf]  ;;  %v7822_v7 = vor.u32 %v9071_v4, %v7819_v38  ;;  %v9090_v36 = vld [vmem:[#allocation18 + $0x3d4] sm:$0xf0]  ;;  %v9057_v4 = vld [vmem:[#allocation21 + $0xf0] sm:$0xff] }
 0x95f   : > { %v3561_v35 = vmul.f32 %v11204_v27, %v3554_v50  ;;  %v7802_v3 = vor.u32 %v9069_v60, %v7801_v19  ;;  %v7890_v37 = vor.u32 %v9090_v36, %v7889_v32  ;;  %v9055_v19 = vld [vmem:[#allocation21 + $0xe0] sm:$0xff]  ;;  %v9096_v60 = vld [vmem:[#allocation21 + $0x128] sm:$0xff]  ;;  %v9105_v32 = vld [vmem:[#allocation21 + $0x170] sm:$0xff] }
 0x960   : > { %v3537_v10 = vsub.f32 1.5, %v3536_v2  ;;  %v9063_v2 = vld [vmem:[#allocation18 + $0x94] sm:$0xf]  ;;  %4555 = vmatpush.bf16.msra.mxu3 %v9121_v11 }
 0x961   : > { %v9606_v12 = vpop.eup %9605  ;;  %v11227_v20 = vadd.f32 %v11217_v61, %v3561_v35  ;;  %v7787_v35 = vld [vmem:[#allocation18 + $0xd0] sm:$0xf0] }
 0x962   : > { %v3538_v49 = vmul.f32 %v11207_v34, %v3537_v10  ;;  %v3544_v21 = vmul.f32 %v9606_v12, %v11210_v62  ;;  %vm3550_vm11 = vweird.f32 %v9606_v12  ;;  %v7790_v10 = vor.u32 %v9063_v2, %v7787_v35  ;;  %v9052_v2 = vld [vmem:[#allocation21 + $0xc8] sm:$0xff]  ;;  %v9095_v36 = vld [vmem:[#allocation21 + $0x120] sm:$0xff] }
 0x963   : > { %v11234_v43 = vpack.c.bf16 %v11227_v20, %v11224_v13  ;;  %vm3551_vm13 = vmor %vm3549_vm12, %vm3550_vm11 }
 0x964   : > { %v3545_v24 = vmul.f32 %v9606_v12, %v3544_v21  ;;  %v3542_v58 = vsel %vm11236_vm10, %v11207_v34, %v3538_v49  ;;  %v7835_v34 = vld [vmem:[#allocation18 + $0x250] sm:$0xf0] }
 0x965   : > { %3783 = vmatmul.bf16.vlgmr.msrb.gmra.mxu2 %v11234_v43  ;;  %3802 = vmatmul.bf16.vlgmr.msra.gmra.mxu1 %v11234_v43  ;;  %v3555_v18 = vmul.f32 %v3542_v58, %v11172_v46  ;;  %v7838_v62 = vor.u32 %v9075_v59, %v7835_v34  ;;  %v9059_v49 = vld [vmem:[#allocation18 + $0x14] sm:$0xf]  ;;  %v9082_v58 = vld [vmem:[#allocation18 + $0x2d4] sm:$0xf0]  ;;  %v9098_v59 = vld [vmem:[#allocation21 + $0x138] sm:$0xff] }
 0x966   : > { %v3546_v5 = vmul.f32 0.5, %v3545_v24  ;;  %4206 = vmatmul.bf16.vlgmr.msrb.gmra.mxu3 %v11234_v43  ;;  %4141 = vmatpush.bf16.msrb.mxu2 %v7882_v33  ;;  %v7771_v21 = vld [vmem:[#allocation18 + $0x50] sm:$0xf0]  ;;  %v7873_v33 = vld [vmem:[#allocation18 + $0x318] sm:$0xf]  ;;  %v9118_v34 = vld [vmem:[#allocation21 + $0x1d8] sm:$0xff] }
 0x967   : > { %4160 = vmatpush.bf16.msra.mxu1 %v7886_v52  ;;  %v3562_v53 = vmul.f32 %v11204_v27, %v3555_v18  ;;  %v7774_v24 = vor.u32 %v9059_v49, %v7771_v21  ;;  %v7874_v48 = vor.u32 %v9086_v14, %v7873_v33  ;;  %v7841_v52 = vld [vmem:[#allocation18 + $0x218] sm:$0xf]  ;;  %v7810_v18 = vor.u32 %v9070_v0, %v7809_v17  ;;  %v9051_v21 = vld [vmem:[#allocation21 + $0xc0] sm:$0xff]  ;;  %v9152_v33 = vld [vmem:[#allocation18 + $0x3ac] sm:$0xf] }
 0x968   : > { %v3547_v25 = vsub.f32 1.5, %v3546_v5  ;;  %v7858_v5 = vor.u32 %v9082_v58, %v7857_v55  ;;  %v7842_v8 = vor.u32 %v9078_v30, %v7841_v52  ;;  %4497 = vmatpush.bf16.msra.mxu0 %v9098_v59  ;;  %v8275_v14 = vld [vmem:[#allocation18 + $0x3e8] sm:$0xf0] }
 0x969   : > { %v11252_v63 = vadd.f32 %v11217_v61, %v3562_v53  ;;  %v9120_v53 = vld [vmem:[#allocation21 + $0x1e8] sm:$0xff]  ;;  %v9148_v30 = vld [vmem:[#allocation18 + $0x32c] sm:$0xf] }
 0x96a   : > { %v3548_v26 = vmul.f32 %v9606_v12, %v3547_v25  ;;  %4142 = vmatpush.bf16.msrb.mxu2 %v7866_v15  ;;  %v7825_v15 = vld [vmem:[#allocation18 + $0x198] sm:$0xf]  ;;  %4556 = vmatpush.bf16.msra.mxu3 %v9120_v53  ;;  %v8243_v17 = vld [vmem:[#allocation18 + $0x2e8] sm:$0xf0]  ;;  %v11293_v53 = vld [vmem:[#allocation19] sm:$0xf] }
 0x96b   : > { %4161 = vmatpush.bf16.msra.mxu1 %v7870_v16  ;;  %v9074_v25 = vld [vmem:[#allocation18 + $0x1d4] sm:$0xf0] }
 0x96c   : > { %v3552_v40 = vsel %vm3551_vm13, %v9606_v12, %v3548_v26  ;;  %v9061_v12 = vld [vmem:[#allocation18 + $0x4c] sm:$0xf0]  ;;  %v7826_v16 = vor.u32 %v9074_v25, %v7825_v15  ;;  %v7794_v26 = vor.u32 %v9066_v9, %v7793_v23 }
 0x96d   : > { %v3556_v28 = vmul.f32 %v3552_v40, %v11177_v54  ;;  %v7817_v54 = vld [vmem:[#allocation18 + $0x190] sm:$0xf]  ;;  %v7770_v22 = vor.u32 %v9061_v12, %v7769_v1  ;;  %v9062_v40 = vld [vmem:[#allocation18 + $0x54] sm:$0xf0]  ;;  %v9106_v1 = vld [vmem:[#allocation21 + $0x178] sm:$0xff] }
 0x96e   : > { %4143 = vmatpush.bf16.msrb.mxu2 %v7850_v31  ;;  %v7777_v31 = vld [vmem:[#allocation18 + $0x18] sm:$0xf]  ;;  %v9103_v25 = vld [vmem:[#allocation21 + $0x160] sm:$0xff] }
 0x96f   : > { %v3563_v46 = vmul.f32 %v11204_v27, %v3556_v28  ;;  %4162 = vmatpush.bf16.msra.mxu1 %v7854_v41  ;;  %v7818_v27 = vor.u32 %v9073_v45, %v7817_v54  ;;  %v7778_v41 = vor.u32 %v9062_v40, %v7777_v31  ;;  %v9119_v28 = vld [vmem:[#allocation21 + $0x1e0] sm:$0xff]  ;;  %v9097_v54 = vld [vmem:[#allocation21 + $0x130] sm:$0xff]  ;;  %v9058_v45 = vld [vmem:[#allocation21 + $0xf8] sm:$0xff] }
 0x970   : > { %4557 = vmatpush.bf16.msra.mxu3 %v9119_v28  ;;  %4498 = vmatpush.bf16.msra.mxu0 %v9097_v54  ;;  %v9136_v54 = vld [vmem:[#allocation18 + $0x1ac] sm:$0xf] }
 0x971   : > { %v11255_v39 = vadd.f32 %v11217_v61, %v3563_v46  ;;  %v7803_v61 = vld [vmem:[#allocation18 + $0x150] sm:$0xf0]  ;;  %v9117_v46 = vld [vmem:[#allocation21 + $0x1d0] sm:$0xff] }
 0x972   : > { %4144 = vmatpush.bf16.msrb.mxu2 %v7834_v51  ;;  %v7806_v50 = vor.u32 %v9067_v57, %v7803_v61  ;;  %v9116_v51 = vld [vmem:[#allocation21 + $0x1c8] sm:$0xff]  ;;  %v11278_v61 = vld [vmem:[#allocation19 + $0x4] sm:$0xf] }
 0x973   : > { %v11259_v44 = vpack.c.bf16 %v11255_v39, %v11252_v63  ;;  %4163 = vmatpush.bf16.msra.mxu1 %v7838_v62  ;;  %v9115_v62 = vld [vmem:[#allocation21 + $0x1c0] sm:$0xff]  ;;  %v3976_v56 = vperm.slane %v11278_v61, 3 }
 0x974   : > { %4558 = vmatpush.bf16.msra.mxu3 %v9118_v34  ;;  %4499 = vmatpush.bf16.msra.mxu0 %v9096_v60  ;;  %v11296_v34 = vperm.slane %v11293_v53, 2  ;;  %v9100_v60 = vld [vmem:[#allocation21 + $0x148] sm:$0xff] }
 0x975   : > { %3788 = vmatmul.bf16.gmra.mxu2 %v11259_v44  ;;  %3807 = vmatmul.bf16.gmra.mxu1 %v11259_v44 }
 0x976   : > { %4211 = vmatmul.bf16.gmra.mxu3 %v11259_v44  ;;  %4145 = vmatpush.bf16.msrb.mxu2 %v7818_v27  ;;  %v9056_v27 = vld [vmem:[#allocation21 + $0xe8] sm:$0xff] }
 0x977   : > { %4164 = vmatpush.bf16.msra.mxu1 %v7822_v7  ;;  %v9054_v7 = vld [vmem:[#allocation21 + $0xd8] sm:$0xff] }
 0x978   : > { %4559 = vmatpush.bf16.msra.mxu3 %v9117_v46  ;;  %4500 = vmatpush.bf16.msra.mxu0 %v9095_v36  ;;  %v9101_v46 = vld [vmem:[#allocation21 + $0x150] sm:$0xff] }
 0x97a   : > { %4146 = vmatpush.bf16.msrb.mxu2 %v7802_v3 }
 0x97b   : > { %4165 = vmatpush.bf16.msra.mxu1 %v7806_v50 }
 0x97c   : > { %4560 = vmatpush.bf16.msra.mxu3 %v9116_v51  ;;  %v9094_v51 = vld [vmem:[#allocation21 + $0x118] sm:$0xff] }
 0x97d   : > { %4501 = vmatpush.bf16.msra.mxu0 %v9094_v51 }
 0x97e   : > { %4147 = vmatpush.bf16.msrb.mxu2 %v7786_v6 }
 0x97f   : > { %4166 = vmatpush.bf16.msra.mxu1 %v7790_v10 }
 0x980   : > { %4561 = vmatpush.bf16.msra.mxu3 %v9115_v62 }
 0x982   : > { %4148 = vmatpush.bf16.msrb.mxu2 %v7770_v22 }
 0x983   : > { %4167 = vmatpush.bf16.msra.mxu1 %v7774_v24 }
 0x984   : > { %4822 = vmatpush.bf16.msrb.mxu3 %v9058_v45  ;;  %v8211_v45 = vld [vmem:[#allocation18 + $0x1e8] sm:$0xf0] }
 0x985   : > { %3821 = vmatmul.bf16.vlgmr.msra.gmra.mxu2 %v11234_v43  ;;  %3840 = vmatmul.bf16.vlgmr.msrb.gmra.mxu1 %v11234_v43 }
 0x986   : > { %4179 = vmatpush.bf16.msra.mxu2 %v7890_v37 }
 0x987   : > { %4516 = vmatpush.bf16.msrb.mxu1 %v9106_v1 }
 0x988   : > { %4823 = vmatpush.bf16.msrb.mxu3 %v9057_v4  ;;  %v8214_v4 = vor.u32 %v9136_v54, %v8211_v45 }
 0x98a   : > { %4180 = vmatpush.bf16.msra.mxu2 %v7874_v48  ;;  %v8278_v48 = vor.u32 %v9152_v33, %v8275_v14  ;;  %v9042_v33 = vld [vmem:[#allocation21 + $0x78] sm:$0xff] }
 0x98b   : > { %4517 = vmatpush.bf16.msrb.mxu1 %v9105_v32 }
 0x98c   : > { %4824 = vmatpush.bf16.msrb.mxu3 %v9056_v27 }
 0x98e   : > { %4181 = vmatpush.bf16.msra.mxu2 %v7858_v5  ;;  %v9104_v5 = vld [vmem:[#allocation21 + $0x168] sm:$0xff] }
 0x98f   : > { %4518 = vmatpush.bf16.msrb.mxu1 %v9104_v5  ;;  %v8163_v5 = vld [vmem:[#allocation18 + $0x68] sm:$0xf0] }
 0x990   : > { %4825 = vmatpush.bf16.msrb.mxu3 %v9055_v19 }
 0x992   : > { %4182 = vmatpush.bf16.msra.mxu2 %v7842_v8  ;;  %v8259_v8 = vld [vmem:[#allocation18 + $0x368] sm:$0xf0] }
 0x993   : > { %v8262_v15 = vor.u32 %v9148_v30, %v8259_v8  ;;  %4519 = vmatpush.bf16.msrb.mxu1 %v9103_v25 }
 0x994   : > { %4826 = vmatpush.bf16.msrb.mxu3 %v9054_v7 }
 0x995   : > { %3826 = vmatmul.bf16.gmra.mxu2 %v11259_v44  ;;  %3845 = vmatmul.bf16.gmra.mxu1 %v11259_v44 }
 0x996   : > { %4183 = vmatpush.bf16.msra.mxu2 %v7826_v16  ;;  %v9144_v16 = vld [vmem:[#allocation18 + $0x2ac] sm:$0xf] }
 0x997   : > { %v8246_v0 = vor.u32 %v9144_v16, %v8243_v17 }
 0x998   : > { %4827 = vmatpush.bf16.msrb.mxu3 %v9053_v29  ;;  %v8195_v29 = vld [vmem:[#allocation18 + $0x168] sm:$0xf0] }
 0x99a   : > { %4184 = vmatpush.bf16.msra.mxu2 %v7810_v18 }
 0x99c   : > { %4828 = vmatpush.bf16.msrb.mxu3 %v9052_v2 }
 0x99e   : > { %4185 = vmatpush.bf16.msra.mxu2 %v7794_v26  ;;  %v9102_v26 = vld [vmem:[#allocation21 + $0x158] sm:$0xff] }
 0x99f   : > { %4520 = vmatpush.bf16.msrb.mxu1 %v9102_v26  ;;  %v9034_v26 = vld [vmem:[#allocation21 + $0x38] sm:$0xff] }
 0x9a0   : > { %4829 = vmatpush.bf16.msrb.mxu3 %v9051_v21  ;;  %v8179_v21 = vld [vmem:[#allocation18 + $0xe8] sm:$0xf0] }
 0x9a2   : > { %4186 = vmatpush.bf16.msra.mxu2 %v7778_v41  ;;  %v9140_v41 = vld [vmem:[#allocation18 + $0x22c] sm:$0xf] }
 0x9a3   : > { %v8230_v11 = vor.u32 %v9140_v41, %v8227_v42  ;;  %4521 = vmatpush.bf16.msrb.mxu1 %v9101_v46  ;;  %v9040_v41 = vld [vmem:[#allocation21 + $0x68] sm:$0xff] }
 0x9a4   : > { %v9112_v46 = vld [vmem:[#allocation21 + $0x1a8] sm:$0xff] }
 0x9a5   : > { %4149 = vmatmul.bf16.vlgmr.msrb.gmra.mxu2 %v11234_v43  ;;  %4168 = vmatmul.bf16.vlgmr.msra.gmra.mxu1 %v11234_v43 }
 0x9a7   : > { %4522 = vmatpush.bf16.msrb.mxu1 %v9100_v60 }
 0x9b5   : > { %4154 = vmatmul.bf16.gmra.mxu2 %v11259_v44  ;;  %4173 = vmatmul.bf16.gmra.mxu1 %v11259_v44 }
 0x9c5   : > { %4187 = vmatmul.bf16.vlgmr.msra.gmra.mxu2 %v11234_v43 }
 0x9d5   : > { %4192 = vmatmul.bf16.gmra.mxu2 %v11259_v44 }
 0x9e2   : > { %v11274_v38 = vpop.f32.mrf.mxu1 }
 0x9e8   : > { %v11276_v57 = vpop.f32.mrf.mxu2 }
 0x9e9   : > { %v4207_v3 = vpop.f32.mrf.mxu3 }
 0x9ea   : > { %v11280_v50 = vpop.f32.mrf.mxu1  ;;  %v4208_v35 = vadd.f32 %v4207_v3, %v3976_v56  ;;  %v9132_v3 = vld [vmem:[#allocation18 + $0x12c] sm:$0xf] }
 0x9eb   : > { %v8198_v2 = vor.u32 %v9132_v3, %v8195_v29  ;;  %v9111_v29 = vld [vmem:[#allocation21 + $0x1a0] sm:$0xff] }
 0x9ec   : > { %v4220_v22 = vmax.f32 %v4208_v35, 0.0  ;;  %v3610_v35 = vperm.slane %v11293_v53, 3 }
 0x9f0   : > { %v11283_v6 = vpop.f32.mrf.mxu2 }
 0x9f1   : > { %v4209_v10 = vpop.f32.mrf.mxu3 }
 0x9f2   : > { %v4210_v12 = vadd.f32 %v4209_v10, %v3976_v56  ;;  %v11285_v49 = vpop.f32.mrf.mxu1  ;;  %v9099_v10 = vld [vmem:[#allocation21 + $0x140] sm:$0xff] }
 0x9f3   : > { %4523 = vmatpush.bf16.msrb.mxu1 %v9099_v10 }
 0x9f4   : > { %v4224_v24 = vmax.f32 %v4210_v12, 0.0  ;;  %v9128_v12 = vld [vmem:[#allocation18 + $0xac] sm:$0xf] }
 0x9f6   : > { %v4236_v37 = vpack.c.bf16 %v4224_v24, %v4220_v22  ;;  %v9092_v22 = vld [vmem:[#allocation21 + $0x108] sm:$0xff]  ;;  %v8182_v24 = vor.u32 %v9128_v12, %v8179_v21  ;;  %v9110_v12 = vld [vmem:[#allocation21 + $0x198] sm:$0xff] }
 0x9f7   : > { %4784 = vmatpush.bf16.msra.mxu1 %v9042_v33  ;;  %v9030_v21 = vld [vmem:[#allocation21 + $0x18] sm:$0xff] }
 0x9f8   : > { %4562 = vmatmul.bf16.vlgmr.msra.gmra.mxu3 %v4236_v37  ;;  %v11287_v55 = vpop.f32.mrf.mxu2 }
 0x9f9   : > { %v4212_v58 = vpop.f32.mrf.mxu3  ;;  %5100 = vmatpush.bf16.msra.mxu3 %v8278_v48 }
 0x9fa   : > { %v11289_v52 = vpop.f32.mrf.mxu1  ;;  %v4213_v18 = vadd.f32 %v4212_v58, %v3976_v56  ;;  %v9124_v58 = vld [vmem:[#allocation18 + $0x2c] sm:$0xf] }
 0x9fb   : > { %v8166_v25 = vor.u32 %v9124_v58, %v8163_v5  ;;  %v9035_v58 = vld [vmem:[#allocation21 + $0x40] sm:$0xff] }
 0x9fc   : > { %v4228_v28 = vmax.f32 %v4213_v18, 0.0 }
 0x9fd   : > { %5101 = vmatpush.bf16.msra.mxu3 %v8262_v15  ;;  %v9091_v15 = vld [vmem:[#allocation21 + $0x100] sm:$0xff] }
 0xa00   : > { %v11291_v23 = vpop.f32.mrf.mxu2 }
 0xa01   : > { %v4214_v9 = vpop.f32.mrf.mxu3  ;;  %5102 = vmatpush.bf16.msra.mxu3 %v8246_v0  ;;  %v9041_v0 = vld [vmem:[#allocation21 + $0x70] sm:$0xff] }
 0xa02   : > { %v4215_v31 = vadd.f32 %v4214_v9, %v3976_v56  ;;  %v3841_v40 = vpop.f32.mrf.mxu1  ;;  %v9093_v56 = vld [vmem:[#allocation21 + $0x110] sm:$0xff]  ;;  %4785 = vmatpush.bf16.msra.mxu1 %v9041_v0  ;;  %v9114_v9 = vld [vmem:[#allocation21 + $0x1b8] sm:$0xff] }
 0xa03   : > { %4502 = vmatpush.bf16.msra.mxu0 %v9093_v56  ;;  %v3842_v32 = vadd.f32 %v3841_v40, %v3610_v35  ;;  %4535 = vmatpush.bf16.msrb.mxu2 %v9114_v9  ;;  %v9031_v56 = vld [vmem:[#allocation21 + $0x20] sm:$0xff]  ;;  %v8267_v9 = vld [vmem:[#allocation18 + $0x3e0] sm:$0xf0] }
 0xa04   : > { %v4232_v59 = vmax.f32 %v4215_v31, 0.0 }
 0xa05   : > { %5103 = vmatpush.bf16.msra.mxu3 %v8230_v11  ;;  %v3854_v16 = vmax.f32 %v3842_v32, 0.0  ;;  %v9113_v11 = vld [vmem:[#allocation21 + $0x1b0] sm:$0xff]  ;;  %v9036_v32 = vld [vmem:[#allocation21 + $0x48] sm:$0xff] }
 0xa06   : > { %v4240_v62 = vpack.c.bf16 %v4232_v59, %v4228_v28  ;;  %4786 = vmatpush.bf16.msra.mxu1 %v9040_v41  ;;  %v9033_v28 = vld [vmem:[#allocation21 + $0x30] sm:$0xff]  ;;  %v9039_v59 = vld [vmem:[#allocation21 + $0x60] sm:$0xff] }
 0xa07   : > { %4503 = vmatpush.bf16.msra.mxu0 %v9092_v22  ;;  %4536 = vmatpush.bf16.msrb.mxu2 %v9113_v11  ;;  %v9107_v11 = vld [vmem:[#allocation21 + $0x180] sm:$0xff] }
 0xa08   : > { %4567 = vmatmul.bf16.gmra.mxu3 %v4240_v62  ;;  %v3822_v27 = vpop.f32.mrf.mxu2  ;;  %v9032_v62 = vld [vmem:[#allocation21 + $0x28] sm:$0xff] }
 0xa09   : > { %v3823_v19 = vadd.f32 %v3822_v27, %v11296_v34  ;;  %5104 = vmatpush.bf16.msra.mxu3 %v8214_v4  ;;  %v9038_v27 = vld [vmem:[#allocation21 + $0x58] sm:$0xff] }
 0xa0a   : > { %v3843_v7 = vpop.f32.mrf.mxu1  ;;  %4787 = vmatpush.bf16.msra.mxu1 %v9039_v59  ;;  %v9147_v59 = vld [vmem:[#allocation18 + $0x324] sm:$0xf] }
 0xa0b   : > { %v3844_v1 = vadd.f32 %v3843_v7, %v3610_v35  ;;  %v3853_v30 = vmax.f32 %v3823_v19, 0.0  ;;  %4504 = vmatpush.bf16.msra.mxu0 %v9091_v15  ;;  %4537 = vmatpush.bf16.msrb.mxu2 %v9112_v46  ;;  %v8251_v46 = vld [vmem:[#allocation18 + $0x360] sm:$0xf0] }
 0xa0d   : > { %5105 = vmatpush.bf16.msra.mxu3 %v8198_v2  ;;  %v3858_v14 = vmax.f32 %v3844_v1, 0.0  ;;  %v9037_v2 = vld [vmem:[#allocation21 + $0x50] sm:$0xff]  ;;  %v11306_v1 = vperm.slane %v11278_v61, 1 }
 0xa0e   : > { %4788 = vmatpush.bf16.msra.mxu1 %v9038_v27 }
 0xa0f   : > { %v3870_v18 = vpack.c.bf16 %v3858_v14, %v3854_v16  ;;  %4765 = vmatpush.bf16.msrb.mxu0 %v9034_v26  ;;  %4538 = vmatpush.bf16.msrb.mxu2 %v9111_v29  ;;  %v9109_v14 = vld [vmem:[#allocation21 + $0x190] sm:$0xff]  ;;  %v9028_v16 = vld [vmem:[#allocation21 + $0x8] sm:$0xff] }
 0xa10   : > { %v3824_v36 = vpop.f32.mrf.mxu2 }
 0xa11   : > { %v3825_v37 = vadd.f32 %v3824_v36, %v11296_v34  ;;  %5106 = vmatpush.bf16.msra.mxu3 %v8182_v24 }
 0xa12   : > { %v3846_v48 = vpop.f32.mrf.mxu1  ;;  %4789 = vmatpush.bf16.msra.mxu1 %v9037_v2  ;;  %v8249_v2 = vld [vmem:[#allocation18 + $0x320] sm:$0xf] }
 0xa13   : > { %v3857_v8 = vmax.f32 %v3825_v37, 0.0  ;;  %4766 = vmatpush.bf16.msrb.mxu0 %v9033_v28  ;;  %v3847_v54 = vadd.f32 %v3846_v48, %v3610_v35  ;;  %4539 = vmatpush.bf16.msrb.mxu2 %v9110_v12  ;;  %v11312_v37 = vperm.slane %v11278_v61, 0  ;;  %v9029_v48 = vld [vmem:[#allocation21 + $0x10] sm:$0xff]  ;;  %v9027_v28 = vld [vmem:[#allocation21] sm:$0xff] }
 0xa14   : > { %v9049_v12 = vld [vmem:[#allocation21 + $0xb0] sm:$0xff] }
 0xa15   : > { %v11301_v17 = vpack.c.bf16 %v3857_v8, %v3853_v30  ;;  %5107 = vmatpush.bf16.msra.mxu3 %v8166_v25  ;;  %v3862_v10 = vmax.f32 %v3847_v54, 0.0  ;;  %v9108_v8 = vld [vmem:[#allocation21 + $0x188] sm:$0xff]  ;;  %v8265_v54 = vld [vmem:[#allocation18 + $0x3a0] sm:$0xf] }
 0xa16   : > { %4790 = vmatpush.bf16.msra.mxu1 %v9036_v32 }
 0xa17   : > { %4767 = vmatpush.bf16.msrb.mxu0 %v9032_v62  ;;  %4540 = vmatpush.bf16.msrb.mxu2 %v9109_v14  ;;  %v8254_v62 = vor.u32 %v9147_v59, %v8251_v46  ;;  %v9048_v14 = vld [vmem:[#allocation21 + $0xa8] sm:$0xff]  ;;  %v11323_v59 = vperm.slane %v11293_v53, 1 }
 0xa18   : > { %4830 = vmatmul.bf16.vlgmr.msrb.gmra.mxu3 %v3870_v18  ;;  %v3827_v31 = vpop.f32.mrf.mxu2  ;;  %v9151_v18 = vld [vmem:[#allocation18 + $0x3a4] sm:$0xf] }
 0xa19   : > { %v3828_v40 = vadd.f32 %v3827_v31, %v11296_v34  ;;  %v8270_v31 = vor.u32 %v9151_v18, %v8267_v9  ;;  %v8217_v9 = vld [vmem:[#allocation18 + $0x220] sm:$0xf] }
 0xa1a   : > { %v3848_v42 = vpop.f32.mrf.mxu1  ;;  %4791 = vmatpush.bf16.msra.mxu1 %v9035_v58  ;;  %v8233_v58 = vld [vmem:[#allocation18 + $0x2a0] sm:$0xf] }
 0xa1b   : > { %v3849_v51 = vadd.f32 %v3848_v42, %v3610_v35  ;;  %v3861_v7 = vmax.f32 %v3828_v40, 0.0  ;;  %4768 = vmatpush.bf16.msrb.mxu0 %v9031_v56  ;;  %4541 = vmatpush.bf16.msrb.mxu2 %v9108_v8 }
 0xa1d   : > { %v3866_v19 = vmax.f32 %v3849_v51, 0.0 }
 0xa1f   : > { %4769 = vmatpush.bf16.msrb.mxu0 %v9030_v21  ;;  %4542 = vmatpush.bf16.msrb.mxu2 %v9107_v11  ;;  %v8187_v11 = vld [vmem:[#allocation18 + $0x160] sm:$0xf0] }
 0xa20   : > { %v3829_v45 = vpop.f32.mrf.mxu2 }
 0xa21   : > { %v3830_v4 = vadd.f32 %v3829_v45, %v11296_v34  ;;  %v3874_v34 = vpack.c.bf16 %v3866_v19, %v3862_v10  ;;  %v9153_v45 = vld [vmem:[#allocation18 + $0x3dc] sm:$0xf0] }
 0xa22   : > { %v4169_v60 = vpop.f32.mrf.mxu1  ;;  %v8266_v27 = vor.u32 %v9153_v45, %v8265_v54  ;;  %v9149_v10 = vld [vmem:[#allocation18 + $0x35c] sm:$0xf0]  ;;  %v9046_v54 = vld [vmem:[#allocation21 + $0x98] sm:$0xff] }
 0xa23   : > { %v3865_v3 = vmax.f32 %v3830_v4, 0.0  ;;  %v4170_v24 = vadd.f32 %v4169_v60, %v11306_v1  ;;  %4770 = vmatpush.bf16.msrb.mxu0 %v9029_v48  ;;  %v9050_v4 = vld [vmem:[#allocation21 + $0xb8] sm:$0xff]  ;;  %v9143_v60 = vld [vmem:[#allocation18 + $0x2a4] sm:$0xf]  ;;  %v8250_v21 = vor.u32 %v9149_v10, %v8249_v2 }
 0xa24   : > { %4803 = vmatpush.bf16.msra.mxu2 %v9050_v4  ;;  %v9127_v4 = vld [vmem:[#allocation18 + $0xa4] sm:$0xf] }
 0xa25   : > { %v11308_v35 = vpack.c.bf16 %v3865_v3, %v3861_v7  ;;  %v4218_v5 = vmax.f32 %v4170_v24, 0.0  ;;  %v8235_v7 = vld [vmem:[#allocation18 + $0x2e0] sm:$0xf0] }
 0xa26   : > { %v8238_v29 = vor.u32 %v9143_v60, %v8235_v7  ;;  %v8219_v24 = vld [vmem:[#allocation18 + $0x260] sm:$0xf0]  ;;  %v8185_v7 = vld [vmem:[#allocation18 + $0x120] sm:$0xf] }
 0xa27   : > { %4771 = vmatpush.bf16.msrb.mxu0 %v9028_v16  ;;  %v9123_v2 = vld [vmem:[#allocation18 + $0x24] sm:$0xf] }
 0xa28   : > { %4835 = vmatmul.bf16.gmra.mxu3 %v3874_v34  ;;  %v4150_v22 = vpop.f32.mrf.mxu2  ;;  %4804 = vmatpush.bf16.msra.mxu2 %v9049_v12  ;;  %v8155_v10 = vld [vmem:[#allocation18 + $0x60] sm:$0xf0] }
 0xa29   : > { %v4151_v15 = vadd.f32 %v4150_v22, %v11312_v37  ;;  %v9139_v22 = vld [vmem:[#allocation18 + $0x224] sm:$0xf] }
 0xa2a   : > { %v4171_v36 = vpop.f32.mrf.mxu1  ;;  %v8222_v32 = vor.u32 %v9139_v22, %v8219_v24  ;;  %v8158_v22 = vor.u32 %v9123_v2, %v8155_v10  ;;  %v8169_v24 = vld [vmem:[#allocation18 + $0xa0] sm:$0xf] }
 0xa2b   : > { %v4172_v33 = vadd.f32 %v4171_v36, %v11306_v1  ;;  %v4217_v41 = vmax.f32 %v4151_v15, 0.0  ;;  %4772 = vmatpush.bf16.msrb.mxu0 %v9027_v28 }
 0xa2c   : > { %4805 = vmatpush.bf16.msra.mxu2 %v9048_v14 }
 0xa2d   : > { %v4222_v30 = vmax.f32 %v4172_v33, 0.0 }
 0xa2f   : > { %v4234_v25 = vpack.c.bf16 %v4222_v30, %v4218_v5  ;;  %v9145_v5 = vld [vmem:[#allocation18 + $0x2dc] sm:$0xf0] }
 0xa30   : > { %v4152_v0 = vpop.f32.mrf.mxu2  ;;  %v8234_v8 = vor.u32 %v9145_v5, %v8233_v58 }
 0xa31   : > { %v4153_v26 = vadd.f32 %v4152_v0, %v11312_v37  ;;  %4524 = vmatmul.bf16.vlgmr.msrb.gmra.mxu1 %v4234_v25  ;;  %v8203_v25 = vld [vmem:[#allocation18 + $0x1e0] sm:$0xf0] }
 0xa32   : > { %v4174_v40 = vpop.f32.mrf.mxu1  ;;  %5062 = vmatpush.bf16.msrb.mxu1 %v8270_v31 }
 0xa33   : > { %v4221_v42 = vmax.f32 %v4153_v26, 0.0  ;;  %v4175_v3 = vadd.f32 %v4174_v40, %v11306_v1  ;;  %v9141_v26 = vld [vmem:[#allocation18 + $0x25c] sm:$0xf0]  ;;  %v9047_v40 = vld [vmem:[#allocation21 + $0xa0] sm:$0xff] }
 0xa34   : > { %4806 = vmatpush.bf16.msra.mxu2 %v9047_v40 }
 0xa35   : > { %v4233_v51 = vpack.c.bf16 %v4221_v42, %v4217_v41  ;;  %v4226_v36 = vmax.f32 %v4175_v3, 0.0  ;;  %v8218_v41 = vor.u32 %v9141_v26, %v8217_v9  ;;  %v9131_v42 = vld [vmem:[#allocation18 + $0x124] sm:$0xf]  ;;  %v9133_v3 = vld [vmem:[#allocation18 + $0x15c] sm:$0xf0] }
 0xa36   : > { %5063 = vmatpush.bf16.msrb.mxu1 %v8254_v62  ;;  %v8190_v28 = vor.u32 %v9131_v42, %v8187_v11  ;;  %v3806_v62 = vadd.f32 %v11280_v50, %v11323_v59  ;;  %v3607_v50 = vperm.slane %v11293_v53, 0  ;;  %v9154_v26 = vld [vmem:[#allocation18 + $0x3e4] sm:$0xf0]  ;;  %v3809_v42 = vadd.f32 %v11285_v49, %v11323_v59 }
 0xa37   : > { %4505 = vmatmul.bf16.vlgmr.msra.gmra.mxu0 %v4233_v51  ;;  %v9137_v51 = vld [vmem:[#allocation18 + $0x1dc] sm:$0xf0]  ;;  %v8257_v11 = vld [vmem:[#allocation18 + $0x328] sm:$0xf] }
 0xa38   : > { %5108 = vmatmul.bf16.vlgmr.msra.gmra.mxu3 %v11234_v43  ;;  %v4155_v19 = vpop.f32.mrf.mxu2  ;;  %5043 = vmatpush.bf16.msra.mxu0 %v8266_v27  ;;  %v8171_v27 = vld [vmem:[#allocation18 + $0xe0] sm:$0xf0]  ;;  %v3856_v12 = vmax.f32 %v3806_v62, 0.0  ;;  %v9146_v62 = vld [vmem:[#allocation18 + $0x2e4] sm:$0xf0] }
 0xa39   : > { %v4156_v48 = vadd.f32 %v4155_v19, %v11312_v37  ;;  %v8174_v60 = vor.u32 %v9127_v4, %v8171_v27  ;;  %4807 = vmatpush.bf16.msra.mxu2 %v9046_v54  ;;  %v3860_v54 = vmax.f32 %v3809_v42, 0.0  ;;  %v8225_v49 = vld [vmem:[#allocation18 + $0x228] sm:$0xf] }
 0xa3a   : > { %v4176_v56 = vpop.f32.mrf.mxu1  ;;  %5064 = vmatpush.bf16.msrb.mxu1 %v8238_v29  ;;  %v3804_v29 = vadd.f32 %v11274_v38, %v11323_v59  ;;  %v9044_v38 = vld [vmem:[#allocation21 + $0x88] sm:$0xff] }
 0xa3b   : > { %v4177_v34 = vadd.f32 %v4176_v56, %v11306_v1  ;;  %v9135_v1 = vld [vmem:[#allocation18 + $0x1a4] sm:$0xf]  ;;  %v4225_v18 = vmax.f32 %v4156_v48, 0.0  ;;  %v3785_v48 = vadd.f32 %v11276_v57, %v3607_v50  ;;  %v8273_v57 = vld [vmem:[#allocation18 + $0x3a8] sm:$0xf] }
 0xa3c   : > { %5044 = vmatpush.bf16.msra.mxu0 %v8250_v21  ;;  %v8206_v0 = vor.u32 %v9135_v1, %v8203_v25  ;;  %v9045_v56 = vld [vmem:[#allocation21 + $0x90] sm:$0xff]  ;;  %v3975_v21 = vperm.slane %v11278_v61, 2  ;;  %v9043_v61 = vld [vmem:[#allocation21 + $0x80] sm:$0xff]  ;;  %v8274_v40 = vor.u32 %v9154_v26, %v8273_v57 }
 0xa3d   : > { %v4230_v33 = vmax.f32 %v4177_v34, 0.0  ;;  %v8186_v34 = vor.u32 %v9133_v3, %v8185_v7  ;;  %4808 = vmatpush.bf16.msra.mxu2 %v9045_v56  ;;  %v9125_v1 = vld [vmem:[#allocation18 + $0x5c] sm:$0xf0] }
 0xa3e   : > { %5065 = vmatpush.bf16.msrb.mxu1 %v8222_v32  ;;  %v9129_v32 = vld [vmem:[#allocation18 + $0xdc] sm:$0xf0] }
 0xa3f   : > { %v4238_v30 = vpack.c.bf16 %v4230_v33, %v4226_v36  ;;  %v3852_v36 = vmax.f32 %v3804_v29, 0.0  ;;  %v3787_v33 = vadd.f32 %v11283_v6, %v3607_v50  ;;  %v8170_v14 = vor.u32 %v9129_v32, %v8169_v24  ;;  %v9134_v24 = vld [vmem:[#allocation18 + $0x164] sm:$0xf0] }
 0xa40   : > { %v4157_v15 = vpop.f32.mrf.mxu2  ;;  %5045 = vmatpush.bf16.msra.mxu0 %v8234_v8  ;;  %v3851_v6 = vmax.f32 %v3785_v48, 0.0  ;;  %v8177_v32 = vld [vmem:[#allocation18 + $0xa8] sm:$0xf] }
 0xa41   : > { %v4158_v16 = vadd.f32 %v4157_v15, %v11312_v37  ;;  %4529 = vmatmul.bf16.gmra.mxu1 %v4238_v30  ;;  %v8201_v37 = vld [vmem:[#allocation18 + $0x1a0] sm:$0xf]  ;;  %v3868_v58 = vpack.c.bf16 %v3856_v12, %v3852_v36  ;;  %v3855_v30 = vmax.f32 %v3787_v33, 0.0  ;;  %4809 = vmatpush.bf16.msra.mxu2 %v9044_v38  ;;  %v9130_v36 = vld [vmem:[#allocation18 + $0xe4] sm:$0xf0] }
 0xa42   : > { %5066 = vmatpush.bf16.msrb.mxu1 %v8206_v0  ;;  %v8202_v45 = vor.u32 %v9137_v51, %v8201_v37  ;;  %v8153_v15 = vld [vmem:[#allocation18 + $0x20] sm:$0xf]  ;;  %v8241_v51 = vld [vmem:[#allocation18 + $0x2a8] sm:$0xf]  ;;  %v8178_v33 = vor.u32 %v9130_v36, %v8177_v32 }
 0xa43   : > { %v4229_v31 = vmax.f32 %v4158_v16, 0.0  ;;  %v8154_v25 = vor.u32 %v9125_v1, %v8153_v15  ;;  %v8242_v4 = vor.u32 %v9146_v62, %v8241_v51  ;;  %v8161_v38 = vld [vmem:[#allocation18 + $0x28] sm:$0xf]  ;;  %v9183_v15 = vld [vmem:[#allocation21 + $0x2e0] sm:$0xff]  ;;  %v9204_v62 = vld [vmem:[#allocation18 + $0x23c] sm:$0xf] }
 0xa44   : > { %5046 = vmatpush.bf16.msra.mxu0 %v8218_v41  ;;  %v9182_v1 = vld [vmem:[#allocation21 + $0x2d8] sm:$0xff] }
 0xa45   : > { %v4237_v46 = vpack.c.bf16 %v4229_v31, %v4225_v18  ;;  %v3867_v18 = vpack.c.bf16 %v3855_v30, %v3851_v6  ;;  %4810 = vmatpush.bf16.msra.mxu2 %v9043_v61  ;;  %v3811_v31 = vadd.f32 %v11289_v52, %v11323_v59  ;;  %v3790_v52 = vadd.f32 %v11287_v55, %v3607_v50  ;;  %v9142_v59 = vld [vmem:[#allocation18 + $0x264] sm:$0xf0]  ;;  %v9184_v61 = vld [vmem:[#allocation21 + $0x2e8] sm:$0xff] }
 0xa46   : > { %5067 = vmatpush.bf16.msrb.mxu1 %v8190_v28  ;;  %v9150_v28 = vld [vmem:[#allocation18 + $0x364] sm:$0xf0]  ;;  %v8226_v10 = vor.u32 %v9142_v59, %v8225_v49  ;;  %v9180_v6 = vld [vmem:[#allocation21 + $0x2c8] sm:$0xff] }
 0xa47   : > { %4510 = vmatmul.bf16.gmra.mxu0 %v4237_v46  ;;  %v3864_v46 = vmax.f32 %v3811_v31, 0.0  ;;  %v8258_v37 = vor.u32 %v9150_v28, %v8257_v11  ;;  %v3859_v29 = vmax.f32 %v3790_v52, 0.0  ;;  %v9212_v31 = vld [vmem:[#allocation18 + $0x33c] sm:$0xf] }
 0xa48   : > { %5113 = vmatmul.bf16.gmra.mxu3 %v11259_v44  ;;  %v4188_v19 = vpop.f32.mrf.mxu2  ;;  %5047 = vmatpush.bf16.msra.mxu0 %v8202_v45  ;;  %v3792_v45 = vadd.f32 %v11291_v23, %v3607_v50  ;;  %v8209_v23 = vld [vmem:[#allocation18 + $0x1a8] sm:$0xf]  ;;  %v9208_v11 = vld [vmem:[#allocation18 + $0x2bc] sm:$0xf] }
 0xa49   : > { %v4189_v53 = vadd.f32 %v4188_v19, %v3975_v21  ;;  %v3872_v19 = vpack.c.bf16 %v3864_v46, %v3860_v54  ;;  %v8193_v50 = vld [vmem:[#allocation18 + $0x128] sm:$0xf]  ;;  %v8499_v28 = vld [vmem:[#allocation18 + $0x2f8] sm:$0xf0] }
 0xa4a   : > { %5068 = vmatpush.bf16.msrb.mxu1 %v8174_v60  ;;  %v3863_v7 = vmax.f32 %v3792_v45, 0.0  ;;  %v8502_v46 = vor.u32 %v9208_v11, %v8499_v28  ;;  %v8483_v54 = vld [vmem:[#allocation18 + $0x278] sm:$0xf0] }
 0xa4b   : > { %v4219_v16 = vmax.f32 %v4189_v53, 0.0  ;;  %v9196_v59 = vld [vmem:[#allocation18 + $0x13c] sm:$0xf] }
 0xa4c   : > { %5048 = vmatpush.bf16.msra.mxu0 %v8186_v34  ;;  %v3871_v12 = vpack.c.bf16 %v3863_v7, %v3859_v29  ;;  %v11368_v7 = vld [vmem:[#allocation19 + $0x8] sm:$0xf]  ;;  %v8451_v29 = vld [vmem:[#allocation18 + $0x178] sm:$0xf0] }
 0xa4e   : > { %5069 = vmatpush.bf16.msrb.mxu1 %v8158_v22  ;;  %v9138_v22 = vld [vmem:[#allocation18 + $0x1e4] sm:$0xf0] }
 0xa4f   : > { %v8210_v55 = vor.u32 %v9138_v22, %v8209_v23  ;;  %v8435_v23 = vld [vmem:[#allocation18 + $0xf8] sm:$0xf0]  ;;  %v9169_v22 = vld [vmem:[#allocation21 + $0x270] sm:$0xff] }
 0xa50   : > { %v4190_v5 = vpop.f32.mrf.mxu2  ;;  %5049 = vmatpush.bf16.msra.mxu0 %v8170_v14  ;;  %v9126_v14 = vld [vmem:[#allocation18 + $0x64] sm:$0xf0] }
 0xa51   : > { %v4191_v8 = vadd.f32 %v4190_v5, %v3975_v21  ;;  %4792 = vmatmul.bf16.vlgmr.msra.gmra.mxu1 %v3868_v58  ;;  %v8162_v48 = vor.u32 %v9126_v14, %v8161_v38  ;;  %v9186_v5 = vld [vmem:[#allocation21 + $0x2f8] sm:$0xff]  ;;  %v8419_v38 = vld [vmem:[#allocation18 + $0x78] sm:$0xf0] }
 0xa52   : > { %5456 = vmatpush.bf16.msrb.mxu3 %v9186_v5 }
 0xa53   : > { %v4223_v0 = vmax.f32 %v4191_v8, 0.0  ;;  %v9185_v8 = vld [vmem:[#allocation21 + $0x2f0] sm:$0xff] }
 0xa54   : > { %5050 = vmatpush.bf16.msra.mxu0 %v8154_v25 }
 0xa55   : > { %v4235_v9 = vpack.c.bf16 %v4223_v0, %v4219_v16  ;;  %v9179_v0 = vld [vmem:[#allocation21 + $0x2c0] sm:$0xff] }
 0xa56   : > { %5457 = vmatpush.bf16.msrb.mxu3 %v9185_v8 }
 0xa57   : > { %4543 = vmatmul.bf16.vlgmr.msrb.gmra.mxu2 %v4235_v9  ;;  %4773 = vmatmul.bf16.vlgmr.msrb.gmra.mxu0 %v3867_v18  ;;  %v9216_v18 = vld [vmem:[#allocation18 + $0x3bc] sm:$0xf] }
 0xa58   : > { %v4193_v41 = vpop.f32.mrf.mxu2  ;;  %5081 = vmatpush.bf16.msrb.mxu2 %v8274_v40  ;;  %v8531_v9 = vld [vmem:[#allocation18 + $0x3f8] sm:$0xf0] }
 0xa59   : > { %v4194_v27 = vadd.f32 %v4193_v41, %v3975_v21  ;;  %v8534_v57 = vor.u32 %v9216_v18, %v8531_v9  ;;  %v8515_v40 = vld [vmem:[#allocation18 + $0x378] sm:$0xf0] }
 0xa5a   : > { %5458 = vmatpush.bf16.msrb.mxu3 %v9184_v61  ;;  %v8518_v41 = vor.u32 %v9212_v31, %v8515_v40  ;;  %v9160_v18 = vld [vmem:[#allocation21 + $0x228] sm:$0xff]  ;;  %v9166_v31 = vld [vmem:[#allocation21 + $0x258] sm:$0xff] }
 0xa5b   : > { %v4227_v56 = vmax.f32 %v4194_v27, 0.0  ;;  %v9200_v27 = vld [vmem:[#allocation18 + $0x1bc] sm:$0xf] }
 0xa5c   : > { %5082 = vmatpush.bf16.msrb.mxu2 %v8258_v37 }
 0xa5e   : > { %5459 = vmatpush.bf16.msrb.mxu3 %v9183_v15 }
 0xa60   : > { %v4195_v60 = vpop.f32.mrf.mxu2  ;;  %5083 = vmatpush.bf16.msrb.mxu2 %v8242_v4  ;;  %v8486_v4 = vor.u32 %v9204_v62, %v8483_v54  ;;  %v9164_v54 = vld [vmem:[#allocation21 + $0x248] sm:$0xff] }
 0xa61   : > { %v4196_v3 = vadd.f32 %v4195_v60, %v3975_v21  ;;  %4797 = vmatmul.bf16.gmra.mxu1 %v3872_v19  ;;  %v8194_v21 = vor.u32 %v9134_v24, %v8193_v50  ;;  %v8467_v19 = vld [vmem:[#allocation18 + $0x1f8] sm:$0xf0] }
 0xa62   : > { %5460 = vmatpush.bf16.msrb.mxu3 %v9182_v1  ;;  %v8470_v60 = vor.u32 %v9200_v27, %v8467_v19  ;;  %v9161_v1 = vld [vmem:[#allocation21 + $0x230] sm:$0xff] }
 0xa63   : > { %v4231_v2 = vmax.f32 %v4196_v3, 0.0 }
 0xa64   : > { %5084 = vmatpush.bf16.msrb.mxu2 %v8226_v10  ;;  %v4878_v10 = vperm.slane %v11368_v7, 3 }
 0xa65   : > { %v4239_v34 = vpack.c.bf16 %v4231_v2, %v4227_v56  ;;  %v9170_v56 = vld [vmem:[#allocation21 + $0x278] sm:$0xff]  ;;  %v8454_v2 = vor.u32 %v9196_v59, %v8451_v29  ;;  %v9163_v59 = vld [vmem:[#allocation21 + $0x240] sm:$0xff] }
 0xa66   : > { %5418 = vmatpush.bf16.msra.mxu1 %v9170_v56 }
 0xa67   : > { %4548 = vmatmul.bf16.gmra.mxu2 %v4239_v34  ;;  %4778 = vmatmul.bf16.gmra.mxu0 %v3871_v12  ;;  %v9192_v12 = vld [vmem:[#allocation18 + $0xbc] sm:$0xf] }
 0xa68   : > { %5085 = vmatpush.bf16.msrb.mxu2 %v8210_v55  ;;  %v8438_v55 = vor.u32 %v9192_v12, %v8435_v23  ;;  %v9215_v12 = vld [vmem:[#allocation18 + $0x3b4] sm:$0xf] }
 0xa6a   : > { %5419 = vmatpush.bf16.msra.mxu1 %v9169_v22 }
 0xa6c   : > { %5086 = vmatpush.bf16.msrb.mxu2 %v8194_v21  ;;  %v9162_v21 = vld [vmem:[#allocation21 + $0x238] sm:$0xff] }
 0xa6d   : > { %5399 = vmatpush.bf16.msrb.mxu0 %v9162_v21  ;;  %v9211_v21 = vld [vmem:[#allocation18 + $0x334] sm:$0xf] }
 0xa70   : > { %5087 = vmatpush.bf16.msrb.mxu2 %v8178_v33  ;;  %v9188_v33 = vld [vmem:[#allocation18 + $0x3c] sm:$0xf] }
 0xa71   : > { %5070 = vmatmul.bf16.vlgmr.msrb.gmra.mxu1 %v11234_v43  ;;  %v8422_v5 = vor.u32 %v9188_v33, %v8419_v38  ;;  %5400 = vmatpush.bf16.msrb.mxu0 %v9161_v1  ;;  %v8491_v1 = vld [vmem:[#allocation18 + $0x2f0] sm:$0xf0] }
 0xa74   : > { %5088 = vmatpush.bf16.msrb.mxu2 %v8162_v48  ;;  %v9168_v48 = vld [vmem:[#allocation21 + $0x268] sm:$0xff] }
 0xa75   : > { %5420 = vmatpush.bf16.msra.mxu1 %v9168_v48  ;;  %5401 = vmatpush.bf16.msrb.mxu0 %v9160_v18  ;;  %v8521_v48 = vld [vmem:[#allocation18 + $0x3b0] sm:$0xf] }
 0xa77   : > { %4811 = vmatmul.bf16.vlgmr.msra.gmra.mxu2 %v11301_v17  ;;  %5051 = vmatmul.bf16.vlgmr.msra.gmra.mxu0 %v11234_v43 }
 0xa7b   : > { %v11343_v58 = vpop.f32.mrf.mxu3 }
 0xa81   : > { %5075 = vmatmul.bf16.gmra.mxu1 %v11259_v44 }
 0xa83   : > { %v11346_v53 = vpop.f32.mrf.mxu3 }
 0xa87   : > { %4816 = vmatmul.bf16.gmra.mxu2 %v11308_v35  ;;  %5056 = vmatmul.bf16.gmra.mxu0 %v11259_v44  ;;  %v9181_v35 = vld [vmem:[#allocation21 + $0x2d0] sm:$0xff] }
 0xa88   : > { %5461 = vmatpush.bf16.msrb.mxu3 %v9181_v35 }
 0xa8b   : > { %v11350_v30 = vpop.f32.mrf.mxu3 }
 0xa8c   : > { %5462 = vmatpush.bf16.msrb.mxu3 %v9180_v6  ;;  %v9167_v6 = vld [vmem:[#allocation21 + $0x260] sm:$0xff] }
 0xa8d   : > { %5421 = vmatpush.bf16.msra.mxu1 %v9167_v6 }
 0xa90   : > { %5463 = vmatpush.bf16.msrb.mxu3 %v9179_v0 }
 0xa91   : > { %5422 = vmatpush.bf16.msra.mxu1 %v9166_v31  ;;  %v9203_v31 = vld [vmem:[#allocation18 + $0x234] sm:$0xf] }
 0xa93   : > { %v11352_v17 = vpop.f32.mrf.mxu3 }
 0xa94   : > { %5738 = vmatpush.bf16.msra.mxu3 %v8534_v57 }
 0xa97   : > { %5089 = vmatmul.bf16.vlgmr.msrb.gmra.mxu2 %v11234_v43 }
 0xa98   : > { %5739 = vmatpush.bf16.msra.mxu3 %v8518_v41  ;;  %v9159_v41 = vld [vmem:[#allocation21 + $0x220] sm:$0xff] }
 0xa99   : > { %5402 = vmatpush.bf16.msrb.mxu0 %v9159_v41 }
 0xa9b   : > { %v11355_v25 = vpop.f32.mrf.mxu3 }
 0xa9c   : > { %5740 = vmatpush.bf16.msra.mxu3 %v8502_v46  ;;  %v9158_v46 = vld [vmem:[#allocation21 + $0x218] sm:$0xff] }
 0xa9d   : > { %5403 = vmatpush.bf16.msrb.mxu0 %v9158_v46  ;;  %v9209_v46 = vld [vmem:[#allocation18 + $0x2ec] sm:$0xf0] }
 0xaa0   : > { %5741 = vmatpush.bf16.msra.mxu3 %v8486_v4 }
 0xaa3   : > { %v11357_v16 = vpop.f32.mrf.mxu3 }
 0xaa4   : > { %5742 = vmatpush.bf16.msra.mxu3 %v8470_v60  ;;  %v9157_v60 = vld [vmem:[#allocation21 + $0x210] sm:$0xff] }
 0xaa5   : > { %5404 = vmatpush.bf16.msrb.mxu0 %v9157_v60 }
 0xaa7   : > { %5094 = vmatmul.bf16.gmra.mxu2 %v11259_v44 }
 0xaa8   : > { %5743 = vmatpush.bf16.msra.mxu3 %v8454_v2  ;;  %v9156_v2 = vld [vmem:[#allocation21 + $0x208] sm:$0xff] }
 0xaa9   : > { %5405 = vmatpush.bf16.msrb.mxu0 %v9156_v2 }
 0xaab   : > { %v11360_v26 = vpop.f32.mrf.mxu3 }
 0xaac   : > { %5744 = vmatpush.bf16.msra.mxu3 %v8438_v55 }
 0xaae   : > { %v4525_v42 = vpop.f32.mrf.mxu1 }
 0xab0   : > { %5745 = vmatpush.bf16.msra.mxu3 %v8422_v5  ;;  %v9217_v5 = vld [vmem:[#allocation18 + $0x3ec] sm:$0xf0] }
 0xab3   : > { %v11362_v37 = vpop.f32.mrf.mxu3 }
 0xab4   : > { %v4506_v51 = vpop.f32.mrf.mxu0 }
 0xab5   : > { %v11364_v45 = vadd.f32 %v4525_v42, %v4506_v51  ;;  %v9165_v42 = vld [vmem:[#allocation21 + $0x250] sm:$0xff] }
 0xab6   : > { %v11366_v52 = vpop.f32.mrf.mxu1  ;;  %5423 = vmatpush.bf16.msra.mxu1 %v9165_v42  ;;  %v9178_v42 = vld [vmem:[#allocation21 + $0x2b8] sm:$0xff] }
 0xab7   : > { %5437 = vmatpush.bf16.msra.mxu2 %v9178_v42 }
 0xaba   : > { %5424 = vmatpush.bf16.msra.mxu1 %v9164_v54 }
 0xabb   : > { %v5109_v3 = vpop.f32.mrf.mxu3 }
 0xabc   : > { %v11370_v49 = vpop.f32.mrf.mxu0  ;;  %v5110_v50 = vadd.f32 %v5109_v3, %v4878_v10 }
 0xabe   : > { %v4530_v34 = vpop.f32.mrf.mxu1  ;;  %v5122_v8 = vmax.f32 %v5110_v50, 0.0  ;;  %5425 = vmatpush.bf16.msra.mxu1 %v9163_v59 }
 0xac3   : > { %v5111_v24 = vpop.f32.mrf.mxu3 }
 0xac4   : > { %v5112_v32 = vadd.f32 %v5111_v24, %v4878_v10  ;;  %v4511_v36 = vpop.f32.mrf.mxu0  ;;  %v9155_v24 = vld [vmem:[#allocation21 + $0x200] sm:$0xff] }
 0xac5   : > { %v11373_v14 = vadd.f32 %v4530_v34, %v4511_v36  ;;  %v4528_v36 = vadd.f32 %v11366_v52, %v11370_v49  ;;  %5406 = vmatpush.bf16.msrb.mxu0 %v9155_v24  ;;  %v8505_v52 = vld [vmem:[#allocation18 + $0x330] sm:$0xf] }
 0xac6   : > { %v5126_v61 = vmax.f32 %v5112_v32, 0.0  ;;  %v4532_v15 = vpop.f32.mrf.mxu1  ;;  %v8507_v32 = vld [vmem:[#allocation18 + $0x370] sm:$0xf0]  ;;  %v9213_v49 = vld [vmem:[#allocation18 + $0x36c] sm:$0xf0] }
 0xac7   : > { %v8457_v24 = vld [vmem:[#allocation18 + $0x1b0] sm:$0xf] }
 0xac8   : > { %v5138_v35 = vpack.c.bf16 %v5126_v61, %v5122_v8 }
 0xaca   : > { %5464 = vmatmul.bf16.vlgmr.msrb.gmra.mxu3 %v5138_v35 }
 0xacb   : > { %v5114_v0 = vpop.f32.mrf.mxu3 }
 0xacc   : > { %v4513_v9 = vpop.f32.mrf.mxu0  ;;  %v5115_v11 = vadd.f32 %v5114_v0, %v4878_v10 }
 0xacd   : > { %v11375_v57 = vadd.f32 %v4532_v15, %v4513_v9  ;;  %v9207_v15 = vld [vmem:[#allocation18 + $0x2b4] sm:$0xf]  ;;  %v8506_v9 = vor.u32 %v9213_v49, %v8505_v52  ;;  %v9174_v49 = vld [vmem:[#allocation21 + $0x298] sm:$0xff] }
 0xace   : > { %v4793_v40 = vpop.f32.mrf.mxu1  ;;  %v5130_v4 = vmax.f32 %v5115_v11, 0.0  ;;  %v8494_v6 = vor.u32 %v9207_v15, %v8491_v1  ;;  %v9197_v15 = vld [vmem:[#allocation18 + $0x16c] sm:$0xf0]  ;;  %v11400_v1 = vperm.slane %v11368_v7, 0 }
 0xad3   : > { %v5116_v28 = vpop.f32.mrf.mxu3 }
 0xad4   : > { %v5117_v51 = vadd.f32 %v5116_v28, %v4878_v10  ;;  %v4774_v62 = vpop.f32.mrf.mxu0  ;;  %v8523_v10 = vld [vmem:[#allocation18 + $0x3f0] sm:$0xf0] }
 0xad5   : > { %v8526_v22 = vor.u32 %v9215_v12, %v8523_v10  ;;  %v9195_v12 = vld [vmem:[#allocation18 + $0x134] sm:$0xf]  ;;  %v11392_v10 = vperm.slane %v11368_v7, 1 }
 0xad6   : > { %v5134_v27 = vmax.f32 %v5117_v51, 0.0  ;;  %v4795_v19 = vpop.f32.mrf.mxu1 }
 0xad7   : > { %5700 = vmatpush.bf16.msrb.mxu1 %v8526_v22  ;;  %v9176_v22 = vld [vmem:[#allocation21 + $0x2a8] sm:$0xff] }
 0xad8   : > { %v5142_v3 = vpack.c.bf16 %v5134_v27, %v5130_v4  ;;  %v9199_v4 = vld [vmem:[#allocation18 + $0x1b4] sm:$0xf] }
 0xad9   : > { %v8459_v27 = vld [vmem:[#allocation18 + $0x1f0] sm:$0xf0] }
 0xada   : > { %5469 = vmatmul.bf16.gmra.mxu3 %v5142_v3  ;;  %v4544_v29 = vpop.f32.mrf.mxu2  ;;  %v8462_v3 = vor.u32 %v9199_v4, %v8459_v27 }
 0xadb   : > { %v4545_v56 = vadd.f32 %v4544_v29, %v11364_v45  ;;  %v8510_v45 = vor.u32 %v9211_v21, %v8507_v32  ;;  %v8473_v29 = vld [vmem:[#allocation18 + $0x230] sm:$0xf] }
 0xadc   : > { %v4776_v34 = vpop.f32.mrf.mxu0  ;;  %v9201_v21 = vld [vmem:[#allocation18 + $0x1ec] sm:$0xf0] }
 0xadd   : > { %v4564_v23 = vadd.f32 %v11343_v58, %v4545_v56  ;;  %5701 = vmatpush.bf16.msrb.mxu1 %v8510_v45  ;;  %v8522_v58 = vor.u32 %v9217_v5, %v8521_v48  ;;  %v9205_v56 = vld [vmem:[#allocation18 + $0x26c] sm:$0xf0]  ;;  %v8427_v48 = vld [vmem:[#allocation18 + $0xf0] sm:$0xf0] }
 0xade   : > { %v4798_v55 = vpop.f32.mrf.mxu1 }
 0xadf   : > { %v4775_v50 = vadd.f32 %v4774_v62, %v4564_v23  ;;  %5681 = vmatpush.bf16.msra.mxu0 %v8522_v58 }
 0xae1   : > { %v11381_v33 = vadd.f32 %v4793_v40, %v4775_v50  ;;  %5702 = vmatpush.bf16.msrb.mxu1 %v8494_v6  ;;  %v8475_v40 = vld [vmem:[#allocation18 + $0x270] sm:$0xf0] }
 0xae2   : > { %v4546_v38 = vpop.f32.mrf.mxu2  ;;  %v8478_v11 = vor.u32 %v9203_v31, %v8475_v40 }
 0xae3   : > { %v4547_v8 = vadd.f32 %v4546_v38, %v4528_v36  ;;  %5682 = vmatpush.bf16.msra.mxu0 %v8506_v9  ;;  %v8458_v36 = vor.u32 %v9201_v21, %v8457_v24  ;;  %v9191_v38 = vld [vmem:[#allocation18 + $0xb4] sm:$0xf]  ;;  %v8529_v21 = vld [vmem:[#allocation18 + $0x3b8] sm:$0xf] }
 0xae4   : > { %v4779_v61 = vpop.f32.mrf.mxu0  ;;  %v8430_v58 = vor.u32 %v9191_v38, %v8427_v48  ;;  %v8411_v9 = vld [vmem:[#allocation18 + $0x70] sm:$0xf0] }
 0xae5   : > { %v4566_v35 = vadd.f32 %v11346_v53, %v4547_v8  ;;  %v8489_v53 = vld [vmem:[#allocation18 + $0x2b0] sm:$0xf]  ;;  %5703 = vmatpush.bf16.msrb.mxu1 %v8478_v11 }
 0xae6   : > { %v11384_v0 = vpop.f32.mrf.mxu1  ;;  %v8490_v62 = vor.u32 %v9209_v46, %v8489_v53  ;;  %v8425_v53 = vld [vmem:[#allocation18 + $0xb0] sm:$0xf] }
 0xae7   : > { %v4777_v18 = vadd.f32 %v4776_v34, %v4566_v35  ;;  %v8474_v34 = vor.u32 %v9205_v56, %v8473_v29  ;;  %v9193_v46 = vld [vmem:[#allocation18 + $0xec] sm:$0xf0] }
 0xae8   : > { %5683 = vmatpush.bf16.msra.mxu0 %v8490_v62 }
 0xae9   : > { %v11386_v41 = vadd.f32 %v4795_v19, %v4777_v18  ;;  %v9177_v19 = vld [vmem:[#allocation21 + $0x2b0] sm:$0xff]  ;;  %5704 = vmatpush.bf16.msrb.mxu1 %v8462_v3  ;;  %v9187_v18 = vld [vmem:[#allocation18 + $0x34] sm:$0xf] }
 0xaea   : > { %5746 = vmatmul.bf16.vlgmr.msra.gmra.mxu3 %v11234_v43  ;;  %v4549_v28 = vpop.f32.mrf.mxu2  ;;  %5438 = vmatpush.bf16.msra.mxu2 %v9177_v19  ;;  %v8414_v42 = vor.u32 %v9187_v18, %v8411_v9  ;;  %v9189_v19 = vld [vmem:[#allocation18 + $0x6c] sm:$0xf0] }
 0xaeb   : > { %v4550_v51 = vadd.f32 %v4549_v28, %v11373_v14  ;;  %v8443_v14 = vld [vmem:[#allocation18 + $0x170] sm:$0xf0] }
 0xaec   : > { %v4781_v54 = vpop.f32.mrf.mxu0  ;;  %5684 = vmatpush.bf16.msra.mxu0 %v8474_v34 }
 0xaed   : > { %v4569_v60 = vadd.f32 %v11350_v30, %v4550_v51  ;;  %v8446_v30 = vor.u32 %v9195_v12, %v8443_v14 }
 0xaee   : > { %v5071_v59 = vpop.f32.mrf.mxu1  ;;  %5439 = vmatpush.bf16.msra.mxu2 %v9176_v22 }
 0xaef   : > { %v4780_v2 = vadd.f32 %v4779_v61, %v4569_v60  ;;  %5705 = vmatpush.bf16.msrb.mxu1 %v8446_v30  ;;  %v5072_v5 = vadd.f32 %v5071_v59, %v11392_v10  ;;  %v8441_v61 = vld [vmem:[#allocation18 + $0x130] sm:$0xf] }
 0xaf0   : > { %5685 = vmatpush.bf16.msra.mxu0 %v8458_v36  ;;  %v8409_v60 = vld [vmem:[#allocation18 + $0x30] sm:$0xf] }
 0xaf1   : > { %v11394_v23 = vadd.f32 %v4798_v55, %v4780_v2  ;;  %v9175_v55 = vld [vmem:[#allocation21 + $0x2a0] sm:$0xff]  ;;  %v5120_v31 = vmax.f32 %v5072_v5, 0.0  ;;  %v8410_v59 = vor.u32 %v9189_v19, %v8409_v60  ;;  %v9172_v2 = vld [vmem:[#allocation21 + $0x288] sm:$0xff] }
 0xaf2   : > { %v4551_v50 = vpop.f32.mrf.mxu2  ;;  %5440 = vmatpush.bf16.msra.mxu2 %v9175_v55  ;;  %v9171_v30 = vld [vmem:[#allocation21 + $0x280] sm:$0xff]  ;;  %v8417_v60 = vld [vmem:[#allocation18 + $0x38] sm:$0xf] }
 0xaf3   : > { %v4552_v32 = vadd.f32 %v4551_v50, %v11375_v57  ;;  %v8442_v57 = vor.u32 %v9197_v15, %v8441_v61  ;;  %5706 = vmatpush.bf16.msrb.mxu1 %v8430_v58  ;;  %v8513_v58 = vld [vmem:[#allocation18 + $0x338] sm:$0xf] }
 0xaf4   : > { %v5052_v45 = vpop.f32.mrf.mxu0  ;;  %v9214_v61 = vld [vmem:[#allocation18 + $0x374] sm:$0xf0] }
 0xaf5   : > { %v4571_v8 = vadd.f32 %v11352_v17, %v4552_v32  ;;  %5686 = vmatpush.bf16.msra.mxu0 %v8442_v57  ;;  %v5053_v11 = vadd.f32 %v5052_v45, %v11400_v1  ;;  %v9218_v32 = vld [vmem:[#allocation18 + $0x3f4] sm:$0xf0] }
 0xaf6   : > { %v5073_v35 = vpop.f32.mrf.mxu1  ;;  %5441 = vmatpush.bf16.msra.mxu2 %v9174_v49  ;;  %v8530_v38 = vor.u32 %v9218_v32, %v8529_v21  ;;  %v9210_v57 = vld [vmem:[#allocation18 + $0x2f4] sm:$0xf0]  ;;  %v9250_v32 = vld [vmem:[#allocation21 + $0x3f8] sm:$0xff] }
 0xaf7   : > { %v5074_v6 = vadd.f32 %v5073_v35, %v11392_v10  ;;  %v4782_v52 = vadd.f32 %v4781_v54, %v4571_v8  ;;  %5707 = vmatpush.bf16.msrb.mxu1 %v8414_v42  ;;  %v8426_v54 = vor.u32 %v9193_v46, %v8425_v53  ;;  %v5119_v29 = vmax.f32 %v5053_v11, 0.0  ;;  %v8497_v35 = vld [vmem:[#allocation18 + $0x2b8] sm:$0xf]  ;;  %6094 = vmatpush.bf16.msrb.mxu3 %v9250_v32 }
 0xaf8   : > { %v8498_v49 = vor.u32 %v9210_v57, %v8497_v35  ;;  %v8465_v11 = vld [vmem:[#allocation18 + $0x1b8] sm:$0xf]  ;;  %v9233_v35 = vld [vmem:[#allocation21 + $0x370] sm:$0xff]  ;;  %v11437_v57 = vld [vmem:[#allocation19 + $0xc] sm:$0xf] }
 0xaf9   : > { %v5124_v17 = vmax.f32 %v5074_v6, 0.0  ;;  %v4801_v40 = vadd.f32 %v11384_v0, %v4782_v52  ;;  %5687 = vmatpush.bf16.msra.mxu0 %v8426_v54  ;;  %v9173_v0 = vld [vmem:[#allocation21 + $0x290] sm:$0xff]  ;;  %v8449_v53 = vld [vmem:[#allocation18 + $0x138] sm:$0xf] }
 0xafa   : > { %5751 = vmatmul.bf16.gmra.mxu3 %v11259_v44  ;;  %v4812_v28 = vpop.f32.mrf.mxu2  ;;  %5442 = vmatpush.bf16.msra.mxu2 %v9173_v0  ;;  %v9198_v46 = vld [vmem:[#allocation18 + $0x174] sm:$0xf0]  ;;  %v4877_v0 = vperm.slane %v11368_v7, 2 }
 0xafb   : > { %v5136_v51 = vpack.c.bf16 %v5124_v17, %v5120_v31  ;;  %v11407_v62 = vadd.f32 %v4812_v28, %v11381_v33  ;;  %v9206_v17 = vld [vmem:[#allocation18 + $0x274] sm:$0xf0]  ;;  %v8450_v54 = vor.u32 %v9198_v46, %v8449_v53  ;;  %v9230_v53 = vld [vmem:[#allocation21 + $0x358] sm:$0xff] }
 0xafc   : > { %v5054_v4 = vpop.f32.mrf.mxu0  ;;  %v9190_v19 = vld [vmem:[#allocation18 + $0x74] sm:$0xf0] }
 0xafd   : > { %v5055_v27 = vadd.f32 %v5054_v4, %v11400_v1  ;;  %5426 = vmatmul.bf16.vlgmr.msra.gmra.mxu1 %v5136_v51  ;;  %5688 = vmatpush.bf16.msra.mxu0 %v8410_v59  ;;  %v8433_v4 = vld [vmem:[#allocation18 + $0xb8] sm:$0xf] }
 0xafe   : > { %v5076_v3 = vpop.f32.mrf.mxu1  ;;  %5443 = vmatpush.bf16.msra.mxu2 %v9172_v2 }
 0xaff   : > { %v5123_v56 = vmax.f32 %v5055_v27, 0.0  ;;  %v5077_v22 = vadd.f32 %v5076_v3, %v11392_v10  ;;  %v9194_v27 = vld [vmem:[#allocation18 + $0xf4] sm:$0xf0] }
 0xb01   : > { %v5135_v34 = vpack.c.bf16 %v5123_v56, %v5119_v29  ;;  %v5128_v36 = vmax.f32 %v5077_v22, 0.0  ;;  %v8418_v56 = vor.u32 %v9190_v19, %v8417_v60  ;;  %v9228_v19 = vld [vmem:[#allocation21 + $0x348] sm:$0xff] }
 0xb02   : > { %v4814_v33 = vpop.f32.mrf.mxu2  ;;  %5444 = vmatpush.bf16.msra.mxu2 %v9171_v30 }
 0xb03   : > { %v11411_v12 = vadd.f32 %v4814_v33, %v11386_v41  ;;  %5407 = vmatmul.bf16.vlgmr.msrb.gmra.mxu0 %v5135_v34 }
 0xb04   : > { %v5057_v14 = vpop.f32.mrf.mxu0 }
 0xb05   : > { %v5058_v5 = vadd.f32 %v5057_v14, %v11400_v1 }
 0xb06   : > { %v5078_v50 = vpop.f32.mrf.mxu1  ;;  %5719 = vmatpush.bf16.msrb.mxu2 %v8530_v38  ;;  %v9247_v38 = vld [vmem:[#allocation21 + $0x3e0] sm:$0xff] }
 0xb07   : > { %v5079_v24 = vadd.f32 %v5078_v50, %v11392_v10  ;;  %v8514_v10 = vor.u32 %v9214_v61, %v8513_v58  ;;  %v5127_v6 = vmax.f32 %v5058_v5, 0.0  ;;  %v9243_v61 = vld [vmem:[#allocation21 + $0x3c0] sm:$0xff] }
 0xb09   : > { %v5132_v45 = vmax.f32 %v5079_v24, 0.0 }
 0xb0a   : > { %v4817_v48 = vpop.f32.mrf.mxu2  ;;  %5720 = vmatpush.bf16.msrb.mxu2 %v8514_v10 }
 0xb0b   : > { %v5140_v41 = vpack.c.bf16 %v5132_v45, %v5128_v36  ;;  %v11417_v8 = vadd.f32 %v4817_v48, %v11394_v23  ;;  %v8481_v23 = vld [vmem:[#allocation18 + $0x238] sm:$0xf]  ;;  %v9249_v36 = vld [vmem:[#allocation21 + $0x3f0] sm:$0xff]  ;;  %v9246_v48 = vld [vmem:[#allocation21 + $0x3d8] sm:$0xff] }
 0xb0c   : > { %v5059_v55 = vpop.f32.mrf.mxu0  ;;  %v8482_v42 = vor.u32 %v9206_v17, %v8481_v23  ;;  %6095 = vmatpush.bf16.msrb.mxu3 %v9249_v36  ;;  %v9248_v45 = vld [vmem:[#allocation21 + $0x3e8] sm:$0xff] }
 0xb0d   : > { %v5060_v15 = vadd.f32 %v5059_v55, %v11400_v1  ;;  %5431 = vmatmul.bf16.gmra.mxu1 %v5140_v41  ;;  %v9202_v1 = vld [vmem:[#allocation18 + $0x1f4] sm:$0xf0]  ;;  %v9245_v41 = vld [vmem:[#allocation21 + $0x3d0] sm:$0xff] }
 0xb0e   : > { %5721 = vmatpush.bf16.msrb.mxu2 %v8498_v49  ;;  %v8466_v28 = vor.u32 %v9202_v1, %v8465_v11  ;;  %v9244_v55 = vld [vmem:[#allocation21 + $0x3c8] sm:$0xff]  ;;  %v5516_v49 = vperm.slane %v11437_v57, 3 }
 0xb0f   : > { %v5131_v52 = vmax.f32 %v5060_v15, 0.0  ;;  %v9224_v11 = vld [vmem:[#allocation21 + $0x328] sm:$0xff] }
 0xb10   : > { %6096 = vmatpush.bf16.msrb.mxu3 %v9248_v45 }
 0xb11   : > { %v5139_v18 = vpack.c.bf16 %v5131_v52, %v5127_v6  ;;  %v9226_v52 = vld [vmem:[#allocation21 + $0x338] sm:$0xff] }
 0xb12   : > { %v4819_v9 = vpop.f32.mrf.mxu2  ;;  %5722 = vmatpush.bf16.msrb.mxu2 %v8482_v42  ;;  %6037 = vmatpush.bf16.msrb.mxu0 %v9226_v52  ;;  %v9240_v52 = vld [vmem:[#allocation21 + $0x3a8] sm:$0xff] }
 0xb13   : > { %v11420_v31 = vadd.f32 %v4819_v9, %v4801_v40  ;;  %5412 = vmatmul.bf16.gmra.mxu0 %v5139_v18  ;;  %v8434_v40 = vor.u32 %v9194_v27, %v8433_v4  ;;  %v9232_v18 = vld [vmem:[#allocation21 + $0x368] sm:$0xff]  ;;  %v9225_v9 = vld [vmem:[#allocation21 + $0x330] sm:$0xff] }
 0xb14   : > { %6097 = vmatpush.bf16.msrb.mxu3 %v9247_v38  ;;  %v9229_v27 = vld [vmem:[#allocation21 + $0x350] sm:$0xff] }
 0xb16   : > { %5723 = vmatpush.bf16.msrb.mxu2 %v8466_v28  ;;  %6038 = vmatpush.bf16.msrb.mxu0 %v9225_v9 }
 0xb18   : > { %6098 = vmatpush.bf16.msrb.mxu3 %v9246_v48 }
 0xb1a   : > { %v5090_v51 = vpop.f32.mrf.mxu2  ;;  %5724 = vmatpush.bf16.msrb.mxu2 %v8450_v54  ;;  %6039 = vmatpush.bf16.msrb.mxu0 %v9224_v11  ;;  %v9223_v54 = vld [vmem:[#allocation21 + $0x320] sm:$0xff] }
 0xb1b   : > { %v5091_v3 = vadd.f32 %v5090_v51, %v4877_v0  ;;  %v9239_v11 = vld [vmem:[#allocation21 + $0x3a0] sm:$0xff] }
 0xb1c   : > { %6099 = vmatpush.bf16.msrb.mxu3 %v9245_v41 }
 0xb1d   : > { %5708 = vmatmul.bf16.vlgmr.msrb.gmra.mxu1 %v11234_v43  ;;  %v5121_v2 = vmax.f32 %v5091_v3, 0.0 }
 0xb1e   : > { %5725 = vmatpush.bf16.msrb.mxu2 %v8434_v40  ;;  %6040 = vmatpush.bf16.msrb.mxu0 %v9223_v54 }
 0xb20   : > { %6100 = vmatpush.bf16.msrb.mxu3 %v9244_v55  ;;  %v9242_v55 = vld [vmem:[#allocation21 + $0x3b8] sm:$0xff] }
 0xb22   : > { %v5092_v59 = vpop.f32.mrf.mxu2  ;;  %5726 = vmatpush.bf16.msrb.mxu2 %v8418_v56 }
 0xb23   : > { %v5093_v29 = vadd.f32 %v5092_v59, %v4877_v0  ;;  %5689 = vmatmul.bf16.vlgmr.msra.gmra.mxu0 %v11234_v43  ;;  %v9221_v59 = vld [vmem:[#allocation21 + $0x310] sm:$0xff] }
 0xb24   : > { %6101 = vmatpush.bf16.msrb.mxu3 %v9243_v61  ;;  %v5514_v61 = vperm.slane %v11437_v57, 1 }
 0xb25   : > { %v5125_v34 = vmax.f32 %v5093_v29, 0.0 }
 0xb27   : > { %v5137_v33 = vpack.c.bf16 %v5125_v34, %v5121_v2  ;;  %v9227_v2 = vld [vmem:[#allocation21 + $0x340] sm:$0xff] }
 0xb29   : > { %5445 = vmatmul.bf16.vlgmr.msra.gmra.mxu2 %v5137_v33  ;;  %v9220_v33 = vld [vmem:[#allocation21 + $0x308] sm:$0xff] }
 0xb2a   : > { %v5095_v14 = vpop.f32.mrf.mxu2  ;;  %6075 = vmatpush.bf16.msra.mxu2 %v9242_v55 }
 0xb2b   : > { %v5096_v7 = vadd.f32 %v5095_v14, %v4877_v0 }
 0xb2d   : > { %5713 = vmatmul.bf16.gmra.mxu1 %v11259_v44  ;;  %v5129_v50 = vmax.f32 %v5096_v7, 0.0 }
 0xb32   : > { %v5097_v22 = vpop.f32.mrf.mxu2 }
 0xb33   : > { %v5098_v30 = vadd.f32 %v5097_v22, %v4877_v0  ;;  %5694 = vmatmul.bf16.gmra.mxu0 %v11259_v44  ;;  %v9222_v0 = vld [vmem:[#allocation21 + $0x318] sm:$0xff] }
 0xb34   : > { %6041 = vmatpush.bf16.msrb.mxu0 %v9222_v0 }
 0xb35   : > { %v5133_v24 = vmax.f32 %v5098_v30, 0.0 }
 0xb37   : > { %v5141_v21 = vpack.c.bf16 %v5133_v24, %v5129_v50 }
 0xb38   : > { %6042 = vmatpush.bf16.msrb.mxu0 %v9221_v59 }
 0xb39   : > { %5450 = vmatmul.bf16.gmra.mxu2 %v5141_v21  ;;  %v9219_v21 = vld [vmem:[#allocation21 + $0x300] sm:$0xff] }
 0xb3c   : > { %6043 = vmatpush.bf16.msrb.mxu0 %v9220_v33 }
 0xb40   : > { %6044 = vmatpush.bf16.msrb.mxu0 %v9219_v21 }
 0xb49   : > { %5727 = vmatmul.bf16.vlgmr.msrb.gmra.mxu2 %v11234_v43  ;;  %v9234_v43 = vld [vmem:[#allocation21 + $0x378] sm:$0xff] }
 0xb4a   : > { %6056 = vmatpush.bf16.msra.mxu1 %v9234_v43  ;;  %v9241_v43 = vld [vmem:[#allocation21 + $0x3b0] sm:$0xff] }
 0xb4b   : > { %6076 = vmatpush.bf16.msra.mxu2 %v9241_v43 }
 0xb4d   : > { %v11428_v5 = vpop.f32.mrf.mxu3 }
 0xb4e   : > { %6057 = vmatpush.bf16.msra.mxu1 %v9233_v35 }
 0xb4f   : > { %6077 = vmatpush.bf16.msra.mxu2 %v9240_v52 }
 0xb52   : > { %6058 = vmatpush.bf16.msra.mxu1 %v9232_v18  ;;  %v5513_v18 = vperm.slane %v11437_v57, 0 }
 0xb53   : > { %6078 = vmatpush.bf16.msra.mxu2 %v9239_v11 }
 0xb55   : > { %v11430_v58 = vpop.f32.mrf.mxu3 }
 0xb59   : > { %5732 = vmatmul.bf16.gmra.mxu2 %v11259_v44  ;;  %v9231_v44 = vld [vmem:[#allocation21 + $0x360] sm:$0xff] }
 0xb5a   : > { %6059 = vmatpush.bf16.msra.mxu1 %v9231_v44 }
 0xb5d   : > { %v11433_v15 = vpop.f32.mrf.mxu3 }
 0xb5e   : > { %6060 = vmatpush.bf16.msra.mxu1 %v9230_v53  ;;  %v9238_v53 = vld [vmem:[#allocation21 + $0x398] sm:$0xff] }
 0xb5f   : > { %6079 = vmatpush.bf16.msra.mxu2 %v9238_v53 }
 0xb62   : > { %6061 = vmatpush.bf16.msra.mxu1 %v9229_v27 }
 0xb65   : > { %v11435_v10 = vpop.f32.mrf.mxu3 }
 0xb66   : > { %6062 = vmatpush.bf16.msra.mxu1 %v9228_v19 }
 0xb6a   : > { %6063 = vmatpush.bf16.msra.mxu1 %v9227_v2  ;;  %v9236_v2 = vld [vmem:[#allocation21 + $0x388] sm:$0xff] }
 0xb6d   : > { %v5747_v6 = vpop.f32.mrf.mxu3 }
 0xb6e   : > { %v5748_v23 = vadd.f32 %v5747_v6, %v5516_v49 }
 0xb70   : > { %v5760_v1 = vmax.f32 %v5748_v23, 0.0 }
 0xb75   : > { %v5749_v17 = vpop.f32.mrf.mxu3 }
 0xb76   : > { %v5750_v42 = vadd.f32 %v5749_v17, %v5516_v49 }
 0xb78   : > { %v5764_v28 = vmax.f32 %v5750_v42, 0.0 }
 0xb7a   : > { %v5776_v46 = vpack.c.bf16 %v5764_v28, %v5760_v1  ;;  %v5427_v51 = vpop.f32.mrf.mxu1 }
 0xb7c   : > { %6102 = vmatmul.bf16.vlgmr.msrb.gmra.mxu3 %v5776_v46 }
 0xb7d   : > { %v5752_v4 = vpop.f32.mrf.mxu3 }
 0xb7e   : > { %v5753_v29 = vadd.f32 %v5752_v4, %v5516_v49 }
 0xb80   : > { %v5408_v40 = vpop.f32.mrf.mxu0  ;;  %v5768_v14 = vmax.f32 %v5753_v29, 0.0 }
 0xb81   : > { %v5428_v60 = vadd.f32 %v5427_v51, %v5408_v40  ;;  %v4832_v40 = vadd.f32 %v11355_v25, %v11407_v62 }
 0xb82   : > { %v5429_v3 = vpop.f32.mrf.mxu1 }
 0xb85   : > { %v5754_v56 = vpop.f32.mrf.mxu3 }
 0xb86   : > { %v5755_v34 = vadd.f32 %v5754_v56, %v5516_v49 }
 0xb88   : > { %v5772_v7 = vmax.f32 %v5755_v34, 0.0  ;;  %v5410_v22 = vpop.f32.mrf.mxu0 }
 0xb89   : > { %v5430_v30 = vadd.f32 %v5429_v3, %v5410_v22  ;;  %v9237_v3 = vld [vmem:[#allocation21 + $0x390] sm:$0xff] }
 0xb8a   : > { %v5780_v50 = vpack.c.bf16 %v5772_v7, %v5768_v14  ;;  %v5432_v24 = vpop.f32.mrf.mxu1  ;;  %6080 = vmatpush.bf16.msra.mxu2 %v9237_v3 }
 0xb8c   : > { %6107 = vmatmul.bf16.gmra.mxu3 %v5780_v50 }
 0xb8e   : > { %6081 = vmatpush.bf16.msra.mxu2 %v9236_v2 }
 0xb90   : > { %v5413_v32 = vpop.f32.mrf.mxu0 }
 0xb91   : > { %v11440_v36 = vadd.f32 %v5432_v24, %v5413_v32  ;;  %v9235_v24 = vld [vmem:[#allocation21 + $0x380] sm:$0xff] }
 0xb92   : > { %v5434_v45 = vpop.f32.mrf.mxu1  ;;  %6082 = vmatpush.bf16.msra.mxu2 %v9235_v24 }
 0xb98   : > { %v5415_v38 = vpop.f32.mrf.mxu0 }
 0xb99   : > { %v11442_v48 = vadd.f32 %v5434_v45, %v5415_v38 }
 0xb9a   : > { %v5709_v41 = vpop.f32.mrf.mxu1 }
 0xb9b   : > { %v5710_v6 = vadd.f32 %v5709_v41, %v5514_v61 }
 0xb9d   : > { %v5758_v44 = vmax.f32 %v5710_v6, 0.0  ;;  %v4839_v6 = vadd.f32 %v11362_v37, %v11420_v31 }
 0xba0   : > { %v5690_v35 = vpop.f32.mrf.mxu0 }
 0xba1   : > { %v5691_v17 = vadd.f32 %v5690_v35, %v5513_v18 }
 0xba2   : > { %v5711_v49 = vpop.f32.mrf.mxu1 }
 0xba3   : > { %v5712_v9 = vadd.f32 %v5711_v49, %v5514_v61  ;;  %v5757_v51 = vmax.f32 %v5691_v17, 0.0 }
 0xba5   : > { %v5762_v23 = vmax.f32 %v5712_v9, 0.0  ;;  %v5515_v9 = vperm.slane %v11437_v57, 2 }
 0xba7   : > { %v5774_v42 = vpack.c.bf16 %v5762_v23, %v5758_v44 }
 0xba8   : > { %v5692_v1 = vpop.f32.mrf.mxu0 }
 0xba9   : > { %v5693_v28 = vadd.f32 %v5692_v1, %v5513_v18  ;;  %6064 = vmatmul.bf16.vlgmr.msra.gmra.mxu1 %v5774_v42 }
 0xbaa   : > { %v5714_v46 = vpop.f32.mrf.mxu1 }
 0xbab   : > { %v5761_v54 = vmax.f32 %v5693_v28, 0.0  ;;  %v5715_v29 = vadd.f32 %v5714_v46, %v5514_v61 }
 0xbac   : > { %v5446_v4 = vpop.f32.mrf.mxu2 }
 0xbad   : > { %v5773_v27 = vpack.c.bf16 %v5761_v54, %v5757_v51  ;;  %v5447_v0 = vadd.f32 %v5446_v4, %v5428_v60  ;;  %v5766_v7 = vmax.f32 %v5715_v29, 0.0  ;;  %v4834_v60 = vadd.f32 %v11357_v16, %v11411_v12 }
 0xbae   : > { %v4837_v16 = vadd.f32 %v11360_v26, %v11417_v8 }
 0xbaf   : > { %v5466_v19 = vadd.f32 %v11428_v5, %v5447_v0  ;;  %6045 = vmatmul.bf16.vlgmr.msrb.gmra.mxu0 %v5773_v27  ;;  %v9553_v0 = vld [vmem:[#allocation22] ss:$0 sm:$0xff] }
 0xbb0   : > { %v5695_v59 = vpop.f32.mrf.mxu0 }
 0xbb1   : > { %v5475_v56 = vadd.f32 %v5466_v19, %v4832_v40  ;;  %v5696_v25 = vadd.f32 %v5695_v59, %v5513_v18 }
 0xbb2   : > { %v5716_v34 = vpop.f32.mrf.mxu1 }
 0xbb3   : > { %v5717_v33 = vadd.f32 %v5716_v34, %v5514_v61  ;;  %v5765_v38 = vmax.f32 %v5696_v25, 0.0 }
 0xbb4   : > { %v5448_v14 = vpop.f32.mrf.mxu2 }
 0xbb5   : > { %v5770_v22 = vmax.f32 %v5717_v33, 0.0  ;;  %v5449_v50 = vadd.f32 %v5448_v14, %v5430_v30 }
 0xbb7   : > { %v5778_v62 = vpack.c.bf16 %v5770_v22, %v5766_v7  ;;  %v5468_v5 = vadd.f32 %v11430_v58, %v5449_v50 }
 0xbb8   : > { %v5697_v21 = vpop.f32.mrf.mxu0 }
 0xbb9   : > { %v11452_v32 = vadd.f32 %v5468_v5, %v4834_v60  ;;  %v5698_v45 = vadd.f32 %v5697_v21, %v5513_v18  ;;  %6069 = vmatmul.bf16.gmra.mxu1 %v5778_v62 }
 0xbbb   : > { %v5769_v41 = vmax.f32 %v5698_v45, 0.0 }
 0xbbc   : > { %v5451_v55 = vpop.f32.mrf.mxu2 }
 0xbbd   : > { %v5777_v61 = vpack.c.bf16 %v5769_v41, %v5765_v38  ;;  %v5452_v30 = vadd.f32 %v5451_v55, %v11440_v36 }
 0xbbf   : > { %v5471_v12 = vadd.f32 %v11433_v15, %v5452_v30  ;;  %6050 = vmatmul.bf16.gmra.mxu0 %v5777_v61 }
 0xbc1   : > { %v5477_v58 = vadd.f32 %v5471_v12, %v4837_v16 }
 0xbc4   : > { %v5453_v43 = vpop.f32.mrf.mxu2 }
 0xbc5   : > { %v5454_v35 = vadd.f32 %v5453_v43, %v11442_v48 }
 0xbc7   : > { %v5473_v52 = vadd.f32 %v11435_v10, %v5454_v35 }
 0xbc9   : > { %v5478_v49 = vadd.f32 %v5473_v52, %v4839_v6 }
 0xbcc   : > { %v5728_v18 = vpop.f32.mrf.mxu2 }
 0xbcd   : > { %v5729_v36 = vadd.f32 %v5728_v18, %v5515_v9 }
 0xbcf   : > { %v5759_v26 = vmax.f32 %v5729_v36, 0.0 }
 0xbd4   : > { %v5730_v44 = vpop.f32.mrf.mxu2 }
 0xbd5   : > { %v5731_v23 = vadd.f32 %v5730_v44, %v5515_v9 }
 0xbd7   : > { %v5763_v8 = vmax.f32 %v5731_v23, 0.0 }
 0xbd9   : > { %v5775_v15 = vpack.c.bf16 %v5763_v8, %v5759_v26 }
 0xbdb   : > { %6083 = vmatmul.bf16.vlgmr.msra.gmra.mxu2 %v5775_v15 }
 0xbdc   : > { %v5733_v17 = vpop.f32.mrf.mxu2 }
 0xbdd   : > { %v5734_v42 = vadd.f32 %v5733_v17, %v5515_v9 }
 0xbdf   : > { %v5767_v1 = vmax.f32 %v5734_v42, 0.0 }
 0xbe4   : > { %v5735_v11 = vpop.f32.mrf.mxu2 }
 0xbe5   : > { %v5736_v48 = vadd.f32 %v5735_v11, %v5515_v9  ;;  %v9257_v11 = vld [vmem:[#allocation28 + $0x30] sm:$0xff] }
 0xbe7   : > { %v5771_v28 = vmax.f32 %v5736_v48, 0.0  ;;  %v9256_v48 = vld [vmem:[#allocation28 + $0x28] sm:$0xff] }
 0xbe9   : > { %v5779_v37 = vpack.c.bf16 %v5771_v28, %v5767_v1  ;;  %v9255_v1 = vld [vmem:[#allocation28 + $0x20] sm:$0xff]  ;;  %v9254_v28 = vld [vmem:[#allocation28 + $0x18] sm:$0xff] }
 0xbeb   : > { %6088 = vmatmul.bf16.gmra.mxu2 %v5779_v37  ;;  %v9274_v37 = vld [vmem:[#allocation28 + $0xb8] sm:$0xff] }
 0xbec   : > { %6449 = vmatpush.bf16.msrb.mxu2 %v9274_v37 }
 0xbff   : > { %v6103_v53 = vpop.f32.mrf.mxu3 }
 0xc07   : > { %v6105_v19 = vpop.f32.mrf.mxu3 }
 0xc0f   : > { %v6108_v7 = vpop.f32.mrf.mxu3 }
 0xc17   : > { %v6110_v61 = vpop.f32.mrf.mxu3 }
 0xc26   : > { %v6065_v10 = vpop.f32.mrf.mxu1 }
 0xc2c   : > { %v6046_v31 = vpop.f32.mrf.mxu0 }
 0xc2d   : > { %v6066_v46 = vadd.f32 %v6065_v10, %v6046_v31  ;;  %v9253_v31 = vld [vmem:[#allocation28 + $0x10] sm:$0xff] }
 0xc2e   : > { %v6067_v4 = vpop.f32.mrf.mxu1  ;;  %v9273_v10 = vld [vmem:[#allocation28 + $0xb0] sm:$0xff] }
 0xc2f   : > { %6450 = vmatpush.bf16.msrb.mxu2 %v9273_v10 }
 0xc34   : > { %v6048_v57 = vpop.f32.mrf.mxu0 }
 0xc35   : > { %v6068_v33 = vadd.f32 %v6067_v4, %v6048_v57  ;;  %v9252_v57 = vld [vmem:[#allocation28 + $0x8] sm:$0xff]  ;;  %v9265_v4 = vld [vmem:[#allocation28 + $0x70] sm:$0xff] }
 0xc36   : > { %v6070_v34 = vpop.f32.mrf.mxu1 }
 0xc3c   : > { %v6051_v2 = vpop.f32.mrf.mxu0 }
 0xc3d   : > { %v6071_v14 = vadd.f32 %v6070_v34, %v6051_v2  ;;  %v9279_v34 = vld [vmem:[#allocation28 + $0xe0] sm:$0xff] }
 0xc3e   : > { %v6072_v21 = vpop.f32.mrf.mxu1 }
 0xc44   : > { %v6053_v62 = vpop.f32.mrf.mxu0 }
 0xc5e   : > { %v6084_v51 = vpop.f32.mrf.mxu2 }
 0xc5f   : > { %v6085_v54 = vadd.f32 %v6084_v51, %v6066_v46  ;;  %v9266_v46 = vld [vmem:[#allocation28 + $0x78] sm:$0xff]  ;;  %v9272_v51 = vld [vmem:[#allocation28 + $0xa8] sm:$0xff] }
 0xc60   : > { %6310 = vmatpush.bf16.msra.mxu0 %v9266_v46  ;;  %6451 = vmatpush.bf16.msrb.mxu2 %v9272_v51 }
 0xc61   : > { %v6104_v27 = vadd.f32 %v6103_v53, %v6085_v54  ;;  %v9282_v53 = vld [vmem:[#allocation28 + $0xf8] sm:$0xff]  ;;  %v9281_v54 = vld [vmem:[#allocation28 + $0xf0] sm:$0xff] }
 0xc62   : > { %6528 = vmatpush.bf16.msra.mxu3 %v9282_v53 }
 0xc63   : > { %v6113_v40 = vadd.f32 %v6104_v27, %v5475_v56  ;;  %v6073_v56 = vadd.f32 %v6072_v21, %v6053_v62  ;;  %v9251_v27 = vld [vmem:[#allocation28] sm:$0xff]  ;;  %v9261_v62 = vld [vmem:[#allocation28 + $0x50] sm:$0xff] }
 0xc64   : > { %6311 = vmatpush.bf16.msra.mxu0 %v9265_v4 }
 0xc65   : > { %v6121_v3 = vadd.f32 %v9553_v0, %v6113_v40  ;;  %v9280_v40 = vld [vmem:[#allocation28 + $0xe8] sm:$0xff] }
 0xc66   : > { %v6086_v59 = vpop.f32.mrf.mxu2  ;;  %6529 = vmatpush.bf16.msra.mxu3 %v9281_v54 }
 0xc67   : > { %v6125_v29 = vadd.f32 %v6121_v3, %v11224_v13  ;;  %v6087_v50 = vadd.f32 %v6086_v59, %v6068_v33  ;;  %v9270_v3 = vld [vmem:[#allocation28 + $0x98] sm:$0xff]  ;;  %v9263_v33 = vld [vmem:[#allocation28 + $0x60] sm:$0xff] }
 0xc69   : > { %6131 = vadd.xlane.f32.xlu1 %v6125_v29  ;;  %v6106_v5 = vadd.f32 %v6105_v19, %v6087_v50  ;;  %v9264_v19 = vld [vmem:[#allocation28 + $0x68] sm:$0xff] }
 0xc6a   : > { %6530 = vmatpush.bf16.msra.mxu3 %v9280_v40  ;;  %6312 = vmatpush.bf16.msra.mxu0 %v9264_v19  ;;  %v9268_v50 = vld [vmem:[#allocation28 + $0x88] sm:$0xff] }
 0xc6b   : > { %v6114_v41 = vadd.f32 %v6106_v5, %v11452_v32  ;;  %v9267_v5 = vld [vmem:[#allocation28 + $0x80] sm:$0xff] }
 0xc6d   : > { %v6122_v12 = vadd.f32 %v9553_v0, %v6114_v41 }
 0xc6e   : > { %v6089_v22 = vpop.f32.mrf.mxu2  ;;  %6531 = vmatpush.bf16.msra.mxu3 %v9279_v34  ;;  %6313 = vmatpush.bf16.msra.mxu0 %v9263_v33 }
 0xc6f   : > { %v6090_v60 = vadd.f32 %v6089_v22, %v6071_v14  ;;  %v6126_v6 = vadd.f32 %v6122_v12, %v11227_v20  ;;  %v9269_v14 = vld [vmem:[#allocation28 + $0x90] sm:$0xff]  ;;  %v9262_v22 = vld [vmem:[#allocation28 + $0x58] sm:$0xff] }
 0xc71   : > { %v6109_v25 = vadd.f32 %v6108_v7, %v6090_v60  ;;  %v9278_v7 = vld [vmem:[#allocation28 + $0xd8] sm:$0xff] }
 0xc72   : > { %6532 = vmatpush.bf16.msra.mxu3 %v9278_v7  ;;  %6314 = vmatpush.bf16.msra.mxu0 %v9262_v22 }
 0xc73   : > { %v6115_v24 = vadd.f32 %v6109_v25, %v5477_v58  ;;  %v9258_v58 = vld [vmem:[#allocation28 + $0x38] sm:$0xff]  ;;  %v9277_v25 = vld [vmem:[#allocation28 + $0xd0] sm:$0xff] }
 0xc74   : > { %6371 = vmatpush.bf16.msrb.mxu1 %v9258_v58  ;;  %v9555_v58 = vld [vmem:[#allocation25] ss:$0 sm:$0xff] }
 0xc75   : > { %v6123_v45 = vadd.f32 %v9553_v0, %v6115_v24 }
 0xc76   : > { %v6091_v38 = vpop.f32.mrf.mxu2  ;;  %6533 = vmatpush.bf16.msra.mxu3 %v9277_v25  ;;  %6315 = vmatpush.bf16.msra.mxu0 %v9261_v62 }
 0xc77   : > { %v6092_v13 = vadd.f32 %v6091_v38, %v6073_v56  ;;  %v6127_v55 = vadd.f32 %v6123_v45, %v11252_v63  ;;  %v9276_v56 = vld [vmem:[#allocation28 + $0xc8] sm:$0xff] }
 0xc78   : > { %6372 = vmatpush.bf16.msrb.mxu1 %v9257_v11  ;;  %v9260_v45 = vld [vmem:[#allocation28 + $0x48] sm:$0xff] }
 0xc79   : > { %v6111_v30 = vadd.f32 %v6110_v61, %v6092_v13  ;;  %6135 = vadd.xlane.f32.xlu2 %v6127_v55  ;;  %v9275_v61 = vld [vmem:[#allocation28 + $0xc0] sm:$0xff] }
 0xc7a   : > { %6534 = vmatpush.bf16.msra.mxu3 %v9276_v56  ;;  %6316 = vmatpush.bf16.msra.mxu0 %v9260_v45 }
 0xc7b   : > { %v6116_v16 = vadd.f32 %v6111_v30, %v5478_v49  ;;  %v9259_v30 = vld [vmem:[#allocation28 + $0x40] sm:$0xff] }
 0xc7c   : > { %6373 = vmatpush.bf16.msrb.mxu1 %v9256_v48 }
 0xc7d   : > { %v6124_v43 = vadd.f32 %v9553_v0, %v6116_v16  ;;  %v9271_v0 = vld [vmem:[#allocation28 + $0xa0] sm:$0xff] }
 0xc7e   : > { %6452 = vmatpush.bf16.msrb.mxu2 %v9271_v0  ;;  %6535 = vmatpush.bf16.msra.mxu3 %v9275_v61 }
 0xc7f   : > { %v6128_v35 = vadd.f32 %v6124_v43, %v11255_v39  ;;  %v9554_v43 = vld [vmem:[#allocation24] ss:$0 sm:$0xff]  ;;  %6317 = vmatpush.bf16.msra.mxu0 %v9259_v30 }
 0xc80   : > { %6374 = vmatpush.bf16.msrb.mxu1 %v9255_v1 }
 0xc81   : > { %6137 = vadd.xlane.f32.xlu0 %v6128_v35  ;;  %6133 = vadd.xlane.f32.xlu2 %v6126_v6 }
 0xc82   : > { %6453 = vmatpush.bf16.msrb.mxu2 %v9270_v3 }
 0xc84   : > { %6375 = vmatpush.bf16.msrb.mxu1 %v9254_v28 }
 0xc86   : > { %6454 = vmatpush.bf16.msrb.mxu2 %v9269_v14 }
 0xc88   : > { %6376 = vmatpush.bf16.msrb.mxu1 %v9253_v31 }
 0xc8a   : > { %6455 = vmatpush.bf16.msrb.mxu2 %v9268_v50 }
 0xc8c   : > { %6377 = vmatpush.bf16.msrb.mxu1 %v9252_v57 }
 0xc8e   : > { %6456 = vmatpush.bf16.msrb.mxu2 %v9267_v5 }
 0xc90   : > { %6378 = vmatpush.bf16.msrb.mxu1 %v9251_v27 }
 0xcdc   : > { %v6132_v52 = vpop.xlane.xlu1 %6131 }
 0xcdd   : > { %v6139_v18 = vmul.f32 %v6132_v52, %v11159_v47 }
 0xcdf   : > { %v11469_v32 = vsub.f32 %v6125_v29, %v6139_v18 }
 0xce1   : > { %v6147_v63 = vmul.f32 %v11469_v32, %v11469_v32 }
 0xce3   : > { %6151 = vadd.xlane.f32.xlu2 %v6147_v63 }
 0xcec   : > { %v6136_v49 = vpop.xlane.xlu2 %6135 }
 0xced   : > { %v6141_v9 = vmul.f32 %v6136_v49, %v11159_v47 }
 0xcef   : > { %v11474_v36 = vsub.f32 %v6127_v55, %v6141_v9 }
 0xcf1   : > { %v6149_v20 = vmul.f32 %v11474_v36, %v11474_v36 }
 0xcf3   : > { %6155 = vadd.xlane.f32.xlu0 %v6149_v20 }
 0xcf4   : > { %v6138_v39 = vpop.xlane.xlu0 %6137  ;;  %v6134_v44 = vpop.xlane.xlu2 %6133 }
 0xcf5   : > { %v6142_v23 = vmul.f32 %v6138_v39, %v11159_v47  ;;  %v6140_v26 = vmul.f32 %v6134_v44, %v11159_v47 }
 0xcf7   : > { %v11480_v8 = vsub.f32 %v6128_v35, %v6142_v23  ;;  %v11482_v15 = vsub.f32 %v6126_v6, %v6140_v26 }
 0xcf9   : > { %v6150_v17 = vmul.f32 %v11480_v8, %v11480_v8  ;;  %v6148_v42 = vmul.f32 %v11482_v15, %v11482_v15 }
 0xcfb   : > { %6157 = vadd.xlane.f32.xlu1 %v6150_v17  ;;  %6153 = vadd.xlane.f32.xlu0 %v6148_v42 }
 0xd56   : > { %v6152_v59 = vpop.xlane.xlu2 %6151 }
 0xd57   : > { %v6159_v29 = vmul.f32 %v6152_v59, %v11159_v47 }
 0xd59   : > { %v6163_v2 = vadd.f32 1e-05, %v6159_v29 }
 0xd5b   : > { %9607 = vrsqrt.f32 %v6163_v2  ;;  %vm6173_vm15 = vweird.f32 %v6163_v2 }
 0xd61   : > { %v9608_v60 = vpop.eup %9607 }
 0xd62   : > { %v6168_v24 = vmul.f32 %v9608_v60, %v6163_v2  ;;  %vm6174_vm14 = vweird.f32 %v9608_v60 }
 0xd63   : > { %vm6175_vm0 = vmor %vm6173_vm15, %vm6174_vm14 }
 0xd64   : > { %v6169_v21 = vmul.f32 %v9608_v60, %v6168_v24 }
 0xd66   : > { %v6170_v38 = vmul.f32 0.5, %v6169_v21  ;;  %v6156_v41 = vpop.xlane.xlu0 %6155 }
 0xd67   : > { %v6161_v13 = vmul.f32 %v6156_v41, %v11159_v47 }
 0xd68   : > { %v6171_v55 = vsub.f32 1.5, %v6170_v38 }
 0xd69   : > { %v6165_v16 = vadd.f32 1e-05, %v6161_v13 }
 0xd6a   : > { %v6172_v12 = vmul.f32 %v9608_v60, %v6171_v55 }
 0xd6b   : > { %9609 = vrsqrt.f32 %v6165_v16  ;;  %vm6193_vm2 = vweird.f32 %v6165_v16 }
 0xd6c   : > { %v6176_v35 = vsel %vm6175_vm0, %v9608_v60, %v6172_v12 }
 0xd6d   : > { %v6207_v6 = vmul.f32 %v6176_v35, %v11469_v32 }
 0xd6e   : > { %v6158_v52 = vpop.xlane.xlu1 %6157  ;;  %v6154_v18 = vpop.xlane.xlu0 %6153 }
 0xd6f   : > { %v6214_v63 = vmul.f32 %v9554_v43, %v6207_v6  ;;  %v6162_v49 = vmul.f32 %v6158_v52, %v11159_v47  ;;  %v6160_v9 = vmul.f32 %v6154_v18, %v11159_v47 }
 0xd71   : > { %v9610_v20 = vpop.eup %9609  ;;  %v6166_v39 = vadd.f32 1e-05, %v6162_v49  ;;  %v6164_v44 = vadd.f32 1e-05, %v6160_v9  ;;  %v6221_v23 = vadd.f32 %v9555_v58, %v6214_v63 }
 0xd72   : > { %v6188_v26 = vmul.f32 %v9610_v20, %v6165_v16  ;;  %vm6194_vm1 = vweird.f32 %v9610_v20 }
 0xd73   : > { %9611 = vrsqrt.f32 %v6166_v39  ;;  %v6225_v17 = vpack.c.bf16 %v6221_v23, %v6221_v23  ;;  %vm6195_vm3 = vmor %vm6193_vm2, %vm6194_vm1  ;;  %vm6203_vm6 = vweird.f32 %v6166_v39  ;;  %vm6183_vm8 = vweird.f32 %v6164_v44 }
 0xd74   : > { %v6189_v42 = vmul.f32 %v9610_v20, %v6188_v26  ;;  %9613 = vrsqrt.f32 %v6164_v44 }
 0xd75   : > { %6379 = vmatmul.bf16.vlgmr.msrb.gmra.mxu1 %v6225_v17 }
 0xd76   : > { %v6190_v11 = vmul.f32 0.5, %v6189_v42 }
 0xd78   : > { %v6191_v32 = vsub.f32 1.5, %v6190_v11 }
 0xd79   : > { %v9612_v48 = vpop.eup %9611 }
 0xd7a   : > { %v9614_v1 = vpop.eup %9613  ;;  %v6192_v28 = vmul.f32 %v9610_v20, %v6191_v32  ;;  %v6198_v37 = vmul.f32 %v9612_v48, %v6166_v39  ;;  %vm6204_vm4 = vweird.f32 %v9612_v48 }
 0xd7b   : > { %v6178_v47 = vmul.f32 %v9614_v1, %v6164_v44  ;;  %vm6184_vm5 = vweird.f32 %v9614_v1  ;;  %vm6205_vm7 = vmor %vm6203_vm6, %vm6204_vm4 }
 0xd7c   : > { %v6196_v31 = vsel %vm6195_vm3, %v9610_v20, %v6192_v28  ;;  %v6199_v10 = vmul.f32 %v9612_v48, %v6198_v37  ;;  %vm6185_vm9 = vmor %vm6183_vm8, %vm6184_vm5 }
 0xd7d   : > { %v6209_v53 = vmul.f32 %v6196_v31, %v11474_v36  ;;  %v6179_v46 = vmul.f32 %v9614_v1, %v6178_v47 }
 0xd7e   : > { %v6200_v57 = vmul.f32 0.5, %v6199_v10 }
 0xd7f   : > { %v6216_v51 = vmul.f32 %v9554_v43, %v6209_v53  ;;  %v6180_v54 = vmul.f32 0.5, %v6179_v46 }
 0xd80   : > { %v6201_v4 = vsub.f32 1.5, %v6200_v57 }
 0xd81   : > { %v6181_v27 = vsub.f32 1.5, %v6180_v54  ;;  %v6223_v0 = vadd.f32 %v9555_v58, %v6216_v51 }
 0xd82   : > { %v6202_v40 = vmul.f32 %v9612_v48, %v6201_v4 }
 0xd83   : > { %v6182_v19 = vmul.f32 %v9614_v1, %v6181_v27  ;;  %v6227_v3 = vpack.c.bf16 %v6223_v0, %v6223_v0 }
 0xd84   : > { %v6206_v59 = vsel %vm6205_vm7, %v9612_v48, %v6202_v40 }
 0xd85   : > { %v6210_v29 = vmul.f32 %v6206_v59, %v11480_v8  ;;  %v6186_v36 = vsel %vm6185_vm9, %v9614_v1, %v6182_v19  ;;  %6457 = vmatmul.bf16.vlgmr.msrb.gmra.mxu2 %v6227_v3  ;;  %v9556_v8 = vld [vmem:[%s11593_s29] ss:$0 sm:$0xff] }
 0xd86   : > { %v6208_v2 = vmul.f32 %v6186_v36, %v11482_v15 }
 0xd87   : > { %v6217_v34 = vmul.f32 %v9554_v43, %v6210_v29 }
 0xd88   : > { %v6215_v33 = vmul.f32 %v9554_v43, %v6208_v2 }
 0xd89   : > { %v6224_v14 = vadd.f32 %v9555_v58, %v6217_v34 }
 0xd8a   : > { %v6222_v7 = vadd.f32 %v9555_v58, %v6215_v33 }
 0xd8b   : > { %v6228_v22 = vpack.c.bf16 %v6224_v14, %v6224_v14 }
 0xd8c   : > { %v6226_v50 = vpack.c.bf16 %v6222_v7, %v6222_v7 }
 0xd8d   : > { %6536 = vmatmul.bf16.vlgmr.msra.gmra.mxu3 %v6228_v22 }
 0xd8e   : > { %6318 = vmatmul.bf16.vlgmr.msra.gmra.mxu0 %v6226_v50 }
 0xdf2   : > { %v6380_v60 = vpop.f32.mrf.mxu1 }
 0xdfa   : > { %v6382_v25 = vpop.f32.mrf.mxu1 }
 0xe08   : > { %v6458_v62 = vpop.f32.mrf.mxu2 }
 0xe0b   : > { %v6319_v5 = vpop.f32.mrf.mxu0 }
 0xe0c   : > { %v6381_v24 = vadd.f32 %v6380_v60, %v6319_v5 }
 0xe0e   : > { %v6462_v21 = vadd.f32 %v6458_v62, %v6381_v24 }
 0xe10   : > { %v6460_v56 = vpop.f32.mrf.mxu2  ;;  %v6537_v15 = vpop.f32.mrf.mxu3 }
 0xe11   : > { %v6541_v45 = vadd.f32 %v6537_v15, %v6462_v21 }
 0xe13   : > { %v6546_v38 = vadd.f32 %v9556_v8, %v6541_v45  ;;  %v6321_v41 = vpop.f32.mrf.mxu0 }
 0xe15   : > { %6547 = vst [vmem:[#allocation30] sm:$0xff] %v6546_v38 }
 0xe18   : > { %v6539_v13 = vpop.f32.mrf.mxu3 }
 0xe19 PF: > { %p9426_p6 = scmp.eq.s32.totalorder %s10355_s4, 7  ;;  %s10220_s30 = smov [#allocation30]  }
 0xe1a   : > { %s6554_s19 = sshll.u32 %s10220_s30, 4  ;;  %s11594_s10 = sld [smem:[#allocation59_spill]]  ;;  %s6555_s19 = int_to_ptr.vmem [resolvable:$true] %s6554_s19 }
 0xe20   : > { %s6556_s14 = sshll.u32 %s11594_s10, 4  ;;  %s6557_s14 = int_to_ptr.hbm [resolvable:$true] %s6556_s14 }
 0xe21   : > { %9344 = dma.vmem_to_hbm [thread:$0]  (%p9426_p6), %s6555_s19, 128, %s6557_s14, [#allocation6]  }
 0xe22   : > { %10176 = dma.done.wait (%p9426_p6), [#allocation6], 128  }
 0xe23   : > { %10178 = vsyncadd (%p9426_p6), [#allocation6], 4294967168 }
 0xe24 PF: > { %s11595_s22 = sld [smem:[#allocation41_spill]]  ;;  %p40_p12 = scmp.ge.s32.totalorder %s10401_s5, 10  }
 0xe25   : > { %s11596_s26 = sld [smem:[#allocation43_spill]]  ;;  %s11597_s2 = smov %s10185_s25 }
 0xe26   : > { %s11599_s27 = smov %s10401_s5  ;;  %42 = sbr.rel (!%p40_p12) target bundleno = 29 (0x1d), region = 227 }
 0xe2a   : > { %s11598_s25 = smov %s11595_s22 }
 0xe2b   :  { %6570 = vsyncpa [#allocation5], 1 }
 0xe2c   :  { %6572 = vsyncpa [#allocation5 + $0x1], 1 }
 0xe2d   :  { %6573 = vsyncpa [#allocation8], 1 }
 0xe2e   :  { %6575 = vsyncpa [#allocation8 + $0x1], 1 }
 0xe2f   :  { %6576 = vsyncpa [#allocation11], 1 }
 0xe30   :  { %6577 = vsyncpa [#allocation14], 1 }
 0xe31   :  { %6578 = vsyncpa [#allocation17], 1 }
 0xe32   :  { %6579 = vsyncpa [#allocation20], 1 }
 0xe33   :  { %6580 = vsyncpa [#allocation23], 1 }
 0xe34   :  { %6581 = vsyncpa [#allocation26], 1 }
 0xe35   :  { %6582 = vsyncpa [#allocation29], 1 }
 0xe36   :  { %6583 = vsyncpa [#allocation6], 1 }
 0xe37   :  { %6585 = vsyncpa [#allocation6 + $0x1], 1 }

</bundles_post_ra>
